<compile_context>
chip_gen: v7x
topology: tpu7x:2x2x1
jax: 0.10.0
libtpu: 0.0.40
codegen_flags: <defaults>
</compile_context>

<pallas_src>
import jax
import jax.numpy as jnp
from jax.experimental import pallas as pl
from jax.experimental.pallas import tpu as pltpu

# Fixed CNN4 geometry (fc = Linear(128*8*8, 10) forces an 8x8 spatial input).
H = W = 8
HW = H * W
CIN, C1, C2 = 3, 64, 128
K1 = 9 * CIN                  # conv1 im2col contraction depth (27)
NCLS = 10
NLANE = 128                   # logits padded to a full lane tile
BB = 16                       # images per grid step (batch block; bf16-tile exact)


def cnn4_fused_kernel(x_ref, w1_ref, b1_ref, w2_ref, b2_ref, wfc_ref, bfc_ref,
                      o_ref, ap_ref, acc2_ref, fc_ref):
    # x_ref   : (HW, BB, K1)  bf16  conv1 im2col patches, pixel-major rows
    # w1_ref  : (K1, C1)      bf16
    # b1_ref  : (1, C1)       f32
    # w2_ref  : (9, C1, C2)   bf16  conv2 weight per tap (kh*3+kw)
    # b2_ref  : (1, C2)       f32
    # wfc_ref : (HW*C2, NLANE) bf16  fc weight, row order p*C2+c, classes in lanes 0..9
    # bfc_ref : (1, NLANE)    f32
    # o_ref   : (BB, NLANE)   f32   logits, lane-dense (sliced to 10 outside)
    # ap_ref  : (H+2, W+2, BB, C1) bf16 VMEM   zero-padded conv1 activation slab
    # acc2_ref: (HW*BB, C2)   f32  VMEM        conv2 accumulator
    # fc_ref  : (BB, HW*C2)   bf16 VMEM        flattened conv2 activation (FC staging)

    # Zero only the pad border of the activation slab; the interior is fully
    # rewritten below.  Done every step, so it is safe on both v7x cores.
    zrow = jnp.zeros((1, W + 2, BB, C1), jnp.bfloat16)
    zcol = jnp.zeros((H, 1, BB, C1), jnp.bfloat16)
    ap_ref[0:1] = zrow
    ap_ref[H + 1:H + 2] = zrow
    ap_ref[1:1 + H, 0:1] = zcol
    ap_ref[1:1 + H, W + 1:W + 2] = zcol

    # ---- conv1: one im2col matmul per pixel row, bias + ReLU, bf16 slab -----
    b1v = b1_ref[...]
    w1v = w1_ref[...]
    for h in range(H):
        patch = x_ref[h * W:(h + 1) * W]                        # (W, BB, K1) bf16
        d = jnp.dot(patch.reshape(W * BB, K1), w1v,
                    preferred_element_type=jnp.float32)          # (W*BB, C1) f32
        a1 = jnp.maximum(d + b1v, 0.0).astype(jnp.bfloat16)
        ap_ref[1 + h:2 + h, 1:1 + W] = a1.reshape(1, W, BB, C1)

    # ---- conv2: 9-tap stencil, bf16 MXU operands, f32 VMEM accumulator ------
    for t in range(9):
        kh, kw = t // 3, t % 3
        patch = ap_ref[kh:kh + H, kw:kw + W]                     # (H, W, BB, C1) bf16
        d = jnp.dot(patch.reshape(HW * BB, C1), w2_ref[t],
                    preferred_element_type=jnp.float32)          # (HW*BB, C2) f32
        if t == 0:
            acc2_ref[...] = d
        else:
            acc2_ref[...] += d

    # ---- bias + ReLU + flatten into the (BB, 8192) FC staging, per pixel ----
    # Pixel-major rows make each per-pixel slice a contiguous (BB, C2) block,
    # stored at 128-aligned lane offset p*C2 (torch's CHW flatten order is
    # absorbed into the host-side FC-weight permutation instead).
    b2v = b2_ref[...]
    for p in range(HW):
        blk = acc2_ref[p * BB:(p + 1) * BB, :]                   # (BB, C2) f32
        blk = jnp.maximum(blk + b2v, 0.0).astype(jnp.bfloat16)
        fc_ref[:, p * C2:(p + 1) * C2] = blk

    # ---- FC: single (BB, 8192) x (8192, 128) MXU matmul, lane-dense store ---
    logits = jnp.dot(fc_ref[...], wfc_ref[...],
                     preferred_element_type=jnp.float32)          # (BB, NLANE)
    o_ref[...] = (logits + bfc_ref[...]).astype(o_ref.dtype)


def prepare_params(w1_hwio, b1, w2_hwio, b2, wfc, bfc):
    """One-time host-side weight prep (off the kernel's critical path)."""
    w1_2d = w1_hwio.reshape(K1, C1).astype(jnp.bfloat16)                 # (27, 64)
    w2_t = w2_hwio.reshape(9, C1, C2).astype(jnp.bfloat16)               # (9, 64, 128)
    # torch fc flatten index is c*HW + p; reorder rows to p*C2 + c so the
    # kernel's pixel-major/channel-lane staging maps straight onto it.
    wfc2d = wfc.reshape(NCLS, C2, HW).transpose(2, 1, 0).reshape(HW * C2, NCLS)
    wfc2d = jnp.pad(wfc2d, ((0, 0), (0, NLANE - NCLS))).astype(jnp.bfloat16)
    bfc_pad = jnp.pad(bfc.reshape(1, NCLS), ((0, 0), (0, NLANE - NCLS)))
    return (w1_2d, b1.reshape(1, C1), w2_t, b2.reshape(1, C2), wfc2d, bfc_pad)


@jax.jit
def cnn4_forward(x_nchw, prepped):
    w1_2d, b1, w2_t, b2, wfc2d, bfc_pad = prepped
    B = x_nchw.shape[0]
    nblk = (B + BB - 1) // BB
    Bpad = nblk * BB
    # Pad batch to a multiple of BB and build conv1 im2col patches host-side
    # (tiny XLA ops, fused off the kernel's critical path).
    # Layout: (pixel, batch, tap*cin) with tap = kh*3 + kw (matches w1 HWIO flatten).
    xp = jnp.pad(x_nchw, ((0, Bpad - B), (0, 0), (1, 1), (1, 1)))        # (Bp,3,10,10)
    taps = jnp.stack([xp[:, :, kh:kh + H, kw:kw + W]
                      for kh in range(3) for kw in range(3)], axis=0)    # (9,Bp,3,8,8)
    xcol = taps.transpose(3, 4, 1, 0, 2).reshape(HW, Bpad, K1).astype(jnp.bfloat16)

    out = pl.pallas_call(
        cnn4_fused_kernel,
        out_shape=jax.ShapeDtypeStruct((Bpad, NLANE), jnp.float32),
        grid=(nblk,),
        in_specs=[
            pl.BlockSpec((HW, BB, K1), lambda i: (0, i, 0)),     # conv1 patches
            pl.BlockSpec((K1, C1), lambda i: (0, 0)),            # w1
            pl.BlockSpec((1, C1), lambda i: (0, 0)),             # b1
            pl.BlockSpec((9, C1, C2), lambda i: (0, 0, 0)),      # w2 (per-tap)
            pl.BlockSpec((1, C2), lambda i: (0, 0)),             # b2
            pl.BlockSpec((HW * C2, NLANE), lambda i: (0, 0)),    # wfc (permuted+padded)
            pl.BlockSpec((1, NLANE), lambda i: (0, 0)),          # bfc (padded)
        ],
        out_specs=pl.BlockSpec((BB, NLANE), lambda i: (i, 0)),
        scratch_shapes=[
            pltpu.VMEM((H + 2, W + 2, BB, C1), jnp.bfloat16),    # padded conv1 act
            pltpu.VMEM((HW * BB, C2), jnp.float32),              # conv2 accumulator
            pltpu.VMEM((BB, HW * C2), jnp.bfloat16),             # FC staging
        ],
        compiler_params=pltpu.CompilerParams(
            dimension_semantics=("parallel",),
            vmem_limit_bytes=32 * 1024 * 1024),
    )(xcol, w1_2d, b1, w2_t, b2, wfc2d, bfc_pad)
    return out[:B, :NCLS]


if __name__ == "__main__":
    key = jax.random.PRNGKey(0)
    ks = jax.random.split(key, 7)

    B = 2
    x = jax.random.normal(ks[0], (B, CIN, H, W), jnp.float32)

    # Deterministic parameters (conv weights stored HWIO; fc weight in torch
    # (out_features, in_features) layout with in_features flattened as C,H,W).
    w1 = jax.random.normal(ks[1], (3, 3, CIN, C1), jnp.float32) * (1.0 / (9 * CIN) ** 0.5)
    b1 = jax.random.normal(ks[2], (C1,), jnp.float32) * 0.01
    w2 = jax.random.normal(ks[3], (3, 3, C1, C2), jnp.float32) * (1.0 / (9 * C1) ** 0.5)
    b2 = jax.random.normal(ks[4], (C2,), jnp.float32) * 0.01
    wfc = jax.random.normal(ks[5], (NCLS, C2 * HW), jnp.float32) * (1.0 / (C2 * HW) ** 0.5)
    bfc = jax.random.normal(ks[6], (NCLS,), jnp.float32) * 0.01

    prepped = prepare_params(w1, b1, w2, b2, wfc, bfc)
    out = cnn4_forward(x, prepped)
    jax.block_until_ready(out)
    assert out.shape == (B, NCLS) and out.dtype == jnp.float32

    # Pure-JAX f32 reference with the exact PyTorch semantics (incl. CHW flatten).
    def ref_forward(x_nchw):
        xh = jnp.transpose(x_nchw, (0, 2, 3, 1))
        y = jax.lax.conv_general_dilated(
            xh, w1, (1, 1), "SAME", dimension_numbers=("NHWC", "HWIO", "NHWC"),
            precision=jax.lax.Precision.HIGHEST) + b1
        y = jnp.maximum(y, 0.0)
        y = jax.lax.conv_general_dilated(
            y, w2, (1, 1), "SAME", dimension_numbers=("NHWC", "HWIO", "NHWC"),
            precision=jax.lax.Precision.HIGHEST) + b2
        y = jnp.maximum(y, 0.0)
        flat = jnp.transpose(y, (0, 3, 1, 2)).reshape(x_nchw.shape[0], -1)
        return jnp.dot(flat, wfc.T, precision=jax.lax.Precision.HIGHEST) + bfc

    ref = ref_forward(x)
    err = float(jnp.max(jnp.abs(out - ref)))
    assert jnp.allclose(out, ref, rtol=3e-2, atol=3e-2), err
    print("KERNEL_OK")
</pallas_src>

<mosaic_0001>
module attributes {stable_mosaic.version = 11 : i64} {
  func.func @cnn4_fused_kernel(%arg0: i32, %arg1: memref<64x16x27xbf16, #tpu.memory_space<vmem>>, %arg2: memref<27x64xbf16, #tpu.memory_space<vmem>>, %arg3: memref<1x64xf32, #tpu.memory_space<vmem>>, %arg4: memref<9x64x128xbf16, #tpu.memory_space<vmem>>, %arg5: memref<1x128xf32, #tpu.memory_space<vmem>>, %arg6: memref<8192x128xbf16, #tpu.memory_space<vmem>>, %arg7: memref<1x128xf32, #tpu.memory_space<vmem>>, %arg8: memref<16x128xf32, #tpu.memory_space<vmem>>, %arg9: memref<10x10x16x64xbf16, #tpu.memory_space<vmem>>, %arg10: memref<1024x128xf32, #tpu.memory_space<vmem>>, %arg11: memref<16x8192xbf16, #tpu.memory_space<vmem>>) attributes {dimension_semantics = [#tpu.dimension_semantics<parallel>], iteration_bounds = array<i64: 1>, scalar_prefetch = 0 : i64, scratch_operands = 3 : i64, tpu.core_type = #tpu.core_type<tc>, window_params = [{transform_indices = @transform_0, window_bounds = array<i64: 64, 16, 27>}, {pipeline_mode = #tpu.pipeline_mode<synchronous>, transform_indices = @transform_1, window_bounds = array<i64: 27, 64>}, {pipeline_mode = #tpu.pipeline_mode<synchronous>, transform_indices = @transform_2, window_bounds = array<i64: 1, 64>}, {pipeline_mode = #tpu.pipeline_mode<synchronous>, transform_indices = @transform_3, window_bounds = array<i64: 9, 64, 128>}, {pipeline_mode = #tpu.pipeline_mode<synchronous>, transform_indices = @transform_4, window_bounds = array<i64: 1, 128>}, {pipeline_mode = #tpu.pipeline_mode<synchronous>, transform_indices = @transform_5, window_bounds = array<i64: 8192, 128>}, {pipeline_mode = #tpu.pipeline_mode<synchronous>, transform_indices = @transform_6, window_bounds = array<i64: 1, 128>}, {transform_indices = @transform_7, window_bounds = array<i64: 16, 128>}]} {
    %cst = arith.constant 0.000000e+00 : bf16
    %0 = vector.broadcast %cst : bf16 to vector<1x10x16x64xbf16>
    %cst_0 = arith.constant 0.000000e+00 : bf16
    %1 = vector.broadcast %cst_0 : bf16 to vector<8x1x16x64xbf16>
    %c0 = arith.constant 0 : index
    %c0_1 = arith.constant 0 : index
    %c0_2 = arith.constant 0 : index
    %c0_3 = arith.constant 0 : index
    %2 = vector.load %arg9[%c0, %c0_1, %c0_2, %c0_3] : memref<10x10x16x64xbf16, #tpu.memory_space<vmem>>, vector<1x10x16x64xbf16>
    tpu.vector_store %arg9[%c0, %c0_1, %c0_2, %c0_3], %0 {strides = array<i32>} : memref<10x10x16x64xbf16, #tpu.memory_space<vmem>>, vector<1x10x16x64xbf16>,
    %c9 = arith.constant 9 : index
    %c0_4 = arith.constant 0 : index
    %c0_5 = arith.constant 0 : index
    %c0_6 = arith.constant 0 : index
    %3 = vector.load %arg9[%c9, %c0_4, %c0_5, %c0_6] : memref<10x10x16x64xbf16, #tpu.memory_space<vmem>>, vector<1x10x16x64xbf16>
    tpu.vector_store %arg9[%c9, %c0_4, %c0_5, %c0_6], %0 {strides = array<i32>} : memref<10x10x16x64xbf16, #tpu.memory_space<vmem>>, vector<1x10x16x64xbf16>,
    %c1 = arith.constant 1 : index
    %c0_7 = arith.constant 0 : index
    %c0_8 = arith.constant 0 : index
    %c0_9 = arith.constant 0 : index
    %4 = vector.load %arg9[%c1, %c0_7, %c0_8, %c0_9] : memref<10x10x16x64xbf16, #tpu.memory_space<vmem>>, vector<8x1x16x64xbf16>
    tpu.vector_store %arg9[%c1, %c0_7, %c0_8, %c0_9], %1 {strides = array<i32>} : memref<10x10x16x64xbf16, #tpu.memory_space<vmem>>, vector<8x1x16x64xbf16>,
    %c1_10 = arith.constant 1 : index
    %c9_11 = arith.constant 9 : index
    %c0_12 = arith.constant 0 : index
    %c0_13 = arith.constant 0 : index
    %5 = vector.load %arg9[%c1_10, %c9_11, %c0_12, %c0_13] : memref<10x10x16x64xbf16, #tpu.memory_space<vmem>>, vector<8x1x16x64xbf16>
    tpu.vector_store %arg9[%c1_10, %c9_11, %c0_12, %c0_13], %1 {strides = array<i32>} : memref<10x10x16x64xbf16, #tpu.memory_space<vmem>>, vector<8x1x16x64xbf16>,
    %c0_14 = arith.constant 0 : index
    %c0_15 = arith.constant 0 : index
    %6 = vector.load %arg3[%c0_14, %c0_15] : memref<1x64xf32, #tpu.memory_space<vmem>>, vector<1x64xf32>
    %c0_16 = arith.constant 0 : index
    %c0_17 = arith.constant 0 : index
    %7 = vector.load %arg2[%c0_16, %c0_17] : memref<27x64xbf16, #tpu.memory_space<vmem>>, vector<27x64xbf16>
    %c0_18 = arith.constant 0 : index
    %c0_19 = arith.constant 0 : index
    %c0_20 = arith.constant 0 : index
    %8 = vector.load %arg1[%c0_18, %c0_19, %c0_20] : memref<64x16x27xbf16, #tpu.memory_space<vmem>>, vector<8x16x27xbf16>
    %9 = vector.shape_cast %8 : vector<8x16x27xbf16> to vector<128x27xbf16>
    %cst_21 = arith.constant dense<0.000000e+00> : vector<128x64xf32>
    %10 = tpu.matmul %9, %7, %cst_21 {dimension_numbers = #tpu.dot_dimension_numbers<[1], [0], [0], [1], [0, 0, 1, 1], [], []>} : vector<128x27xbf16>, vector<27x64xbf16>, vector<128x64xf32> -> vector<128x64xf32>
    %11 = vector.broadcast %6 : vector<1x64xf32> to vector<128x64xf32>
    %12 = arith.addf %10, %11 : vector<128x64xf32>
    %cst_22 = arith.constant 0.000000e+00 : f32
    %13 = vector.broadcast %cst_22 : f32 to vector<128x64xf32>
    %14 = arith.maximumf %12, %13 : vector<128x64xf32>
    %15 = arith.truncf %14 : vector<128x64xf32> to vector<128x64xbf16>
    %16 = vector.shape_cast %15 : vector<128x64xbf16> to vector<1x8x16x64xbf16>
    %c1_23 = arith.constant 1 : index
    %c1_24 = arith.constant 1 : index
    %c0_25 = arith.constant 0 : index
    %c0_26 = arith.constant 0 : index
    %17 = vector.load %arg9[%c1_23, %c1_24, %c0_25, %c0_26] : memref<10x10x16x64xbf16, #tpu.memory_space<vmem>>, vector<1x8x16x64xbf16>
    tpu.vector_store %arg9[%c1_23, %c1_24, %c0_25, %c0_26], %16 {strides = array<i32>} : memref<10x10x16x64xbf16, #tpu.memory_space<vmem>>, vector<1x8x16x64xbf16>,
    %c8 = arith.constant 8 : index
    %c0_27 = arith.constant 0 : index
    %c0_28 = arith.constant 0 : index
    %18 = vector.load %arg1[%c8, %c0_27, %c0_28] : memref<64x16x27xbf16, #tpu.memory_space<vmem>>, vector<8x16x27xbf16>
    %19 = vector.shape_cast %18 : vector<8x16x27xbf16> to vector<128x27xbf16>
    %cst_29 = arith.constant dense<0.000000e+00> : vector<128x64xf32>
    %20 = tpu.matmul %19, %7, %cst_29 {dimension_numbers = #tpu.dot_dimension_numbers<[1], [0], [0], [1], [0, 0, 1, 1], [], []>} : vector<128x27xbf16>, vector<27x64xbf16>, vector<128x64xf32> -> vector<128x64xf32>
    %21 = vector.broadcast %6 : vector<1x64xf32> to vector<128x64xf32>
    %22 = arith.addf %20, %21 : vector<128x64xf32>
    %cst_30 = arith.constant 0.000000e+00 : f32
    %23 = vector.broadcast %cst_30 : f32 to vector<128x64xf32>
    %24 = arith.maximumf %22, %23 : vector<128x64xf32>
    %25 = arith.truncf %24 : vector<128x64xf32> to vector<128x64xbf16>
    %26 = vector.shape_cast %25 : vector<128x64xbf16> to vector<1x8x16x64xbf16>
    %c2 = arith.constant 2 : index
    %c1_31 = arith.constant 1 : index
    %c0_32 = arith.constant 0 : index
    %c0_33 = arith.constant 0 : index
    %27 = vector.load %arg9[%c2, %c1_31, %c0_32, %c0_33] : memref<10x10x16x64xbf16, #tpu.memory_space<vmem>>, vector<1x8x16x64xbf16>
    tpu.vector_store %arg9[%c2, %c1_31, %c0_32, %c0_33], %26 {strides = array<i32>} : memref<10x10x16x64xbf16, #tpu.memory_space<vmem>>, vector<1x8x16x64xbf16>,
    %c16 = arith.constant 16 : index
    %c0_34 = arith.constant 0 : index
    %c0_35 = arith.constant 0 : index
    %28 = vector.load %arg1[%c16, %c0_34, %c0_35] : memref<64x16x27xbf16, #tpu.memory_space<vmem>>, vector<8x16x27xbf16>
    %29 = vector.shape_cast %28 : vector<8x16x27xbf16> to vector<128x27xbf16>
    %cst_36 = arith.constant dense<0.000000e+00> : vector<128x64xf32>
    %30 = tpu.matmul %29, %7, %cst_36 {dimension_numbers = #tpu.dot_dimension_numbers<[1], [0], [0], [1], [0, 0, 1, 1], [], []>} : vector<128x27xbf16>, vector<27x64xbf16>, vector<128x64xf32> -> vector<128x64xf32>
    %31 = vector.broadcast %6 : vector<1x64xf32> to vector<128x64xf32>
    %32 = arith.addf %30, %31 : vector<128x64xf32>
    %cst_37 = arith.constant 0.000000e+00 : f32
    %33 = vector.broadcast %cst_37 : f32 to vector<128x64xf32>
    %34 = arith.maximumf %32, %33 : vector<128x64xf32>
    %35 = arith.truncf %34 : vector<128x64xf32> to vector<128x64xbf16>
    %36 = vector.shape_cast %35 : vector<128x64xbf16> to vector<1x8x16x64xbf16>
    %c3 = arith.constant 3 : index
    %c1_38 = arith.constant 1 : index
    %c0_39 = arith.constant 0 : index
    %c0_40 = arith.constant 0 : index
    %37 = vector.load %arg9[%c3, %c1_38, %c0_39, %c0_40] : memref<10x10x16x64xbf16, #tpu.memory_space<vmem>>, vector<1x8x16x64xbf16>
    tpu.vector_store %arg9[%c3, %c1_38, %c0_39, %c0_40], %36 {strides = array<i32>} : memref<10x10x16x64xbf16, #tpu.memory_space<vmem>>, vector<1x8x16x64xbf16>,
    %c24 = arith.constant 24 : index
    %c0_41 = arith.constant 0 : index
    %c0_42 = arith.constant 0 : index
    %38 = vector.load %arg1[%c24, %c0_41, %c0_42] : memref<64x16x27xbf16, #tpu.memory_space<vmem>>, vector<8x16x27xbf16>
    %39 = vector.shape_cast %38 : vector<8x16x27xbf16> to vector<128x27xbf16>
    %cst_43 = arith.constant dense<0.000000e+00> : vector<128x64xf32>
    %40 = tpu.matmul %39, %7, %cst_43 {dimension_numbers = #tpu.dot_dimension_numbers<[1], [0], [0], [1], [0, 0, 1, 1], [], []>} : vector<128x27xbf16>, vector<27x64xbf16>, vector<128x64xf32> -> vector<128x64xf32>
    %41 = vector.broadcast %6 : vector<1x64xf32> to vector<128x64xf32>
    %42 = arith.addf %40, %41 : vector<128x64xf32>
    %cst_44 = arith.constant 0.000000e+00 : f32
    %43 = vector.broadcast %cst_44 : f32 to vector<128x64xf32>
    %44 = arith.maximumf %42, %43 : vector<128x64xf32>
    %45 = arith.truncf %44 : vector<128x64xf32> to vector<128x64xbf16>
    %46 = vector.shape_cast %45 : vector<128x64xbf16> to vector<1x8x16x64xbf16>
    %c4 = arith.constant 4 : index
    %c1_45 = arith.constant 1 : index
    %c0_46 = arith.constant 0 : index
    %c0_47 = arith.constant 0 : index
    %47 = vector.load %arg9[%c4, %c1_45, %c0_46, %c0_47] : memref<10x10x16x64xbf16, #tpu.memory_space<vmem>>, vector<1x8x16x64xbf16>
    tpu.vector_store %arg9[%c4, %c1_45, %c0_46, %c0_47], %46 {strides = array<i32>} : memref<10x10x16x64xbf16, #tpu.memory_space<vmem>>, vector<1x8x16x64xbf16>,
    %c32 = arith.constant 32 : index
    %c0_48 = arith.constant 0 : index
    %c0_49 = arith.constant 0 : index
    %48 = vector.load %arg1[%c32, %c0_48, %c0_49] : memref<64x16x27xbf16, #tpu.memory_space<vmem>>, vector<8x16x27xbf16>
    %49 = vector.shape_cast %48 : vector<8x16x27xbf16> to vector<128x27xbf16>
    %cst_50 = arith.constant dense<0.000000e+00> : vector<128x64xf32>
    %50 = tpu.matmul %49, %7, %cst_50 {dimension_numbers = #tpu.dot_dimension_numbers<[1], [0], [0], [1], [0, 0, 1, 1], [], []>} : vector<128x27xbf16>, vector<27x64xbf16>, vector<128x64xf32> -> vector<128x64xf32>
    %51 = vector.broadcast %6 : vector<1x64xf32> to vector<128x64xf32>
    %52 = arith.addf %50, %51 : vector<128x64xf32>
    %cst_51 = arith.constant 0.000000e+00 : f32
    %53 = vector.broadcast %cst_51 : f32 to vector<128x64xf32>
    %54 = arith.maximumf %52, %53 : vector<128x64xf32>
    %55 = arith.truncf %54 : vector<128x64xf32> to vector<128x64xbf16>
    %56 = vector.shape_cast %55 : vector<128x64xbf16> to vector<1x8x16x64xbf16>
    %c5 = arith.constant 5 : index
    %c1_52 = arith.constant 1 : index
    %c0_53 = arith.constant 0 : index
    %c0_54 = arith.constant 0 : index
    %57 = vector.load %arg9[%c5, %c1_52, %c0_53, %c0_54] : memref<10x10x16x64xbf16, #tpu.memory_space<vmem>>, vector<1x8x16x64xbf16>
    tpu.vector_store %arg9[%c5, %c1_52, %c0_53, %c0_54], %56 {strides = array<i32>} : memref<10x10x16x64xbf16, #tpu.memory_space<vmem>>, vector<1x8x16x64xbf16>,
    %c40 = arith.constant 40 : index
    %c0_55 = arith.constant 0 : index
    %c0_56 = arith.constant 0 : index
    %58 = vector.load %arg1[%c40, %c0_55, %c0_56] : memref<64x16x27xbf16, #tpu.memory_space<vmem>>, vector<8x16x27xbf16>
    %59 = vector.shape_cast %58 : vector<8x16x27xbf16> to vector<128x27xbf16>
    %cst_57 = arith.constant dense<0.000000e+00> : vector<128x64xf32>
    %60 = tpu.matmul %59, %7, %cst_57 {dimension_numbers = #tpu.dot_dimension_numbers<[1], [0], [0], [1], [0, 0, 1, 1], [], []>} : vector<128x27xbf16>, vector<27x64xbf16>, vector<128x64xf32> -> vector<128x64xf32>
    %61 = vector.broadcast %6 : vector<1x64xf32> to vector<128x64xf32>
    %62 = arith.addf %60, %61 : vector<128x64xf32>
    %cst_58 = arith.constant 0.000000e+00 : f32
    %63 = vector.broadcast %cst_58 : f32 to vector<128x64xf32>
    %64 = arith.maximumf %62, %63 : vector<128x64xf32>
    %65 = arith.truncf %64 : vector<128x64xf32> to vector<128x64xbf16>
    %66 = vector.shape_cast %65 : vector<128x64xbf16> to vector<1x8x16x64xbf16>
    %c6 = arith.constant 6 : index
    %c1_59 = arith.constant 1 : index
    %c0_60 = arith.constant 0 : index
    %c0_61 = arith.constant 0 : index
    %67 = vector.load %arg9[%c6, %c1_59, %c0_60, %c0_61] : memref<10x10x16x64xbf16, #tpu.memory_space<vmem>>, vector<1x8x16x64xbf16>
    tpu.vector_store %arg9[%c6, %c1_59, %c0_60, %c0_61], %66 {strides = array<i32>} : memref<10x10x16x64xbf16, #tpu.memory_space<vmem>>, vector<1x8x16x64xbf16>,
    %c48 = arith.constant 48 : index
    %c0_62 = arith.constant 0 : index
    %c0_63 = arith.constant 0 : index
    %68 = vector.load %arg1[%c48, %c0_62, %c0_63] : memref<64x16x27xbf16, #tpu.memory_space<vmem>>, vector<8x16x27xbf16>
    %69 = vector.shape_cast %68 : vector<8x16x27xbf16> to vector<128x27xbf16>
    %cst_64 = arith.constant dense<0.000000e+00> : vector<128x64xf32>
    %70 = tpu.matmul %69, %7, %cst_64 {dimension_numbers = #tpu.dot_dimension_numbers<[1], [0], [0], [1], [0, 0, 1, 1], [], []>} : vector<128x27xbf16>, vector<27x64xbf16>, vector<128x64xf32> -> vector<128x64xf32>
    %71 = vector.broadcast %6 : vector<1x64xf32> to vector<128x64xf32>
    %72 = arith.addf %70, %71 : vector<128x64xf32>
    %cst_65 = arith.constant 0.000000e+00 : f32
    %73 = vector.broadcast %cst_65 : f32 to vector<128x64xf32>
    %74 = arith.maximumf %72, %73 : vector<128x64xf32>
    %75 = arith.truncf %74 : vector<128x64xf32> to vector<128x64xbf16>
    %76 = vector.shape_cast %75 : vector<128x64xbf16> to vector<1x8x16x64xbf16>
    %c7 = arith.constant 7 : index
    %c1_66 = arith.constant 1 : index
    %c0_67 = arith.constant 0 : index
    %c0_68 = arith.constant 0 : index
    %77 = vector.load %arg9[%c7, %c1_66, %c0_67, %c0_68] : memref<10x10x16x64xbf16, #tpu.memory_space<vmem>>, vector<1x8x16x64xbf16>
    tpu.vector_store %arg9[%c7, %c1_66, %c0_67, %c0_68], %76 {strides = array<i32>} : memref<10x10x16x64xbf16, #tpu.memory_space<vmem>>, vector<1x8x16x64xbf16>,
    %c56 = arith.constant 56 : index
    %c0_69 = arith.constant 0 : index
    %c0_70 = arith.constant 0 : index
    %78 = vector.load %arg1[%c56, %c0_69, %c0_70] : memref<64x16x27xbf16, #tpu.memory_space<vmem>>, vector<8x16x27xbf16>
    %79 = vector.shape_cast %78 : vector<8x16x27xbf16> to vector<128x27xbf16>
    %cst_71 = arith.constant dense<0.000000e+00> : vector<128x64xf32>
    %80 = tpu.matmul %79, %7, %cst_71 {dimension_numbers = #tpu.dot_dimension_numbers<[1], [0], [0], [1], [0, 0, 1, 1], [], []>} : vector<128x27xbf16>, vector<27x64xbf16>, vector<128x64xf32> -> vector<128x64xf32>
    %81 = vector.broadcast %6 : vector<1x64xf32> to vector<128x64xf32>
    %82 = arith.addf %80, %81 : vector<128x64xf32>
    %cst_72 = arith.constant 0.000000e+00 : f32
    %83 = vector.broadcast %cst_72 : f32 to vector<128x64xf32>
    %84 = arith.maximumf %82, %83 : vector<128x64xf32>
    %85 = arith.truncf %84 : vector<128x64xf32> to vector<128x64xbf16>
    %86 = vector.shape_cast %85 : vector<128x64xbf16> to vector<1x8x16x64xbf16>
    %c8_73 = arith.constant 8 : index
    %c1_74 = arith.constant 1 : index
    %c0_75 = arith.constant 0 : index
    %c0_76 = arith.constant 0 : index
    %87 = vector.load %arg9[%c8_73, %c1_74, %c0_75, %c0_76] : memref<10x10x16x64xbf16, #tpu.memory_space<vmem>>, vector<1x8x16x64xbf16>
    tpu.vector_store %arg9[%c8_73, %c1_74, %c0_75, %c0_76], %86 {strides = array<i32>} : memref<10x10x16x64xbf16, #tpu.memory_space<vmem>>, vector<1x8x16x64xbf16>,
    %c0_77 = arith.constant 0 : index
    %c0_78 = arith.constant 0 : index
    %c0_79 = arith.constant 0 : index
    %c0_80 = arith.constant 0 : index
    %88 = vector.load %arg9[%c0_77, %c0_78, %c0_79, %c0_80] : memref<10x10x16x64xbf16, #tpu.memory_space<vmem>>, vector<8x8x16x64xbf16>
    %89 = vector.shape_cast %88 : vector<8x8x16x64xbf16> to vector<1024x64xbf16>
    %c0_81 = arith.constant 0 : index
    %c0_82 = arith.constant 0 : index
    %c0_83 = arith.constant 0 : index
    %90 = vector.load %arg4[%c0_81, %c0_82, %c0_83] : memref<9x64x128xbf16, #tpu.memory_space<vmem>>, vector<1x64x128xbf16>
    %91 = vector.shape_cast %90 : vector<1x64x128xbf16> to vector<64x128xbf16>
    %cst_84 = arith.constant dense<0.000000e+00> : vector<1024x128xf32>
    %92 = tpu.matmul %89, %91, %cst_84 {dimension_numbers = #tpu.dot_dimension_numbers<[1], [0], [0], [1], [0, 0, 1, 1], [], []>} : vector<1024x64xbf16>, vector<64x128xbf16>, vector<1024x128xf32> -> vector<1024x128xf32>
    %c0_85 = arith.constant 0 : index
    %c0_86 = arith.constant 0 : index
    %93 = vector.load %arg10[%c0_85, %c0_86] : memref<1024x128xf32, #tpu.memory_space<vmem>>, vector<1024x128xf32>
    tpu.vector_store %arg10[%c0_85, %c0_86], %92 {strides = array<i32>} : memref<1024x128xf32, #tpu.memory_space<vmem>>, vector<1024x128xf32>,
    %c0_87 = arith.constant 0 : index
    %c1_88 = arith.constant 1 : index
    %c0_89 = arith.constant 0 : index
    %c0_90 = arith.constant 0 : index
    %94 = vector.load %arg9[%c0_87, %c1_88, %c0_89, %c0_90] : memref<10x10x16x64xbf16, #tpu.memory_space<vmem>>, vector<8x8x16x64xbf16>
    %95 = vector.shape_cast %94 : vector<8x8x16x64xbf16> to vector<1024x64xbf16>
    %c1_91 = arith.constant 1 : index
    %c0_92 = arith.constant 0 : index
    %c0_93 = arith.constant 0 : index
    %96 = vector.load %arg4[%c1_91, %c0_92, %c0_93] : memref<9x64x128xbf16, #tpu.memory_space<vmem>>, vector<1x64x128xbf16>
    %97 = vector.shape_cast %96 : vector<1x64x128xbf16> to vector<64x128xbf16>
    %cst_94 = arith.constant dense<0.000000e+00> : vector<1024x128xf32>
    %98 = tpu.matmul %95, %97, %cst_94 {dimension_numbers = #tpu.dot_dimension_numbers<[1], [0], [0], [1], [0, 0, 1, 1], [], []>} : vector<1024x64xbf16>, vector<64x128xbf16>, vector<1024x128xf32> -> vector<1024x128xf32>
    %c0_95 = arith.constant 0 : index
    %c0_96 = arith.constant 0 : index
    %99 = vector.load %arg10[%c0_95, %c0_96] : memref<1024x128xf32, #tpu.memory_space<vmem>>, vector<1024x128xf32>
    %100 = arith.addf %99, %98 : vector<1024x128xf32>
    %c0_97 = arith.constant 0 : index
    %c0_98 = arith.constant 0 : index
    %101 = vector.load %arg10[%c0_97, %c0_98] : memref<1024x128xf32, #tpu.memory_space<vmem>>, vector<1024x128xf32>
    tpu.vector_store %arg10[%c0_97, %c0_98], %100 {strides = array<i32>} : memref<1024x128xf32, #tpu.memory_space<vmem>>, vector<1024x128xf32>,
    %c0_99 = arith.constant 0 : index
    %c2_100 = arith.constant 2 : index
    %c0_101 = arith.constant 0 : index
    %c0_102 = arith.constant 0 : index
    %102 = vector.load %arg9[%c0_99, %c2_100, %c0_101, %c0_102] : memref<10x10x16x64xbf16, #tpu.memory_space<vmem>>, vector<8x8x16x64xbf16>
    %103 = vector.shape_cast %102 : vector<8x8x16x64xbf16> to vector<1024x64xbf16>
    %c2_103 = arith.constant 2 : index
    %c0_104 = arith.constant 0 : index
    %c0_105 = arith.constant 0 : index
    %104 = vector.load %arg4[%c2_103, %c0_104, %c0_105] : memref<9x64x128xbf16, #tpu.memory_space<vmem>>, vector<1x64x128xbf16>
    %105 = vector.shape_cast %104 : vector<1x64x128xbf16> to vector<64x128xbf16>
    %cst_106 = arith.constant dense<0.000000e+00> : vector<1024x128xf32>
    %106 = tpu.matmul %103, %105, %cst_106 {dimension_numbers = #tpu.dot_dimension_numbers<[1], [0], [0], [1], [0, 0, 1, 1], [], []>} : vector<1024x64xbf16>, vector<64x128xbf16>, vector<1024x128xf32> -> vector<1024x128xf32>
    %c0_107 = arith.constant 0 : index
    %c0_108 = arith.constant 0 : index
    %107 = vector.load %arg10[%c0_107, %c0_108] : memref<1024x128xf32, #tpu.memory_space<vmem>>, vector<1024x128xf32>
    %108 = arith.addf %107, %106 : vector<1024x128xf32>
    %c0_109 = arith.constant 0 : index
    %c0_110 = arith.constant 0 : index
    %109 = vector.load %arg10[%c0_109, %c0_110] : memref<1024x128xf32, #tpu.memory_space<vmem>>, vector<1024x128xf32>
    tpu.vector_store %arg10[%c0_109, %c0_110], %108 {strides = array<i32>} : memref<1024x128xf32, #tpu.memory_space<vmem>>, vector<1024x128xf32>,
    %c1_111 = arith.constant 1 : index
    %c0_112 = arith.constant 0 : index
    %c0_113 = arith.constant 0 : index
    %c0_114 = arith.constant 0 : index
    %110 = vector.load %arg9[%c1_111, %c0_112, %c0_113, %c0_114] : memref<10x10x16x64xbf16, #tpu.memory_space<vmem>>, vector<8x8x16x64xbf16>
    %111 = vector.shape_cast %110 : vector<8x8x16x64xbf16> to vector<1024x64xbf16>
    %c3_115 = arith.constant 3 : index
    %c0_116 = arith.constant 0 : index
    %c0_117 = arith.constant 0 : index
    %112 = vector.load %arg4[%c3_115, %c0_116, %c0_117] : memref<9x64x128xbf16, #tpu.memory_space<vmem>>, vector<1x64x128xbf16>
    %113 = vector.shape_cast %112 : vector<1x64x128xbf16> to vector<64x128xbf16>
    %cst_118 = arith.constant dense<0.000000e+00> : vector<1024x128xf32>
    %114 = tpu.matmul %111, %113, %cst_118 {dimension_numbers = #tpu.dot_dimension_numbers<[1], [0], [0], [1], [0, 0, 1, 1], [], []>} : vector<1024x64xbf16>, vector<64x128xbf16>, vector<1024x128xf32> -> vector<1024x128xf32>
    %c0_119 = arith.constant 0 : index
    %c0_120 = arith.constant 0 : index
    %115 = vector.load %arg10[%c0_119, %c0_120] : memref<1024x128xf32, #tpu.memory_space<vmem>>, vector<1024x128xf32>
    %116 = arith.addf %115, %114 : vector<1024x128xf32>
    %c0_121 = arith.constant 0 : index
    %c0_122 = arith.constant 0 : index
    %117 = vector.load %arg10[%c0_121, %c0_122] : memref<1024x128xf32, #tpu.memory_space<vmem>>, vector<1024x128xf32>
    tpu.vector_store %arg10[%c0_121, %c0_122], %116 {strides = array<i32>} : memref<1024x128xf32, #tpu.memory_space<vmem>>, vector<1024x128xf32>,
    %c1_123 = arith.constant 1 : index
    %c1_124 = arith.constant 1 : index
    %c0_125 = arith.constant 0 : index
    %c0_126 = arith.constant 0 : index
    %118 = vector.load %arg9[%c1_123, %c1_124, %c0_125, %c0_126] : memref<10x10x16x64xbf16, #tpu.memory_space<vmem>>, vector<8x8x16x64xbf16>
    %119 = vector.shape_cast %118 : vector<8x8x16x64xbf16> to vector<1024x64xbf16>
    %c4_127 = arith.constant 4 : index
    %c0_128 = arith.constant 0 : index
    %c0_129 = arith.constant 0 : index
    %120 = vector.load %arg4[%c4_127, %c0_128, %c0_129] : memref<9x64x128xbf16, #tpu.memory_space<vmem>>, vector<1x64x128xbf16>
    %121 = vector.shape_cast %120 : vector<1x64x128xbf16> to vector<64x128xbf16>
    %cst_130 = arith.constant dense<0.000000e+00> : vector<1024x128xf32>
    %122 = tpu.matmul %119, %121, %cst_130 {dimension_numbers = #tpu.dot_dimension_numbers<[1], [0], [0], [1], [0, 0, 1, 1], [], []>} : vector<1024x64xbf16>, vector<64x128xbf16>, vector<1024x128xf32> -> vector<1024x128xf32>
    %c0_131 = arith.constant 0 : index
    %c0_132 = arith.constant 0 : index
    %123 = vector.load %arg10[%c0_131, %c0_132] : memref<1024x128xf32, #tpu.memory_space<vmem>>, vector<1024x128xf32>
    %124 = arith.addf %123, %122 : vector<1024x128xf32>
    %c0_133 = arith.constant 0 : index
    %c0_134 = arith.constant 0 : index
    %125 = vector.load %arg10[%c0_133, %c0_134] : memref<1024x128xf32, #tpu.memory_space<vmem>>, vector<1024x128xf32>
    tpu.vector_store %arg10[%c0_133, %c0_134], %124 {strides = array<i32>} : memref<1024x128xf32, #tpu.memory_space<vmem>>, vector<1024x128xf32>,
    %c1_135 = arith.constant 1 : index
    %c2_136 = arith.constant 2 : index
    %c0_137 = arith.constant 0 : index
    %c0_138 = arith.constant 0 : index
    %126 = vector.load %arg9[%c1_135, %c2_136, %c0_137, %c0_138] : memref<10x10x16x64xbf16, #tpu.memory_space<vmem>>, vector<8x8x16x64xbf16>
    %127 = vector.shape_cast %126 : vector<8x8x16x64xbf16> to vector<1024x64xbf16>
    %c5_139 = arith.constant 5 : index
    %c0_140 = arith.constant 0 : index
    %c0_141 = arith.constant 0 : index
    %128 = vector.load %arg4[%c5_139, %c0_140, %c0_141] : memref<9x64x128xbf16, #tpu.memory_space<vmem>>, vector<1x64x128xbf16>
    %129 = vector.shape_cast %128 : vector<1x64x128xbf16> to vector<64x128xbf16>
    %cst_142 = arith.constant dense<0.000000e+00> : vector<1024x128xf32>
    %130 = tpu.matmul %127, %129, %cst_142 {dimension_numbers = #tpu.dot_dimension_numbers<[1], [0], [0], [1], [0, 0, 1, 1], [], []>} : vector<1024x64xbf16>, vector<64x128xbf16>, vector<1024x128xf32> -> vector<1024x128xf32>
    %c0_143 = arith.constant 0 : index
    %c0_144 = arith.constant 0 : index
    %131 = vector.load %arg10[%c0_143, %c0_144] : memref<1024x128xf32, #tpu.memory_space<vmem>>, vector<1024x128xf32>
    %132 = arith.addf %131, %130 : vector<1024x128xf32>
    %c0_145 = arith.constant 0 : index
    %c0_146 = arith.constant 0 : index
    %133 = vector.load %arg10[%c0_145, %c0_146] : memref<1024x128xf32, #tpu.memory_space<vmem>>, vector<1024x128xf32>
    tpu.vector_store %arg10[%c0_145, %c0_146], %132 {strides = array<i32>} : memref<1024x128xf32, #tpu.memory_space<vmem>>, vector<1024x128xf32>,
    %c2_147 = arith.constant 2 : index
    %c0_148 = arith.constant 0 : index
    %c0_149 = arith.constant 0 : index
    %c0_150 = arith.constant 0 : index
    %134 = vector.load %arg9[%c2_147, %c0_148, %c0_149, %c0_150] : memref<10x10x16x64xbf16, #tpu.memory_space<vmem>>, vector<8x8x16x64xbf16>
    %135 = vector.shape_cast %134 : vector<8x8x16x64xbf16> to vector<1024x64xbf16>
    %c6_151 = arith.constant 6 : index
    %c0_152 = arith.constant 0 : index
    %c0_153 = arith.constant 0 : index
    %136 = vector.load %arg4[%c6_151, %c0_152, %c0_153] : memref<9x64x128xbf16, #tpu.memory_space<vmem>>, vector<1x64x128xbf16>
    %137 = vector.shape_cast %136 : vector<1x64x128xbf16> to vector<64x128xbf16>
    %cst_154 = arith.constant dense<0.000000e+00> : vector<1024x128xf32>
    %138 = tpu.matmul %135, %137, %cst_154 {dimension_numbers = #tpu.dot_dimension_numbers<[1], [0], [0], [1], [0, 0, 1, 1], [], []>} : vector<1024x64xbf16>, vector<64x128xbf16>, vector<1024x128xf32> -> vector<1024x128xf32>
    %c0_155 = arith.constant 0 : index
    %c0_156 = arith.constant 0 : index
    %139 = vector.load %arg10[%c0_155, %c0_156] : memref<1024x128xf32, #tpu.memory_space<vmem>>, vector<1024x128xf32>
    %140 = arith.addf %139, %138 : vector<1024x128xf32>
    %c0_157 = arith.constant 0 : index
    %c0_158 = arith.constant 0 : index
    %141 = vector.load %arg10[%c0_157, %c0_158] : memref<1024x128xf32, #tpu.memory_space<vmem>>, vector<1024x128xf32>
    tpu.vector_store %arg10[%c0_157, %c0_158], %140 {strides = array<i32>} : memref<1024x128xf32, #tpu.memory_space<vmem>>, vector<1024x128xf32>,
    %c2_159 = arith.constant 2 : index
    %c1_160 = arith.constant 1 : index
    %c0_161 = arith.constant 0 : index
    %c0_162 = arith.constant 0 : index
    %142 = vector.load %arg9[%c2_159, %c1_160, %c0_161, %c0_162] : memref<10x10x16x64xbf16, #tpu.memory_space<vmem>>, vector<8x8x16x64xbf16>
    %143 = vector.shape_cast %142 : vector<8x8x16x64xbf16> to vector<1024x64xbf16>
    %c7_163 = arith.constant 7 : index
    %c0_164 = arith.constant 0 : index
    %c0_165 = arith.constant 0 : index
    %144 = vector.load %arg4[%c7_163, %c0_164, %c0_165] : memref<9x64x128xbf16, #tpu.memory_space<vmem>>, vector<1x64x128xbf16>
    %145 = vector.shape_cast %144 : vector<1x64x128xbf16> to vector<64x128xbf16>
    %cst_166 = arith.constant dense<0.000000e+00> : vector<1024x128xf32>
    %146 = tpu.matmul %143, %145, %cst_166 {dimension_numbers = #tpu.dot_dimension_numbers<[1], [0], [0], [1], [0, 0, 1, 1], [], []>} : vector<1024x64xbf16>, vector<64x128xbf16>, vector<1024x128xf32> -> vector<1024x128xf32>
    %c0_167 = arith.constant 0 : index
    %c0_168 = arith.constant 0 : index
    %147 = vector.load %arg10[%c0_167, %c0_168] : memref<1024x128xf32, #tpu.memory_space<vmem>>, vector<1024x128xf32>
    %148 = arith.addf %147, %146 : vector<1024x128xf32>
    %c0_169 = arith.constant 0 : index
    %c0_170 = arith.constant 0 : index
    %149 = vector.load %arg10[%c0_169, %c0_170] : memref<1024x128xf32, #tpu.memory_space<vmem>>, vector<1024x128xf32>
    tpu.vector_store %arg10[%c0_169, %c0_170], %148 {strides = array<i32>} : memref<1024x128xf32, #tpu.memory_space<vmem>>, vector<1024x128xf32>,
    %c2_171 = arith.constant 2 : index
    %c2_172 = arith.constant 2 : index
    %c0_173 = arith.constant 0 : index
    %c0_174 = arith.constant 0 : index
    %150 = vector.load %arg9[%c2_171, %c2_172, %c0_173, %c0_174] : memref<10x10x16x64xbf16, #tpu.memory_space<vmem>>, vector<8x8x16x64xbf16>
    %151 = vector.shape_cast %150 : vector<8x8x16x64xbf16> to vector<1024x64xbf16>
    %c8_175 = arith.constant 8 : index
    %c0_176 = arith.constant 0 : index
    %c0_177 = arith.constant 0 : index
    %152 = vector.load %arg4[%c8_175, %c0_176, %c0_177] : memref<9x64x128xbf16, #tpu.memory_space<vmem>>, vector<1x64x128xbf16>
    %153 = vector.shape_cast %152 : vector<1x64x128xbf16> to vector<64x128xbf16>
    %cst_178 = arith.constant dense<0.000000e+00> : vector<1024x128xf32>
    %154 = tpu.matmul %151, %153, %cst_178 {dimension_numbers = #tpu.dot_dimension_numbers<[1], [0], [0], [1], [0, 0, 1, 1], [], []>} : vector<1024x64xbf16>, vector<64x128xbf16>, vector<1024x128xf32> -> vector<1024x128xf32>
    %c0_179 = arith.constant 0 : index
    %c0_180 = arith.constant 0 : index
    %155 = vector.load %arg10[%c0_179, %c0_180] : memref<1024x128xf32, #tpu.memory_space<vmem>>, vector<1024x128xf32>
    %156 = arith.addf %155, %154 : vector<1024x128xf32>
    %c0_181 = arith.constant 0 : index
    %c0_182 = arith.constant 0 : index
    %157 = vector.load %arg10[%c0_181, %c0_182] : memref<1024x128xf32, #tpu.memory_space<vmem>>, vector<1024x128xf32>
    tpu.vector_store %arg10[%c0_181, %c0_182], %156 {strides = array<i32>} : memref<1024x128xf32, #tpu.memory_space<vmem>>, vector<1024x128xf32>,
    %c0_183 = arith.constant 0 : index
    %c0_184 = arith.constant 0 : index
    %158 = vector.load %arg5[%c0_183, %c0_184] : memref<1x128xf32, #tpu.memory_space<vmem>>, vector<1x128xf32>
    %c0_185 = arith.constant 0 : index
    %c0_186 = arith.constant 0 : index
    %159 = vector.load %arg10[%c0_185, %c0_186] : memref<1024x128xf32, #tpu.memory_space<vmem>>, vector<16x128xf32>
    %160 = vector.broadcast %158 : vector<1x128xf32> to vector<16x128xf32>
    %161 = arith.addf %159, %160 : vector<16x128xf32>
    %cst_187 = arith.constant 0.000000e+00 : f32
    %162 = vector.broadcast %cst_187 : f32 to vector<16x128xf32>
    %163 = arith.maximumf %161, %162 : vector<16x128xf32>
    %164 = arith.truncf %163 : vector<16x128xf32> to vector<16x128xbf16>
    %c0_188 = arith.constant 0 : index
    %c0_189 = arith.constant 0 : index
    %165 = vector.load %arg11[%c0_188, %c0_189] : memref<16x8192xbf16, #tpu.memory_space<vmem>>, vector<16x128xbf16>
    tpu.vector_store %arg11[%c0_188, %c0_189], %164 {strides = array<i32>} : memref<16x8192xbf16, #tpu.memory_space<vmem>>, vector<16x128xbf16>,
    %c16_190 = arith.constant 16 : index
    %c0_191 = arith.constant 0 : index
    %166 = vector.load %arg10[%c16_190, %c0_191] : memref<1024x128xf32, #tpu.memory_space<vmem>>, vector<16x128xf32>
    %167 = vector.broadcast %158 : vector<1x128xf32> to vector<16x128xf32>
    %168 = arith.addf %166, %167 : vector<16x128xf32>
    %cst_192 = arith.constant 0.000000e+00 : f32
    %169 = vector.broadcast %cst_192 : f32 to vector<16x128xf32>
    %170 = arith.maximumf %168, %169 : vector<16x128xf32>
    %171 = arith.truncf %170 : vector<16x128xf32> to vector<16x128xbf16>
    %c0_193 = arith.constant 0 : index
    %c128 = arith.constant 128 : index
    %172 = vector.load %arg11[%c0_193, %c128] : memref<16x8192xbf16, #tpu.memory_space<vmem>>, vector<16x128xbf16>
    tpu.vector_store %arg11[%c0_193, %c128], %171 {strides = array<i32>} : memref<16x8192xbf16, #tpu.memory_space<vmem>>, vector<16x128xbf16>,
    %c32_194 = arith.constant 32 : index
    %c0_195 = arith.constant 0 : index
    %173 = vector.load %arg10[%c32_194, %c0_195] : memref<1024x128xf32, #tpu.memory_space<vmem>>, vector<16x128xf32>
    %174 = vector.broadcast %158 : vector<1x128xf32> to vector<16x128xf32>
    %175 = arith.addf %173, %174 : vector<16x128xf32>
    %cst_196 = arith.constant 0.000000e+00 : f32
    %176 = vector.broadcast %cst_196 : f32 to vector<16x128xf32>
    %177 = arith.maximumf %175, %176 : vector<16x128xf32>
    %178 = arith.truncf %177 : vector<16x128xf32> to vector<16x128xbf16>
    %c0_197 = arith.constant 0 : index
    %c256 = arith.constant 256 : index
    %179 = vector.load %arg11[%c0_197, %c256] : memref<16x8192xbf16, #tpu.memory_space<vmem>>, vector<16x128xbf16>
    tpu.vector_store %arg11[%c0_197, %c256], %178 {strides = array<i32>} : memref<16x8192xbf16, #tpu.memory_space<vmem>>, vector<16x128xbf16>,
    %c48_198 = arith.constant 48 : index
    %c0_199 = arith.constant 0 : index
    %180 = vector.load %arg10[%c48_198, %c0_199] : memref<1024x128xf32, #tpu.memory_space<vmem>>, vector<16x128xf32>
    %181 = vector.broadcast %158 : vector<1x128xf32> to vector<16x128xf32>
    %182 = arith.addf %180, %181 : vector<16x128xf32>
    %cst_200 = arith.constant 0.000000e+00 : f32
    %183 = vector.broadcast %cst_200 : f32 to vector<16x128xf32>
    %184 = arith.maximumf %182, %183 : vector<16x128xf32>
    %185 = arith.truncf %184 : vector<16x128xf32> to vector<16x128xbf16>
    %c0_201 = arith.constant 0 : index
    %c384 = arith.constant 384 : index
    %186 = vector.load %arg11[%c0_201, %c384] : memref<16x8192xbf16, #tpu.memory_space<vmem>>, vector<16x128xbf16>
    tpu.vector_store %arg11[%c0_201, %c384], %185 {strides = array<i32>} : memref<16x8192xbf16, #tpu.memory_space<vmem>>, vector<16x128xbf16>,
    %c64 = arith.constant 64 : index
    %c0_202 = arith.constant 0 : index
    %187 = vector.load %arg10[%c64, %c0_202] : memref<1024x128xf32, #tpu.memory_space<vmem>>, vector<16x128xf32>
    %188 = vector.broadcast %158 : vector<1x128xf32> to vector<16x128xf32>
    %189 = arith.addf %187, %188 : vector<16x128xf32>
    %cst_203 = arith.constant 0.000000e+00 : f32
    %190 = vector.broadcast %cst_203 : f32 to vector<16x128xf32>
    %191 = arith.maximumf %189, %190 : vector<16x128xf32>
    %192 = arith.truncf %191 : vector<16x128xf32> to vector<16x128xbf16>
    %c0_204 = arith.constant 0 : index
    %c512 = arith.constant 512 : index
    %193 = vector.load %arg11[%c0_204, %c512] : memref<16x8192xbf16, #tpu.memory_space<vmem>>, vector<16x128xbf16>
    tpu.vector_store %arg11[%c0_204, %c512], %192 {strides = array<i32>} : memref<16x8192xbf16, #tpu.memory_space<vmem>>, vector<16x128xbf16>,
    %c80 = arith.constant 80 : index
    %c0_205 = arith.constant 0 : index
    %194 = vector.load %arg10[%c80, %c0_205] : memref<1024x128xf32, #tpu.memory_space<vmem>>, vector<16x128xf32>
    %195 = vector.broadcast %158 : vector<1x128xf32> to vector<16x128xf32>
    %196 = arith.addf %194, %195 : vector<16x128xf32>
    %cst_206 = arith.constant 0.000000e+00 : f32
    %197 = vector.broadcast %cst_206 : f32 to vector<16x128xf32>
    %198 = arith.maximumf %196, %197 : vector<16x128xf32>
    %199 = arith.truncf %198 : vector<16x128xf32> to vector<16x128xbf16>
    %c0_207 = arith.constant 0 : index
    %c640 = arith.constant 640 : index
    %200 = vector.load %arg11[%c0_207, %c640] : memref<16x8192xbf16, #tpu.memory_space<vmem>>, vector<16x128xbf16>
    tpu.vector_store %arg11[%c0_207, %c640], %199 {strides = array<i32>} : memref<16x8192xbf16, #tpu.memory_space<vmem>>, vector<16x128xbf16>,
    %c96 = arith.constant 96 : index
    %c0_208 = arith.constant 0 : index
    %201 = vector.load %arg10[%c96, %c0_208] : memref<1024x128xf32, #tpu.memory_space<vmem>>, vector<16x128xf32>
    %202 = vector.broadcast %158 : vector<1x128xf32> to vector<16x128xf32>
    %203 = arith.addf %201, %202 : vector<16x128xf32>
    %cst_209 = arith.constant 0.000000e+00 : f32
    %204 = vector.broadcast %cst_209 : f32 to vector<16x128xf32>
    %205 = arith.maximumf %203, %204 : vector<16x128xf32>
    %206 = arith.truncf %205 : vector<16x128xf32> to vector<16x128xbf16>
    %c0_210 = arith.constant 0 : index
    %c768 = arith.constant 768 : index
    %207 = vector.load %arg11[%c0_210, %c768] : memref<16x8192xbf16, #tpu.memory_space<vmem>>, vector<16x128xbf16>
    tpu.vector_store %arg11[%c0_210, %c768], %206 {strides = array<i32>} : memref<16x8192xbf16, #tpu.memory_space<vmem>>, vector<16x128xbf16>,
    %c112 = arith.constant 112 : index
    %c0_211 = arith.constant 0 : index
    %208 = vector.load %arg10[%c112, %c0_211] : memref<1024x128xf32, #tpu.memory_space<vmem>>, vector<16x128xf32>
    %209 = vector.broadcast %158 : vector<1x128xf32> to vector<16x128xf32>
    %210 = arith.addf %208, %209 : vector<16x128xf32>
    %cst_212 = arith.constant 0.000000e+00 : f32
    %211 = vector.broadcast %cst_212 : f32 to vector<16x128xf32>
    %212 = arith.maximumf %210, %211 : vector<16x128xf32>
    %213 = arith.truncf %212 : vector<16x128xf32> to vector<16x128xbf16>
    %c0_213 = arith.constant 0 : index
    %c896 = arith.constant 896 : index
    %214 = vector.load %arg11[%c0_213, %c896] : memref<16x8192xbf16, #tpu.memory_space<vmem>>, vector<16x128xbf16>
    tpu.vector_store %arg11[%c0_213, %c896], %213 {strides = array<i32>} : memref<16x8192xbf16, #tpu.memory_space<vmem>>, vector<16x128xbf16>,
    %c128_214 = arith.constant 128 : index
    %c0_215 = arith.constant 0 : index
    %215 = vector.load %arg10[%c128_214, %c0_215] : memref<1024x128xf32, #tpu.memory_space<vmem>>, vector<16x128xf32>
    %216 = vector.broadcast %158 : vector<1x128xf32> to vector<16x128xf32>
    %217 = arith.addf %215, %216 : vector<16x128xf32>
    %cst_216 = arith.constant 0.000000e+00 : f32
    %218 = vector.broadcast %cst_216 : f32 to vector<16x128xf32>
    %219 = arith.maximumf %217, %218 : vector<16x128xf32>
    %220 = arith.truncf %219 : vector<16x128xf32> to vector<16x128xbf16>
    %c0_217 = arith.constant 0 : index
    %c1024 = arith.constant 1024 : index
    %221 = vector.load %arg11[%c0_217, %c1024] : memref<16x8192xbf16, #tpu.memory_space<vmem>>, vector<16x128xbf16>
    tpu.vector_store %arg11[%c0_217, %c1024], %220 {strides = array<i32>} : memref<16x8192xbf16, #tpu.memory_space<vmem>>, vector<16x128xbf16>,
    %c144 = arith.constant 144 : index
    %c0_218 = arith.constant 0 : index
    %222 = vector.load %arg10[%c144, %c0_218] : memref<1024x128xf32, #tpu.memory_space<vmem>>, vector<16x128xf32>
    %223 = vector.broadcast %158 : vector<1x128xf32> to vector<16x128xf32>
    %224 = arith.addf %222, %223 : vector<16x128xf32>
    %cst_219 = arith.constant 0.000000e+00 : f32
    %225 = vector.broadcast %cst_219 : f32 to vector<16x128xf32>
    %226 = arith.maximumf %224, %225 : vector<16x128xf32>
    %227 = arith.truncf %226 : vector<16x128xf32> to vector<16x128xbf16>
    %c0_220 = arith.constant 0 : index
    %c1152 = arith.constant 1152 : index
    %228 = vector.load %arg11[%c0_220, %c1152] : memref<16x8192xbf16, #tpu.memory_space<vmem>>, vector<16x128xbf16>
    tpu.vector_store %arg11[%c0_220, %c1152], %227 {strides = array<i32>} : memref<16x8192xbf16, #tpu.memory_space<vmem>>, vector<16x128xbf16>,
    %c160 = arith.constant 160 : index
    %c0_221 = arith.constant 0 : index
    %229 = vector.load %arg10[%c160, %c0_221] : memref<1024x128xf32, #tpu.memory_space<vmem>>, vector<16x128xf32>
    %230 = vector.broadcast %158 : vector<1x128xf32> to vector<16x128xf32>
    %231 = arith.addf %229, %230 : vector<16x128xf32>
    %cst_222 = arith.constant 0.000000e+00 : f32
    %232 = vector.broadcast %cst_222 : f32 to vector<16x128xf32>
    %233 = arith.maximumf %231, %232 : vector<16x128xf32>
    %234 = arith.truncf %233 : vector<16x128xf32> to vector<16x128xbf16>
    %c0_223 = arith.constant 0 : index
    %c1280 = arith.constant 1280 : index
    %235 = vector.load %arg11[%c0_223, %c1280] : memref<16x8192xbf16, #tpu.memory_space<vmem>>, vector<16x128xbf16>
    tpu.vector_store %arg11[%c0_223, %c1280], %234 {strides = array<i32>} : memref<16x8192xbf16, #tpu.memory_space<vmem>>, vector<16x128xbf16>,
    %c176 = arith.constant 176 : index
    %c0_224 = arith.constant 0 : index
    %236 = vector.load %arg10[%c176, %c0_224] : memref<1024x128xf32, #tpu.memory_space<vmem>>, vector<16x128xf32>
    %237 = vector.broadcast %158 : vector<1x128xf32> to vector<16x128xf32>
    %238 = arith.addf %236, %237 : vector<16x128xf32>
    %cst_225 = arith.constant 0.000000e+00 : f32
    %239 = vector.broadcast %cst_225 : f32 to vector<16x128xf32>
    %240 = arith.maximumf %238, %239 : vector<16x128xf32>
    %241 = arith.truncf %240 : vector<16x128xf32> to vector<16x128xbf16>
    %c0_226 = arith.constant 0 : index
    %c1408 = arith.constant 1408 : index
    %242 = vector.load %arg11[%c0_226, %c1408] : memref<16x8192xbf16, #tpu.memory_space<vmem>>, vector<16x128xbf16>
    tpu.vector_store %arg11[%c0_226, %c1408], %241 {strides = array<i32>} : memref<16x8192xbf16, #tpu.memory_space<vmem>>, vector<16x128xbf16>,
    %c192 = arith.constant 192 : index
    %c0_227 = arith.constant 0 : index
    %243 = vector.load %arg10[%c192, %c0_227] : memref<1024x128xf32, #tpu.memory_space<vmem>>, vector<16x128xf32>
    %244 = vector.broadcast %158 : vector<1x128xf32> to vector<16x128xf32>
    %245 = arith.addf %243, %244 : vector<16x128xf32>
    %cst_228 = arith.constant 0.000000e+00 : f32
    %246 = vector.broadcast %cst_228 : f32 to vector<16x128xf32>
    %247 = arith.maximumf %245, %246 : vector<16x128xf32>
    %248 = arith.truncf %247 : vector<16x128xf32> to vector<16x128xbf16>
    %c0_229 = arith.constant 0 : index
    %c1536 = arith.constant 1536 : index
    %249 = vector.load %arg11[%c0_229, %c1536] : memref<16x8192xbf16, #tpu.memory_space<vmem>>, vector<16x128xbf16>
    tpu.vector_store %arg11[%c0_229, %c1536], %248 {strides = array<i32>} : memref<16x8192xbf16, #tpu.memory_space<vmem>>, vector<16x128xbf16>,
    %c208 = arith.constant 208 : index
    %c0_230 = arith.constant 0 : index
    %250 = vector.load %arg10[%c208, %c0_230] : memref<1024x128xf32, #tpu.memory_space<vmem>>, vector<16x128xf32>
    %251 = vector.broadcast %158 : vector<1x128xf32> to vector<16x128xf32>
    %252 = arith.addf %250, %251 : vector<16x128xf32>
    %cst_231 = arith.constant 0.000000e+00 : f32
    %253 = vector.broadcast %cst_231 : f32 to vector<16x128xf32>
    %254 = arith.maximumf %252, %253 : vector<16x128xf32>
    %255 = arith.truncf %254 : vector<16x128xf32> to vector<16x128xbf16>
    %c0_232 = arith.constant 0 : index
    %c1664 = arith.constant 1664 : index
    %256 = vector.load %arg11[%c0_232, %c1664] : memref<16x8192xbf16, #tpu.memory_space<vmem>>, vector<16x128xbf16>
    tpu.vector_store %arg11[%c0_232, %c1664], %255 {strides = array<i32>} : memref<16x8192xbf16, #tpu.memory_space<vmem>>, vector<16x128xbf16>,
    %c224 = arith.constant 224 : index
    %c0_233 = arith.constant 0 : index
    %257 = vector.load %arg10[%c224, %c0_233] : memref<1024x128xf32, #tpu.memory_space<vmem>>, vector<16x128xf32>
    %258 = vector.broadcast %158 : vector<1x128xf32> to vector<16x128xf32>
    %259 = arith.addf %257, %258 : vector<16x128xf32>
    %cst_234 = arith.constant 0.000000e+00 : f32
    %260 = vector.broadcast %cst_234 : f32 to vector<16x128xf32>
    %261 = arith.maximumf %259, %260 : vector<16x128xf32>
    %262 = arith.truncf %261 : vector<16x128xf32> to vector<16x128xbf16>
    %c0_235 = arith.constant 0 : index
    %c1792 = arith.constant 1792 : index
    %263 = vector.load %arg11[%c0_235, %c1792] : memref<16x8192xbf16, #tpu.memory_space<vmem>>, vector<16x128xbf16>
    tpu.vector_store %arg11[%c0_235, %c1792], %262 {strides = array<i32>} : memref<16x8192xbf16, #tpu.memory_space<vmem>>, vector<16x128xbf16>,
    %c240 = arith.constant 240 : index
    %c0_236 = arith.constant 0 : index
    %264 = vector.load %arg10[%c240, %c0_236] : memref<1024x128xf32, #tpu.memory_space<vmem>>, vector<16x128xf32>
    %265 = vector.broadcast %158 : vector<1x128xf32> to vector<16x128xf32>
    %266 = arith.addf %264, %265 : vector<16x128xf32>
    %cst_237 = arith.constant 0.000000e+00 : f32
    %267 = vector.broadcast %cst_237 : f32 to vector<16x128xf32>
    %268 = arith.maximumf %266, %267 : vector<16x128xf32>
    %269 = arith.truncf %268 : vector<16x128xf32> to vector<16x128xbf16>
    %c0_238 = arith.constant 0 : index
    %c1920 = arith.constant 1920 : index
    %270 = vector.load %arg11[%c0_238, %c1920] : memref<16x8192xbf16, #tpu.memory_space<vmem>>, vector<16x128xbf16>
    tpu.vector_store %arg11[%c0_238, %c1920], %269 {strides = array<i32>} : memref<16x8192xbf16, #tpu.memory_space<vmem>>, vector<16x128xbf16>,
    %c256_239 = arith.constant 256 : index
    %c0_240 = arith.constant 0 : index
    %271 = vector.load %arg10[%c256_239, %c0_240] : memref<1024x128xf32, #tpu.memory_space<vmem>>, vector<16x128xf32>
    %272 = vector.broadcast %158 : vector<1x128xf32> to vector<16x128xf32>
    %273 = arith.addf %271, %272 : vector<16x128xf32>
    %cst_241 = arith.constant 0.000000e+00 : f32
    %274 = vector.broadcast %cst_241 : f32 to vector<16x128xf32>
    %275 = arith.maximumf %273, %274 : vector<16x128xf32>
    %276 = arith.truncf %275 : vector<16x128xf32> to vector<16x128xbf16>
    %c0_242 = arith.constant 0 : index
    %c2048 = arith.constant 2048 : index
    %277 = vector.load %arg11[%c0_242, %c2048] : memref<16x8192xbf16, #tpu.memory_space<vmem>>, vector<16x128xbf16>
    tpu.vector_store %arg11[%c0_242, %c2048], %276 {strides = array<i32>} : memref<16x8192xbf16, #tpu.memory_space<vmem>>, vector<16x128xbf16>,
    %c272 = arith.constant 272 : index
    %c0_243 = arith.constant 0 : index
    %278 = vector.load %arg10[%c272, %c0_243] : memref<1024x128xf32, #tpu.memory_space<vmem>>, vector<16x128xf32>
    %279 = vector.broadcast %158 : vector<1x128xf32> to vector<16x128xf32>
    %280 = arith.addf %278, %279 : vector<16x128xf32>
    %cst_244 = arith.constant 0.000000e+00 : f32
    %281 = vector.broadcast %cst_244 : f32 to vector<16x128xf32>
    %282 = arith.maximumf %280, %281 : vector<16x128xf32>
    %283 = arith.truncf %282 : vector<16x128xf32> to vector<16x128xbf16>
    %c0_245 = arith.constant 0 : index
    %c2176 = arith.constant 2176 : index
    %284 = vector.load %arg11[%c0_245, %c2176] : memref<16x8192xbf16, #tpu.memory_space<vmem>>, vector<16x128xbf16>
    tpu.vector_store %arg11[%c0_245, %c2176], %283 {strides = array<i32>} : memref<16x8192xbf16, #tpu.memory_space<vmem>>, vector<16x128xbf16>,
    %c288 = arith.constant 288 : index
    %c0_246 = arith.constant 0 : index
    %285 = vector.load %arg10[%c288, %c0_246] : memref<1024x128xf32, #tpu.memory_space<vmem>>, vector<16x128xf32>
    %286 = vector.broadcast %158 : vector<1x128xf32> to vector<16x128xf32>
    %287 = arith.addf %285, %286 : vector<16x128xf32>
    %cst_247 = arith.constant 0.000000e+00 : f32
    %288 = vector.broadcast %cst_247 : f32 to vector<16x128xf32>
    %289 = arith.maximumf %287, %288 : vector<16x128xf32>
    %290 = arith.truncf %289 : vector<16x128xf32> to vector<16x128xbf16>
    %c0_248 = arith.constant 0 : index
    %c2304 = arith.constant 2304 : index
    %291 = vector.load %arg11[%c0_248, %c2304] : memref<16x8192xbf16, #tpu.memory_space<vmem>>, vector<16x128xbf16>
    tpu.vector_store %arg11[%c0_248, %c2304], %290 {strides = array<i32>} : memref<16x8192xbf16, #tpu.memory_space<vmem>>, vector<16x128xbf16>,
    %c304 = arith.constant 304 : index
    %c0_249 = arith.constant 0 : index
    %292 = vector.load %arg10[%c304, %c0_249] : memref<1024x128xf32, #tpu.memory_space<vmem>>, vector<16x128xf32>
    %293 = vector.broadcast %158 : vector<1x128xf32> to vector<16x128xf32>
    %294 = arith.addf %292, %293 : vector<16x128xf32>
    %cst_250 = arith.constant 0.000000e+00 : f32
    %295 = vector.broadcast %cst_250 : f32 to vector<16x128xf32>
    %296 = arith.maximumf %294, %295 : vector<16x128xf32>
    %297 = arith.truncf %296 : vector<16x128xf32> to vector<16x128xbf16>
    %c0_251 = arith.constant 0 : index
    %c2432 = arith.constant 2432 : index
    %298 = vector.load %arg11[%c0_251, %c2432] : memref<16x8192xbf16, #tpu.memory_space<vmem>>, vector<16x128xbf16>
    tpu.vector_store %arg11[%c0_251, %c2432], %297 {strides = array<i32>} : memref<16x8192xbf16, #tpu.memory_space<vmem>>, vector<16x128xbf16>,
    %c320 = arith.constant 320 : index
    %c0_252 = arith.constant 0 : index
    %299 = vector.load %arg10[%c320, %c0_252] : memref<1024x128xf32, #tpu.memory_space<vmem>>, vector<16x128xf32>
    %300 = vector.broadcast %158 : vector<1x128xf32> to vector<16x128xf32>
    %301 = arith.addf %299, %300 : vector<16x128xf32>
    %cst_253 = arith.constant 0.000000e+00 : f32
    %302 = vector.broadcast %cst_253 : f32 to vector<16x128xf32>
    %303 = arith.maximumf %301, %302 : vector<16x128xf32>
    %304 = arith.truncf %303 : vector<16x128xf32> to vector<16x128xbf16>
    %c0_254 = arith.constant 0 : index
    %c2560 = arith.constant 2560 : index
    %305 = vector.load %arg11[%c0_254, %c2560] : memref<16x8192xbf16, #tpu.memory_space<vmem>>, vector<16x128xbf16>
    tpu.vector_store %arg11[%c0_254, %c2560], %304 {strides = array<i32>} : memref<16x8192xbf16, #tpu.memory_space<vmem>>, vector<16x128xbf16>,
    %c336 = arith.constant 336 : index
    %c0_255 = arith.constant 0 : index
    %306 = vector.load %arg10[%c336, %c0_255] : memref<1024x128xf32, #tpu.memory_space<vmem>>, vector<16x128xf32>
    %307 = vector.broadcast %158 : vector<1x128xf32> to vector<16x128xf32>
    %308 = arith.addf %306, %307 : vector<16x128xf32>
    %cst_256 = arith.constant 0.000000e+00 : f32
    %309 = vector.broadcast %cst_256 : f32 to vector<16x128xf32>
    %310 = arith.maximumf %308, %309 : vector<16x128xf32>
    %311 = arith.truncf %310 : vector<16x128xf32> to vector<16x128xbf16>
    %c0_257 = arith.constant 0 : index
    %c2688 = arith.constant 2688 : index
    %312 = vector.load %arg11[%c0_257, %c2688] : memref<16x8192xbf16, #tpu.memory_space<vmem>>, vector<16x128xbf16>
    tpu.vector_store %arg11[%c0_257, %c2688], %311 {strides = array<i32>} : memref<16x8192xbf16, #tpu.memory_space<vmem>>, vector<16x128xbf16>,
    %c352 = arith.constant 352 : index
    %c0_258 = arith.constant 0 : index
    %313 = vector.load %arg10[%c352, %c0_258] : memref<1024x128xf32, #tpu.memory_space<vmem>>, vector<16x128xf32>
    %314 = vector.broadcast %158 : vector<1x128xf32> to vector<16x128xf32>
    %315 = arith.addf %313, %314 : vector<16x128xf32>
    %cst_259 = arith.constant 0.000000e+00 : f32
    %316 = vector.broadcast %cst_259 : f32 to vector<16x128xf32>
    %317 = arith.maximumf %315, %316 : vector<16x128xf32>
    %318 = arith.truncf %317 : vector<16x128xf32> to vector<16x128xbf16>
    %c0_260 = arith.constant 0 : index
    %c2816 = arith.constant 2816 : index
    %319 = vector.load %arg11[%c0_260, %c2816] : memref<16x8192xbf16, #tpu.memory_space<vmem>>, vector<16x128xbf16>
    tpu.vector_store %arg11[%c0_260, %c2816], %318 {strides = array<i32>} : memref<16x8192xbf16, #tpu.memory_space<vmem>>, vector<16x128xbf16>,
    %c368 = arith.constant 368 : index
    %c0_261 = arith.constant 0 : index
    %320 = vector.load %arg10[%c368, %c0_261] : memref<1024x128xf32, #tpu.memory_space<vmem>>, vector<16x128xf32>
    %321 = vector.broadcast %158 : vector<1x128xf32> to vector<16x128xf32>
    %322 = arith.addf %320, %321 : vector<16x128xf32>
    %cst_262 = arith.constant 0.000000e+00 : f32
    %323 = vector.broadcast %cst_262 : f32 to vector<16x128xf32>
    %324 = arith.maximumf %322, %323 : vector<16x128xf32>
    %325 = arith.truncf %324 : vector<16x128xf32> to vector<16x128xbf16>
    %c0_263 = arith.constant 0 : index
    %c2944 = arith.constant 2944 : index
    %326 = vector.load %arg11[%c0_263, %c2944] : memref<16x8192xbf16, #tpu.memory_space<vmem>>, vector<16x128xbf16>
    tpu.vector_store %arg11[%c0_263, %c2944], %325 {strides = array<i32>} : memref<16x8192xbf16, #tpu.memory_space<vmem>>, vector<16x128xbf16>,
    %c384_264 = arith.constant 384 : index
    %c0_265 = arith.constant 0 : index
    %327 = vector.load %arg10[%c384_264, %c0_265] : memref<1024x128xf32, #tpu.memory_space<vmem>>, vector<16x128xf32>
    %328 = vector.broadcast %158 : vector<1x128xf32> to vector<16x128xf32>
    %329 = arith.addf %327, %328 : vector<16x128xf32>
    %cst_266 = arith.constant 0.000000e+00 : f32
    %330 = vector.broadcast %cst_266 : f32 to vector<16x128xf32>
    %331 = arith.maximumf %329, %330 : vector<16x128xf32>
    %332 = arith.truncf %331 : vector<16x128xf32> to vector<16x128xbf16>
    %c0_267 = arith.constant 0 : index
    %c3072 = arith.constant 3072 : index
    %333 = vector.load %arg11[%c0_267, %c3072] : memref<16x8192xbf16, #tpu.memory_space<vmem>>, vector<16x128xbf16>
    tpu.vector_store %arg11[%c0_267, %c3072], %332 {strides = array<i32>} : memref<16x8192xbf16, #tpu.memory_space<vmem>>, vector<16x128xbf16>,
    %c400 = arith.constant 400 : index
    %c0_268 = arith.constant 0 : index
    %334 = vector.load %arg10[%c400, %c0_268] : memref<1024x128xf32, #tpu.memory_space<vmem>>, vector<16x128xf32>
    %335 = vector.broadcast %158 : vector<1x128xf32> to vector<16x128xf32>
    %336 = arith.addf %334, %335 : vector<16x128xf32>
    %cst_269 = arith.constant 0.000000e+00 : f32
    %337 = vector.broadcast %cst_269 : f32 to vector<16x128xf32>
    %338 = arith.maximumf %336, %337 : vector<16x128xf32>
    %339 = arith.truncf %338 : vector<16x128xf32> to vector<16x128xbf16>
    %c0_270 = arith.constant 0 : index
    %c3200 = arith.constant 3200 : index
    %340 = vector.load %arg11[%c0_270, %c3200] : memref<16x8192xbf16, #tpu.memory_space<vmem>>, vector<16x128xbf16>
    tpu.vector_store %arg11[%c0_270, %c3200], %339 {strides = array<i32>} : memref<16x8192xbf16, #tpu.memory_space<vmem>>, vector<16x128xbf16>,
    %c416 = arith.constant 416 : index
    %c0_271 = arith.constant 0 : index
    %341 = vector.load %arg10[%c416, %c0_271] : memref<1024x128xf32, #tpu.memory_space<vmem>>, vector<16x128xf32>
    %342 = vector.broadcast %158 : vector<1x128xf32> to vector<16x128xf32>
    %343 = arith.addf %341, %342 : vector<16x128xf32>
    %cst_272 = arith.constant 0.000000e+00 : f32
    %344 = vector.broadcast %cst_272 : f32 to vector<16x128xf32>
    %345 = arith.maximumf %343, %344 : vector<16x128xf32>
    %346 = arith.truncf %345 : vector<16x128xf32> to vector<16x128xbf16>
    %c0_273 = arith.constant 0 : index
    %c3328 = arith.constant 3328 : index
    %347 = vector.load %arg11[%c0_273, %c3328] : memref<16x8192xbf16, #tpu.memory_space<vmem>>, vector<16x128xbf16>
    tpu.vector_store %arg11[%c0_273, %c3328], %346 {strides = array<i32>} : memref<16x8192xbf16, #tpu.memory_space<vmem>>, vector<16x128xbf16>,
    %c432 = arith.constant 432 : index
    %c0_274 = arith.constant 0 : index
    %348 = vector.load %arg10[%c432, %c0_274] : memref<1024x128xf32, #tpu.memory_space<vmem>>, vector<16x128xf32>
    %349 = vector.broadcast %158 : vector<1x128xf32> to vector<16x128xf32>
    %350 = arith.addf %348, %349 : vector<16x128xf32>
    %cst_275 = arith.constant 0.000000e+00 : f32
    %351 = vector.broadcast %cst_275 : f32 to vector<16x128xf32>
    %352 = arith.maximumf %350, %351 : vector<16x128xf32>
    %353 = arith.truncf %352 : vector<16x128xf32> to vector<16x128xbf16>
    %c0_276 = arith.constant 0 : index
    %c3456 = arith.constant 3456 : index
    %354 = vector.load %arg11[%c0_276, %c3456] : memref<16x8192xbf16, #tpu.memory_space<vmem>>, vector<16x128xbf16>
    tpu.vector_store %arg11[%c0_276, %c3456], %353 {strides = array<i32>} : memref<16x8192xbf16, #tpu.memory_space<vmem>>, vector<16x128xbf16>,
    %c448 = arith.constant 448 : index
    %c0_277 = arith.constant 0 : index
    %355 = vector.load %arg10[%c448, %c0_277] : memref<1024x128xf32, #tpu.memory_space<vmem>>, vector<16x128xf32>
    %356 = vector.broadcast %158 : vector<1x128xf32> to vector<16x128xf32>
    %357 = arith.addf %355, %356 : vector<16x128xf32>
    %cst_278 = arith.constant 0.000000e+00 : f32
    %358 = vector.broadcast %cst_278 : f32 to vector<16x128xf32>
    %359 = arith.maximumf %357, %358 : vector<16x128xf32>
    %360 = arith.truncf %359 : vector<16x128xf32> to vector<16x128xbf16>
    %c0_279 = arith.constant 0 : index
    %c3584 = arith.constant 3584 : index
    %361 = vector.load %arg11[%c0_279, %c3584] : memref<16x8192xbf16, #tpu.memory_space<vmem>>, vector<16x128xbf16>
    tpu.vector_store %arg11[%c0_279, %c3584], %360 {strides = array<i32>} : memref<16x8192xbf16, #tpu.memory_space<vmem>>, vector<16x128xbf16>,
    %c464 = arith.constant 464 : index
    %c0_280 = arith.constant 0 : index
    %362 = vector.load %arg10[%c464, %c0_280] : memref<1024x128xf32, #tpu.memory_space<vmem>>, vector<16x128xf32>
    %363 = vector.broadcast %158 : vector<1x128xf32> to vector<16x128xf32>
    %364 = arith.addf %362, %363 : vector<16x128xf32>
    %cst_281 = arith.constant 0.000000e+00 : f32
    %365 = vector.broadcast %cst_281 : f32 to vector<16x128xf32>
    %366 = arith.maximumf %364, %365 : vector<16x128xf32>
    %367 = arith.truncf %366 : vector<16x128xf32> to vector<16x128xbf16>
    %c0_282 = arith.constant 0 : index
    %c3712 = arith.constant 3712 : index
    %368 = vector.load %arg11[%c0_282, %c3712] : memref<16x8192xbf16, #tpu.memory_space<vmem>>, vector<16x128xbf16>
    tpu.vector_store %arg11[%c0_282, %c3712], %367 {strides = array<i32>} : memref<16x8192xbf16, #tpu.memory_space<vmem>>, vector<16x128xbf16>,
    %c480 = arith.constant 480 : index
    %c0_283 = arith.constant 0 : index
    %369 = vector.load %arg10[%c480, %c0_283] : memref<1024x128xf32, #tpu.memory_space<vmem>>, vector<16x128xf32>
    %370 = vector.broadcast %158 : vector<1x128xf32> to vector<16x128xf32>
    %371 = arith.addf %369, %370 : vector<16x128xf32>
    %cst_284 = arith.constant 0.000000e+00 : f32
    %372 = vector.broadcast %cst_284 : f32 to vector<16x128xf32>
    %373 = arith.maximumf %371, %372 : vector<16x128xf32>
    %374 = arith.truncf %373 : vector<16x128xf32> to vector<16x128xbf16>
    %c0_285 = arith.constant 0 : index
    %c3840 = arith.constant 3840 : index
    %375 = vector.load %arg11[%c0_285, %c3840] : memref<16x8192xbf16, #tpu.memory_space<vmem>>, vector<16x128xbf16>
    tpu.vector_store %arg11[%c0_285, %c3840], %374 {strides = array<i32>} : memref<16x8192xbf16, #tpu.memory_space<vmem>>, vector<16x128xbf16>,
    %c496 = arith.constant 496 : index
    %c0_286 = arith.constant 0 : index
    %376 = vector.load %arg10[%c496, %c0_286] : memref<1024x128xf32, #tpu.memory_space<vmem>>, vector<16x128xf32>
    %377 = vector.broadcast %158 : vector<1x128xf32> to vector<16x128xf32>
    %378 = arith.addf %376, %377 : vector<16x128xf32>
    %cst_287 = arith.constant 0.000000e+00 : f32
    %379 = vector.broadcast %cst_287 : f32 to vector<16x128xf32>
    %380 = arith.maximumf %378, %379 : vector<16x128xf32>
    %381 = arith.truncf %380 : vector<16x128xf32> to vector<16x128xbf16>
    %c0_288 = arith.constant 0 : index
    %c3968 = arith.constant 3968 : index
    %382 = vector.load %arg11[%c0_288, %c3968] : memref<16x8192xbf16, #tpu.memory_space<vmem>>, vector<16x128xbf16>
    tpu.vector_store %arg11[%c0_288, %c3968], %381 {strides = array<i32>} : memref<16x8192xbf16, #tpu.memory_space<vmem>>, vector<16x128xbf16>,
    %c512_289 = arith.constant 512 : index
    %c0_290 = arith.constant 0 : index
    %383 = vector.load %arg10[%c512_289, %c0_290] : memref<1024x128xf32, #tpu.memory_space<vmem>>, vector<16x128xf32>
    %384 = vector.broadcast %158 : vector<1x128xf32> to vector<16x128xf32>
    %385 = arith.addf %383, %384 : vector<16x128xf32>
    %cst_291 = arith.constant 0.000000e+00 : f32
    %386 = vector.broadcast %cst_291 : f32 to vector<16x128xf32>
    %387 = arith.maximumf %385, %386 : vector<16x128xf32>
    %388 = arith.truncf %387 : vector<16x128xf32> to vector<16x128xbf16>
    %c0_292 = arith.constant 0 : index
    %c4096 = arith.constant 4096 : index
    %389 = vector.load %arg11[%c0_292, %c4096] : memref<16x8192xbf16, #tpu.memory_space<vmem>>, vector<16x128xbf16>
    tpu.vector_store %arg11[%c0_292, %c4096], %388 {strides = array<i32>} : memref<16x8192xbf16, #tpu.memory_space<vmem>>, vector<16x128xbf16>,
    %c528 = arith.constant 528 : index
    %c0_293 = arith.constant 0 : index
    %390 = vector.load %arg10[%c528, %c0_293] : memref<1024x128xf32, #tpu.memory_space<vmem>>, vector<16x128xf32>
    %391 = vector.broadcast %158 : vector<1x128xf32> to vector<16x128xf32>
    %392 = arith.addf %390, %391 : vector<16x128xf32>
    %cst_294 = arith.constant 0.000000e+00 : f32
    %393 = vector.broadcast %cst_294 : f32 to vector<16x128xf32>
    %394 = arith.maximumf %392, %393 : vector<16x128xf32>
    %395 = arith.truncf %394 : vector<16x128xf32> to vector<16x128xbf16>
    %c0_295 = arith.constant 0 : index
    %c4224 = arith.constant 4224 : index
    %396 = vector.load %arg11[%c0_295, %c4224] : memref<16x8192xbf16, #tpu.memory_space<vmem>>, vector<16x128xbf16>
    tpu.vector_store %arg11[%c0_295, %c4224], %395 {strides = array<i32>} : memref<16x8192xbf16, #tpu.memory_space<vmem>>, vector<16x128xbf16>,
    %c544 = arith.constant 544 : index
    %c0_296 = arith.constant 0 : index
    %397 = vector.load %arg10[%c544, %c0_296] : memref<1024x128xf32, #tpu.memory_space<vmem>>, vector<16x128xf32>
    %398 = vector.broadcast %158 : vector<1x128xf32> to vector<16x128xf32>
    %399 = arith.addf %397, %398 : vector<16x128xf32>
    %cst_297 = arith.constant 0.000000e+00 : f32
    %400 = vector.broadcast %cst_297 : f32 to vector<16x128xf32>
    %401 = arith.maximumf %399, %400 : vector<16x128xf32>
    %402 = arith.truncf %401 : vector<16x128xf32> to vector<16x128xbf16>
    %c0_298 = arith.constant 0 : index
    %c4352 = arith.constant 4352 : index
    %403 = vector.load %arg11[%c0_298, %c4352] : memref<16x8192xbf16, #tpu.memory_space<vmem>>, vector<16x128xbf16>
    tpu.vector_store %arg11[%c0_298, %c4352], %402 {strides = array<i32>} : memref<16x8192xbf16, #tpu.memory_space<vmem>>, vector<16x128xbf16>,
    %c560 = arith.constant 560 : index
    %c0_299 = arith.constant 0 : index
    %404 = vector.load %arg10[%c560, %c0_299] : memref<1024x128xf32, #tpu.memory_space<vmem>>, vector<16x128xf32>
    %405 = vector.broadcast %158 : vector<1x128xf32> to vector<16x128xf32>
    %406 = arith.addf %404, %405 : vector<16x128xf32>
    %cst_300 = arith.constant 0.000000e+00 : f32
    %407 = vector.broadcast %cst_300 : f32 to vector<16x128xf32>
    %408 = arith.maximumf %406, %407 : vector<16x128xf32>
    %409 = arith.truncf %408 : vector<16x128xf32> to vector<16x128xbf16>
    %c0_301 = arith.constant 0 : index
    %c4480 = arith.constant 4480 : index
    %410 = vector.load %arg11[%c0_301, %c4480] : memref<16x8192xbf16, #tpu.memory_space<vmem>>, vector<16x128xbf16>
    tpu.vector_store %arg11[%c0_301, %c4480], %409 {strides = array<i32>} : memref<16x8192xbf16, #tpu.memory_space<vmem>>, vector<16x128xbf16>,
    %c576 = arith.constant 576 : index
    %c0_302 = arith.constant 0 : index
    %411 = vector.load %arg10[%c576, %c0_302] : memref<1024x128xf32, #tpu.memory_space<vmem>>, vector<16x128xf32>
    %412 = vector.broadcast %158 : vector<1x128xf32> to vector<16x128xf32>
    %413 = arith.addf %411, %412 : vector<16x128xf32>
    %cst_303 = arith.constant 0.000000e+00 : f32
    %414 = vector.broadcast %cst_303 : f32 to vector<16x128xf32>
    %415 = arith.maximumf %413, %414 : vector<16x128xf32>
    %416 = arith.truncf %415 : vector<16x128xf32> to vector<16x128xbf16>
    %c0_304 = arith.constant 0 : index
    %c4608 = arith.constant 4608 : index
    %417 = vector.load %arg11[%c0_304, %c4608] : memref<16x8192xbf16, #tpu.memory_space<vmem>>, vector<16x128xbf16>
    tpu.vector_store %arg11[%c0_304, %c4608], %416 {strides = array<i32>} : memref<16x8192xbf16, #tpu.memory_space<vmem>>, vector<16x128xbf16>,
    %c592 = arith.constant 592 : index
    %c0_305 = arith.constant 0 : index
    %418 = vector.load %arg10[%c592, %c0_305] : memref<1024x128xf32, #tpu.memory_space<vmem>>, vector<16x128xf32>
    %419 = vector.broadcast %158 : vector<1x128xf32> to vector<16x128xf32>
    %420 = arith.addf %418, %419 : vector<16x128xf32>
    %cst_306 = arith.constant 0.000000e+00 : f32
    %421 = vector.broadcast %cst_306 : f32 to vector<16x128xf32>
    %422 = arith.maximumf %420, %421 : vector<16x128xf32>
    %423 = arith.truncf %422 : vector<16x128xf32> to vector<16x128xbf16>
    %c0_307 = arith.constant 0 : index
    %c4736 = arith.constant 4736 : index
    %424 = vector.load %arg11[%c0_307, %c4736] : memref<16x8192xbf16, #tpu.memory_space<vmem>>, vector<16x128xbf16>
    tpu.vector_store %arg11[%c0_307, %c4736], %423 {strides = array<i32>} : memref<16x8192xbf16, #tpu.memory_space<vmem>>, vector<16x128xbf16>,
    %c608 = arith.constant 608 : index
    %c0_308 = arith.constant 0 : index
    %425 = vector.load %arg10[%c608, %c0_308] : memref<1024x128xf32, #tpu.memory_space<vmem>>, vector<16x128xf32>
    %426 = vector.broadcast %158 : vector<1x128xf32> to vector<16x128xf32>
    %427 = arith.addf %425, %426 : vector<16x128xf32>
    %cst_309 = arith.constant 0.000000e+00 : f32
    %428 = vector.broadcast %cst_309 : f32 to vector<16x128xf32>
    %429 = arith.maximumf %427, %428 : vector<16x128xf32>
    %430 = arith.truncf %429 : vector<16x128xf32> to vector<16x128xbf16>
    %c0_310 = arith.constant 0 : index
    %c4864 = arith.constant 4864 : index
    %431 = vector.load %arg11[%c0_310, %c4864] : memref<16x8192xbf16, #tpu.memory_space<vmem>>, vector<16x128xbf16>
    tpu.vector_store %arg11[%c0_310, %c4864], %430 {strides = array<i32>} : memref<16x8192xbf16, #tpu.memory_space<vmem>>, vector<16x128xbf16>,
    %c624 = arith.constant 624 : index
    %c0_311 = arith.constant 0 : index
    %432 = vector.load %arg10[%c624, %c0_311] : memref<1024x128xf32, #tpu.memory_space<vmem>>, vector<16x128xf32>
    %433 = vector.broadcast %158 : vector<1x128xf32> to vector<16x128xf32>
    %434 = arith.addf %432, %433 : vector<16x128xf32>
    %cst_312 = arith.constant 0.000000e+00 : f32
    %435 = vector.broadcast %cst_312 : f32 to vector<16x128xf32>
    %436 = arith.maximumf %434, %435 : vector<16x128xf32>
    %437 = arith.truncf %436 : vector<16x128xf32> to vector<16x128xbf16>
    %c0_313 = arith.constant 0 : index
    %c4992 = arith.constant 4992 : index
    %438 = vector.load %arg11[%c0_313, %c4992] : memref<16x8192xbf16, #tpu.memory_space<vmem>>, vector<16x128xbf16>
    tpu.vector_store %arg11[%c0_313, %c4992], %437 {strides = array<i32>} : memref<16x8192xbf16, #tpu.memory_space<vmem>>, vector<16x128xbf16>,
    %c640_314 = arith.constant 640 : index
    %c0_315 = arith.constant 0 : index
    %439 = vector.load %arg10[%c640_314, %c0_315] : memref<1024x128xf32, #tpu.memory_space<vmem>>, vector<16x128xf32>
    %440 = vector.broadcast %158 : vector<1x128xf32> to vector<16x128xf32>
    %441 = arith.addf %439, %440 : vector<16x128xf32>
    %cst_316 = arith.constant 0.000000e+00 : f32
    %442 = vector.broadcast %cst_316 : f32 to vector<16x128xf32>
    %443 = arith.maximumf %441, %442 : vector<16x128xf32>
    %444 = arith.truncf %443 : vector<16x128xf32> to vector<16x128xbf16>
    %c0_317 = arith.constant 0 : index
    %c5120 = arith.constant 5120 : index
    %445 = vector.load %arg11[%c0_317, %c5120] : memref<16x8192xbf16, #tpu.memory_space<vmem>>, vector<16x128xbf16>
    tpu.vector_store %arg11[%c0_317, %c5120], %444 {strides = array<i32>} : memref<16x8192xbf16, #tpu.memory_space<vmem>>, vector<16x128xbf16>,
    %c656 = arith.constant 656 : index
    %c0_318 = arith.constant 0 : index
    %446 = vector.load %arg10[%c656, %c0_318] : memref<1024x128xf32, #tpu.memory_space<vmem>>, vector<16x128xf32>
    %447 = vector.broadcast %158 : vector<1x128xf32> to vector<16x128xf32>
    %448 = arith.addf %446, %447 : vector<16x128xf32>
    %cst_319 = arith.constant 0.000000e+00 : f32
    %449 = vector.broadcast %cst_319 : f32 to vector<16x128xf32>
    %450 = arith.maximumf %448, %449 : vector<16x128xf32>
    %451 = arith.truncf %450 : vector<16x128xf32> to vector<16x128xbf16>
    %c0_320 = arith.constant 0 : index
    %c5248 = arith.constant 5248 : index
    %452 = vector.load %arg11[%c0_320, %c5248] : memref<16x8192xbf16, #tpu.memory_space<vmem>>, vector<16x128xbf16>
    tpu.vector_store %arg11[%c0_320, %c5248], %451 {strides = array<i32>} : memref<16x8192xbf16, #tpu.memory_space<vmem>>, vector<16x128xbf16>,
    %c672 = arith.constant 672 : index
    %c0_321 = arith.constant 0 : index
    %453 = vector.load %arg10[%c672, %c0_321] : memref<1024x128xf32, #tpu.memory_space<vmem>>, vector<16x128xf32>
    %454 = vector.broadcast %158 : vector<1x128xf32> to vector<16x128xf32>
    %455 = arith.addf %453, %454 : vector<16x128xf32>
    %cst_322 = arith.constant 0.000000e+00 : f32
    %456 = vector.broadcast %cst_322 : f32 to vector<16x128xf32>
    %457 = arith.maximumf %455, %456 : vector<16x128xf32>
    %458 = arith.truncf %457 : vector<16x128xf32> to vector<16x128xbf16>
    %c0_323 = arith.constant 0 : index
    %c5376 = arith.constant 5376 : index
    %459 = vector.load %arg11[%c0_323, %c5376] : memref<16x8192xbf16, #tpu.memory_space<vmem>>, vector<16x128xbf16>
    tpu.vector_store %arg11[%c0_323, %c5376], %458 {strides = array<i32>} : memref<16x8192xbf16, #tpu.memory_space<vmem>>, vector<16x128xbf16>,
    %c688 = arith.constant 688 : index
    %c0_324 = arith.constant 0 : index
    %460 = vector.load %arg10[%c688, %c0_324] : memref<1024x128xf32, #tpu.memory_space<vmem>>, vector<16x128xf32>
    %461 = vector.broadcast %158 : vector<1x128xf32> to vector<16x128xf32>
    %462 = arith.addf %460, %461 : vector<16x128xf32>
    %cst_325 = arith.constant 0.000000e+00 : f32
    %463 = vector.broadcast %cst_325 : f32 to vector<16x128xf32>
    %464 = arith.maximumf %462, %463 : vector<16x128xf32>
    %465 = arith.truncf %464 : vector<16x128xf32> to vector<16x128xbf16>
    %c0_326 = arith.constant 0 : index
    %c5504 = arith.constant 5504 : index
    %466 = vector.load %arg11[%c0_326, %c5504] : memref<16x8192xbf16, #tpu.memory_space<vmem>>, vector<16x128xbf16>
    tpu.vector_store %arg11[%c0_326, %c5504], %465 {strides = array<i32>} : memref<16x8192xbf16, #tpu.memory_space<vmem>>, vector<16x128xbf16>,
    %c704 = arith.constant 704 : index
    %c0_327 = arith.constant 0 : index
    %467 = vector.load %arg10[%c704, %c0_327] : memref<1024x128xf32, #tpu.memory_space<vmem>>, vector<16x128xf32>
    %468 = vector.broadcast %158 : vector<1x128xf32> to vector<16x128xf32>
    %469 = arith.addf %467, %468 : vector<16x128xf32>
    %cst_328 = arith.constant 0.000000e+00 : f32
    %470 = vector.broadcast %cst_328 : f32 to vector<16x128xf32>
    %471 = arith.maximumf %469, %470 : vector<16x128xf32>
    %472 = arith.truncf %471 : vector<16x128xf32> to vector<16x128xbf16>
    %c0_329 = arith.constant 0 : index
    %c5632 = arith.constant 5632 : index
    %473 = vector.load %arg11[%c0_329, %c5632] : memref<16x8192xbf16, #tpu.memory_space<vmem>>, vector<16x128xbf16>
    tpu.vector_store %arg11[%c0_329, %c5632], %472 {strides = array<i32>} : memref<16x8192xbf16, #tpu.memory_space<vmem>>, vector<16x128xbf16>,
    %c720 = arith.constant 720 : index
    %c0_330 = arith.constant 0 : index
    %474 = vector.load %arg10[%c720, %c0_330] : memref<1024x128xf32, #tpu.memory_space<vmem>>, vector<16x128xf32>
    %475 = vector.broadcast %158 : vector<1x128xf32> to vector<16x128xf32>
    %476 = arith.addf %474, %475 : vector<16x128xf32>
    %cst_331 = arith.constant 0.000000e+00 : f32
    %477 = vector.broadcast %cst_331 : f32 to vector<16x128xf32>
    %478 = arith.maximumf %476, %477 : vector<16x128xf32>
    %479 = arith.truncf %478 : vector<16x128xf32> to vector<16x128xbf16>
    %c0_332 = arith.constant 0 : index
    %c5760 = arith.constant 5760 : index
    %480 = vector.load %arg11[%c0_332, %c5760] : memref<16x8192xbf16, #tpu.memory_space<vmem>>, vector<16x128xbf16>
    tpu.vector_store %arg11[%c0_332, %c5760], %479 {strides = array<i32>} : memref<16x8192xbf16, #tpu.memory_space<vmem>>, vector<16x128xbf16>,
    %c736 = arith.constant 736 : index
    %c0_333 = arith.constant 0 : index
    %481 = vector.load %arg10[%c736, %c0_333] : memref<1024x128xf32, #tpu.memory_space<vmem>>, vector<16x128xf32>
    %482 = vector.broadcast %158 : vector<1x128xf32> to vector<16x128xf32>
    %483 = arith.addf %481, %482 : vector<16x128xf32>
    %cst_334 = arith.constant 0.000000e+00 : f32
    %484 = vector.broadcast %cst_334 : f32 to vector<16x128xf32>
    %485 = arith.maximumf %483, %484 : vector<16x128xf32>
    %486 = arith.truncf %485 : vector<16x128xf32> to vector<16x128xbf16>
    %c0_335 = arith.constant 0 : index
    %c5888 = arith.constant 5888 : index
    %487 = vector.load %arg11[%c0_335, %c5888] : memref<16x8192xbf16, #tpu.memory_space<vmem>>, vector<16x128xbf16>
    tpu.vector_store %arg11[%c0_335, %c5888], %486 {strides = array<i32>} : memref<16x8192xbf16, #tpu.memory_space<vmem>>, vector<16x128xbf16>,
    %c752 = arith.constant 752 : index
    %c0_336 = arith.constant 0 : index
    %488 = vector.load %arg10[%c752, %c0_336] : memref<1024x128xf32, #tpu.memory_space<vmem>>, vector<16x128xf32>
    %489 = vector.broadcast %158 : vector<1x128xf32> to vector<16x128xf32>
    %490 = arith.addf %488, %489 : vector<16x128xf32>
    %cst_337 = arith.constant 0.000000e+00 : f32
    %491 = vector.broadcast %cst_337 : f32 to vector<16x128xf32>
    %492 = arith.maximumf %490, %491 : vector<16x128xf32>
    %493 = arith.truncf %492 : vector<16x128xf32> to vector<16x128xbf16>
    %c0_338 = arith.constant 0 : index
    %c6016 = arith.constant 6016 : index
    %494 = vector.load %arg11[%c0_338, %c6016] : memref<16x8192xbf16, #tpu.memory_space<vmem>>, vector<16x128xbf16>
    tpu.vector_store %arg11[%c0_338, %c6016], %493 {strides = array<i32>} : memref<16x8192xbf16, #tpu.memory_space<vmem>>, vector<16x128xbf16>,
    %c768_339 = arith.constant 768 : index
    %c0_340 = arith.constant 0 : index
    %495 = vector.load %arg10[%c768_339, %c0_340] : memref<1024x128xf32, #tpu.memory_space<vmem>>, vector<16x128xf32>
    %496 = vector.broadcast %158 : vector<1x128xf32> to vector<16x128xf32>
    %497 = arith.addf %495, %496 : vector<16x128xf32>
    %cst_341 = arith.constant 0.000000e+00 : f32
    %498 = vector.broadcast %cst_341 : f32 to vector<16x128xf32>
    %499 = arith.maximumf %497, %498 : vector<16x128xf32>
    %500 = arith.truncf %499 : vector<16x128xf32> to vector<16x128xbf16>
    %c0_342 = arith.constant 0 : index
    %c6144 = arith.constant 6144 : index
    %501 = vector.load %arg11[%c0_342, %c6144] : memref<16x8192xbf16, #tpu.memory_space<vmem>>, vector<16x128xbf16>
    tpu.vector_store %arg11[%c0_342, %c6144], %500 {strides = array<i32>} : memref<16x8192xbf16, #tpu.memory_space<vmem>>, vector<16x128xbf16>,
    %c784 = arith.constant 784 : index
    %c0_343 = arith.constant 0 : index
    %502 = vector.load %arg10[%c784, %c0_343] : memref<1024x128xf32, #tpu.memory_space<vmem>>, vector<16x128xf32>
    %503 = vector.broadcast %158 : vector<1x128xf32> to vector<16x128xf32>
    %504 = arith.addf %502, %503 : vector<16x128xf32>
    %cst_344 = arith.constant 0.000000e+00 : f32
    %505 = vector.broadcast %cst_344 : f32 to vector<16x128xf32>
    %506 = arith.maximumf %504, %505 : vector<16x128xf32>
    %507 = arith.truncf %506 : vector<16x128xf32> to vector<16x128xbf16>
    %c0_345 = arith.constant 0 : index
    %c6272 = arith.constant 6272 : index
    %508 = vector.load %arg11[%c0_345, %c6272] : memref<16x8192xbf16, #tpu.memory_space<vmem>>, vector<16x128xbf16>
    tpu.vector_store %arg11[%c0_345, %c6272], %507 {strides = array<i32>} : memref<16x8192xbf16, #tpu.memory_space<vmem>>, vector<16x128xbf16>,
    %c800 = arith.constant 800 : index
    %c0_346 = arith.constant 0 : index
    %509 = vector.load %arg10[%c800, %c0_346] : memref<1024x128xf32, #tpu.memory_space<vmem>>, vector<16x128xf32>
    %510 = vector.broadcast %158 : vector<1x128xf32> to vector<16x128xf32>
    %511 = arith.addf %509, %510 : vector<16x128xf32>
    %cst_347 = arith.constant 0.000000e+00 : f32
    %512 = vector.broadcast %cst_347 : f32 to vector<16x128xf32>
    %513 = arith.maximumf %511, %512 : vector<16x128xf32>
    %514 = arith.truncf %513 : vector<16x128xf32> to vector<16x128xbf16>
    %c0_348 = arith.constant 0 : index
    %c6400 = arith.constant 6400 : index
    %515 = vector.load %arg11[%c0_348, %c6400] : memref<16x8192xbf16, #tpu.memory_space<vmem>>, vector<16x128xbf16>
    tpu.vector_store %arg11[%c0_348, %c6400], %514 {strides = array<i32>} : memref<16x8192xbf16, #tpu.memory_space<vmem>>, vector<16x128xbf16>,
    %c816 = arith.constant 816 : index
    %c0_349 = arith.constant 0 : index
    %516 = vector.load %arg10[%c816, %c0_349] : memref<1024x128xf32, #tpu.memory_space<vmem>>, vector<16x128xf32>
    %517 = vector.broadcast %158 : vector<1x128xf32> to vector<16x128xf32>
    %518 = arith.addf %516, %517 : vector<16x128xf32>
    %cst_350 = arith.constant 0.000000e+00 : f32
    %519 = vector.broadcast %cst_350 : f32 to vector<16x128xf32>
    %520 = arith.maximumf %518, %519 : vector<16x128xf32>
    %521 = arith.truncf %520 : vector<16x128xf32> to vector<16x128xbf16>
    %c0_351 = arith.constant 0 : index
    %c6528 = arith.constant 6528 : index
    %522 = vector.load %arg11[%c0_351, %c6528] : memref<16x8192xbf16, #tpu.memory_space<vmem>>, vector<16x128xbf16>
    tpu.vector_store %arg11[%c0_351, %c6528], %521 {strides = array<i32>} : memref<16x8192xbf16, #tpu.memory_space<vmem>>, vector<16x128xbf16>,
    %c832 = arith.constant 832 : index
    %c0_352 = arith.constant 0 : index
    %523 = vector.load %arg10[%c832, %c0_352] : memref<1024x128xf32, #tpu.memory_space<vmem>>, vector<16x128xf32>
    %524 = vector.broadcast %158 : vector<1x128xf32> to vector<16x128xf32>
    %525 = arith.addf %523, %524 : vector<16x128xf32>
    %cst_353 = arith.constant 0.000000e+00 : f32
    %526 = vector.broadcast %cst_353 : f32 to vector<16x128xf32>
    %527 = arith.maximumf %525, %526 : vector<16x128xf32>
    %528 = arith.truncf %527 : vector<16x128xf32> to vector<16x128xbf16>
    %c0_354 = arith.constant 0 : index
    %c6656 = arith.constant 6656 : index
    %529 = vector.load %arg11[%c0_354, %c6656] : memref<16x8192xbf16, #tpu.memory_space<vmem>>, vector<16x128xbf16>
    tpu.vector_store %arg11[%c0_354, %c6656], %528 {strides = array<i32>} : memref<16x8192xbf16, #tpu.memory_space<vmem>>, vector<16x128xbf16>,
    %c848 = arith.constant 848 : index
    %c0_355 = arith.constant 0 : index
    %530 = vector.load %arg10[%c848, %c0_355] : memref<1024x128xf32, #tpu.memory_space<vmem>>, vector<16x128xf32>
    %531 = vector.broadcast %158 : vector<1x128xf32> to vector<16x128xf32>
    %532 = arith.addf %530, %531 : vector<16x128xf32>
    %cst_356 = arith.constant 0.000000e+00 : f32
    %533 = vector.broadcast %cst_356 : f32 to vector<16x128xf32>
    %534 = arith.maximumf %532, %533 : vector<16x128xf32>
    %535 = arith.truncf %534 : vector<16x128xf32> to vector<16x128xbf16>
    %c0_357 = arith.constant 0 : index
    %c6784 = arith.constant 6784 : index
    %536 = vector.load %arg11[%c0_357, %c6784] : memref<16x8192xbf16, #tpu.memory_space<vmem>>, vector<16x128xbf16>
    tpu.vector_store %arg11[%c0_357, %c6784], %535 {strides = array<i32>} : memref<16x8192xbf16, #tpu.memory_space<vmem>>, vector<16x128xbf16>,
    %c864 = arith.constant 864 : index
    %c0_358 = arith.constant 0 : index
    %537 = vector.load %arg10[%c864, %c0_358] : memref<1024x128xf32, #tpu.memory_space<vmem>>, vector<16x128xf32>
    %538 = vector.broadcast %158 : vector<1x128xf32> to vector<16x128xf32>
    %539 = arith.addf %537, %538 : vector<16x128xf32>
    %cst_359 = arith.constant 0.000000e+00 : f32
    %540 = vector.broadcast %cst_359 : f32 to vector<16x128xf32>
    %541 = arith.maximumf %539, %540 : vector<16x128xf32>
    %542 = arith.truncf %541 : vector<16x128xf32> to vector<16x128xbf16>
    %c0_360 = arith.constant 0 : index
    %c6912 = arith.constant 6912 : index
    %543 = vector.load %arg11[%c0_360, %c6912] : memref<16x8192xbf16, #tpu.memory_space<vmem>>, vector<16x128xbf16>
    tpu.vector_store %arg11[%c0_360, %c6912], %542 {strides = array<i32>} : memref<16x8192xbf16, #tpu.memory_space<vmem>>, vector<16x128xbf16>,
    %c880 = arith.constant 880 : index
    %c0_361 = arith.constant 0 : index
    %544 = vector.load %arg10[%c880, %c0_361] : memref<1024x128xf32, #tpu.memory_space<vmem>>, vector<16x128xf32>
    %545 = vector.broadcast %158 : vector<1x128xf32> to vector<16x128xf32>
    %546 = arith.addf %544, %545 : vector<16x128xf32>
    %cst_362 = arith.constant 0.000000e+00 : f32
    %547 = vector.broadcast %cst_362 : f32 to vector<16x128xf32>
    %548 = arith.maximumf %546, %547 : vector<16x128xf32>
    %549 = arith.truncf %548 : vector<16x128xf32> to vector<16x128xbf16>
    %c0_363 = arith.constant 0 : index
    %c7040 = arith.constant 7040 : index
    %550 = vector.load %arg11[%c0_363, %c7040] : memref<16x8192xbf16, #tpu.memory_space<vmem>>, vector<16x128xbf16>
    tpu.vector_store %arg11[%c0_363, %c7040], %549 {strides = array<i32>} : memref<16x8192xbf16, #tpu.memory_space<vmem>>, vector<16x128xbf16>,
    %c896_364 = arith.constant 896 : index
    %c0_365 = arith.constant 0 : index
    %551 = vector.load %arg10[%c896_364, %c0_365] : memref<1024x128xf32, #tpu.memory_space<vmem>>, vector<16x128xf32>
    %552 = vector.broadcast %158 : vector<1x128xf32> to vector<16x128xf32>
    %553 = arith.addf %551, %552 : vector<16x128xf32>
    %cst_366 = arith.constant 0.000000e+00 : f32
    %554 = vector.broadcast %cst_366 : f32 to vector<16x128xf32>
    %555 = arith.maximumf %553, %554 : vector<16x128xf32>
    %556 = arith.truncf %555 : vector<16x128xf32> to vector<16x128xbf16>
    %c0_367 = arith.constant 0 : index
    %c7168 = arith.constant 7168 : index
    %557 = vector.load %arg11[%c0_367, %c7168] : memref<16x8192xbf16, #tpu.memory_space<vmem>>, vector<16x128xbf16>
    tpu.vector_store %arg11[%c0_367, %c7168], %556 {strides = array<i32>} : memref<16x8192xbf16, #tpu.memory_space<vmem>>, vector<16x128xbf16>,
    %c912 = arith.constant 912 : index
    %c0_368 = arith.constant 0 : index
    %558 = vector.load %arg10[%c912, %c0_368] : memref<1024x128xf32, #tpu.memory_space<vmem>>, vector<16x128xf32>
    %559 = vector.broadcast %158 : vector<1x128xf32> to vector<16x128xf32>
    %560 = arith.addf %558, %559 : vector<16x128xf32>
    %cst_369 = arith.constant 0.000000e+00 : f32
    %561 = vector.broadcast %cst_369 : f32 to vector<16x128xf32>
    %562 = arith.maximumf %560, %561 : vector<16x128xf32>
    %563 = arith.truncf %562 : vector<16x128xf32> to vector<16x128xbf16>
    %c0_370 = arith.constant 0 : index
    %c7296 = arith.constant 7296 : index
    %564 = vector.load %arg11[%c0_370, %c7296] : memref<16x8192xbf16, #tpu.memory_space<vmem>>, vector<16x128xbf16>
    tpu.vector_store %arg11[%c0_370, %c7296], %563 {strides = array<i32>} : memref<16x8192xbf16, #tpu.memory_space<vmem>>, vector<16x128xbf16>,
    %c928 = arith.constant 928 : index
    %c0_371 = arith.constant 0 : index
    %565 = vector.load %arg10[%c928, %c0_371] : memref<1024x128xf32, #tpu.memory_space<vmem>>, vector<16x128xf32>
    %566 = vector.broadcast %158 : vector<1x128xf32> to vector<16x128xf32>
    %567 = arith.addf %565, %566 : vector<16x128xf32>
    %cst_372 = arith.constant 0.000000e+00 : f32
    %568 = vector.broadcast %cst_372 : f32 to vector<16x128xf32>
    %569 = arith.maximumf %567, %568 : vector<16x128xf32>
    %570 = arith.truncf %569 : vector<16x128xf32> to vector<16x128xbf16>
    %c0_373 = arith.constant 0 : index
    %c7424 = arith.constant 7424 : index
    %571 = vector.load %arg11[%c0_373, %c7424] : memref<16x8192xbf16, #tpu.memory_space<vmem>>, vector<16x128xbf16>
    tpu.vector_store %arg11[%c0_373, %c7424], %570 {strides = array<i32>} : memref<16x8192xbf16, #tpu.memory_space<vmem>>, vector<16x128xbf16>,
    %c944 = arith.constant 944 : index
    %c0_374 = arith.constant 0 : index
    %572 = vector.load %arg10[%c944, %c0_374] : memref<1024x128xf32, #tpu.memory_space<vmem>>, vector<16x128xf32>
    %573 = vector.broadcast %158 : vector<1x128xf32> to vector<16x128xf32>
    %574 = arith.addf %572, %573 : vector<16x128xf32>
    %cst_375 = arith.constant 0.000000e+00 : f32
    %575 = vector.broadcast %cst_375 : f32 to vector<16x128xf32>
    %576 = arith.maximumf %574, %575 : vector<16x128xf32>
    %577 = arith.truncf %576 : vector<16x128xf32> to vector<16x128xbf16>
    %c0_376 = arith.constant 0 : index
    %c7552 = arith.constant 7552 : index
    %578 = vector.load %arg11[%c0_376, %c7552] : memref<16x8192xbf16, #tpu.memory_space<vmem>>, vector<16x128xbf16>
    tpu.vector_store %arg11[%c0_376, %c7552], %577 {strides = array<i32>} : memref<16x8192xbf16, #tpu.memory_space<vmem>>, vector<16x128xbf16>,
    %c960 = arith.constant 960 : index
    %c0_377 = arith.constant 0 : index
    %579 = vector.load %arg10[%c960, %c0_377] : memref<1024x128xf32, #tpu.memory_space<vmem>>, vector<16x128xf32>
    %580 = vector.broadcast %158 : vector<1x128xf32> to vector<16x128xf32>
    %581 = arith.addf %579, %580 : vector<16x128xf32>
    %cst_378 = arith.constant 0.000000e+00 : f32
    %582 = vector.broadcast %cst_378 : f32 to vector<16x128xf32>
    %583 = arith.maximumf %581, %582 : vector<16x128xf32>
    %584 = arith.truncf %583 : vector<16x128xf32> to vector<16x128xbf16>
    %c0_379 = arith.constant 0 : index
    %c7680 = arith.constant 7680 : index
    %585 = vector.load %arg11[%c0_379, %c7680] : memref<16x8192xbf16, #tpu.memory_space<vmem>>, vector<16x128xbf16>
    tpu.vector_store %arg11[%c0_379, %c7680], %584 {strides = array<i32>} : memref<16x8192xbf16, #tpu.memory_space<vmem>>, vector<16x128xbf16>,
    %c976 = arith.constant 976 : index
    %c0_380 = arith.constant 0 : index
    %586 = vector.load %arg10[%c976, %c0_380] : memref<1024x128xf32, #tpu.memory_space<vmem>>, vector<16x128xf32>
    %587 = vector.broadcast %158 : vector<1x128xf32> to vector<16x128xf32>
    %588 = arith.addf %586, %587 : vector<16x128xf32>
    %cst_381 = arith.constant 0.000000e+00 : f32
    %589 = vector.broadcast %cst_381 : f32 to vector<16x128xf32>
    %590 = arith.maximumf %588, %589 : vector<16x128xf32>
    %591 = arith.truncf %590 : vector<16x128xf32> to vector<16x128xbf16>
    %c0_382 = arith.constant 0 : index
    %c7808 = arith.constant 7808 : index
    %592 = vector.load %arg11[%c0_382, %c7808] : memref<16x8192xbf16, #tpu.memory_space<vmem>>, vector<16x128xbf16>
    tpu.vector_store %arg11[%c0_382, %c7808], %591 {strides = array<i32>} : memref<16x8192xbf16, #tpu.memory_space<vmem>>, vector<16x128xbf16>,
    %c992 = arith.constant 992 : index
    %c0_383 = arith.constant 0 : index
    %593 = vector.load %arg10[%c992, %c0_383] : memref<1024x128xf32, #tpu.memory_space<vmem>>, vector<16x128xf32>
    %594 = vector.broadcast %158 : vector<1x128xf32> to vector<16x128xf32>
    %595 = arith.addf %593, %594 : vector<16x128xf32>
    %cst_384 = arith.constant 0.000000e+00 : f32
    %596 = vector.broadcast %cst_384 : f32 to vector<16x128xf32>
    %597 = arith.maximumf %595, %596 : vector<16x128xf32>
    %598 = arith.truncf %597 : vector<16x128xf32> to vector<16x128xbf16>
    %c0_385 = arith.constant 0 : index
    %c7936 = arith.constant 7936 : index
    %599 = vector.load %arg11[%c0_385, %c7936] : memref<16x8192xbf16, #tpu.memory_space<vmem>>, vector<16x128xbf16>
    tpu.vector_store %arg11[%c0_385, %c7936], %598 {strides = array<i32>} : memref<16x8192xbf16, #tpu.memory_space<vmem>>, vector<16x128xbf16>,
    %c1008 = arith.constant 1008 : index
    %c0_386 = arith.constant 0 : index
    %600 = vector.load %arg10[%c1008, %c0_386] : memref<1024x128xf32, #tpu.memory_space<vmem>>, vector<16x128xf32>
    %601 = vector.broadcast %158 : vector<1x128xf32> to vector<16x128xf32>
    %602 = arith.addf %600, %601 : vector<16x128xf32>
    %cst_387 = arith.constant 0.000000e+00 : f32
    %603 = vector.broadcast %cst_387 : f32 to vector<16x128xf32>
    %604 = arith.maximumf %602, %603 : vector<16x128xf32>
    %605 = arith.truncf %604 : vector<16x128xf32> to vector<16x128xbf16>
    %c0_388 = arith.constant 0 : index
    %c8064 = arith.constant 8064 : index
    %606 = vector.load %arg11[%c0_388, %c8064] : memref<16x8192xbf16, #tpu.memory_space<vmem>>, vector<16x128xbf16>
    tpu.vector_store %arg11[%c0_388, %c8064], %605 {strides = array<i32>} : memref<16x8192xbf16, #tpu.memory_space<vmem>>, vector<16x128xbf16>,
    %c0_389 = arith.constant 0 : index
    %c0_390 = arith.constant 0 : index
    %607 = vector.load %arg11[%c0_389, %c0_390] : memref<16x8192xbf16, #tpu.memory_space<vmem>>, vector<16x8192xbf16>
    %c0_391 = arith.constant 0 : index
    %c0_392 = arith.constant 0 : index
    %608 = vector.load %arg6[%c0_391, %c0_392] : memref<8192x128xbf16, #tpu.memory_space<vmem>>, vector<8192x128xbf16>
    %cst_393 = arith.constant dense<0.000000e+00> : vector<16x128xf32>
    %609 = tpu.matmul %607, %608, %cst_393 {dimension_numbers = #tpu.dot_dimension_numbers<[1], [0], [0], [1], [0, 0, 1, 1], [], []>} : vector<16x8192xbf16>, vector<8192x128xbf16>, vector<16x128xf32> -> vector<16x128xf32>
    %c0_394 = arith.constant 0 : index
    %c0_395 = arith.constant 0 : index
    %610 = vector.load %arg7[%c0_394, %c0_395] : memref<1x128xf32, #tpu.memory_space<vmem>>, vector<1x128xf32>
    %611 = vector.broadcast %610 : vector<1x128xf32> to vector<16x128xf32>
    %612 = arith.addf %609, %611 : vector<16x128xf32>
    %c0_396 = arith.constant 0 : index
    %c0_397 = arith.constant 0 : index
    %613 = vector.load %arg8[%c0_396, %c0_397] : memref<16x128xf32, #tpu.memory_space<vmem>>, vector<16x128xf32>
    tpu.vector_store %arg8[%c0_396, %c0_397], %612 {strides = array<i32>} : memref<16x128xf32, #tpu.memory_space<vmem>>, vector<16x128xf32>,
    return
  }
  func.func @transform_0(%arg0: i32) -> (i32, i32, i32) {
    %c0_i32 = arith.constant 0 : i32
    %c0_i32_0 = arith.constant 0 : i32
    %c0_i32_1 = arith.constant 0 : i32
    return %c0_i32, %arg0, %c0_i32_0 : i32, i32, i32
  }
  func.func @transform_1(%arg0: i32) -> (i32, i32) {
    %c0_i32 = arith.constant 0 : i32
    %c0_i32_0 = arith.constant 0 : i32
    %c0_i32_1 = arith.constant 0 : i32
    return %c0_i32, %c0_i32_0 : i32, i32
  }
  func.func @transform_2(%arg0: i32) -> (i32, i32) {
    %c0_i32 = arith.constant 0 : i32
    %c0_i32_0 = arith.constant 0 : i32
    %c0_i32_1 = arith.constant 0 : i32
    return %c0_i32, %c0_i32_0 : i32, i32
  }
  func.func @transform_3(%arg0: i32) -> (i32, i32, i32) {
    %c0_i32 = arith.constant 0 : i32
    %c0_i32_0 = arith.constant 0 : i32
    %c0_i32_1 = arith.constant 0 : i32
    %c0_i32_2 = arith.constant 0 : i32
    return %c0_i32, %c0_i32_0, %c0_i32_1 : i32, i32, i32
  }
  func.func @transform_4(%arg0: i32) -> (i32, i32) {
    %c0_i32 = arith.constant 0 : i32
    %c0_i32_0 = arith.constant 0 : i32
    %c0_i32_1 = arith.constant 0 : i32
    return %c0_i32, %c0_i32_0 : i32, i32
  }
  func.func @transform_5(%arg0: i32) -> (i32, i32) {
    %c0_i32 = arith.constant 0 : i32
    %c0_i32_0 = arith.constant 0 : i32
    %c0_i32_1 = arith.constant 0 : i32
    return %c0_i32, %c0_i32_0 : i32, i32
  }
  func.func @transform_6(%arg0: i32) -> (i32, i32) {
    %c0_i32 = arith.constant 0 : i32
    %c0_i32_0 = arith.constant 0 : i32
    %c0_i32_1 = arith.constant 0 : i32
    return %c0_i32, %c0_i32_0 : i32, i32
  }
  func.func @transform_7(%arg0: i32) -> (i32, i32) {
    %c0_i32 = arith.constant 0 : i32
    %c0_i32_0 = arith.constant 0 : i32
    return %arg0, %c0_i32 : i32, i32
  }
}

</mosaic_0001>

<bundles_post_ra>
// kernel: cnn4_forward.1
= control target key start
LH: loop header
LB: loop body
LE: loop exit
PB: predicated region body
PF: predicated region fallthrough
CT: control target
= control target key end

     0   :  { %vm170_vm0 = vcmask 1044480   ;;  %vm171_vm1 = vcmask 1045504   ;;  %vm145_vm2 = vcmask 220160   ;;  %v24407_v1 = vmov 65535   ;;  %s28754_s1 = inlined_call_operand.vmem [shape: bf16[27,64], index: 1, kind: input, shape index: {}]   ;;  %s28755_s0 = inlined_call_operand.vmem [shape: bf16[64,16,27], index: 0, kind: input, shape index: {}]   ;;  %s28756_s3 = inlined_call_operand.vmem [shape: bf16[9,64,128], index: 3, kind: input, shape index: {}]   ;;  %s28757_s2 = inlined_call_operand.vmem [shape: f32[1,64], index: 2, kind: input, shape index: {}]   ;;  %s28758_s5 = inlined_call_operand.vmem [shape: bf16[8192,128], index: 5, kind: input, shape index: {}]   ;;  %s28759_s4 = inlined_call_operand.vmem [shape: f32[1,128], index: 4, kind: input, shape index: {}]   ;;  %s28760_s6 = inlined_call_operand.vmem [shape: f32[1,128], index: 6, kind: input, shape index: {}]   ;;  %s28761_s7 = inlined_call_operand.vmem [shape: f32[16,128], index: 7, kind: output, shape index: {}]  }
   0x1   :  { %v24452_v0 = vld [vmem:[%s28754_s1] sm:$0xff]   ;;  %v172_v2 = vsel %vm170_vm0, 4294967295, %v24407_v1  ;;  %v23746_v3 = vld [vmem:[%s28754_s1 + $0x8] sm:$0x3f]   ;;  %vm27_vm3 = vcmask 523264   ;;  %v23749_v8 = vld [vmem:[%s28755_s0 + $0x10] sm:$0xff]  }
   0x2   :  { %21327 = vmatprep.subr.bf16.mxu0 %v24452_v0  ;;  %v173_v4 = vsel %vm171_vm1, %v172_v2, 0  ;;  %v23747_v5 = vld [vmem:[%s28755_s0] sm:$0xff]   ;;  %21347 = vmatprep.subr.bf16.mxu1 %v24452_v0  ;;  %v23748_v7 = vld [vmem:[%s28755_s0 + $0x8] sm:$0xff]   ;;  %v24408_v9 = vmov 0   ;;  %v23757_v12 = vld [vmem:[%s28755_s0 + $0x50] sm:$0xff]  }
   0x3   :  { %21328 = vmatpush3.bf16.msra.mxu0 %v24452_v0  ;;  %v24463_v6 = vand.u32 %v23746_v3, %v173_v4  ;;  %21348 = vmatpush3.bf16.msra.mxu1 %v24452_v0  ;;  %28 = vst.msk [vmem:[#allocation2] sm:$0xff] %vm27_vm3, %v24408_v9  ;;  %29 = vst.msk [vmem:[#allocation2 + $0x8] sm:$0xff] %vm27_vm3, %v24408_v9  ;;  %v23755_v10 = vld [vmem:[%s28755_s0 + $0x40] sm:$0xff]   ;;  %v23756_v11 = vld [vmem:[%s28755_s0 + $0x48] sm:$0xff]  }
   0x4   :  { %21331 = vmatprep.mubr.msk.bf16.mxu0 %vm145_vm2, %v23747_v5  ;;  %30 = vst.msk [vmem:[#allocation2 + $0x10] sm:$0xff] %vm27_vm3, %v24408_v9  ;;  %31 = vst.msk [vmem:[#allocation2 + $0x18] sm:$0xff] %vm27_vm3, %v24408_v9  ;;  %21351 = vmatprep.mubr.msk.bf16.mxu1 %vm145_vm2, %v23755_v10  ;;  %v23750_v13 = vld [vmem:[%s28755_s0 + $0x18] sm:$0xff]   ;;  %v23751_v14 = vld [vmem:[%s28755_s0 + $0x20] sm:$0xff]  }
   0x5   :  { %21329 = vmatprep.subr.bf16.mxu0 %v24463_v6  ;;  %21349 = vmatprep.subr.bf16.mxu1 %v24463_v6  ;;  %32 = vst.msk [vmem:[#allocation2 + $0x20] sm:$0xff] %vm27_vm3, %v24408_v9  ;;  %33 = vst.msk [vmem:[#allocation2 + $0x28] sm:$0xff] %vm27_vm3, %v24408_v9  ;;  %v23758_v15 = vld [vmem:[%s28755_s0 + $0x58] sm:$0xff]   ;;  %v23759_v16 = vld [vmem:[%s28755_s0 + $0x60] sm:$0xff]  }
   0x6   :  { %34 = vst.msk [vmem:[#allocation2 + $0x30] sm:$0xff] %vm27_vm3, %v24408_v9  ;;  %35 = vst.msk [vmem:[#allocation2 + $0x38] sm:$0xff] %vm27_vm3, %v24408_v9  ;;  %v23752_v17 = vld [vmem:[%s28755_s0 + $0x28] sm:$0xff]   ;;  %v23753_v18 = vld [vmem:[%s28755_s0 + $0x30] sm:$0xff]  }
   0x7   :  { %21330 = vmatpush3.bf16.msra.mxu0 %v24463_v6  ;;  %21350 = vmatpush3.bf16.msra.mxu1 %v24463_v6  ;;  %36 = vst.msk [vmem:[#allocation2 + $0x40] sm:$0xff] %vm27_vm3, %v24408_v9  ;;  %37 = vst.msk [vmem:[#allocation2 + $0x48] sm:$0xff] %vm27_vm3, %v24408_v9  ;;  %v23760_v19 = vld [vmem:[%s28755_s0 + $0x68] sm:$0xff]   ;;  %v23761_v20 = vld [vmem:[%s28755_s0 + $0x70] sm:$0xff]  }
   0x8   :  { %39 = vst.msk [vmem:[#allocation2 + $0x2d0] sm:$0xff] %vm27_vm3, %v24408_v9  ;;  %40 = vst.msk [vmem:[#allocation2 + $0x2d8] sm:$0xff] %vm27_vm3, %v24408_v9  ;;  %21367 = vmatprep.subr.bf16.mxu0 %v24452_v0  ;;  %21387 = vmatprep.subr.bf16.mxu1 %v24452_v0  ;;  %v23754_v21 = vld [vmem:[%s28755_s0 + $0x38] sm:$0xff]   ;;  %v23763_v22 = vld [vmem:[%s28755_s0 + $0x80] sm:$0xff]  }
   0x9   :  { %41 = vst.msk [vmem:[#allocation2 + $0x2e0] sm:$0xff] %vm27_vm3, %v24408_v9  ;;  %42 = vst.msk [vmem:[#allocation2 + $0x2e8] sm:$0xff] %vm27_vm3, %v24408_v9  ;;  %v23762_v23 = vld [vmem:[%s28755_s0 + $0x78] sm:$0xff]   ;;  %v23771_v24 = vld [vmem:[%s28755_s0 + $0xc0] sm:$0xff]  }
   0xa   :  { %43 = vst.msk [vmem:[#allocation2 + $0x2f0] sm:$0xff] %vm27_vm3, %v24408_v9  ;;  %44 = vst.msk [vmem:[#allocation2 + $0x2f8] sm:$0xff] %vm27_vm3, %v24408_v9  ;;  %21332 = vmatmul.mubr.msk.bf16.vlgmr.msra.gmra.mrb[0].mxu0 %vm145_vm2, %v23748_v7  ;;  %21352 = vmatmul.mubr.msk.bf16.vlgmr.msra.gmra.mrb[0].mxu1 %vm145_vm2, %v23756_v11  ;;  %v23764_v25 = vld [vmem:[%s28755_s0 + $0x88] sm:$0xff]   ;;  %v23765_v26 = vld [vmem:[%s28755_s0 + $0x90] sm:$0xff]  }
   0xb   :  { %45 = vst.msk [vmem:[#allocation2 + $0x300] sm:$0xff] %vm27_vm3, %v24408_v9  ;;  %46 = vst.msk [vmem:[#allocation2 + $0x308] sm:$0xff] %vm27_vm3, %v24408_v9  ;;  %21335 = vmatprep.mubr.msk.bf16.mxu0 %vm145_vm2, %v23749_v8  ;;  %21368 = vmatpush3.bf16.msra.mxu0 %v24452_v0  ;;  %v23772_v27 = vld [vmem:[%s28755_s0 + $0xc8] sm:$0xff]   ;;  %v23773_v28 = vld [vmem:[%s28755_s0 + $0xd0] sm:$0xff]  }
   0xc   :  { %47 = vst.msk [vmem:[#allocation2 + $0x310] sm:$0xff] %vm27_vm3, %v24408_v9  ;;  %48 = vst.msk [vmem:[#allocation2 + $0x318] sm:$0xff] %vm27_vm3, %v24408_v9  ;;  %21369 = vmatprep.subr.bf16.mxu0 %v24463_v6  ;;  %21355 = vmatprep.mubr.msk.bf16.mxu1 %vm145_vm2, %v23757_v12  ;;  %v23766_v29 = vld [vmem:[%s28755_s0 + $0x98] sm:$0xff]   ;;  %v23767_v30 = vld [vmem:[%s28755_s0 + $0xa0] sm:$0xff]  }
   0xd   :  { %50 = vst.msk [vmem:[#allocation2 + $0x50] sm:$0xff] %vm27_vm3, %v24408_v9  ;;  %51 = vst.msk [vmem:[#allocation2 + $0xa0] sm:$0xff] %vm27_vm3, %v24408_v9  ;;  %21388 = vmatpush3.bf16.msra.mxu1 %v24452_v0  ;;  %v23774_v31 = vld [vmem:[%s28755_s0 + $0xd8] sm:$0xff]   ;;  %v23775_v32 = vld [vmem:[%s28755_s0 + $0xe0] sm:$0xff]  }
   0xe   :  { %52 = vst.msk [vmem:[#allocation2 + $0xf0] sm:$0xff] %vm27_vm3, %v24408_v9  ;;  %53 = vst.msk [vmem:[#allocation2 + $0x140] sm:$0xff] %vm27_vm3, %v24408_v9  ;;  %21389 = vmatprep.subr.bf16.mxu1 %v24463_v6  ;;  %v23768_v33 = vld [vmem:[%s28755_s0 + $0xa8] sm:$0xff]   ;;  %v23769_v34 = vld [vmem:[%s28755_s0 + $0xb0] sm:$0xff]  }
   0xf   :  { %54 = vst.msk [vmem:[#allocation2 + $0x190] sm:$0xff] %vm27_vm3, %v24408_v9  ;;  %55 = vst.msk [vmem:[#allocation2 + $0x1e0] sm:$0xff] %vm27_vm3, %v24408_v9  ;;  %21370 = vmatpush3.bf16.msra.mxu0 %v24463_v6  ;;  %v23776_v35 = vld [vmem:[%s28755_s0 + $0xe8] sm:$0xff]   ;;  %v23777_v36 = vld [vmem:[%s28755_s0 + $0xf0] sm:$0xff]  }
  0x10   :  { %56 = vst.msk [vmem:[#allocation2 + $0x230] sm:$0xff] %vm27_vm3, %v24408_v9  ;;  %57 = vst.msk [vmem:[#allocation2 + $0x280] sm:$0xff] %vm27_vm3, %v24408_v9  ;;  %21407 = vmatprep.subr.bf16.mxu0 %v24452_v0  ;;  %v23770_v37 = vld [vmem:[%s28755_s0 + $0xb8] sm:$0xff]   ;;  %v23779_v38 = vld [vmem:[%s28755_s0 + $0x100] sm:$0xff]  }
  0x11   :  { %59 = vst.msk [vmem:[#allocation2 + $0x98] sm:$0xff] %vm27_vm3, %v24408_v9  ;;  %60 = vst.msk [vmem:[#allocation2 + $0xe8] sm:$0xff] %vm27_vm3, %v24408_v9  ;;  %21390 = vmatpush3.bf16.msra.mxu1 %v24463_v6  ;;  %v23778_v39 = vld [vmem:[%s28755_s0 + $0xf8] sm:$0xff]   ;;  %v23781_v40 = vld [vmem:[%s28755_s0 + $0x140] sm:$0xff]  }
  0x12   :  { %61 = vst.msk [vmem:[#allocation2 + $0x138] sm:$0xff] %vm27_vm3, %v24408_v9  ;;  %62 = vst.msk [vmem:[#allocation2 + $0x188] sm:$0xff] %vm27_vm3, %v24408_v9  ;;  %21336 = vmatmul.mubr.msk.bf16.gmra.mrb[4].mxu0 %vm145_vm2, %v23750_v13  ;;  %21427 = vmatprep.subr.bf16.mxu1 %v24452_v0  ;;  %v23780_v41 = vld [vmem:[%s28755_s0 + $0x108] sm:$0xff]   ;;  %v23783_v42 = vld [vmem:[%s28755_s0 + $0x110] sm:$0xff]  }
  0x13   :  { %63 = vst.msk [vmem:[#allocation2 + $0x1d8] sm:$0xff] %vm27_vm3, %v24408_v9  ;;  %64 = vst.msk [vmem:[#allocation2 + $0x228] sm:$0xff] %vm27_vm3, %v24408_v9  ;;  %21339 = vmatprep.mubr.msk.bf16.mxu0 %vm145_vm2, %v23751_v14  ;;  %21356 = vmatmul.mubr.msk.bf16.gmra.mrb[4].mxu1 %vm145_vm2, %v23758_v15  ;;  %v23782_v43 = vld [vmem:[%s28755_s0 + $0x148] sm:$0xff]   ;;  %v23785_v44 = vld [vmem:[%s28755_s0 + $0x150] sm:$0xff]  }
  0x14   :  { %65 = vst.msk [vmem:[#allocation2 + $0x278] sm:$0xff] %vm27_vm3, %v24408_v9  ;;  %66 = vst.msk [vmem:[#allocation2 + $0x2c8] sm:$0xff] %vm27_vm3, %v24408_v9  ;;  %21359 = vmatprep.mubr.msk.bf16.mxu1 %vm145_vm2, %v23759_v16  ;;  %v23784_v45 = vld [vmem:[%s28755_s0 + $0x118] sm:$0xff]   ;;  %v23800_v46 = vld [vmem:[%s28756_s3 + $0x40] sm:$0xff]  }
  0x15   :  { %v23787_v47 = vld [vmem:[%s28755_s0 + $0x120] sm:$0xff]   ;;  %v23786_v49 = vld [vmem:[%s28755_s0 + $0x158] sm:$0xff]   ;;  %v23788_v51 = vld [vmem:[%s28755_s0 + $0x128] sm:$0xff]  }
  0x16   :  { %v23807_v48 = vld [vmem:[%s28756_s3] sm:$0xff]   ;;  %v23791_v52 = vld [vmem:[%s28755_s0 + $0x130] sm:$0xff]   ;;  %v23790_v53 = vld [vmem:[%s28755_s0 + $0x168] sm:$0xff]  }
  0x17   :  { %v23789_v50 = vld [vmem:[%s28755_s0 + $0x160] sm:$0xff]   ;;  %v23793_v54 = vld [vmem:[%s28755_s0 + $0x170] sm:$0xff]   ;;  %v23792_v55 = vld [vmem:[%s28755_s0 + $0x138] sm:$0xff]  }
  0x18   :  { %v23797_v56 = vld [vmem:[%s28755_s0 + $0x180] sm:$0xff]   ;;  %v23794_v57 = vld [vmem:[%s28755_s0 + $0x178] sm:$0xff]   ;;  %v23798_v59 = vld [vmem:[%s28755_s0 + $0x188] sm:$0xff]  }
  0x19   :  { %v23795_v58 = vld [vmem:[%s28755_s0 + $0x1c0] sm:$0xff]   ;;  %v23802_v60 = vld [vmem:[%s28755_s0 + $0x190] sm:$0xff]   ;;  %v23805_v61 = vld [vmem:[%s28756_s3 + $0x48] sm:$0xff]  }
  0x1a   :  { %21340 = vmatmul.mubr.msk.bf16.gmra.mrb[8].mxu0 %vm145_vm2, %v23752_v17  ;;  %v23796_v62 = vld [vmem:[%s28755_s0 + $0x1c8] sm:$0xff]   ;;  %v23799_v63 = vld [vmem:[%s28755_s0 + $0x1d0] sm:$0xff]   ;;  %v23803_v2 = vld [vmem:[%s28755_s0 + $0x198] sm:$0xff]  }
  0x1b   :  { %21343 = vmatprep.mubr.msk.bf16.mxu0 %vm145_vm2, %v23753_v18  ;;  %21360 = vmatmul.mubr.msk.bf16.gmra.mrb[8].mxu1 %vm145_vm2, %v23760_v19  ;;  %v23812_v1 = vld [vmem:[%s28756_s3 + $0x50] sm:$0xff]   ;;  %v23808_v3 = vld [vmem:[%s28755_s0 + $0x1a0] sm:$0xff]   ;;  %v23801_v5 = vld [vmem:[%s28755_s0 + $0x1d8] sm:$0xff]  }
  0x1c   :  { %21363 = vmatprep.mubr.msk.bf16.mxu1 %vm145_vm2, %v23761_v20  ;;  %v23814_v4 = vld [vmem:[%s28756_s3 + $0x10] sm:$0xff]   ;;  %v23804_v7 = vld [vmem:[%s28755_s0 + $0x1e0] sm:$0xff]   ;;  %v23816_v8 = vld [vmem:[%s28756_s3 + $0x18] sm:$0xff]  }
  0x1d   :  { %v23819_v9 = vld [vmem:[%s28756_s3 + $0x60] sm:$0xff]   ;;  %v23810_v10 = vld [vmem:[%s28755_s0 + $0x1a8] sm:$0xff]   ;;  %v23815_v11 = vld [vmem:[%s28755_s0 + $0x1b0] sm:$0xff]  }
  0x1e   :  { %v23806_v12 = vld [vmem:[%s28755_s0 + $0x1e8] sm:$0xff]   ;;  %v23811_v13 = vld [vmem:[%s28755_s0 + $0x1f0] sm:$0xff]   ;;  %v23817_v14 = vld [vmem:[%s28755_s0 + $0x1b8] sm:$0xff]  }
  0x1f   :  { %v3965_v15 = vld [vmem:[#allocation2 + $0x10] sm:$0xff]  ;;  %v23813_v16 = vld [vmem:[%s28755_s0 + $0x1f8] sm:$0xff]   ;;  %v1784_v17 = vld [vmem:[#allocation2] sm:$0xff] }
  0x20   :  { %v3966_v18 = vld [vmem:[#allocation2 + $0x18] sm:$0xff]  ;;  %v3967_v19 = vld [vmem:[#allocation2 + $0x20] sm:$0xff]  ;;  %v23820_v20 = vld [vmem:[%s28756_s3 + $0x68] sm:$0xff]  }
  0x22   :  { %21344 = vmatmul.mubr.msk.bf16.gmra.mrb[12].mxu0 %vm145_vm2, %v23754_v21  ;;  %v1785_v21 = vld [vmem:[#allocation2 + $0x8] sm:$0xff] }
  0x23   :  { %21371 = vmatprep.mubr.msk.bf16.mxu0 %vm145_vm2, %v23763_v22  ;;  %21364 = vmatmul.mubr.msk.bf16.gmra.mrb[12].mxu1 %vm145_vm2, %v23762_v23  ;;  %v3968_v22 = vld [vmem:[#allocation2 + $0x28] sm:$0xff]  ;;  %v3969_v23 = vld [vmem:[#allocation2 + $0x30] sm:$0xff] }
  0x24   :  { %21391 = vmatprep.mubr.msk.bf16.mxu1 %vm145_vm2, %v23771_v24  ;;  %v23821_v24 = vld [vmem:[%s28756_s3 + $0x70] sm:$0xff]  }
  0x2a   :  { %21372 = vmatmul.mubr.msk.bf16.vlgmr.msra.gmra.mrb[16].mxu0 %vm145_vm2, %v23764_v25  ;;  %v3970_v25 = vld [vmem:[#allocation2 + $0x38] sm:$0xff] }
  0x2b   :  { %21375 = vmatprep.mubr.msk.bf16.mxu0 %vm145_vm2, %v23765_v26  ;;  %21408 = vmatpush3.bf16.msra.mxu0 %v24452_v0  ;;  %v3971_v26 = vld [vmem:[#allocation2 + $0x40] sm:$0xff] }
  0x2c   :  { %21409 = vmatprep.subr.bf16.mxu0 %v24463_v6  ;;  %21392 = vmatmul.mubr.msk.bf16.vlgmr.msra.gmra.mrb[16].mxu1 %vm145_vm2, %v23772_v27  ;;  %v3972_v27 = vld [vmem:[#allocation2 + $0x48] sm:$0xff] }
  0x2d   :  { %21395 = vmatprep.mubr.msk.bf16.mxu1 %vm145_vm2, %v23773_v28  ;;  %21428 = vmatpush3.bf16.msra.mxu1 %v24452_v0  ;;  %v24831_v28 = vld [vmem:[#allocation2 + $0x50] sm:$0xff] }
  0x2e   :  { %21429 = vmatprep.subr.bf16.mxu1 %v24463_v6 }
  0x2f   :  { %21410 = vmatpush3.bf16.msra.mxu0 %v24463_v6 }
  0x30   :  { %21447 = vmatprep.subr.bf16.mxu0 %v24452_v0 }
  0x31   :  { %21430 = vmatpush3.bf16.msra.mxu1 %v24463_v6 }
  0x32   :  { %21376 = vmatmul.mubr.msk.bf16.gmra.mrb[20].mxu0 %vm145_vm2, %v23766_v29  ;;  %21467 = vmatprep.subr.bf16.mxu1 %v24452_v0  ;;  %v23822_v29 = vld [vmem:[%s28756_s3 + $0x78] sm:$0xff]  }
  0x33   :  { %21379 = vmatprep.mubr.msk.bf16.mxu0 %vm145_vm2, %v23767_v30  ;;  %v23823_v30 = vld [vmem:[%s28756_s3 + $0x80] sm:$0xff]  }
  0x34   :  { %21396 = vmatmul.mubr.msk.bf16.gmra.mrb[20].mxu1 %vm145_vm2, %v23774_v31  ;;  %v24845_v31 = vld [vmem:[%s28757_s2] ss:$0 sm:$0xff] }
  0x35   :  { %21399 = vmatprep.mubr.msk.bf16.mxu1 %vm145_vm2, %v23775_v32 }
  0x3a   :  { %21380 = vmatmul.mubr.msk.bf16.gmra.mrb[24].mxu0 %vm145_vm2, %v23768_v33 }
  0x3b   :  { %21383 = vmatprep.mubr.msk.bf16.mxu0 %vm145_vm2, %v23769_v34 }
  0x3c   :  { %21400 = vmatmul.mubr.msk.bf16.gmra.mrb[24].mxu1 %vm145_vm2, %v23776_v35 }
  0x3d   :  { %21403 = vmatprep.mubr.msk.bf16.mxu1 %vm145_vm2, %v23777_v36 }
  0x42   :  { %21384 = vmatmul.mubr.msk.bf16.gmra.mrb[28].mxu0 %vm145_vm2, %v23770_v37 }
  0x43   :  { %21411 = vmatprep.mubr.msk.bf16.mxu0 %vm145_vm2, %v23779_v38 }
  0x44   :  { %21404 = vmatmul.mubr.msk.bf16.gmra.mrb[28].mxu1 %vm145_vm2, %v23778_v39 }
  0x45   :  { %21431 = vmatprep.mubr.msk.bf16.mxu1 %vm145_vm2, %v23781_v40 }
  0x4a   :  { %21412 = vmatmul.mubr.msk.bf16.vlgmr.msra.gmra.mrb[32].mxu0 %vm145_vm2, %v23780_v41 }
  0x4b   :  { %21415 = vmatprep.mubr.msk.bf16.mxu0 %vm145_vm2, %v23783_v42  ;;  %21448 = vmatpush3.bf16.msra.mxu0 %v24452_v0 }
  0x4c   :  { %21449 = vmatprep.subr.bf16.mxu0 %v24463_v6  ;;  %21432 = vmatmul.mubr.msk.bf16.vlgmr.msra.gmra.mrb[32].mxu1 %vm145_vm2, %v23782_v43 }
  0x4d   :  { %21435 = vmatprep.mubr.msk.bf16.mxu1 %vm145_vm2, %v23785_v44  ;;  %21468 = vmatpush3.bf16.msra.mxu1 %v24452_v0  ;;  %v23809_v0 = vld [vmem:[%s28756_s3 + $0x8] sm:$0xff]  }
  0x4e   :  { %21469 = vmatprep.subr.bf16.mxu1 %v24463_v6 }
  0x4f   :  { %21450 = vmatpush3.bf16.msra.mxu0 %v24463_v6 }
  0x50   :  { %21759 = vmatprep.subr.bf16.mxu0 %v23800_v46 }
  0x51   :  { %21470 = vmatpush3.bf16.msra.mxu1 %v24463_v6  ;;  %v23818_v6 = vld [vmem:[%s28756_s3 + $0x58] sm:$0xff]  }
  0x52   :  { %21416 = vmatmul.mubr.msk.bf16.gmra.mrb[36].mxu0 %vm145_vm2, %v23784_v45  ;;  %21487 = vmatprep.subr.bf16.mxu1 %v23807_v48 }
  0x53   :  { %21419 = vmatprep.mubr.msk.bf16.mxu0 %vm145_vm2, %v23787_v47 }
  0x54   :  { %21436 = vmatmul.mubr.msk.bf16.gmra.mrb[36].mxu1 %vm145_vm2, %v23786_v49 }
  0x55   :  { %21439 = vmatprep.mubr.msk.bf16.mxu1 %vm145_vm2, %v23789_v50 }
  0x5a   :  { %21420 = vmatmul.mubr.msk.bf16.gmra.mrb[40].mxu0 %vm145_vm2, %v23788_v51 }
  0x5b   :  { %21423 = vmatprep.mubr.msk.bf16.mxu0 %vm145_vm2, %v23791_v52 }
  0x5c   :  { %21440 = vmatmul.mubr.msk.bf16.gmra.mrb[40].mxu1 %vm145_vm2, %v23790_v53 }
  0x5d   :  { %21443 = vmatprep.mubr.msk.bf16.mxu1 %vm145_vm2, %v23793_v54 }
  0x62   :  { %21424 = vmatmul.mubr.msk.bf16.gmra.mrb[44].mxu0 %vm145_vm2, %v23792_v55 }
  0x63   :  { %21451 = vmatprep.mubr.msk.bf16.mxu0 %vm145_vm2, %v23797_v56 }
  0x64   :  { %21444 = vmatmul.mubr.msk.bf16.gmra.mrb[44].mxu1 %vm145_vm2, %v23794_v57 }
  0x65   :  { %21471 = vmatprep.mubr.msk.bf16.mxu1 %vm145_vm2, %v23795_v58 }
  0x6a   :  { %21452 = vmatmul.mubr.msk.bf16.vlgmr.msra.gmra.mrb[48].mxu0 %vm145_vm2, %v23798_v59 }
  0x6b   :  { %21760 = vmatpush3.bf16.msra.mxu0 %v23800_v46  ;;  %21455 = vmatprep.mubr.msk.bf16.mxu0 %vm145_vm2, %v23802_v60 }
  0x6c   :  { %21761 = vmatprep.subr.bf16.mxu0 %v23805_v61  ;;  %21472 = vmatmul.mubr.msk.bf16.vlgmr.msra.gmra.mrb[48].mxu1 %vm145_vm2, %v23796_v62 }
  0x6d   :  { %21475 = vmatprep.mubr.msk.bf16.mxu1 %vm145_vm2, %v23799_v63  ;;  %21488 = vmatpush3.bf16.msra.mxu1 %v23807_v48 }
  0x6e   :  { %21489 = vmatprep.subr.bf16.mxu1 %v23809_v0 }
  0x6f   :  { %21762 = vmatpush3.bf16.msra.mxu0 %v23805_v61 }
  0x70   :  { %21763 = vmatprep.subr.bf16.mxu0 %v23812_v1 }
  0x71   :  { %21490 = vmatpush3.bf16.msra.mxu1 %v23809_v0 }
  0x72   :  { %21456 = vmatmul.mubr.msk.bf16.gmra.mrb[52].mxu0 %vm145_vm2, %v23803_v2  ;;  %21491 = vmatprep.subr.bf16.mxu1 %v23814_v4 }
  0x73   :  { %21459 = vmatprep.mubr.msk.bf16.mxu0 %vm145_vm2, %v23808_v3  ;;  %21764 = vmatpush3.bf16.msra.mxu0 %v23812_v1 }
  0x74   :  { %21476 = vmatmul.mubr.msk.bf16.gmra.mrb[52].mxu1 %vm145_vm2, %v23801_v5  ;;  %21765 = vmatprep.subr.bf16.mxu0 %v23818_v6 }
  0x75   :  { %21479 = vmatprep.mubr.msk.bf16.mxu1 %vm145_vm2, %v23804_v7  ;;  %21492 = vmatpush3.bf16.msra.mxu1 %v23814_v4 }
  0x76   :  { %21493 = vmatprep.subr.bf16.mxu1 %v23816_v8 }
  0x77   :  { %21766 = vmatpush3.bf16.msra.mxu0 %v23818_v6 }
  0x78   :  { %21895 = vmatprep.subr.bf16.mxu0 %v23819_v9 }
  0x79   :  { %21494 = vmatpush3.bf16.msra.mxu1 %v23816_v8 }
  0x7a   :  { %21460 = vmatmul.mubr.msk.bf16.gmra.mrb[56].mxu0 %vm145_vm2, %v23810_v10 }
  0x7b   :  { %21463 = vmatprep.mubr.msk.bf16.mxu0 %vm145_vm2, %v23815_v11 }
  0x7c   :  { %21480 = vmatmul.mubr.msk.bf16.gmra.mrb[56].mxu1 %vm145_vm2, %v23806_v12 }
  0x7d   :  { %21483 = vmatprep.mubr.msk.bf16.mxu1 %vm145_vm2, %v23811_v13 }
  0x82   :  { %21464 = vmatmul.mubr.msk.bf16.gmra.mrb[60].mxu0 %vm145_vm2, %v23817_v14 }
  0x83   :  { %21767 = vmatprep.mubr.msk.bf16.mxu0 %vm27_vm3, %v3965_v15 }
  0x84   :  { %21484 = vmatmul.mubr.msk.bf16.gmra.mrb[60].mxu1 %vm145_vm2, %v23813_v16 }
  0x85   :  { %21495 = vmatprep.mubr.msk.bf16.mxu1 %vm27_vm3, %v1784_v17 }
  0x8a   :  { %21768 = vmatmul.mubr.msk.bf16.vlgmr.msra.gmra.mrb[64].mxu0 %vm27_vm3, %v3966_v18 }
  0x8b   :  { %21896 = vmatpush3.bf16.msra.mxu0 %v23819_v9  ;;  %21771 = vmatprep.mubr.msk.bf16.mxu0 %vm27_vm3, %v3967_v19 }
  0x8c   :  { %21897 = vmatprep.subr.bf16.mxu0 %v23820_v20  ;;  %21496 = vmatmul.mubr.msk.bf16.vlgmr.msra.gmra.mrb[64].mxu1 %vm27_vm3, %v1785_v21 }
  0x8d   :  { %21499 = vmatprep.mubr.msk.bf16.mxu1 %vm27_vm3, %v3965_v15 }
  0x8f   :  { %21898 = vmatpush3.bf16.msra.mxu0 %v23820_v20 }
  0x90   :  { %21899 = vmatprep.subr.bf16.mxu0 %v23821_v24 }
  0x92   :  { %21772 = vmatmul.mubr.msk.bf16.gmra.mrb[68].mxu0 %vm27_vm3, %v3968_v22 }
  0x93   :  { %21775 = vmatprep.mubr.msk.bf16.mxu0 %vm27_vm3, %v3969_v23  ;;  %21900 = vmatpush3.bf16.msra.mxu0 %v23821_v24 }
  0x94   :  { %21500 = vmatmul.mubr.msk.bf16.gmra.mrb[68].mxu1 %vm27_vm3, %v3966_v18  ;;  %21901 = vmatprep.subr.bf16.mxu0 %v23822_v29 }
  0x95   :  { %21503 = vmatprep.mubr.msk.bf16.mxu1 %vm27_vm3, %v3967_v19 }
  0x97   :  { %21902 = vmatpush3.bf16.msra.mxu0 %v23822_v29 }
  0x98   :  { %22031 = vmatprep.subr.bf16.mxu0 %v23823_v30 }
  0x9a   :  { %21776 = vmatmul.mubr.msk.bf16.gmra.mrb[72].mxu0 %vm27_vm3, %v3970_v25 }
  0x9b   :  { %21779 = vmatprep.mubr.msk.bf16.mxu0 %vm27_vm3, %v3971_v26 }
  0x9c   :  { %21504 = vmatmul.mubr.msk.bf16.gmra.mrb[72].mxu1 %vm27_vm3, %v3968_v22 }
  0x9d   :  { %21507 = vmatprep.mubr.msk.bf16.mxu1 %vm27_vm3, %v3969_v23 }
  0xa2   :  { %21780 = vmatmul.mubr.msk.bf16.gmra.mrb[76].mxu0 %vm27_vm3, %v3972_v27 }
  0xa4   :  { %21508 = vmatmul.mubr.msk.bf16.gmra.mrb[76].mxu1 %vm27_vm3, %v3970_v25 }
  0xa5   :  { %21511 = vmatprep.mubr.msk.bf16.mxu1 %vm27_vm3, %v24831_v28 }
  0xdd   :  { %v21333_v32 = vpop.f32.mrb[0].mxu0  ;;  %v21353_v39 = vpop.f32.mrb[0].mxu1 }
  0xde   :  { %v220_v33 = vadd.f32 %v21333_v32, %v24845_v31  ;;  %v211_v34 = vpop.f32.mrb[1].mxu0  ;;  %v431_v41 = vadd.f32 %v21353_v39, %v24845_v31  ;;  %v422_v42 = vpop.f32.mrb[1].mxu1 }
  0xdf   :  { %v212_v35 = vadd.f32 %v24845_v31, %v211_v34  ;;  %v21334_v36 = vpop.f32.mrb[2].mxu0  ;;  %v423_v45 = vadd.f32 %v24845_v31, %v422_v42  ;;  %v21354_v46 = vpop.f32.mrb[2].mxu1 }
  0xe0   :  { %v223_v37 = vadd.f32 %v21334_v36, %v24845_v31  ;;  %v214_v38 = vpop.f32.mrb[3].mxu0  ;;  %v276_v43 = vmax.f32 %v220_v33, 0.0  ;;  %v487_v49 = vmax.f32 %v431_v41, 0.0  ;;  %v434_v50 = vadd.f32 %v21354_v46, %v24845_v31  ;;  %v425_v51 = vpop.f32.mrb[3].mxu1 }
  0xe1   :  { %v215_v40 = vadd.f32 %v24845_v31, %v214_v38  ;;  %v274_v47 = vmax.f32 %v212_v35, 0.0  ;;  %v485_v53 = vmax.f32 %v423_v45, 0.0  ;;  %v426_v54 = vadd.f32 %v24845_v31, %v425_v51 }
  0xe2   :  { %v277_v44 = vmax.f32 %v223_v37, 0.0  ;;  %v488_v57 = vmax.f32 %v434_v50, 0.0 }
  0xe3   :  { %v275_v48 = vmax.f32 %v215_v40, 0.0  ;;  %v486_v60 = vmax.f32 %v426_v54, 0.0 }
  0xe4   :  { %v291_v52 = vpack.c.bf16 %v277_v44, %v276_v43  ;;  %v502_v63 = vpack.c.bf16 %v488_v57, %v487_v49 }
  0xe5   :  { %v290_v55 = vpack.c.bf16 %v275_v48, %v274_v47  ;;  %v21337_v56 = vpop.f32.mrb[4].mxu0  ;;  %v501_v2 = vpack.c.bf16 %v486_v60, %v485_v53 }
  0xe6   :  { %300 = vst.msk [vmem:[#allocation2 + $0x60] sm:$0xff] %vm27_vm3, %v291_v52  ;;  %v236_v58 = vadd.f32 %v21337_v56, %v24845_v31  ;;  %v227_v59 = vpop.f32.mrb[5].mxu0  ;;  %v21357_v3 = vpop.f32.mrb[4].mxu1  ;;  %511 = vst.msk [vmem:[#allocation2 + $0xb0] sm:$0xff] %vm27_vm3, %v502_v63 }
  0xe7   :  { %299 = vst.msk [vmem:[#allocation2 + $0x58] sm:$0xff] %vm27_vm3, %v290_v55  ;;  %v228_v61 = vadd.f32 %v24845_v31, %v227_v59  ;;  %v21338_v62 = vpop.f32.mrb[6].mxu0  ;;  %v447_v5 = vadd.f32 %v21357_v3, %v24845_v31  ;;  %v438_v6 = vpop.f32.mrb[5].mxu1  ;;  %510 = vst.msk [vmem:[#allocation2 + $0xa8] sm:$0xff] %vm27_vm3, %v501_v2 }
  0xe8   :  { %v239_v0 = vadd.f32 %v21338_v62, %v24845_v31  ;;  %v230_v1 = vpop.f32.mrb[7].mxu0  ;;  %v280_v7 = vmax.f32 %v236_v58, 0.0  ;;  %v439_v9 = vadd.f32 %v24845_v31, %v438_v6  ;;  %v21358_v10 = vpop.f32.mrb[6].mxu1 }
  0xe9   :  { %v231_v4 = vadd.f32 %v24845_v31, %v230_v1  ;;  %v278_v11 = vmax.f32 %v228_v61, 0.0  ;;  %v491_v13 = vmax.f32 %v447_v5, 0.0  ;;  %v450_v14 = vadd.f32 %v21358_v10, %v24845_v31  ;;  %v441_v15 = vpop.f32.mrb[7].mxu1 }
  0xea   :  { %v281_v8 = vmax.f32 %v239_v0, 0.0  ;;  %v489_v17 = vmax.f32 %v439_v9, 0.0  ;;  %v442_v18 = vadd.f32 %v24845_v31, %v441_v15 }
  0xeb   :  { %v279_v12 = vmax.f32 %v231_v4, 0.0  ;;  %v492_v22 = vmax.f32 %v450_v14, 0.0 }
  0xec   :  { %v293_v16 = vpack.c.bf16 %v281_v8, %v280_v7  ;;  %v490_v26 = vmax.f32 %v442_v18, 0.0 }
  0xed   :  { %v292_v19 = vpack.c.bf16 %v279_v12, %v278_v11  ;;  %v21341_v20 = vpop.f32.mrb[8].mxu0  ;;  %v24867_v21 = vld [vmem:[#allocation2 + $0x60] sm:$0xff]  ;;  %v504_v30 = vpack.c.bf16 %v492_v22, %v491_v13 }
  0xee   :  { %302 = vst.msk [vmem:[#allocation2 + $0x70] sm:$0xff] %vm27_vm3, %v293_v16  ;;  %v252_v23 = vadd.f32 %v21341_v20, %v24845_v31  ;;  %v243_v24 = vpop.f32.mrb[9].mxu0  ;;  %21783 = vmatprep.mubr.msk.bf16.mxu0 %vm27_vm3, %v24867_v21  ;;  %v24873_v25 = vld [vmem:[#allocation2 + $0x58] sm:$0xff]  ;;  %v503_v34 = vpack.c.bf16 %v490_v26, %v489_v17  ;;  %v21361_v35 = vpop.f32.mrb[8].mxu1 }
  0xef   :  { %301 = vst.msk [vmem:[#allocation2 + $0x68] sm:$0xff] %vm27_vm3, %v292_v19  ;;  %v244_v27 = vadd.f32 %v24845_v31, %v243_v24  ;;  %v21342_v29 = vpop.f32.mrb[10].mxu0  ;;  %21512 = vmatmul.mubr.msk.bf16.gmra.mrb[80].mxu1 %vm27_vm3, %v24873_v25  ;;  %513 = vst.msk [vmem:[#allocation2 + $0xc0] sm:$0xff] %vm27_vm3, %v504_v30  ;;  %v463_v37 = vadd.f32 %v21361_v35, %v24845_v31  ;;  %v454_v38 = vpop.f32.mrb[9].mxu1 }
  0xf0   :  { %v255_v32 = vadd.f32 %v21342_v29, %v24845_v31  ;;  %v246_v33 = vpop.f32.mrb[11].mxu0  ;;  %21515 = vmatprep.mubr.msk.bf16.mxu1 %vm27_vm3, %v24867_v21  ;;  %v284_v39 = vmax.f32 %v252_v23, 0.0  ;;  %512 = vst.msk [vmem:[#allocation2 + $0xb8] sm:$0xff] %vm27_vm3, %v503_v34  ;;  %v455_v41 = vadd.f32 %v24845_v31, %v454_v38  ;;  %v21362_v42 = vpop.f32.mrb[10].mxu1 }
  0xf1   :  { %v247_v36 = vadd.f32 %v24845_v31, %v246_v33  ;;  %v282_v43 = vmax.f32 %v244_v27, 0.0  ;;  %v495_v45 = vmax.f32 %v463_v37, 0.0  ;;  %v466_v46 = vadd.f32 %v21362_v42, %v24845_v31  ;;  %v457_v47 = vpop.f32.mrb[11].mxu1 }
  0xf2   :  { %v285_v40 = vmax.f32 %v255_v32, 0.0  ;;  %v493_v49 = vmax.f32 %v455_v41, 0.0  ;;  %v458_v50 = vadd.f32 %v24845_v31, %v457_v47 }
  0xf3   :  { %v283_v44 = vmax.f32 %v247_v36, 0.0  ;;  %v496_v53 = vmax.f32 %v466_v46, 0.0 }
  0xf4   :  { %v295_v48 = vpack.c.bf16 %v285_v40, %v284_v39  ;;  %v494_v57 = vmax.f32 %v458_v50, 0.0 }
  0xf5   :  { %v294_v51 = vpack.c.bf16 %v283_v44, %v282_v43  ;;  %v21345_v52 = vpop.f32.mrb[12].mxu0  ;;  %v24899_v60 = vld [vmem:[#allocation2 + $0x70] sm:$0xff]  ;;  %v506_v61 = vpack.c.bf16 %v496_v53, %v495_v45 }
  0xf6   :  { %304 = vst.msk [vmem:[#allocation2 + $0x80] sm:$0xff] %vm27_vm3, %v295_v48  ;;  %v268_v54 = vadd.f32 %v21345_v52, %v24845_v31  ;;  %v259_v55 = vpop.f32.mrb[13].mxu0  ;;  %v24891_v56 = vld [vmem:[#allocation2 + $0x68] sm:$0xff]  ;;  %v505_v0 = vpack.c.bf16 %v494_v57, %v493_v49  ;;  %v21365_v1 = vpop.f32.mrb[12].mxu1 }
  0xf7   :  { %303 = vst.msk [vmem:[#allocation2 + $0x78] sm:$0xff] %vm27_vm3, %v294_v51  ;;  %v260_v58 = vadd.f32 %v24845_v31, %v259_v55  ;;  %v21346_v59 = vpop.f32.mrb[14].mxu0  ;;  %21516 = vmatmul.mubr.msk.bf16.gmra.mrb[84].mxu1 %vm27_vm3, %v24891_v56  ;;  %21784 = vmatmul.mubr.msk.bf16.gmra.mrb[80].mxu0 %vm27_vm3, %v24891_v56  ;;  %515 = vst.msk [vmem:[#allocation2 + $0xd0] sm:$0xff] %vm27_vm3, %v506_v61  ;;  %v479_v3 = vadd.f32 %v21365_v1, %v24845_v31  ;;  %v470_v4 = vpop.f32.mrb[13].mxu1  ;;  %v24937_v51 = vld [vmem:[#allocation2 + $0xa0] sm:$0xff] }
  0xf8   :  { %v271_v62 = vadd.f32 %v21346_v59, %v24845_v31  ;;  %v262_v63 = vpop.f32.mrb[15].mxu0  ;;  %21519 = vmatprep.mubr.msk.bf16.mxu1 %vm27_vm3, %v24899_v60  ;;  %21787 = vmatprep.mubr.msk.bf16.mxu0 %vm27_vm3, %v24899_v60  ;;  %v288_v5 = vmax.f32 %v268_v54, 0.0  ;;  %514 = vst.msk [vmem:[#allocation2 + $0xc8] sm:$0xff] %vm27_vm3, %v505_v0  ;;  %v471_v7 = vadd.f32 %v24845_v31, %v470_v4  ;;  %v21366_v8 = vpop.f32.mrb[14].mxu1 }
  0xf9   :  { %v263_v2 = vadd.f32 %v24845_v31, %v262_v63  ;;  %v286_v9 = vmax.f32 %v260_v58, 0.0  ;;  %v499_v11 = vmax.f32 %v479_v3, 0.0  ;;  %v482_v12 = vadd.f32 %v21366_v8, %v24845_v31  ;;  %v473_v13 = vpop.f32.mrb[15].mxu1 }
  0xfa   :  { %v289_v6 = vmax.f32 %v271_v62, 0.0  ;;  %v497_v15 = vmax.f32 %v471_v7, 0.0  ;;  %v474_v16 = vadd.f32 %v24845_v31, %v473_v13 }
  0xfb   :  { %v287_v10 = vmax.f32 %v263_v2, 0.0  ;;  %v500_v18 = vmax.f32 %v482_v12, 0.0 }
  0xfc   :  { %v297_v14 = vpack.c.bf16 %v289_v6, %v288_v5  ;;  %v498_v22 = vmax.f32 %v474_v16, 0.0 }
  0xfd   :  { %v296_v17 = vpack.c.bf16 %v287_v10, %v286_v9  ;;  %v21373_v19 = vpop.f32.mrb[16].mxu0  ;;  %v24922_v26 = vld [vmem:[#allocation2 + $0x80] sm:$0xff]  ;;  %v508_v27 = vpack.c.bf16 %v500_v18, %v499_v11 }
  0xfe   :  { %306 = vst.msk [vmem:[#allocation2 + $0x90] sm:$0xff] %vm27_vm3, %v297_v14  ;;  %v24914_v20 = vld [vmem:[#allocation2 + $0x78] sm:$0xff]  ;;  %v642_v23 = vadd.f32 %v21373_v19, %v24845_v31  ;;  %v633_v24 = vpop.f32.mrb[17].mxu0  ;;  %v507_v32 = vpack.c.bf16 %v498_v22, %v497_v15 }
  0xff   :  { %305 = vst.msk [vmem:[#allocation2 + $0x88] sm:$0xff] %vm27_vm3, %v296_v17  ;;  %21520 = vmatmul.mubr.msk.bf16.gmra.mrb[88].mxu1 %vm27_vm3, %v24914_v20  ;;  %21788 = vmatmul.mubr.msk.bf16.gmra.mrb[84].mxu0 %vm27_vm3, %v24914_v20  ;;  %v634_v29 = vadd.f32 %v24845_v31, %v633_v24  ;;  %v21374_v30 = vpop.f32.mrb[18].mxu0  ;;  %v21393_v36 = vpop.f32.mrb[16].mxu1  ;;  %517 = vst.msk [vmem:[#allocation2 + $0xe0] sm:$0xff] %vm27_vm3, %v508_v27  ;;  %v3980_v17 = vld [vmem:[#allocation2 + $0x98] sm:$0xff] }
 0x100   :  { %21523 = vmatprep.mubr.msk.bf16.mxu1 %vm27_vm3, %v24922_v26  ;;  %21791 = vmatprep.mubr.msk.bf16.mxu0 %vm27_vm3, %v24922_v26  ;;  %v698_v33 = vmax.f32 %v642_v23, 0.0  ;;  %v645_v34 = vadd.f32 %v21374_v30, %v24845_v31  ;;  %v636_v35 = vpop.f32.mrb[19].mxu0  ;;  %v853_v39 = vadd.f32 %v21393_v36, %v24845_v31  ;;  %v844_v40 = vpop.f32.mrb[17].mxu1  ;;  %516 = vst.msk [vmem:[#allocation2 + $0xd8] sm:$0xff] %vm27_vm3, %v507_v32 }
 0x101   :  { %v696_v37 = vmax.f32 %v634_v29, 0.0  ;;  %v637_v38 = vadd.f32 %v24845_v31, %v636_v35  ;;  %v845_v42 = vadd.f32 %v24845_v31, %v844_v40  ;;  %v21394_v43 = vpop.f32.mrb[18].mxu1  ;;  %v24960_v29 = vld [vmem:[#allocation2 + $0xa8] sm:$0xff] }
 0x102   :  { %v699_v41 = vmax.f32 %v645_v34, 0.0  ;;  %v909_v45 = vmax.f32 %v853_v39, 0.0  ;;  %v856_v46 = vadd.f32 %v21394_v43, %v24845_v31  ;;  %v847_v47 = vpop.f32.mrb[19].mxu1  ;;  %v24967_v34 = vld [vmem:[#allocation2 + $0xb0] sm:$0xff] }
 0x103   :  { %v697_v44 = vmax.f32 %v637_v38, 0.0  ;;  %v907_v49 = vmax.f32 %v845_v42, 0.0  ;;  %v848_v50 = vadd.f32 %v24845_v31, %v847_v47 }
 0x104   :  { %v713_v48 = vpack.c.bf16 %v699_v41, %v698_v33  ;;  %v910_v54 = vmax.f32 %v856_v46, 0.0 }
 0x105   :  { %v712_v52 = vpack.c.bf16 %v697_v44, %v696_v37  ;;  %v21377_v53 = vpop.f32.mrb[20].mxu0  ;;  %v908_v59 = vmax.f32 %v848_v50, 0.0  ;;  %v3979_v61 = vld [vmem:[#allocation2 + $0x90] sm:$0xff] }
 0x106   :  { %v24939_v55 = vld [vmem:[#allocation2 + $0x88] sm:$0xff]  ;;  %722 = vst.msk [vmem:[#allocation2 + $0x100] sm:$0xff] %vm27_vm3, %v713_v48  ;;  %v658_v57 = vadd.f32 %v21377_v53, %v24845_v31  ;;  %v649_v58 = vpop.f32.mrb[21].mxu0  ;;  %v924_v0 = vpack.c.bf16 %v910_v54, %v909_v45 }
 0x107   :  { %21524 = vmatmul.mubr.msk.bf16.gmra.mrb[92].mxu1 %vm27_vm3, %v24939_v55  ;;  %21792 = vmatmul.mubr.msk.bf16.gmra.mrb[88].mxu0 %vm27_vm3, %v24939_v55  ;;  %721 = vst.msk [vmem:[#allocation2 + $0xf8] sm:$0xff] %vm27_vm3, %v712_v52  ;;  %v650_v62 = vadd.f32 %v24845_v31, %v649_v58  ;;  %v21378_v63 = vpop.f32.mrb[22].mxu0  ;;  %v923_v4 = vpack.c.bf16 %v908_v59, %v907_v49  ;;  %v21397_v5 = vpop.f32.mrb[20].mxu1 }
 0x108   :  { %21795 = vmatprep.mubr.msk.bf16.mxu0 %vm27_vm3, %v3979_v61  ;;  %21527 = vmatprep.mubr.msk.bf16.mxu1 %vm27_vm3, %v24937_v51  ;;  %v702_v1 = vmax.f32 %v658_v57, 0.0  ;;  %v661_v2 = vadd.f32 %v21378_v63, %v24845_v31  ;;  %v652_v3 = vpop.f32.mrb[23].mxu0  ;;  %933 = vst.msk [vmem:[#allocation2 + $0x150] sm:$0xff] %vm27_vm3, %v924_v0  ;;  %v869_v8 = vadd.f32 %v21397_v5, %v24845_v31  ;;  %v860_v9 = vpop.f32.mrb[21].mxu1  ;;  %v24983_v0 = vld [vmem:[#allocation2 + $0xb8] sm:$0xff] }
 0x109   :  { %v700_v6 = vmax.f32 %v650_v62, 0.0  ;;  %v653_v7 = vadd.f32 %v24845_v31, %v652_v3  ;;  %932 = vst.msk [vmem:[#allocation2 + $0x148] sm:$0xff] %vm27_vm3, %v923_v4  ;;  %v861_v11 = vadd.f32 %v24845_v31, %v860_v9  ;;  %v21398_v12 = vpop.f32.mrb[22].mxu1  ;;  %v24991_v4 = vld [vmem:[#allocation2 + $0xc0] sm:$0xff] }
 0x10a   :  { %v703_v10 = vmax.f32 %v661_v2, 0.0  ;;  %v913_v14 = vmax.f32 %v869_v8, 0.0  ;;  %v872_v15 = vadd.f32 %v21398_v12, %v24845_v31  ;;  %v863_v16 = vpop.f32.mrb[23].mxu1 }
 0x10b   :  { %v701_v13 = vmax.f32 %v653_v7, 0.0  ;;  %v911_v19 = vmax.f32 %v861_v11, 0.0  ;;  %v864_v22 = vadd.f32 %v24845_v31, %v863_v16 }
 0x10c   :  { %v715_v18 = vpack.c.bf16 %v703_v10, %v702_v1  ;;  %v914_v27 = vmax.f32 %v872_v15, 0.0 }
 0x10d   :  { %v714_v23 = vpack.c.bf16 %v701_v13, %v700_v6  ;;  %v21381_v24 = vpop.f32.mrb[24].mxu0  ;;  %v912_v33 = vmax.f32 %v864_v22, 0.0 }
 0x10e   :  { %724 = vst.msk [vmem:[#allocation2 + $0x110] sm:$0xff] %vm27_vm3, %v715_v18  ;;  %v674_v30 = vadd.f32 %v21381_v24, %v24845_v31  ;;  %v665_v32 = vpop.f32.mrb[25].mxu0  ;;  %v926_v37 = vpack.c.bf16 %v914_v27, %v913_v14 }
 0x10f   :  { %21528 = vmatmul.mubr.msk.bf16.gmra.mrb[96].mxu1 %vm27_vm3, %v24960_v29  ;;  %21796 = vmatmul.mubr.msk.bf16.gmra.mrb[92].mxu0 %vm27_vm3, %v3980_v17  ;;  %723 = vst.msk [vmem:[#allocation2 + $0x108] sm:$0xff] %vm27_vm3, %v714_v23  ;;  %v666_v35 = vadd.f32 %v24845_v31, %v665_v32  ;;  %v21382_v36 = vpop.f32.mrb[26].mxu0  ;;  %v925_v41 = vpack.c.bf16 %v912_v33, %v911_v19  ;;  %v21401_v42 = vpop.f32.mrb[24].mxu1 }
 0x110   :  { %21531 = vmatprep.mubr.msk.bf16.mxu1 %vm27_vm3, %v24967_v34  ;;  %21799 = vmatprep.mubr.msk.bf16.mxu0 %vm27_vm3, %v24967_v34  ;;  %v706_v38 = vmax.f32 %v674_v30, 0.0  ;;  %v677_v39 = vadd.f32 %v21382_v36, %v24845_v31  ;;  %v668_v40 = vpop.f32.mrb[27].mxu0  ;;  %935 = vst.msk [vmem:[#allocation2 + $0x160] sm:$0xff] %vm27_vm3, %v926_v37  ;;  %v885_v45 = vadd.f32 %v21401_v42, %v24845_v31  ;;  %v876_v46 = vpop.f32.mrb[25].mxu1  ;;  %v25015_v42 = vld [vmem:[#allocation2 + $0xd0] sm:$0xff] }
 0x111   :  { %v704_v43 = vmax.f32 %v666_v35, 0.0  ;;  %v669_v44 = vadd.f32 %v24845_v31, %v668_v40  ;;  %934 = vst.msk [vmem:[#allocation2 + $0x158] sm:$0xff] %vm27_vm3, %v925_v41  ;;  %v877_v48 = vadd.f32 %v24845_v31, %v876_v46  ;;  %v21402_v49 = vpop.f32.mrb[26].mxu1 }
 0x112   :  { %v707_v47 = vmax.f32 %v677_v39, 0.0  ;;  %v917_v52 = vmax.f32 %v885_v45, 0.0  ;;  %v888_v53 = vadd.f32 %v21402_v49, %v24845_v31  ;;  %v879_v54 = vpop.f32.mrb[27].mxu1 }
 0x113   :  { %v705_v50 = vmax.f32 %v669_v44, 0.0  ;;  %v915_v58 = vmax.f32 %v877_v48, 0.0  ;;  %v880_v59 = vadd.f32 %v24845_v31, %v879_v54 }
 0x114   :  { %v717_v57 = vpack.c.bf16 %v707_v47, %v706_v38  ;;  %v918_v63 = vmax.f32 %v888_v53, 0.0  ;;  %v25007_v38 = vld [vmem:[#allocation2 + $0xc8] sm:$0xff] }
 0x115   :  { %v716_v61 = vpack.c.bf16 %v705_v50, %v704_v43  ;;  %v21385_v62 = vpop.f32.mrb[28].mxu0  ;;  %v916_v3 = vmax.f32 %v880_v59, 0.0 }
 0x116   :  { %726 = vst.msk [vmem:[#allocation2 + $0x120] sm:$0xff] %vm27_vm3, %v717_v57  ;;  %v690_v1 = vadd.f32 %v21385_v62, %v24845_v31  ;;  %v681_v2 = vpop.f32.mrb[29].mxu0  ;;  %v928_v7 = vpack.c.bf16 %v918_v63, %v917_v52 }
 0x117   :  { %21532 = vmatmul.mubr.msk.bf16.gmra.mrb[100].mxu1 %vm27_vm3, %v24983_v0  ;;  %21800 = vmatmul.mubr.msk.bf16.gmra.mrb[96].mxu0 %vm27_vm3, %v24983_v0  ;;  %725 = vst.msk [vmem:[#allocation2 + $0x118] sm:$0xff] %vm27_vm3, %v716_v61  ;;  %v682_v5 = vadd.f32 %v24845_v31, %v681_v2  ;;  %v21386_v6 = vpop.f32.mrb[30].mxu0  ;;  %v927_v11 = vpack.c.bf16 %v916_v3, %v915_v58  ;;  %v21405_v12 = vpop.f32.mrb[28].mxu1 }
 0x118   :  { %21535 = vmatprep.mubr.msk.bf16.mxu1 %vm27_vm3, %v24991_v4  ;;  %21803 = vmatprep.mubr.msk.bf16.mxu0 %vm27_vm3, %v24991_v4  ;;  %v710_v8 = vmax.f32 %v690_v1, 0.0  ;;  %v693_v9 = vadd.f32 %v21386_v6, %v24845_v31  ;;  %v684_v10 = vpop.f32.mrb[31].mxu0  ;;  %937 = vst.msk [vmem:[#allocation2 + $0x170] sm:$0xff] %vm27_vm3, %v928_v7  ;;  %v901_v15 = vadd.f32 %v21405_v12, %v24845_v31  ;;  %v892_v16 = vpop.f32.mrb[29].mxu1  ;;  %v25031_v7 = vld [vmem:[#allocation2 + $0xf0] sm:$0xff] }
 0x119   :  { %v708_v13 = vmax.f32 %v682_v5, 0.0  ;;  %v685_v14 = vadd.f32 %v24845_v31, %v684_v10  ;;  %936 = vst.msk [vmem:[#allocation2 + $0x168] sm:$0xff] %vm27_vm3, %v927_v11  ;;  %v893_v18 = vadd.f32 %v24845_v31, %v892_v16  ;;  %v21406_v19 = vpop.f32.mrb[30].mxu1  ;;  %v25033_v11 = vld [vmem:[#allocation2 + $0xd8] sm:$0xff] }
 0x11a   :  { %v711_v17 = vmax.f32 %v693_v9, 0.0  ;;  %v921_v23 = vmax.f32 %v901_v15, 0.0  ;;  %v904_v24 = vadd.f32 %v21406_v19, %v24845_v31  ;;  %v895_v27 = vpop.f32.mrb[31].mxu1  ;;  %v3987_v15 = vld [vmem:[#allocation2 + $0xe0] sm:$0xff] }
 0x11b   :  { %v709_v22 = vmax.f32 %v685_v14, 0.0  ;;  %v919_v32 = vmax.f32 %v893_v18, 0.0  ;;  %v896_v33 = vadd.f32 %v24845_v31, %v895_v27 }
 0x11c   :  { %v719_v30 = vpack.c.bf16 %v711_v17, %v710_v8  ;;  %v922_v36 = vmax.f32 %v904_v24, 0.0 }
 0x11d   :  { %v718_v35 = vpack.c.bf16 %v709_v22, %v708_v13  ;;  %v21413_v37 = vpop.f32.mrb[32].mxu0  ;;  %v920_v39 = vmax.f32 %v896_v33, 0.0 }
 0x11e   :  { %728 = vst.msk [vmem:[#allocation2 + $0x130] sm:$0xff] %vm27_vm3, %v719_v30  ;;  %v1064_v40 = vadd.f32 %v21413_v37, %v24845_v31  ;;  %v1055_v41 = vpop.f32.mrb[33].mxu0  ;;  %v930_v43 = vpack.c.bf16 %v922_v36, %v921_v23 }
 0x11f   :  { %21536 = vmatmul.mubr.msk.bf16.gmra.mrb[104].mxu1 %vm27_vm3, %v25007_v38  ;;  %21804 = vmatmul.mubr.msk.bf16.gmra.mrb[100].mxu0 %vm27_vm3, %v25007_v38  ;;  %727 = vst.msk [vmem:[#allocation2 + $0x128] sm:$0xff] %vm27_vm3, %v718_v35  ;;  %v1056_v44 = vadd.f32 %v24845_v31, %v1055_v41  ;;  %v21414_v45 = vpop.f32.mrb[34].mxu0  ;;  %v929_v46 = vpack.c.bf16 %v920_v39, %v919_v32  ;;  %v21433_v50 = vpop.f32.mrb[32].mxu1 }
 0x120   :  { %21539 = vmatprep.mubr.msk.bf16.mxu1 %vm27_vm3, %v25015_v42  ;;  %21807 = vmatprep.mubr.msk.bf16.mxu0 %vm27_vm3, %v25015_v42  ;;  %v1120_v47 = vmax.f32 %v1064_v40, 0.0  ;;  %v1067_v48 = vadd.f32 %v21414_v45, %v24845_v31  ;;  %v1058_v49 = vpop.f32.mrb[35].mxu0  ;;  %939 = vst.msk [vmem:[#allocation2 + $0x180] sm:$0xff] %vm27_vm3, %v930_v43  ;;  %v1275_v54 = vadd.f32 %v21433_v50, %v24845_v31  ;;  %v1266_v57 = vpop.f32.mrb[33].mxu1  ;;  %v3988_v45 = vld [vmem:[#allocation2 + $0xe8] sm:$0xff] }
 0x121   :  { %v1118_v52 = vmax.f32 %v1056_v44, 0.0  ;;  %v1059_v53 = vadd.f32 %v24845_v31, %v1058_v49  ;;  %938 = vst.msk [vmem:[#allocation2 + $0x178] sm:$0xff] %vm27_vm3, %v929_v46  ;;  %v1267_v59 = vadd.f32 %v24845_v31, %v1266_v57  ;;  %v21434_v61 = vpop.f32.mrb[34].mxu1 }
 0x122   :  { %v1121_v58 = vmax.f32 %v1067_v48, 0.0  ;;  %v1331_v63 = vmax.f32 %v1275_v54, 0.0  ;;  %v1278_v1 = vadd.f32 %v21434_v61, %v24845_v31  ;;  %v1269_v2 = vpop.f32.mrb[35].mxu1 }
 0x123   :  { %v1119_v62 = vmax.f32 %v1059_v53, 0.0  ;;  %v1329_v5 = vmax.f32 %v1267_v59, 0.0  ;;  %v1270_v6 = vadd.f32 %v24845_v31, %v1269_v2  ;;  %v25054_v53 = vld [vmem:[#allocation2 + $0xf8] sm:$0xff]  ;;  %v25061_v59 = vld [vmem:[#allocation2 + $0x100] sm:$0xff] }
 0x124   :  { %v1135_v3 = vpack.c.bf16 %v1121_v58, %v1120_v47  ;;  %v1332_v10 = vmax.f32 %v1278_v1, 0.0 }
 0x125   :  { %v1134_v8 = vpack.c.bf16 %v1119_v62, %v1118_v52  ;;  %v21417_v9 = vpop.f32.mrb[36].mxu0  ;;  %v1330_v14 = vmax.f32 %v1270_v6, 0.0 }
 0x126   :  { %1144 = vst.msk [vmem:[#allocation2 + $0x1a0] sm:$0xff] %vm27_vm3, %v1135_v3  ;;  %v1080_v12 = vadd.f32 %v21417_v9, %v24845_v31  ;;  %v1071_v13 = vpop.f32.mrb[37].mxu0  ;;  %v1346_v18 = vpack.c.bf16 %v1332_v10, %v1331_v63 }
 0x127   :  { %21540 = vmatmul.mubr.msk.bf16.gmra.mrb[108].mxu1 %vm27_vm3, %v25033_v11  ;;  %21808 = vmatmul.mubr.msk.bf16.gmra.mrb[104].mxu0 %vm27_vm3, %v25033_v11  ;;  %1143 = vst.msk [vmem:[#allocation2 + $0x198] sm:$0xff] %vm27_vm3, %v1134_v8  ;;  %v1072_v16 = vadd.f32 %v24845_v31, %v1071_v13  ;;  %v21418_v17 = vpop.f32.mrb[38].mxu0  ;;  %v1345_v24 = vpack.c.bf16 %v1330_v14, %v1329_v5  ;;  %v21437_v27 = vpop.f32.mrb[36].mxu1 }
 0x128   :  { %21811 = vmatprep.mubr.msk.bf16.mxu0 %vm27_vm3, %v3987_v15  ;;  %21543 = vmatprep.mubr.msk.bf16.mxu1 %vm27_vm3, %v25031_v7  ;;  %v1124_v19 = vmax.f32 %v1080_v12, 0.0  ;;  %v1083_v22 = vadd.f32 %v21418_v17, %v24845_v31  ;;  %v1074_v23 = vpop.f32.mrb[39].mxu0  ;;  %1355 = vst.msk [vmem:[#allocation2 + $0x1f0] sm:$0xff] %vm27_vm3, %v1346_v18  ;;  %v1291_v33 = vadd.f32 %v21437_v27, %v24845_v31  ;;  %v1282_v35 = vpop.f32.mrb[37].mxu1 }
 0x129   :  { %v1122_v30 = vmax.f32 %v1072_v16, 0.0  ;;  %v1075_v32 = vadd.f32 %v24845_v31, %v1074_v23  ;;  %1354 = vst.msk [vmem:[#allocation2 + $0x1e8] sm:$0xff] %vm27_vm3, %v1345_v24  ;;  %v1283_v37 = vadd.f32 %v24845_v31, %v1282_v35  ;;  %v21438_v39 = vpop.f32.mrb[38].mxu1 }
 0x12a   :  { %v1125_v36 = vmax.f32 %v1083_v22, 0.0  ;;  %v1335_v41 = vmax.f32 %v1291_v33, 0.0  ;;  %v1294_v43 = vadd.f32 %v21438_v39, %v24845_v31  ;;  %v1285_v44 = vpop.f32.mrb[39].mxu1  ;;  %v25077_v33 = vld [vmem:[#allocation2 + $0x108] sm:$0xff]  ;;  %v25085_v39 = vld [vmem:[#allocation2 + $0x110] sm:$0xff] }
 0x12b   :  { %v1123_v40 = vmax.f32 %v1075_v32, 0.0  ;;  %v1333_v47 = vmax.f32 %v1283_v37, 0.0  ;;  %v1286_v48 = vadd.f32 %v24845_v31, %v1285_v44 }
 0x12c   :  { %v1137_v46 = vpack.c.bf16 %v1125_v36, %v1124_v19  ;;  %v1336_v52 = vmax.f32 %v1294_v43, 0.0 }
 0x12d   :  { %v1136_v49 = vpack.c.bf16 %v1123_v40, %v1122_v30  ;;  %v21421_v50 = vpop.f32.mrb[40].mxu0  ;;  %v1334_v58 = vmax.f32 %v1286_v48, 0.0 }
 0x12e   :  { %1146 = vst.msk [vmem:[#allocation2 + $0x1b0] sm:$0xff] %vm27_vm3, %v1137_v46  ;;  %v1096_v54 = vadd.f32 %v21421_v50, %v24845_v31  ;;  %v1087_v57 = vpop.f32.mrb[41].mxu0  ;;  %v1348_v63 = vpack.c.bf16 %v1336_v52, %v1335_v41 }
 0x12f   :  { %21544 = vmatmul.mubr.msk.bf16.gmra.mrb[112].mxu1 %vm27_vm3, %v25054_v53  ;;  %21812 = vmatmul.mubr.msk.bf16.gmra.mrb[108].mxu0 %vm27_vm3, %v3988_v45  ;;  %1145 = vst.msk [vmem:[#allocation2 + $0x1a8] sm:$0xff] %vm27_vm3, %v1136_v49  ;;  %v1088_v61 = vadd.f32 %v24845_v31, %v1087_v57  ;;  %v21422_v62 = vpop.f32.mrb[42].mxu0  ;;  %v1347_v5 = vpack.c.bf16 %v1334_v58, %v1333_v47  ;;  %v21441_v6 = vpop.f32.mrb[40].mxu1 }
 0x130   :  { %21547 = vmatprep.mubr.msk.bf16.mxu1 %vm27_vm3, %v25061_v59  ;;  %21815 = vmatprep.mubr.msk.bf16.mxu0 %vm27_vm3, %v25061_v59  ;;  %v1128_v1 = vmax.f32 %v1096_v54, 0.0  ;;  %v1099_v2 = vadd.f32 %v21422_v62, %v24845_v31  ;;  %v1090_v3 = vpop.f32.mrb[43].mxu0  ;;  %1357 = vst.msk [vmem:[#allocation2 + $0x200] sm:$0xff] %vm27_vm3, %v1348_v63  ;;  %v1307_v10 = vadd.f32 %v21441_v6, %v24845_v31  ;;  %v1298_v12 = vpop.f32.mrb[41].mxu1 }
 0x131   :  { %v1126_v8 = vmax.f32 %v1088_v61, 0.0  ;;  %v1091_v9 = vadd.f32 %v24845_v31, %v1090_v3  ;;  %1356 = vst.msk [vmem:[#allocation2 + $0x1f8] sm:$0xff] %vm27_vm3, %v1347_v5  ;;  %v1299_v14 = vadd.f32 %v24845_v31, %v1298_v12  ;;  %v21442_v15 = vpop.f32.mrb[42].mxu1  ;;  %v23825_v12 = vld [vmem:[%s28756_s3 + $0x20] sm:$0xff]  }
 0x132   :  { %v1129_v13 = vmax.f32 %v1099_v2, 0.0  ;;  %v1339_v17 = vmax.f32 %v1307_v10, 0.0  ;;  %v1310_v18 = vadd.f32 %v21442_v15, %v24845_v31  ;;  %v1301_v19 = vpop.f32.mrb[43].mxu1  ;;  %21623 = vmatprep.subr.bf16.mxu1 %v23825_v12 }
 0x133   :  { %v1127_v16 = vmax.f32 %v1091_v9, 0.0  ;;  %v1337_v23 = vmax.f32 %v1299_v14, 0.0  ;;  %v1302_v24 = vadd.f32 %v24845_v31, %v1301_v19  ;;  %21624 = vmatpush3.bf16.msra.mxu1 %v23825_v12 }
 0x134   :  { %v1139_v22 = vpack.c.bf16 %v1129_v13, %v1128_v1  ;;  %v1340_v32 = vmax.f32 %v1310_v18, 0.0  ;;  %v25104_v13 = vld [vmem:[#allocation2 + $0x118] sm:$0xff] }
 0x135   :  { %v1138_v27 = vpack.c.bf16 %v1127_v16, %v1126_v8  ;;  %v21425_v30 = vpop.f32.mrb[44].mxu0  ;;  %v1338_v37 = vmax.f32 %v1302_v24, 0.0 }
 0x136   :  { %1148 = vst.msk [vmem:[#allocation2 + $0x1c0] sm:$0xff] %vm27_vm3, %v1139_v22  ;;  %v1112_v35 = vadd.f32 %v21425_v30, %v24845_v31  ;;  %v1103_v36 = vpop.f32.mrb[45].mxu0  ;;  %v1350_v43 = vpack.c.bf16 %v1340_v32, %v1339_v17  ;;  %v25112_v17 = vld [vmem:[#allocation2 + $0x120] sm:$0xff]  ;;  %v23826_v32 = vld [vmem:[%s28756_s3 + $0x28] sm:$0xff]  }
 0x137   :  { %21548 = vmatmul.mubr.msk.bf16.gmra.mrb[116].mxu1 %vm27_vm3, %v25077_v33  ;;  %21816 = vmatmul.mubr.msk.bf16.gmra.mrb[112].mxu0 %vm27_vm3, %v25077_v33  ;;  %1147 = vst.msk [vmem:[#allocation2 + $0x1b8] sm:$0xff] %vm27_vm3, %v1138_v27  ;;  %v1104_v40 = vadd.f32 %v24845_v31, %v1103_v36  ;;  %v21426_v41 = vpop.f32.mrb[46].mxu0  ;;  %v1349_v47 = vpack.c.bf16 %v1338_v37, %v1337_v23  ;;  %v21445_v48 = vpop.f32.mrb[44].mxu1 }
 0x138   :  { %21551 = vmatprep.mubr.msk.bf16.mxu1 %vm27_vm3, %v25085_v39  ;;  %21819 = vmatprep.mubr.msk.bf16.mxu0 %vm27_vm3, %v25085_v39  ;;  %v1132_v44 = vmax.f32 %v1112_v35, 0.0  ;;  %v1115_v45 = vadd.f32 %v21426_v41, %v24845_v31  ;;  %v1106_v46 = vpop.f32.mrb[47].mxu0  ;;  %1359 = vst.msk [vmem:[#allocation2 + $0x210] sm:$0xff] %vm27_vm3, %v1350_v43  ;;  %v1323_v52 = vadd.f32 %v21445_v48, %v24845_v31  ;;  %v1314_v54 = vpop.f32.mrb[45].mxu1  ;;  %v25127_v43 = vld [vmem:[#allocation2 + $0x140] sm:$0xff] }
 0x139   :  { %v1130_v49 = vmax.f32 %v1104_v40, 0.0  ;;  %v1107_v50 = vadd.f32 %v24845_v31, %v1106_v46  ;;  %1358 = vst.msk [vmem:[#allocation2 + $0x208] sm:$0xff] %vm27_vm3, %v1349_v47  ;;  %v1315_v58 = vadd.f32 %v24845_v31, %v1314_v54  ;;  %v21446_v61 = vpop.f32.mrb[46].mxu1  ;;  %21625 = vmatprep.subr.bf16.mxu1 %v23826_v32  ;;  %v23827_v46 = vld [vmem:[%s28756_s3 + $0x30] sm:$0xff]   ;;  %v25132_v47 = vld [vmem:[#allocation2 + $0x128] sm:$0xff]  ;;  %v23828_v54 = vld [vmem:[%s28756_s3 + $0x38] sm:$0xff]  }
 0x13a   :  { %v1133_v57 = vmax.f32 %v1115_v45, 0.0  ;;  %v1343_v63 = vmax.f32 %v1323_v52, 0.0  ;;  %v1326_v1 = vadd.f32 %v21446_v61, %v24845_v31  ;;  %v1317_v2 = vpop.f32.mrb[47].mxu1  ;;  %21626 = vmatpush3.bf16.msra.mxu1 %v23826_v32  ;;  %v25189_v32 = vld [vmem:[#allocation2 + $0x158] sm:$0xff] }
 0x13b   :  { %v1131_v62 = vmax.f32 %v1107_v50, 0.0  ;;  %v1341_v5 = vmax.f32 %v1315_v58, 0.0  ;;  %v1318_v6 = vadd.f32 %v24845_v31, %v1317_v2  ;;  %21627 = vmatprep.subr.bf16.mxu1 %v23827_v46 }
 0x13c   :  { %v1141_v3 = vpack.c.bf16 %v1133_v57, %v1132_v44  ;;  %v1344_v10 = vmax.f32 %v1326_v1, 0.0 }
 0x13d   :  { %v1140_v8 = vpack.c.bf16 %v1131_v62, %v1130_v49  ;;  %v21453_v9 = vpop.f32.mrb[48].mxu0  ;;  %v1342_v16 = vmax.f32 %v1318_v6, 0.0  ;;  %v23824_v6 = vld [vmem:[%s28756_s3 + $0x88] sm:$0xff]  }
 0x13e   :  { %1150 = vst.msk [vmem:[#allocation2 + $0x1d0] sm:$0xff] %vm27_vm3, %v1141_v3  ;;  %v1486_v14 = vadd.f32 %v21453_v9, %v24845_v31  ;;  %v1477_v15 = vpop.f32.mrb[49].mxu0  ;;  %v1352_v22 = vpack.c.bf16 %v1344_v10, %v1343_v63  ;;  %21628 = vmatpush3.bf16.msra.mxu1 %v23827_v46  ;;  %v25151_v3 = vld [vmem:[#allocation2 + $0x148] sm:$0xff]  ;;  %v25156_v9 = vld [vmem:[#allocation2 + $0x150] sm:$0xff] }
 0x13f   :  { %21552 = vmatmul.mubr.msk.bf16.gmra.mrb[120].mxu1 %vm27_vm3, %v25104_v13  ;;  %21820 = vmatmul.mubr.msk.bf16.gmra.mrb[116].mxu0 %vm27_vm3, %v25104_v13  ;;  %1149 = vst.msk [vmem:[#allocation2 + $0x1c8] sm:$0xff] %vm27_vm3, %v1140_v8  ;;  %v1478_v18 = vadd.f32 %v24845_v31, %v1477_v15  ;;  %v21454_v19 = vpop.f32.mrb[50].mxu0  ;;  %v1351_v30 = vpack.c.bf16 %v1342_v16, %v1341_v5 }
 0x140   :  { %21555 = vmatprep.mubr.msk.bf16.mxu1 %vm27_vm3, %v25112_v17  ;;  %21823 = vmatprep.mubr.msk.bf16.mxu0 %vm27_vm3, %v25112_v17  ;;  %v1542_v23 = vmax.f32 %v1486_v14, 0.0  ;;  %v1489_v24 = vadd.f32 %v21454_v19, %v24845_v31  ;;  %v1480_v27 = vpop.f32.mrb[51].mxu0  ;;  %1361 = vst.msk [vmem:[#allocation2 + $0x220] sm:$0xff] %vm27_vm3, %v1352_v22  ;;  %v25168_v14 = vld [vmem:[%s28757_s2] ss:$0 sm:$0xff] }
 0x141   :  { %v1540_v35 = vmax.f32 %v1478_v18, 0.0  ;;  %v1481_v36 = vadd.f32 %v24845_v31, %v1480_v27  ;;  %1360 = vst.msk [vmem:[#allocation2 + $0x218] sm:$0xff] %vm27_vm3, %v1351_v30  ;;  %21629 = vmatprep.subr.bf16.mxu1 %v23828_v54 }
 0x142   :  { %v1543_v37 = vmax.f32 %v1489_v24, 0.0  ;;  %21630 = vmatpush3.bf16.msra.mxu1 %v23828_v54  ;;  %v23829_v24 = vld [vmem:[%s28756_s3 + $0x90] sm:$0xff]  }
 0x143   :  { %v1541_v40 = vmax.f32 %v1481_v36, 0.0  ;;  %v25191_v36 = vld [vmem:[#allocation2 + $0x160] sm:$0xff] }
 0x144   :  { %v1557_v41 = vpack.c.bf16 %v1543_v37, %v1542_v23 }
 0x145   :  { %v1556_v44 = vpack.c.bf16 %v1541_v40, %v1540_v35  ;;  %v21457_v45 = vpop.f32.mrb[52].mxu0 }
 0x146   :  { %1566 = vst.msk [vmem:[#allocation2 + $0x240] sm:$0xff] %vm27_vm3, %v1557_v41  ;;  %v1502_v48 = vadd.f32 %v21457_v45, %v24845_v31  ;;  %v1493_v49 = vpop.f32.mrb[53].mxu0 }
 0x147   :  { %21556 = vmatmul.mubr.msk.bf16.gmra.mrb[124].mxu1 %vm27_vm3, %v25132_v47  ;;  %21824 = vmatmul.mubr.msk.bf16.gmra.mrb[120].mxu0 %vm27_vm3, %v25132_v47  ;;  %1565 = vst.msk [vmem:[#allocation2 + $0x238] sm:$0xff] %vm27_vm3, %v1556_v44  ;;  %v1494_v50 = vadd.f32 %v24845_v31, %v1493_v49  ;;  %v21458_v52 = vpop.f32.mrb[54].mxu0 }
 0x148   :  { %21559 = vmatprep.mubr.msk.bf16.mxu1 %vm27_vm3, %v25127_v43  ;;  %21903 = vmatprep.mubr.msk.bf16.mxu0 %vm27_vm3, %v24831_v28  ;;  %v1546_v57 = vmax.f32 %v1502_v48, 0.0  ;;  %v1505_v58 = vadd.f32 %v21458_v52, %v24845_v31  ;;  %v1496_v61 = vpop.f32.mrb[55].mxu0 }
 0x149   :  { %v1544_v62 = vmax.f32 %v1494_v50, 0.0  ;;  %v1497_v63 = vadd.f32 %v24845_v31, %v1496_v61 }
 0x14a   :  { %v1547_v1 = vmax.f32 %v1505_v58, 0.0  ;;  %v25207_v58 = vld [vmem:[#allocation2 + $0x168] sm:$0xff] }
 0x14b   :  { %v1545_v2 = vmax.f32 %v1497_v63, 0.0 }
 0x14c   :  { %v1559_v5 = vpack.c.bf16 %v1547_v1, %v1546_v57  ;;  %v25223_v1 = vld [vmem:[#allocation2 + $0x190] sm:$0xff] }
 0x14d   :  { %v1558_v28 = vpack.c.bf16 %v1545_v2, %v1544_v62  ;;  %v21461_v8 = vpop.f32.mrb[56].mxu0  ;;  %v25209_v62 = vld [vmem:[#allocation2 + $0x170] sm:$0xff] }
 0x14e   :  { %1568 = vst.msk [vmem:[#allocation2 + $0x250] sm:$0xff] %vm27_vm3, %v1559_v5  ;;  %v1518_v10 = vadd.f32 %v21461_v8, %v24845_v31  ;;  %v1509_v12 = vpop.f32.mrb[57].mxu0  ;;  %v24360_v31 = vld [vmem:[%s28756_s3 + $0x80] sm:$0xff]   ;;  %v25247_v2 = vld [vmem:[#allocation2 + $0x1b0] sm:$0xff] }
 0x14f   :  { %21560 = vmatmul.mubr.msk.bf16.gmra.mrb[128].mxu1 %vm27_vm3, %v25151_v3  ;;  %21904 = vmatmul.mubr.msk.bf16.vlgmr.msra.gmra.mrb[64].mxu0 %vm27_vm3, %v24873_v25  ;;  %1567 = vst.msk [vmem:[#allocation2 + $0x248] sm:$0xff] %vm27_vm3, %v1558_v28  ;;  %v1510_v15 = vadd.f32 %v25168_v14, %v1509_v12  ;;  %v21462_v16 = vpop.f32.mrb[58].mxu0 }
 0x150   :  { %22032 = vmatpush3.bf16.msra.mxu0 %v24360_v31  ;;  %21907 = vmatprep.mubr.msk.bf16.mxu0 %vm27_vm3, %v24867_v21  ;;  %v1550_v18 = vmax.f32 %v1518_v10, 0.0  ;;  %v1521_v25 = vadd.f32 %v25168_v14, %v21462_v16  ;;  %v1512_v19 = vpop.f32.mrb[59].mxu0  ;;  %v25186_v21 = vld [vmem:[%s28756_s3 + $0x40] sm:$0xff]  }
 0x151   :  { %21563 = vmatprep.mubr.msk.bf16.mxu1 %vm27_vm3, %v25156_v9  ;;  %22033 = vmatprep.subr.bf16.mxu0 %v23824_v6  ;;  %v1548_v22 = vmax.f32 %v1510_v15, 0.0  ;;  %v1513_v23 = vadd.f32 %v25168_v14, %v1512_v19  ;;  %v25311_v15 = vld [vmem:[#allocation2 + $0x208] sm:$0xff] }
 0x152   :  { %v1551_v27 = vmax.f32 %v1521_v25, 0.0  ;;  %22711 = vmatprep.subr.bf16.mxu1 %v25186_v21 }
 0x153   :  { %v1549_v30 = vmax.f32 %v1513_v23, 0.0 }
 0x154   :  { %22034 = vmatpush3.bf16.msra.mxu0 %v23824_v6  ;;  %v1561_v35 = vpack.c.bf16 %v1551_v27, %v1550_v18 }
 0x155   :  { %v1560_v37 = vpack.c.bf16 %v1549_v30, %v1548_v22  ;;  %v21465_v40 = vpop.f32.mrb[60].mxu0  ;;  %22035 = vmatprep.subr.bf16.mxu0 %v23829_v24 }
 0x156   :  { %1570 = vst.msk [vmem:[#allocation2 + $0x260] sm:$0xff] %vm27_vm3, %v1561_v35  ;;  %v1534_v41 = vadd.f32 %v25168_v14, %v21465_v40  ;;  %v1525_v44 = vpop.f32.mrb[61].mxu0 }
 0x157   :  { %21564 = vmatmul.mubr.msk.bf16.gmra.mrb[132].mxu1 %vm27_vm3, %v25189_v32  ;;  %21908 = vmatmul.mubr.msk.bf16.gmra.mrb[68].mxu0 %vm27_vm3, %v24891_v56  ;;  %1569 = vst.msk [vmem:[#allocation2 + $0x258] sm:$0xff] %vm27_vm3, %v1560_v37  ;;  %v1526_v45 = vadd.f32 %v25168_v14, %v1525_v44  ;;  %v21466_v46 = vpop.f32.mrb[62].mxu0  ;;  %v25332_v44 = vld [vmem:[#allocation2 + $0x230] sm:$0xff] }
 0x158   :  { %21911 = vmatprep.mubr.msk.bf16.mxu0 %vm27_vm3, %v24899_v60  ;;  %21567 = vmatprep.mubr.msk.bf16.mxu1 %vm27_vm3, %v25191_v36  ;;  %v1554_v48 = vmax.f32 %v1534_v41, 0.0  ;;  %v1537_v49 = vadd.f32 %v25168_v14, %v21466_v46  ;;  %v1528_v50 = vpop.f32.mrb[63].mxu0  ;;  %v25221_v60 = vld [vmem:[#allocation2 + $0x178] sm:$0xff] }
 0x159   :  { %v1552_v52 = vmax.f32 %v1526_v45, 0.0  ;;  %v1529_v54 = vadd.f32 %v25168_v14, %v1528_v50  ;;  %22036 = vmatpush3.bf16.msra.mxu0 %v23829_v24 }
 0x15a   :  { %v1555_v56 = vmax.f32 %v1537_v49, 0.0 }
 0x15b   :  { %v1553_v57 = vmax.f32 %v1529_v54, 0.0 }
 0x15c   :  { %v1563_v61 = vpack.c.bf16 %v1555_v56, %v1554_v48 }
 0x15d   :  { %v1562_v63 = vpack.c.bf16 %v1553_v57, %v1552_v52 }
 0x15e   :  { %1572 = vst.msk [vmem:[#allocation2 + $0x270] sm:$0xff] %vm27_vm3, %v1563_v61 }
 0x15f   :  { %21568 = vmatmul.mubr.msk.bf16.gmra.mrb[136].mxu1 %vm27_vm3, %v25207_v58  ;;  %21912 = vmatmul.mubr.msk.bf16.gmra.mrb[72].mxu0 %vm27_vm3, %v24914_v20  ;;  %1571 = vst.msk [vmem:[#allocation2 + $0x268] sm:$0xff] %vm27_vm3, %v1562_v63  ;;  %v25233_v20 = vld [vmem:[#allocation2 + $0x198] sm:$0xff] }
 0x160   :  { %21915 = vmatprep.mubr.msk.bf16.mxu0 %vm27_vm3, %v24922_v26  ;;  %21571 = vmatprep.mubr.msk.bf16.mxu1 %vm27_vm3, %v25209_v62  ;;  %v25235_v26 = vld [vmem:[#allocation2 + $0x1a0] sm:$0xff] }
 0x167   :  { %21572 = vmatmul.mubr.msk.bf16.gmra.mrb[140].mxu1 %vm27_vm3, %v25221_v60  ;;  %21916 = vmatmul.mubr.msk.bf16.gmra.mrb[76].mxu0 %vm27_vm3, %v24939_v55  ;;  %v25245_v55 = vld [vmem:[#allocation2 + $0x1a8] sm:$0xff] }
 0x168   :  { %21575 = vmatprep.mubr.msk.bf16.mxu1 %vm27_vm3, %v25223_v1  ;;  %21919 = vmatprep.mubr.msk.bf16.mxu0 %vm27_vm3, %v24937_v51  ;;  %v25257_v51 = vld [vmem:[#allocation2 + $0x1b8] sm:$0xff] }
 0x16f   :  { %21576 = vmatmul.mubr.msk.bf16.gmra.mrb[144].mxu1 %vm27_vm3, %v25233_v20  ;;  %21920 = vmatmul.mubr.msk.bf16.gmra.mrb[80].mxu0 %vm27_vm3, %v24960_v29  ;;  %v25259_v29 = vld [vmem:[#allocation2 + $0x1c0] sm:$0xff] }
 0x170   :  { %21923 = vmatprep.mubr.msk.bf16.mxu0 %vm27_vm3, %v24967_v34  ;;  %21579 = vmatprep.mubr.msk.bf16.mxu1 %vm27_vm3, %v25235_v26  ;;  %v25269_v34 = vld [vmem:[#allocation2 + $0x1c8] sm:$0xff] }
 0x177   :  { %21580 = vmatmul.mubr.msk.bf16.gmra.mrb[148].mxu1 %vm27_vm3, %v25245_v55  ;;  %21924 = vmatmul.mubr.msk.bf16.gmra.mrb[84].mxu0 %vm27_vm3, %v24983_v0  ;;  %v25271_v0 = vld [vmem:[#allocation2 + $0x1e0] sm:$0xff] }
 0x178   :  { %21927 = vmatprep.mubr.msk.bf16.mxu0 %vm27_vm3, %v24991_v4  ;;  %21583 = vmatprep.mubr.msk.bf16.mxu1 %vm27_vm3, %v25247_v2  ;;  %v23830_v4 = vld [vmem:[%s28756_s3 + $0x98] sm:$0xff]  }
 0x179   :  { %22037 = vmatprep.subr.bf16.mxu0 %v23830_v4 }
 0x17a   :  { %22038 = vmatpush3.bf16.msra.mxu0 %v23830_v4 }
 0x17f   :  { %21584 = vmatmul.mubr.msk.bf16.gmra.mrb[152].mxu1 %vm27_vm3, %v25257_v51  ;;  %21928 = vmatmul.mubr.msk.bf16.gmra.mrb[88].mxu0 %vm27_vm3, %v25007_v38  ;;  %v25284_v38 = vld [vmem:[#allocation2 + $0x1e8] sm:$0xff] }
 0x180   :  { %21931 = vmatprep.mubr.msk.bf16.mxu0 %vm27_vm3, %v25015_v42  ;;  %21587 = vmatprep.mubr.msk.bf16.mxu1 %vm27_vm3, %v25259_v29  ;;  %v25286_v42 = vld [vmem:[#allocation2 + $0x1f0] sm:$0xff] }
 0x187   :  { %21588 = vmatmul.mubr.msk.bf16.gmra.mrb[156].mxu1 %vm27_vm3, %v25269_v34  ;;  %21932 = vmatmul.mubr.msk.bf16.gmra.mrb[92].mxu0 %vm27_vm3, %v25033_v11  ;;  %v25298_v11 = vld [vmem:[#allocation2 + $0x200] sm:$0xff] }
 0x188   :  { %21591 = vmatprep.mubr.msk.bf16.mxu1 %vm27_vm3, %v25271_v0  ;;  %21935 = vmatprep.mubr.msk.bf16.mxu0 %vm27_vm3, %v25031_v7  ;;  %v25296_v7 = vld [vmem:[#allocation2 + $0x1f8] sm:$0xff] }
 0x18f   :  { %21592 = vmatmul.mubr.msk.bf16.gmra.mrb[160].mxu1 %vm27_vm3, %v25284_v38  ;;  %21936 = vmatmul.mubr.msk.bf16.gmra.mrb[96].mxu0 %vm27_vm3, %v25054_v53  ;;  %v21473_v53 = vpop.f32.mrb[48].mxu1 }
 0x190   :  { %21939 = vmatprep.mubr.msk.bf16.mxu0 %vm27_vm3, %v25061_v59  ;;  %21595 = vmatprep.mubr.msk.bf16.mxu1 %vm27_vm3, %v25286_v42  ;;  %v1697_v59 = vadd.f32 %v25168_v14, %v21473_v53  ;;  %v1688_v5 = vpop.f32.mrb[49].mxu1 }
 0x191   :  { %v1689_v6 = vadd.f32 %v25168_v14, %v1688_v5  ;;  %v21474_v28 = vpop.f32.mrb[50].mxu1 }
 0x192   :  { %v1753_v8 = vmax.f32 %v1697_v59, 0.0  ;;  %v1700_v10 = vadd.f32 %v25168_v14, %v21474_v28  ;;  %v1691_v12 = vpop.f32.mrb[51].mxu1  ;;  %v25348_v59 = vld [vmem:[#allocation2 + $0x238] sm:$0xff] }
 0x193   :  { %v1692_v16 = vadd.f32 %v25168_v14, %v1691_v12  ;;  %v21477_v22 = vpop.f32.mrb[52].mxu1 }
 0x194   :  { %v1754_v31 = vmax.f32 %v1700_v10, 0.0  ;;  %v1713_v23 = vadd.f32 %v25168_v14, %v21477_v22  ;;  %v1704_v24 = vpop.f32.mrb[53].mxu1 }
 0x195   :  { %v1752_v18 = vmax.f32 %v1692_v16, 0.0  ;;  %v1705_v27 = vadd.f32 %v25168_v14, %v1704_v24  ;;  %v21478_v30 = vpop.f32.mrb[54].mxu1 }
 0x196   :  { %v1768_v25 = vpack.c.bf16 %v1754_v31, %v1753_v8  ;;  %v1716_v35 = vadd.f32 %v25168_v14, %v21478_v30  ;;  %v1707_v37 = vpop.f32.mrb[55].mxu1 }
 0x197   :  { %21596 = vmatmul.mubr.msk.bf16.gmra.mrb[164].mxu1 %vm27_vm3, %v25296_v7  ;;  %21940 = vmatmul.mubr.msk.bf16.gmra.mrb[100].mxu0 %vm27_vm3, %v25077_v33  ;;  %v1751_v33 = vmax.f32 %v1689_v6, 0.0  ;;  %v1755_v40 = vmax.f32 %v1705_v27, 0.0  ;;  %v1708_v41 = vadd.f32 %v25168_v14, %v1707_v37  ;;  %v21481_v50 = vpop.f32.mrb[56].mxu1  ;;  %v25354_v6 = vld [vmem:[#allocation2 + $0x240] sm:$0xff]  ;;  %v25372_v27 = vld [vmem:[#allocation2 + $0x250] sm:$0xff]  ;;  %v2748_v37 = vld [vmem:[#allocation2 + $0x18] sm:$0xff] }
 0x198   :  { %21943 = vmatprep.mubr.msk.bf16.mxu0 %vm27_vm3, %v25085_v39  ;;  %21599 = vmatprep.mubr.msk.bf16.mxu1 %vm27_vm3, %v25298_v11  ;;  %v25314_v39 = vld [vmem:[#allocation2 + $0x210] sm:$0xff]  ;;  %1777 = vst.msk [vmem:[#allocation2 + $0x290] sm:$0xff] %vm27_vm3, %v1768_v25  ;;  %v1758_v45 = vmax.f32 %v1716_v35, 0.0  ;;  %v1729_v52 = vadd.f32 %v25168_v14, %v21481_v50  ;;  %v1720_v54 = vpop.f32.mrb[57].mxu1  ;;  %v25392_v35 = vld [vmem:[#allocation2 + $0x268] sm:$0xff]  ;;  %v25444_v50 = vld [vmem:[#allocation2 + $0x60] sm:$0xff] }
 0x199   :  { %v1767_v19 = vpack.c.bf16 %v1752_v18, %v1751_v33  ;;  %v1756_v46 = vmax.f32 %v1708_v41, 0.0  ;;  %v1721_v56 = vadd.f32 %v25168_v14, %v1720_v54  ;;  %v21482_v57 = vpop.f32.mrb[58].mxu1  ;;  %v24363_v41 = vld [vmem:[%s28756_s3 + $0x50] sm:$0xff]  }
 0x19a   :  { %v1732_v61 = vadd.f32 %v25168_v14, %v21482_v57  ;;  %v1723_v63 = vpop.f32.mrb[59].mxu1  ;;  %v25456_v54 = vld [vmem:[#allocation2 + $0x70] sm:$0xff]  ;;  %v25474_v57 = vld [vmem:[#allocation2 + $0x88] sm:$0xff] }
 0x19b   :  { %1776 = vst.msk [vmem:[#allocation2 + $0x288] sm:$0xff] %vm27_vm3, %v1767_v19  ;;  %v1769_v49 = vpack.c.bf16 %v1756_v46, %v1755_v40  ;;  %v1759_v4 = vmax.f32 %v1721_v56, 0.0  ;;  %v1724_v53 = vadd.f32 %v25168_v14, %v1723_v63  ;;  %v21485_v10 = vpop.f32.mrb[60].mxu1  ;;  %v2750_v40 = vld [vmem:[#allocation2 + $0x28] sm:$0xff]  ;;  %v2752_v46 = vld [vmem:[#allocation2 + $0x38] sm:$0xff]  ;;  %v25468_v56 = vld [vmem:[#allocation2 + $0x80] sm:$0xff] }
 0x19c   :  { %v1745_v12 = vadd.f32 %v25168_v14, %v21485_v10  ;;  %v1736_v33 = vpop.f32.mrb[61].mxu1  ;;  %v25492_v63 = vld [vmem:[#allocation2 + $0xb0] sm:$0xff]  ;;  %v25534_v10 = vld [vmem:[#allocation2 + $0xf8] sm:$0xff] }
 0x19d   :  { %1778 = vst.msk [vmem:[#allocation2 + $0x298] sm:$0xff] %vm27_vm3, %v1769_v49  ;;  %v1760_v5 = vmax.f32 %v1724_v53, 0.0  ;;  %v21486_v16 = vpop.f32.mrb[62].mxu1  ;;  %v25438_v49 = vld [vmem:[#allocation2 + $0x58] sm:$0xff]  ;;  %v25504_v53 = vld [vmem:[#allocation2 + $0xc0] sm:$0xff] }
 0x19e   :  { %v1765_v31 = vmax.f32 %v1745_v12, 0.0  ;;  %v1748_v18 = vadd.f32 %v25168_v14, %v21486_v16  ;;  %v1739_v25 = vpop.f32.mrb[63].mxu1  ;;  %v25539_v12 = vld [vmem:[#allocation2 + $0x100] sm:$0xff] }
 0x19f   :  { %21600 = vmatmul.mubr.msk.bf16.gmra.mrb[168].mxu1 %vm27_vm3, %v25311_v15  ;;  %21944 = vmatmul.mubr.msk.bf16.gmra.mrb[104].mxu0 %vm27_vm3, %v25104_v13  ;;  %v1757_v13 = vmax.f32 %v1713_v23, 0.0  ;;  %v1771_v8 = vpack.c.bf16 %v1760_v5, %v1759_v4  ;;  %v1740_v22 = vadd.f32 %v25168_v14, %v1739_v25  ;;  %v25366_v23 = vld [vmem:[#allocation2 + $0x248] sm:$0xff]  ;;  %v25498_v4 = vld [vmem:[#allocation2 + $0xb8] sm:$0xff]  ;;  %v25549_v16 = vld [vmem:[#allocation2 + $0x290] sm:$0xff] }
 0x1a0   :  { %21947 = vmatprep.mubr.msk.bf16.mxu0 %vm27_vm3, %v25112_v17  ;;  %21603 = vmatprep.mubr.msk.bf16.mxu1 %vm27_vm3, %v25314_v39  ;;  %v25329_v17 = vld [vmem:[#allocation2 + $0x218] sm:$0xff] }
 0x1a1   :  { %v1770_v48 = vpack.c.bf16 %v1758_v45, %v1757_v13  ;;  %1780 = vst.msk [vmem:[#allocation2 + $0x2a8] sm:$0xff] %vm27_vm3, %v1771_v8  ;;  %v1764_v24 = vmax.f32 %v1740_v22, 0.0  ;;  %v25380_v13 = vld [vmem:[#allocation2 + $0x258] sm:$0xff]  ;;  %v2751_v45 = vld [vmem:[#allocation2 + $0x30] sm:$0xff]  ;;  %v25528_v8 = vld [vmem:[#allocation2 + $0xe0] sm:$0xff] }
 0x1a2   :  { %v25522_v5 = vld [vmem:[#allocation2 + $0xd8] sm:$0xff]  ;;  %v25571_v22 = vld [vmem:[#allocation2 + $0x120] sm:$0xff] }
 0x1a3   :  { %1779 = vst.msk [vmem:[#allocation2 + $0x2a0] sm:$0xff] %vm27_vm3, %v1770_v48  ;;  %v2753_v48 = vld [vmem:[#allocation2 + $0x40] sm:$0xff]  ;;  %v25563_v25 = vld [vmem:[#allocation2 + $0x118] sm:$0xff] }
 0x1a7   :  { %21604 = vmatmul.mubr.msk.bf16.gmra.mrb[172].mxu1 %vm27_vm3, %v25329_v17  ;;  %21948 = vmatmul.mubr.msk.bf16.gmra.mrb[108].mxu0 %vm27_vm3, %v25132_v47  ;;  %v1761_v47 = vmax.f32 %v1729_v52, 0.0  ;;  %v25450_v52 = vld [vmem:[#allocation2 + $0x68] sm:$0xff] }
 0x1a8   :  { %21607 = vmatprep.mubr.msk.bf16.mxu1 %vm27_vm3, %v25332_v44  ;;  %21951 = vmatprep.mubr.msk.bf16.mxu0 %vm27_vm3, %v25127_v43  ;;  %v1762_v43 = vmax.f32 %v1732_v61, 0.0  ;;  %v25486_v61 = vld [vmem:[#allocation2 + $0xa8] sm:$0xff] }
 0x1aa   :  { %v1772_v28 = vpack.c.bf16 %v1762_v43, %v1761_v47  ;;  %v25480_v47 = vld [vmem:[#allocation2 + $0x90] sm:$0xff] }
 0x1ab   :  { %v25516_v43 = vld [vmem:[#allocation2 + $0xd0] sm:$0xff] }
 0x1ac   :  { %1781 = vst.msk [vmem:[#allocation2 + $0x2b0] sm:$0xff] %vm27_vm3, %v1772_v28  ;;  %v5239_v28 = vld [vmem:[#allocation2 + $0x280] sm:$0xff] }
 0x1af   :  { %21608 = vmatmul.mubr.msk.bf16.gmra.mrb[176].mxu1 %vm27_vm3, %v25348_v59  ;;  %21952 = vmatmul.mubr.msk.bf16.gmra.mrb[112].mxu0 %vm27_vm3, %v25151_v3  ;;  %v1737_v3 = vadd.f32 %v25168_v14, %v1736_v33  ;;  %v25541_v33 = vld [vmem:[#allocation2 + $0x288] sm:$0xff] }
 0x1b0   :  { %21611 = vmatprep.mubr.msk.bf16.mxu1 %vm27_vm3, %v25354_v6  ;;  %21955 = vmatprep.mubr.msk.bf16.mxu0 %vm27_vm3, %v25156_v9  ;;  %v1766_v9 = vmax.f32 %v1748_v18, 0.0  ;;  %v25557_v18 = vld [vmem:[#allocation2 + $0x298] sm:$0xff] }
 0x1b1   :  { %v1763_v19 = vmax.f32 %v1737_v3, 0.0  ;;  %v25547_v3 = vld [vmem:[#allocation2 + $0x108] sm:$0xff] }
 0x1b2   :  { %v1774_v30 = vpack.c.bf16 %v1766_v9, %v1765_v31  ;;  %v25555_v31 = vld [vmem:[#allocation2 + $0x110] sm:$0xff]  ;;  %v25573_v9 = vld [vmem:[#allocation2 + $0x2a8] sm:$0xff] }
 0x1b3   :  { %v1773_v14 = vpack.c.bf16 %v1764_v24, %v1763_v19  ;;  %v25565_v19 = vld [vmem:[#allocation2 + $0x2a0] sm:$0xff]  ;;  %v25579_v24 = vld [vmem:[#allocation2 + $0x128] sm:$0xff] }
 0x1b4   :  { %1783 = vst.msk [vmem:[#allocation2 + $0x2c0] sm:$0xff] %vm27_vm3, %v1774_v30  ;;  %v25581_v30 = vld [vmem:[#allocation2 + $0x2b0] sm:$0xff] }
 0x1b5   :  { %1782 = vst.msk [vmem:[#allocation2 + $0x2b8] sm:$0xff] %vm27_vm3, %v1773_v14  ;;  %v25587_v14 = vld [vmem:[#allocation2 + $0x130] sm:$0xff] }
 0x1b7   :  { %21612 = vmatmul.mubr.msk.bf16.gmra.mrb[180].mxu1 %vm27_vm3, %v25366_v23  ;;  %21956 = vmatmul.mubr.msk.bf16.gmra.mrb[116].mxu0 %vm27_vm3, %v25189_v32  ;;  %v25386_v32 = vld [vmem:[#allocation2 + $0x260] sm:$0xff] }
 0x1b8   :  { %21615 = vmatprep.mubr.msk.bf16.mxu1 %vm27_vm3, %v25372_v27  ;;  %21959 = vmatprep.mubr.msk.bf16.mxu0 %vm27_vm3, %v25191_v36  ;;  %v2746_v36 = vld [vmem:[#allocation2 + $0x8] sm:$0xff] }
 0x1bf   :  { %21616 = vmatmul.mubr.msk.bf16.gmra.mrb[184].mxu1 %vm27_vm3, %v25380_v13  ;;  %21960 = vmatmul.mubr.msk.bf16.gmra.mrb[120].mxu0 %vm27_vm3, %v25207_v58  ;;  %v25404_v58 = vld [vmem:[%s28756_s3 + $0xa0] sm:$0xff]  }
 0x1c0   :  { %21619 = vmatprep.mubr.msk.bf16.mxu1 %vm27_vm3, %v25386_v32  ;;  %21963 = vmatprep.mubr.msk.bf16.mxu0 %vm27_vm3, %v25209_v62  ;;  %v2747_v62 = vld [vmem:[#allocation2 + $0x10] sm:$0xff] }
 0x1c1   :  { %22167 = vmatprep.subr.bf16.mxu0 %v25404_v58 }
 0x1c7   :  { %21620 = vmatmul.mubr.msk.bf16.gmra.mrb[188].mxu1 %vm27_vm3, %v25392_v35  ;;  %21964 = vmatmul.mubr.msk.bf16.gmra.mrb[124].mxu0 %vm27_vm3, %v25221_v60  ;;  %v24362_v60 = vld [vmem:[%s28756_s3 + $0x48] sm:$0xff]  }
 0x1c8   :  { %21631 = vmatprep.mubr.msk.bf16.mxu1 %vm27_vm3, %v2746_v36  ;;  %21967 = vmatprep.mubr.msk.bf16.mxu0 %vm27_vm3, %v25223_v1  ;;  %v2749_v1 = vld [vmem:[#allocation2 + $0x20] sm:$0xff]  ;;  %v25589_v36 = vld [vmem:[#allocation2 + $0x2b8] sm:$0xff] }
 0x1cf   :  { %21632 = vmatmul.mubr.msk.bf16.vlgmr.msra.gmra.mrb[64].mxu1 %vm27_vm3, %v2747_v62  ;;  %21968 = vmatmul.mubr.msk.bf16.gmra.mrb[128].mxu0 %vm27_vm3, %v25233_v20  ;;  %v25595_v62 = vld [vmem:[#allocation2 + $0x148] sm:$0xff] }
 0x1d0   :  { %21971 = vmatprep.mubr.msk.bf16.mxu0 %vm27_vm3, %v25235_v26  ;;  %21635 = vmatprep.mubr.msk.bf16.mxu1 %vm27_vm3, %v2748_v37  ;;  %v23832_v37 = vld [vmem:[%s28756_s3 + $0xa8] sm:$0xff]  }
 0x1d1   :  { %22715 = vmatpush3.bf16.msra.mxu1 %v25186_v21  ;;  %v24364_v21 = vld [vmem:[%s28756_s3 + $0x58] sm:$0xff]  }
 0x1d2   :  { %22712 = vmatprep.subr.bf16.mxu1 %v24362_v60 }
 0x1d5   :  { %22716 = vmatpush3.bf16.msra.mxu1 %v24362_v60  ;;  %v25604_v60 = vld [vmem:[#allocation2 + $0x150] sm:$0xff] }
 0x1d6   :  { %22713 = vmatprep.subr.bf16.mxu1 %v24363_v41 }
 0x1d7   :  { %21636 = vmatmul.mubr.msk.bf16.gmra.mrb[68].mxu1 %vm27_vm3, %v2749_v1  ;;  %21972 = vmatmul.mubr.msk.bf16.gmra.mrb[132].mxu0 %vm27_vm3, %v25245_v55  ;;  %v25610_v1 = vld [vmem:[#allocation2 + $0x158] sm:$0xff] }
 0x1d8   :  { %21975 = vmatprep.mubr.msk.bf16.mxu0 %vm27_vm3, %v25247_v2  ;;  %21639 = vmatprep.mubr.msk.bf16.mxu1 %vm27_vm3, %v2750_v40  ;;  %v23833_v40 = vld [vmem:[%s28756_s3 + $0xb0] sm:$0xff]  }
 0x1d9   :  { %22717 = vmatpush3.bf16.msra.mxu1 %v24363_v41  ;;  %v25620_v41 = vld [vmem:[#allocation2 + $0x160] sm:$0xff] }
 0x1da   :  { %22714 = vmatprep.subr.bf16.mxu1 %v24364_v21 }
 0x1dd   :  { %22718 = vmatpush3.bf16.msra.mxu1 %v24364_v21  ;;  %v25632_v21 = vld [vmem:[#allocation2 + $0x170] sm:$0xff] }
 0x1df   :  { %21640 = vmatmul.mubr.msk.bf16.gmra.mrb[72].mxu1 %vm27_vm3, %v2751_v45  ;;  %21976 = vmatmul.mubr.msk.bf16.gmra.mrb[136].mxu0 %vm27_vm3, %v25257_v51  ;;  %v25638_v45 = vld [vmem:[#allocation2 + $0x178] sm:$0xff] }
 0x1e0   :  { %21979 = vmatprep.mubr.msk.bf16.mxu0 %vm27_vm3, %v25259_v29  ;;  %21643 = vmatprep.mubr.msk.bf16.mxu1 %vm27_vm3, %v2752_v46  ;;  %v25644_v46 = vld [vmem:[#allocation2 + $0x180] sm:$0xff] }
 0x1e7   :  { %21644 = vmatmul.mubr.msk.bf16.gmra.mrb[76].mxu1 %vm27_vm3, %v2753_v48  ;;  %21980 = vmatmul.mubr.msk.bf16.gmra.mrb[140].mxu0 %vm27_vm3, %v25269_v34 }
 0x1e8   :  { %21647 = vmatprep.mubr.msk.bf16.mxu1 %vm27_vm3, %v25438_v49  ;;  %21983 = vmatprep.mubr.msk.bf16.mxu0 %vm27_vm3, %v25271_v0  ;;  %v25462_v0 = vld [vmem:[#allocation2 + $0x78] sm:$0xff] }
 0x1ef   :  { %21648 = vmatmul.mubr.msk.bf16.gmra.mrb[80].mxu1 %vm27_vm3, %v25444_v50  ;;  %21984 = vmatmul.mubr.msk.bf16.gmra.mrb[144].mxu0 %vm27_vm3, %v25284_v38 }
 0x1f0   :  { %21651 = vmatprep.mubr.msk.bf16.mxu1 %vm27_vm3, %v25450_v52  ;;  %21987 = vmatprep.mubr.msk.bf16.mxu0 %vm27_vm3, %v25286_v42 }
 0x1f7   :  { %21652 = vmatmul.mubr.msk.bf16.gmra.mrb[84].mxu1 %vm27_vm3, %v25456_v54  ;;  %21988 = vmatmul.mubr.msk.bf16.gmra.mrb[148].mxu0 %vm27_vm3, %v25296_v7 }
 0x1f8   :  { %21655 = vmatprep.mubr.msk.bf16.mxu1 %vm27_vm3, %v25462_v0  ;;  %21991 = vmatprep.mubr.msk.bf16.mxu0 %vm27_vm3, %v25298_v11 }
 0x1ff   :  { %21656 = vmatmul.mubr.msk.bf16.gmra.mrb[88].mxu1 %vm27_vm3, %v25468_v56  ;;  %21992 = vmatmul.mubr.msk.bf16.gmra.mrb[152].mxu0 %vm27_vm3, %v25311_v15 }
 0x200   :  { %21659 = vmatprep.mubr.msk.bf16.mxu1 %vm27_vm3, %v25474_v57  ;;  %21995 = vmatprep.mubr.msk.bf16.mxu0 %vm27_vm3, %v25314_v39 }
 0x207   :  { %21660 = vmatmul.mubr.msk.bf16.gmra.mrb[92].mxu1 %vm27_vm3, %v25480_v47  ;;  %21996 = vmatmul.mubr.msk.bf16.gmra.mrb[156].mxu0 %vm27_vm3, %v25329_v17 }
 0x208   :  { %21663 = vmatprep.mubr.msk.bf16.mxu1 %vm27_vm3, %v25486_v61  ;;  %21999 = vmatprep.mubr.msk.bf16.mxu0 %vm27_vm3, %v25332_v44  ;;  %v25510_v44 = vld [vmem:[#allocation2 + $0xc8] sm:$0xff] }
 0x20f   :  { %21664 = vmatmul.mubr.msk.bf16.gmra.mrb[96].mxu1 %vm27_vm3, %v25492_v63  ;;  %22000 = vmatmul.mubr.msk.bf16.gmra.mrb[160].mxu0 %vm27_vm3, %v25348_v59 }
 0x210   :  { %21667 = vmatprep.mubr.msk.bf16.mxu1 %vm27_vm3, %v25498_v4  ;;  %22003 = vmatprep.mubr.msk.bf16.mxu0 %vm27_vm3, %v25354_v6 }
 0x217   :  { %21668 = vmatmul.mubr.msk.bf16.gmra.mrb[100].mxu1 %vm27_vm3, %v25504_v53  ;;  %22004 = vmatmul.mubr.msk.bf16.gmra.mrb[164].mxu0 %vm27_vm3, %v25366_v23 }
 0x218   :  { %21671 = vmatprep.mubr.msk.bf16.mxu1 %vm27_vm3, %v25510_v44  ;;  %22007 = vmatprep.mubr.msk.bf16.mxu0 %vm27_vm3, %v25372_v27 }
 0x21f   :  { %21672 = vmatmul.mubr.msk.bf16.gmra.mrb[104].mxu1 %vm27_vm3, %v25516_v43  ;;  %22008 = vmatmul.mubr.msk.bf16.gmra.mrb[168].mxu0 %vm27_vm3, %v25380_v13 }
 0x220   :  { %21675 = vmatprep.mubr.msk.bf16.mxu1 %vm27_vm3, %v25522_v5  ;;  %22011 = vmatprep.mubr.msk.bf16.mxu0 %vm27_vm3, %v25386_v32 }
 0x227   :  { %21676 = vmatmul.mubr.msk.bf16.gmra.mrb[108].mxu1 %vm27_vm3, %v25528_v8  ;;  %22012 = vmatmul.mubr.msk.bf16.gmra.mrb[172].mxu0 %vm27_vm3, %v25392_v35 }
 0x228   :  { %21679 = vmatprep.mubr.msk.bf16.mxu1 %vm27_vm3, %v25534_v10  ;;  %22015 = vmatprep.mubr.msk.bf16.mxu0 %vm27_vm3, %v5239_v28 }
 0x22f   :  { %21680 = vmatmul.mubr.msk.bf16.gmra.mrb[112].mxu1 %vm27_vm3, %v25539_v12  ;;  %22016 = vmatmul.mubr.msk.bf16.gmra.mrb[176].mxu0 %vm27_vm3, %v25541_v33 }
 0x230   :  { %21683 = vmatprep.mubr.msk.bf16.mxu1 %vm27_vm3, %v25547_v3  ;;  %22019 = vmatprep.mubr.msk.bf16.mxu0 %vm27_vm3, %v25549_v16 }
 0x237   :  { %21684 = vmatmul.mubr.msk.bf16.gmra.mrb[116].mxu1 %vm27_vm3, %v25555_v31  ;;  %22020 = vmatmul.mubr.msk.bf16.gmra.mrb[180].mxu0 %vm27_vm3, %v25557_v18 }
 0x238   :  { %21687 = vmatprep.mubr.msk.bf16.mxu1 %vm27_vm3, %v25563_v25  ;;  %22023 = vmatprep.mubr.msk.bf16.mxu0 %vm27_vm3, %v25565_v19 }
 0x23f   :  { %21688 = vmatmul.mubr.msk.bf16.gmra.mrb[120].mxu1 %vm27_vm3, %v25571_v22  ;;  %22024 = vmatmul.mubr.msk.bf16.gmra.mrb[184].mxu0 %vm27_vm3, %v25573_v9 }
 0x240   :  { %21691 = vmatprep.mubr.msk.bf16.mxu1 %vm27_vm3, %v25579_v24  ;;  %22027 = vmatprep.mubr.msk.bf16.mxu0 %vm27_vm3, %v25581_v30 }
 0x247   :  { %21692 = vmatmul.mubr.msk.bf16.gmra.mrb[124].mxu1 %vm27_vm3, %v25587_v14  ;;  %22028 = vmatmul.mubr.msk.bf16.gmra.mrb[188].mxu0 %vm27_vm3, %v25589_v36 }
 0x248   :  { %21695 = vmatprep.mubr.msk.bf16.mxu1 %vm27_vm3, %v25595_v62  ;;  %22039 = vmatprep.mubr.msk.bf16.mxu0 %vm27_vm3, %v25438_v49 }
 0x24f   :  { %21696 = vmatmul.mubr.msk.bf16.gmra.mrb[128].mxu1 %vm27_vm3, %v25604_v60  ;;  %22040 = vmatmul.mubr.msk.bf16.vlgmr.msra.gmra.mrb[64].mxu0 %vm27_vm3, %v25444_v50 }
 0x250   :  { %22168 = vmatpush3.bf16.msra.mxu0 %v25404_v58  ;;  %21699 = vmatprep.mubr.msk.bf16.mxu1 %vm27_vm3, %v25610_v1  ;;  %v25626_v58 = vld [vmem:[#allocation2 + $0x168] sm:$0xff] }
 0x251   :  { %22043 = vmatprep.mubr.msk.bf16.mxu0 %vm27_vm3, %v25450_v52  ;;  %22169 = vmatprep.subr.bf16.mxu0 %v23832_v37 }
 0x254   :  { %22170 = vmatpush3.bf16.msra.mxu0 %v23832_v37 }
 0x255   :  { %22171 = vmatprep.subr.bf16.mxu0 %v23833_v40 }
 0x257   :  { %21700 = vmatmul.mubr.msk.bf16.gmra.mrb[132].mxu1 %vm27_vm3, %v25620_v41  ;;  %22044 = vmatmul.mubr.msk.bf16.gmra.mrb[68].mxu0 %vm27_vm3, %v25456_v54 }
 0x258   :  { %21703 = vmatprep.mubr.msk.bf16.mxu1 %vm27_vm3, %v25626_v58  ;;  %22047 = vmatprep.mubr.msk.bf16.mxu0 %vm27_vm3, %v25462_v0 }
 0x259   :  { %22172 = vmatpush3.bf16.msra.mxu0 %v23833_v40 }
 0x25f   :  { %21704 = vmatmul.mubr.msk.bf16.gmra.mrb[136].mxu1 %vm27_vm3, %v25632_v21  ;;  %22048 = vmatmul.mubr.msk.bf16.gmra.mrb[72].mxu0 %vm27_vm3, %v25468_v56 }
 0x260   :  { %21707 = vmatprep.mubr.msk.bf16.mxu1 %vm27_vm3, %v25638_v45  ;;  %22051 = vmatprep.mubr.msk.bf16.mxu0 %vm27_vm3, %v25474_v57 }
 0x267   :  { %21708 = vmatmul.mubr.msk.bf16.gmra.mrb[140].mxu1 %vm27_vm3, %v25644_v46  ;;  %22052 = vmatmul.mubr.msk.bf16.gmra.mrb[76].mxu0 %vm27_vm3, %v25480_v47 }
 0x268   :  { %21711 = vmatprep.mubr.msk.bf16.mxu1 %vm27_vm3, %v25233_v20  ;;  %22055 = vmatprep.mubr.msk.bf16.mxu0 %vm27_vm3, %v25486_v61  ;;  %v25678_v20 = vld [vmem:[#allocation2 + $0x1d0] sm:$0xff] }
 0x26f   :  { %21712 = vmatmul.mubr.msk.bf16.gmra.mrb[144].mxu1 %vm27_vm3, %v25235_v26  ;;  %22056 = vmatmul.mubr.msk.bf16.gmra.mrb[80].mxu0 %vm27_vm3, %v25492_v63  ;;  %v23834_v26 = vld [vmem:[%s28756_s3 + $0xb8] sm:$0xff]  }
 0x270   :  { %21715 = vmatprep.mubr.msk.bf16.mxu1 %vm27_vm3, %v25245_v55  ;;  %22059 = vmatprep.mubr.msk.bf16.mxu0 %vm27_vm3, %v25498_v4 }
 0x271   :  { %22173 = vmatprep.subr.bf16.mxu0 %v23834_v26 }
 0x272   :  { %22174 = vmatpush3.bf16.msra.mxu0 %v23834_v26  ;;  %v25813_v26 = vld [vmem:[#allocation2 + $0x138] sm:$0xff] }
 0x277   :  { %21716 = vmatmul.mubr.msk.bf16.gmra.mrb[148].mxu1 %vm27_vm3, %v25247_v2  ;;  %22060 = vmatmul.mubr.msk.bf16.gmra.mrb[84].mxu0 %vm27_vm3, %v25504_v53 }
 0x278   :  { %21719 = vmatprep.mubr.msk.bf16.mxu1 %vm27_vm3, %v25257_v51  ;;  %22063 = vmatprep.mubr.msk.bf16.mxu0 %vm27_vm3, %v25510_v44 }
 0x27f   :  { %21720 = vmatmul.mubr.msk.bf16.gmra.mrb[152].mxu1 %vm27_vm3, %v25259_v29  ;;  %22064 = vmatmul.mubr.msk.bf16.gmra.mrb[88].mxu0 %vm27_vm3, %v25516_v43 }
 0x280   :  { %21723 = vmatprep.mubr.msk.bf16.mxu1 %vm27_vm3, %v25269_v34  ;;  %22067 = vmatprep.mubr.msk.bf16.mxu0 %vm27_vm3, %v25522_v5  ;;  %v25723_v34 = vld [vmem:[#allocation2 + $0x220] sm:$0xff] }
 0x287   :  { %21724 = vmatmul.mubr.msk.bf16.gmra.mrb[156].mxu1 %vm27_vm3, %v25678_v20  ;;  %22068 = vmatmul.mubr.msk.bf16.gmra.mrb[92].mxu0 %vm27_vm3, %v25528_v8 }
 0x288   :  { %21727 = vmatprep.mubr.msk.bf16.mxu1 %vm27_vm3, %v25284_v38  ;;  %22071 = vmatprep.mubr.msk.bf16.mxu0 %vm27_vm3, %v25534_v10  ;;  %v25789_v10 = vld [vmem:[#allocation2 + $0x270] sm:$0xff] }
 0x28f   :  { %21728 = vmatmul.mubr.msk.bf16.gmra.mrb[160].mxu1 %vm27_vm3, %v25286_v42  ;;  %22072 = vmatmul.mubr.msk.bf16.gmra.mrb[96].mxu0 %vm27_vm3, %v25539_v12 }
 0x290   :  { %21731 = vmatprep.mubr.msk.bf16.mxu1 %vm27_vm3, %v25296_v7  ;;  %22075 = vmatprep.mubr.msk.bf16.mxu0 %vm27_vm3, %v25547_v3 }
 0x297   :  { %21732 = vmatmul.mubr.msk.bf16.gmra.mrb[164].mxu1 %vm27_vm3, %v25298_v11  ;;  %22076 = vmatmul.mubr.msk.bf16.gmra.mrb[100].mxu0 %vm27_vm3, %v25555_v31 }
 0x298   :  { %21735 = vmatprep.mubr.msk.bf16.mxu1 %vm27_vm3, %v25311_v15  ;;  %22079 = vmatprep.mubr.msk.bf16.mxu0 %vm27_vm3, %v25563_v25 }
 0x29f   :  { %21736 = vmatmul.mubr.msk.bf16.gmra.mrb[168].mxu1 %vm27_vm3, %v25314_v39  ;;  %22080 = vmatmul.mubr.msk.bf16.gmra.mrb[104].mxu0 %vm27_vm3, %v25571_v22 }
 0x2a0   :  { %21739 = vmatprep.mubr.msk.bf16.mxu1 %vm27_vm3, %v25329_v17  ;;  %22083 = vmatprep.mubr.msk.bf16.mxu0 %vm27_vm3, %v25579_v24 }
 0x2a2   :  { %v25715_v55 = vpop.f32.mrb[64].mxu1 }
 0x2a3   :  { %28763 = vst [vmem:[#allocation5_spill] sm:$0xff] %v25715_v55  ;;  %v25717_v2 = vpop.f32.mrb[65].mxu1  ;;  %v25997_v55 = vld [vmem:[#allocation2 + $0x250] sm:$0xff] }
 0x2a4   :  { %28764 = vst [vmem:[#allocation6_spill] sm:$0xff] %v25717_v2  ;;  %v25719_v51 = vpop.f32.mrb[66].mxu1  ;;  %v25983_v2 = vld [vmem:[#allocation2 + $0x248] sm:$0xff] }
 0x2a5   :  { %28765 = vst [vmem:[#allocation7_spill] sm:$0xff] %v25719_v51  ;;  %v25721_v29 = vpop.f32.mrb[67].mxu1  ;;  %v25977_v51 = vld [vmem:[#allocation2 + $0x240] sm:$0xff] }
 0x2a6   :  { %28766 = vst [vmem:[#allocation8_spill] sm:$0xff] %v25721_v29 }
 0x2a7   :  { %21740 = vmatmul.mubr.msk.bf16.gmra.mrb[172].mxu1 %vm27_vm3, %v25723_v34  ;;  %22084 = vmatmul.mubr.msk.bf16.gmra.mrb[108].mxu0 %vm27_vm3, %v25587_v14 }
 0x2a8   :  { %21743 = vmatprep.mubr.msk.bf16.mxu1 %vm27_vm3, %v25348_v59  ;;  %22087 = vmatprep.mubr.msk.bf16.mxu0 %vm27_vm3, %v25595_v62 }
 0x2aa   :  { %v25733_v38 = vpop.f32.mrb[68].mxu1 }
 0x2ab   :  { %28767 = vst [vmem:[#allocation9_spill] sm:$0xff] %v25733_v38  ;;  %v25735_v42 = vpop.f32.mrb[69].mxu1  ;;  %v25961_v38 = vld [vmem:[#allocation2 + $0x238] sm:$0xff] }
 0x2ac   :  { %28768 = vst [vmem:[#allocation10_spill] sm:$0xff] %v25735_v42  ;;  %v25737_v7 = vpop.f32.mrb[70].mxu1  ;;  %v25943_v42 = vld [vmem:[#allocation2 + $0x218] sm:$0xff]  ;;  %28815 = vst [vmem:[#allocation57_spill] sm:$0xff] %v25961_v38 }
 0x2ad   :  { %28769 = vst [vmem:[#allocation11_spill] sm:$0xff] %v25737_v7  ;;  %v25739_v11 = vpop.f32.mrb[71].mxu1  ;;  %v25937_v7 = vld [vmem:[#allocation2 + $0x210] sm:$0xff] }
 0x2ae   :  { %28770 = vst [vmem:[#allocation12_spill] sm:$0xff] %v25739_v11  ;;  %v25923_v11 = vld [vmem:[#allocation2 + $0x208] sm:$0xff] }
 0x2af   :  { %21744 = vmatmul.mubr.msk.bf16.gmra.mrb[176].mxu1 %vm27_vm3, %v25354_v6  ;;  %22088 = vmatmul.mubr.msk.bf16.gmra.mrb[112].mxu0 %vm27_vm3, %v25604_v60 }
 0x2b0   :  { %21747 = vmatprep.mubr.msk.bf16.mxu1 %vm27_vm3, %v25366_v23  ;;  %22091 = vmatprep.mubr.msk.bf16.mxu0 %vm27_vm3, %v25610_v1 }
 0x2b2   :  { %v25749_v15 = vpop.f32.mrb[72].mxu1 }
 0x2b3   :  { %28771 = vst [vmem:[#allocation13_spill] sm:$0xff] %v25749_v15  ;;  %v25751_v39 = vpop.f32.mrb[73].mxu1  ;;  %v25917_v15 = vld [vmem:[#allocation2 + $0x200] sm:$0xff] }
 0x2b4   :  { %28772 = vst [vmem:[#allocation14_spill] sm:$0xff] %v25751_v39  ;;  %v25753_v17 = vpop.f32.mrb[74].mxu1  ;;  %v25903_v39 = vld [vmem:[#allocation2 + $0x1f8] sm:$0xff] }
 0x2b5   :  { %28773 = vst [vmem:[#allocation15_spill] sm:$0xff] %v25753_v17  ;;  %v25755_v59 = vpop.f32.mrb[75].mxu1  ;;  %v25897_v17 = vld [vmem:[#allocation2 + $0x1f0] sm:$0xff] }
 0x2b6   :  { %28774 = vst [vmem:[#allocation16_spill] sm:$0xff] %v25755_v59 }
 0x2b7   :  { %21748 = vmatmul.mubr.msk.bf16.gmra.mrb[180].mxu1 %vm27_vm3, %v25372_v27  ;;  %22092 = vmatmul.mubr.msk.bf16.gmra.mrb[116].mxu0 %vm27_vm3, %v25620_v41 }
 0x2b8   :  { %21751 = vmatprep.mubr.msk.bf16.mxu1 %vm27_vm3, %v25380_v13  ;;  %22095 = vmatprep.mubr.msk.bf16.mxu0 %vm27_vm3, %v25626_v58 }
 0x2ba   :  { %v25765_v6 = vpop.f32.mrb[76].mxu1 }
 0x2bb   :  { %28775 = vst [vmem:[#allocation17_spill] sm:$0xff] %v25765_v6  ;;  %v25767_v23 = vpop.f32.mrb[77].mxu1  ;;  %v25881_v6 = vld [vmem:[#allocation2 + $0x1e8] sm:$0xff] }
 0x2bc   :  { %28776 = vst [vmem:[#allocation18_spill] sm:$0xff] %v25767_v23  ;;  %v25769_v48 = vpop.f32.mrb[78].mxu1  ;;  %v25863_v23 = vld [vmem:[#allocation2 + $0x1c8] sm:$0xff] }
 0x2bd   :  { %28777 = vst [vmem:[#allocation19_spill] sm:$0xff] %v25769_v48  ;;  %v25771_v49 = vpop.f32.mrb[79].mxu1  ;;  %v25857_v48 = vld [vmem:[#allocation2 + $0x1c0] sm:$0xff] }
 0x2be   :  { %28778 = vst [vmem:[#allocation20_spill] sm:$0xff] %v25771_v49  ;;  %v25843_v49 = vld [vmem:[#allocation2 + $0x1b8] sm:$0xff] }
 0x2bf   :  { %21752 = vmatmul.mubr.msk.bf16.gmra.mrb[184].mxu1 %vm27_vm3, %v25386_v32  ;;  %22096 = vmatmul.mubr.msk.bf16.gmra.mrb[120].mxu0 %vm27_vm3, %v25632_v21  ;;  %v25795_v32 = vld [vmem:[#allocation2 + $0x198] sm:$0xff] }
 0x2c0   :  { %21755 = vmatprep.mubr.msk.bf16.mxu1 %vm27_vm3, %v25392_v35  ;;  %22099 = vmatprep.mubr.msk.bf16.mxu0 %vm27_vm3, %v25638_v45  ;;  %v25804_v35 = vld [vmem:[%s28756_s3 + $0xc0] sm:$0xff]  }
 0x2c1   :  { %22303 = vmatprep.subr.bf16.mxu0 %v25804_v35 }
 0x2c2   :  { %v25781_v27 = vpop.f32.mrb[80].mxu1 }
 0x2c3   :  { %28779 = vst [vmem:[#allocation21_spill] sm:$0xff] %v25781_v27  ;;  %v25783_v13 = vpop.f32.mrb[81].mxu1  ;;  %v25837_v27 = vld [vmem:[#allocation2 + $0x1b0] sm:$0xff] }
 0x2c4   :  { %28780 = vst [vmem:[#allocation22_spill] sm:$0xff] %v25783_v13  ;;  %v25785_v61 = vpop.f32.mrb[82].mxu1  ;;  %v25823_v13 = vld [vmem:[#allocation2 + $0x1a8] sm:$0xff] }
 0x2c5   :  { %28781 = vst [vmem:[#allocation23_spill] sm:$0xff] %v25785_v61  ;;  %v25787_v28 = vpop.f32.mrb[83].mxu1  ;;  %v25817_v61 = vld [vmem:[#allocation2 + $0x1a0] sm:$0xff] }
 0x2c6   :  { %28782 = vst [vmem:[#allocation24_spill] sm:$0xff] %v25787_v28 }
 0x2c7   :  { %21756 = vmatmul.mubr.msk.bf16.gmra.mrb[188].mxu1 %vm27_vm3, %v25789_v10  ;;  %22100 = vmatmul.mubr.msk.bf16.gmra.mrb[124].mxu0 %vm27_vm3, %v25644_v46 }
 0x2c8   :  { %21827 = vmatprep.mubr.msk.bf16.mxu1 %vm27_vm3, %v25587_v14  ;;  %22103 = vmatprep.mubr.msk.bf16.mxu0 %vm27_vm3, %v25795_v32 }
 0x2ca   :  { %v25806_v62 = vpop.f32.mrb[84].mxu1 }
 0x2cb   :  { %28783 = vst [vmem:[#allocation25_spill] sm:$0xff] %v25806_v62  ;;  %v25809_v37 = vpop.f32.mrb[85].mxu1 }
 0x2cc   :  { %28784 = vst [vmem:[#allocation26_spill] sm:$0xff] %v25809_v37  ;;  %v25811_v40 = vpop.f32.mrb[86].mxu1 }
 0x2cd   :  { %28785 = vst [vmem:[#allocation27_spill] sm:$0xff] %v25811_v40  ;;  %v25815_v28 = vpop.f32.mrb[87].mxu1 }
 0x2ce   :  { %28786 = vst [vmem:[#allocation28_spill] sm:$0xff] %v25815_v28 }
 0x2cf   :  { %21828 = vmatmul.mubr.msk.bf16.vlgmr.msra.gmra.mrb[124].mxu1 %vm27_vm3, %v25813_v26  ;;  %22104 = vmatmul.mubr.msk.bf16.gmra.mrb[128].mxu0 %vm27_vm3, %v25817_v61 }
 0x2d0   :  { %21831 = vmatprep.mubr.msk.bf16.mxu1 %vm27_vm3, %v25604_v60  ;;  %22107 = vmatprep.mubr.msk.bf16.mxu0 %vm27_vm3, %v25823_v13 }
 0x2d2   :  { %v25829_v40 = vpop.f32.mrb[88].mxu1 }
 0x2d3   :  { %28787 = vst [vmem:[#allocation29_spill] sm:$0xff] %v25829_v40  ;;  %v25831_v37 = vpop.f32.mrb[89].mxu1 }
 0x2d4   :  { %28788 = vst [vmem:[#allocation30_spill] sm:$0xff] %v25831_v37  ;;  %v25833_v28 = vpop.f32.mrb[90].mxu1 }
 0x2d5   :  { %28789 = vst [vmem:[#allocation31_spill] sm:$0xff] %v25833_v28  ;;  %v25835_v62 = vpop.f32.mrb[91].mxu1 }
 0x2d6   :  { %28790 = vst [vmem:[#allocation32_spill] sm:$0xff] %v25835_v62 }
 0x2d7   :  { %21832 = vmatmul.mubr.msk.bf16.gmra.mrb[128].mxu1 %vm27_vm3, %v25610_v1  ;;  %22108 = vmatmul.mubr.msk.bf16.gmra.mrb[132].mxu0 %vm27_vm3, %v25837_v27 }
 0x2d8   :  { %21835 = vmatprep.mubr.msk.bf16.mxu1 %vm27_vm3, %v25620_v41  ;;  %22111 = vmatprep.mubr.msk.bf16.mxu0 %vm27_vm3, %v25843_v49 }
 0x2da   :  { %v25849_v37 = vpop.f32.mrb[92].mxu1 }
 0x2db   :  { %28791 = vst [vmem:[#allocation33_spill] sm:$0xff] %v25849_v37  ;;  %v25851_v28 = vpop.f32.mrb[93].mxu1 }
 0x2dc   :  { %28792 = vst [vmem:[#allocation34_spill] sm:$0xff] %v25851_v28  ;;  %v25853_v62 = vpop.f32.mrb[94].mxu1 }
 0x2dd   :  { %28793 = vst [vmem:[#allocation35_spill] sm:$0xff] %v25853_v62  ;;  %v25855_v40 = vpop.f32.mrb[95].mxu1 }
 0x2de   :  { %28794 = vst [vmem:[#allocation36_spill] sm:$0xff] %v25855_v40 }
 0x2df   :  { %21836 = vmatmul.mubr.msk.bf16.gmra.mrb[132].mxu1 %vm27_vm3, %v25626_v58  ;;  %22112 = vmatmul.mubr.msk.bf16.gmra.mrb[136].mxu0 %vm27_vm3, %v25857_v48 }
 0x2e0   :  { %21839 = vmatprep.mubr.msk.bf16.mxu1 %vm27_vm3, %v25632_v21  ;;  %22115 = vmatprep.mubr.msk.bf16.mxu0 %vm27_vm3, %v25863_v23 }
 0x2e2   :  { %v25869_v28 = vpop.f32.mrb[96].mxu1 }
 0x2e3   :  { %28795 = vst [vmem:[#allocation37_spill] sm:$0xff] %v25869_v28  ;;  %v25871_v62 = vpop.f32.mrb[97].mxu1 }
 0x2e4   :  { %28796 = vst [vmem:[#allocation38_spill] sm:$0xff] %v25871_v62  ;;  %v25873_v40 = vpop.f32.mrb[98].mxu1 }
 0x2e5   :  { %28797 = vst [vmem:[#allocation39_spill] sm:$0xff] %v25873_v40  ;;  %v25875_v37 = vpop.f32.mrb[99].mxu1 }
 0x2e6   :  { %28798 = vst [vmem:[#allocation40_spill] sm:$0xff] %v25875_v37  ;;  %v25893_v37 = vld [vmem:[#allocation2 + $0x188] sm:$0xff] }
 0x2e7   :  { %21840 = vmatmul.mubr.msk.bf16.gmra.mrb[136].mxu1 %vm27_vm3, %v25638_v45  ;;  %22116 = vmatmul.mubr.msk.bf16.gmra.mrb[140].mxu0 %vm27_vm3, %v25678_v20 }
 0x2e8   :  { %21843 = vmatprep.mubr.msk.bf16.mxu1 %vm27_vm3, %v25644_v46  ;;  %22119 = vmatprep.mubr.msk.bf16.mxu0 %vm27_vm3, %v25881_v6 }
 0x2ea   :  { %v25887_v28 = vpop.f32.mrb[100].mxu1 }
 0x2eb   :  { %28799 = vst [vmem:[#allocation41_spill] sm:$0xff] %v25887_v28  ;;  %v25889_v62 = vpop.f32.mrb[101].mxu1 }
 0x2ec   :  { %28800 = vst [vmem:[#allocation42_spill] sm:$0xff] %v25889_v62  ;;  %v25891_v40 = vpop.f32.mrb[102].mxu1 }
 0x2ed   :  { %28801 = vst [vmem:[#allocation43_spill] sm:$0xff] %v25891_v40  ;;  %v25895_v59 = vpop.f32.mrb[103].mxu1 }
 0x2ee   :  { %28802 = vst [vmem:[#allocation44_spill] sm:$0xff] %v25895_v59 }
 0x2ef   :  { %21844 = vmatmul.mubr.msk.bf16.gmra.mrb[140].mxu1 %vm27_vm3, %v25893_v37  ;;  %22120 = vmatmul.mubr.msk.bf16.gmra.mrb[144].mxu0 %vm27_vm3, %v25897_v17 }
 0x2f0   :  { %21847 = vmatprep.mubr.msk.bf16.mxu1 %vm27_vm3, %v25817_v61  ;;  %22123 = vmatprep.mubr.msk.bf16.mxu0 %vm27_vm3, %v25903_v39 }
 0x2f2   :  { %v25909_v40 = vpop.f32.mrb[104].mxu1 }
 0x2f3   :  { %28803 = vst [vmem:[#allocation45_spill] sm:$0xff] %v25909_v40  ;;  %v25911_v62 = vpop.f32.mrb[105].mxu1 }
 0x2f4   :  { %28804 = vst [vmem:[#allocation46_spill] sm:$0xff] %v25911_v62  ;;  %v25913_v59 = vpop.f32.mrb[106].mxu1 }
 0x2f5   :  { %28805 = vst [vmem:[#allocation47_spill] sm:$0xff] %v25913_v59  ;;  %v25915_v28 = vpop.f32.mrb[107].mxu1 }
 0x2f6   :  { %28806 = vst [vmem:[#allocation48_spill] sm:$0xff] %v25915_v28 }
 0x2f7   :  { %21848 = vmatmul.mubr.msk.bf16.gmra.mrb[144].mxu1 %vm27_vm3, %v25823_v13  ;;  %22124 = vmatmul.mubr.msk.bf16.gmra.mrb[148].mxu0 %vm27_vm3, %v25917_v15 }
 0x2f8   :  { %21851 = vmatprep.mubr.msk.bf16.mxu1 %vm27_vm3, %v25837_v27  ;;  %22127 = vmatprep.mubr.msk.bf16.mxu0 %vm27_vm3, %v25923_v11 }
 0x2fa   :  { %v25929_v62 = vpop.f32.mrb[108].mxu1 }
 0x2fb   :  { %28807 = vst [vmem:[#allocation49_spill] sm:$0xff] %v25929_v62  ;;  %v25931_v59 = vpop.f32.mrb[109].mxu1 }
 0x2fc   :  { %28808 = vst [vmem:[#allocation50_spill] sm:$0xff] %v25931_v59  ;;  %v25933_v28 = vpop.f32.mrb[110].mxu1 }
 0x2fd   :  { %28809 = vst [vmem:[#allocation51_spill] sm:$0xff] %v25933_v28  ;;  %v25935_v40 = vpop.f32.mrb[111].mxu1 }
 0x2fe   :  { %28810 = vst [vmem:[#allocation52_spill] sm:$0xff] %v25935_v40 }
 0x2ff   :  { %21852 = vmatmul.mubr.msk.bf16.gmra.mrb[148].mxu1 %vm27_vm3, %v25843_v49  ;;  %22128 = vmatmul.mubr.msk.bf16.gmra.mrb[152].mxu0 %vm27_vm3, %v25937_v7 }
 0x300   :  { %21855 = vmatprep.mubr.msk.bf16.mxu1 %vm27_vm3, %v25857_v48  ;;  %22131 = vmatprep.mubr.msk.bf16.mxu0 %vm27_vm3, %v25943_v42 }
 0x302   :  { %v25949_v59 = vpop.f32.mrb[112].mxu1 }
 0x303   :  { %28811 = vst [vmem:[#allocation53_spill] sm:$0xff] %v25949_v59  ;;  %v25951_v28 = vpop.f32.mrb[113].mxu1 }
 0x304   :  { %28812 = vst [vmem:[#allocation54_spill] sm:$0xff] %v25951_v28  ;;  %v25953_v40 = vpop.f32.mrb[114].mxu1 }
 0x305   :  { %28813 = vst [vmem:[#allocation55_spill] sm:$0xff] %v25953_v40  ;;  %v25955_v62 = vpop.f32.mrb[115].mxu1 }
 0x306   :  { %28814 = vst [vmem:[#allocation56_spill] sm:$0xff] %v25955_v62  ;;  %v25973_v62 = vld [vmem:[#allocation2 + $0x1d8] sm:$0xff] }
 0x307   :  { %21856 = vmatmul.mubr.msk.bf16.gmra.mrb[152].mxu1 %vm27_vm3, %v25863_v23  ;;  %22132 = vmatmul.mubr.msk.bf16.gmra.mrb[156].mxu0 %vm27_vm3, %v25723_v34 }
 0x308   :  { %21859 = vmatprep.mubr.msk.bf16.mxu1 %vm27_vm3, %v25678_v20  ;;  %22135 = vmatprep.mubr.msk.bf16.mxu0 %vm27_vm3, %v25961_v38  ;;  %v26003_v38 = vld [vmem:[#allocation2 + $0x258] sm:$0xff] }
 0x30a   :  { %v25967_v59 = vpop.f32.mrb[116].mxu1 }
 0x30b   :  { %28816 = vst [vmem:[#allocation58_spill] sm:$0xff] %v25967_v59  ;;  %v25969_v28 = vpop.f32.mrb[117].mxu1 }
 0x30c   :  { %28817 = vst [vmem:[#allocation59_spill] sm:$0xff] %v25969_v28  ;;  %v25971_v40 = vpop.f32.mrb[118].mxu1 }
 0x30d   :  { %28818 = vst [vmem:[#allocation60_spill] sm:$0xff] %v25971_v40  ;;  %v25975_v29 = vpop.f32.mrb[119].mxu1 }
 0x30e   :  { %28819 = vst [vmem:[#allocation61_spill] sm:$0xff] %v25975_v29 }
 0x30f   :  { %21860 = vmatmul.mubr.msk.bf16.gmra.mrb[156].mxu1 %vm27_vm3, %v25973_v62  ;;  %22136 = vmatmul.mubr.msk.bf16.gmra.mrb[160].mxu0 %vm27_vm3, %v25977_v51 }
 0x310   :  { %21863 = vmatprep.mubr.msk.bf16.mxu1 %vm27_vm3, %v25897_v17  ;;  %22139 = vmatprep.mubr.msk.bf16.mxu0 %vm27_vm3, %v25983_v2 }
 0x312   :  { %v25989_v40 = vpop.f32.mrb[120].mxu1 }
 0x313   :  { %v25991_v28 = vpop.f32.mrb[121].mxu1 }
 0x314   :  { %28820 = vst [vmem:[#allocation62_spill] sm:$0xff] %v25991_v28  ;;  %v25993_v29 = vpop.f32.mrb[122].mxu1  ;;  %v26009_v28 = vld [vmem:[#allocation2 + $0x260] sm:$0xff] }
 0x315   :  { %28821 = vst [vmem:[#allocation63_spill] sm:$0xff] %v25993_v29  ;;  %v25995_v59 = vpop.f32.mrb[123].mxu1  ;;  %v26029_v29 = vld [vmem:[#allocation2 + $0x228] sm:$0xff] }
 0x316   :  { %28822 = vst [vmem:[#allocation64_spill] sm:$0xff] %v25995_v59  ;;  %v26015_v59 = vld [vmem:[#allocation2 + $0x268] sm:$0xff] }
 0x317   :  { %21864 = vmatmul.mubr.msk.bf16.gmra.mrb[160].mxu1 %vm27_vm3, %v25903_v39  ;;  %22140 = vmatmul.mubr.msk.bf16.gmra.mrb[164].mxu0 %vm27_vm3, %v25997_v55 }
 0x318   :  { %21867 = vmatprep.mubr.msk.bf16.mxu1 %vm27_vm3, %v25917_v15  ;;  %22143 = vmatprep.mubr.msk.bf16.mxu0 %vm27_vm3, %v26003_v38 }
 0x31f   :  { %21868 = vmatmul.mubr.msk.bf16.gmra.mrb[164].mxu1 %vm27_vm3, %v25923_v11  ;;  %22144 = vmatmul.mubr.msk.bf16.gmra.mrb[168].mxu0 %vm27_vm3, %v26009_v28 }
 0x320   :  { %21871 = vmatprep.mubr.msk.bf16.mxu1 %vm27_vm3, %v25937_v7  ;;  %22147 = vmatprep.mubr.msk.bf16.mxu0 %vm27_vm3, %v26015_v59 }
 0x327   :  { %21872 = vmatmul.mubr.msk.bf16.gmra.mrb[168].mxu1 %vm27_vm3, %v25943_v42  ;;  %22148 = vmatmul.mubr.msk.bf16.gmra.mrb[172].mxu0 %vm27_vm3, %v25789_v10 }
 0x328   :  { %21875 = vmatprep.mubr.msk.bf16.mxu1 %vm27_vm3, %v25723_v34  ;;  %22151 = vmatprep.mubr.msk.bf16.mxu0 %vm27_vm3, %v25541_v33  ;;  %v26055_v33 = vld [vmem:[#allocation2 + $0x2c0] sm:$0xff] }
 0x32f   :  { %21876 = vmatmul.mubr.msk.bf16.gmra.mrb[172].mxu1 %vm27_vm3, %v26029_v29  ;;  %22152 = vmatmul.mubr.msk.bf16.gmra.mrb[176].mxu0 %vm27_vm3, %v25549_v16  ;;  %v26065_v16 = vld [vmem:[#allocation2 + $0x278] sm:$0xff] }
 0x330   :  { %21879 = vmatprep.mubr.msk.bf16.mxu1 %vm27_vm3, %v25977_v51  ;;  %22155 = vmatprep.mubr.msk.bf16.mxu0 %vm27_vm3, %v25557_v18  ;;  %v23836_v18 = vld [vmem:[%s28756_s3 + $0xc8] sm:$0xff]  }
 0x337   :  { %21880 = vmatmul.mubr.msk.bf16.gmra.mrb[176].mxu1 %vm27_vm3, %v25983_v2  ;;  %22156 = vmatmul.mubr.msk.bf16.gmra.mrb[180].mxu0 %vm27_vm3, %v25565_v19 }
 0x338   :  { %21883 = vmatprep.mubr.msk.bf16.mxu1 %vm27_vm3, %v25997_v55  ;;  %22159 = vmatprep.mubr.msk.bf16.mxu0 %vm27_vm3, %v25573_v9 }
 0x33f   :  { %21884 = vmatmul.mubr.msk.bf16.gmra.mrb[180].mxu1 %vm27_vm3, %v26003_v38  ;;  %22160 = vmatmul.mubr.msk.bf16.gmra.mrb[184].mxu0 %vm27_vm3, %v25581_v30 }
 0x340   :  { %21887 = vmatprep.mubr.msk.bf16.mxu1 %vm27_vm3, %v26009_v28  ;;  %22163 = vmatprep.mubr.msk.bf16.mxu0 %vm27_vm3, %v25589_v36  ;;  %v26184_v36 = vld [vmem:[%s28756_s3 + $0xe0] sm:$0xff]  }
 0x347   :  { %21888 = vmatmul.mubr.msk.bf16.gmra.mrb[184].mxu1 %vm27_vm3, %v26015_v59  ;;  %22164 = vmatmul.mubr.msk.bf16.gmra.mrb[188].mxu0 %vm27_vm3, %v26055_v33 }
 0x348   :  { %21891 = vmatprep.mubr.msk.bf16.mxu1 %vm27_vm3, %v25789_v10  ;;  %22175 = vmatprep.mubr.msk.bf16.mxu0 %vm27_vm3, %v25444_v50  ;;  %v23837_v50 = vld [vmem:[%s28756_s3 + $0xd0] sm:$0xff]  }
 0x34f   :  { %21892 = vmatmul.mubr.msk.bf16.gmra.mrb[188].mxu1 %vm27_vm3, %v26065_v16  ;;  %22176 = vmatmul.mubr.msk.bf16.vlgmr.msra.gmra.mrb[64].mxu0 %vm27_vm3, %v25450_v52  ;;  %v7627_v52 = vld [vmem:[#allocation2 + $0x98] sm:$0xff] }
 0x350   :  { %22304 = vmatpush3.bf16.msra.mxu0 %v25804_v35  ;;  %22179 = vmatprep.mubr.msk.bf16.mxu0 %vm27_vm3, %v25456_v54  ;;  %v7635_v54 = vld [vmem:[#allocation2 + $0xe8] sm:$0xff] }
 0x351   :  { %22305 = vmatprep.subr.bf16.mxu0 %v23836_v18 }
 0x354   :  { %22306 = vmatpush3.bf16.msra.mxu0 %v23836_v18 }
 0x355   :  { %22307 = vmatprep.subr.bf16.mxu0 %v23837_v50 }
 0x357   :  { %22180 = vmatmul.mubr.msk.bf16.gmra.mrb[68].mxu0 %vm27_vm3, %v25462_v0  ;;  %v23838_v0 = vld [vmem:[%s28756_s3 + $0xd8] sm:$0xff]  }
 0x358   :  { %22183 = vmatprep.mubr.msk.bf16.mxu0 %vm27_vm3, %v25468_v56  ;;  %22308 = vmatpush3.bf16.msra.mxu0 %v23837_v50 }
 0x359   :  { %22309 = vmatprep.subr.bf16.mxu0 %v23838_v0 }
 0x35c   :  { %22310 = vmatpush3.bf16.msra.mxu0 %v23838_v0 }
 0x35d   :  { %22439 = vmatprep.subr.bf16.mxu0 %v26184_v36 }
 0x35f   :  { %22184 = vmatmul.mubr.msk.bf16.gmra.mrb[72].mxu0 %vm27_vm3, %v25474_v57 }
 0x360   :  { %22187 = vmatprep.mubr.msk.bf16.mxu0 %vm27_vm3, %v25480_v47 }
 0x367   :  { %22188 = vmatmul.mubr.msk.bf16.gmra.mrb[76].mxu0 %vm27_vm3, %v7627_v52 }
 0x368   :  { %22191 = vmatprep.mubr.msk.bf16.mxu0 %vm27_vm3, %v25492_v63 }
 0x36f   :  { %22192 = vmatmul.mubr.msk.bf16.gmra.mrb[80].mxu0 %vm27_vm3, %v25498_v4 }
 0x370   :  { %22195 = vmatprep.mubr.msk.bf16.mxu0 %vm27_vm3, %v25504_v53 }
 0x377   :  { %22196 = vmatmul.mubr.msk.bf16.gmra.mrb[84].mxu0 %vm27_vm3, %v25510_v44 }
 0x378   :  { %22199 = vmatprep.mubr.msk.bf16.mxu0 %vm27_vm3, %v25516_v43 }
 0x37f   :  { %22200 = vmatmul.mubr.msk.bf16.gmra.mrb[88].mxu0 %vm27_vm3, %v25522_v5 }
 0x380   :  { %22203 = vmatprep.mubr.msk.bf16.mxu0 %vm27_vm3, %v25528_v8 }
 0x387   :  { %22204 = vmatmul.mubr.msk.bf16.gmra.mrb[92].mxu0 %vm27_vm3, %v7635_v54 }
 0x388   :  { %22207 = vmatprep.mubr.msk.bf16.mxu0 %vm27_vm3, %v25539_v12 }
 0x38f   :  { %22208 = vmatmul.mubr.msk.bf16.gmra.mrb[96].mxu0 %vm27_vm3, %v25547_v3 }
 0x390   :  { %22211 = vmatprep.mubr.msk.bf16.mxu0 %vm27_vm3, %v25555_v31 }
 0x397   :  { %22212 = vmatmul.mubr.msk.bf16.gmra.mrb[100].mxu0 %vm27_vm3, %v25563_v25 }
 0x398   :  { %22215 = vmatprep.mubr.msk.bf16.mxu0 %vm27_vm3, %v25571_v22 }
 0x39f   :  { %22216 = vmatmul.mubr.msk.bf16.gmra.mrb[104].mxu0 %vm27_vm3, %v25579_v24 }
 0x3a0   :  { %22219 = vmatprep.mubr.msk.bf16.mxu0 %vm27_vm3, %v25587_v14 }
 0x3a2   :  { %v26121_v56 = vpop.f32.mrb[124].mxu1 }
 0x3a3   :  { %v26123_v57 = vpop.f32.mrb[125].mxu1 }
 0x3a4   :  { %v26125_v47 = vpop.f32.mrb[126].mxu1 }
 0x3a5   :  { %v26127_v63 = vpop.f32.mrb[127].mxu1 }
 0x3a7   :  { %22220 = vmatmul.mubr.msk.bf16.gmra.mrb[108].mxu0 %vm27_vm3, %v25813_v26 }
 0x3a8   :  { %22223 = vmatprep.mubr.msk.bf16.mxu0 %vm27_vm3, %v25604_v60 }
 0x3aa   :  { %v26133_v4 = vpop.f32.mrb[128].mxu1 }
 0x3ab   :  { %v26135_v53 = vpop.f32.mrb[129].mxu1 }
 0x3ac   :  { %v26137_v44 = vpop.f32.mrb[130].mxu1 }
 0x3ad   :  { %v26139_v43 = vpop.f32.mrb[131].mxu1 }
 0x3af   :  { %22224 = vmatmul.mubr.msk.bf16.gmra.mrb[112].mxu0 %vm27_vm3, %v25610_v1 }
 0x3b0   :  { %22227 = vmatprep.mubr.msk.bf16.mxu0 %vm27_vm3, %v25620_v41 }
 0x3b2   :  { %v26145_v5 = vpop.f32.mrb[132].mxu1 }
 0x3b3   :  { %v26147_v8 = vpop.f32.mrb[133].mxu1 }
 0x3b4   :  { %v26149_v12 = vpop.f32.mrb[134].mxu1 }
 0x3b5   :  { %v26151_v3 = vpop.f32.mrb[135].mxu1 }
 0x3b7   :  { %22228 = vmatmul.mubr.msk.bf16.gmra.mrb[116].mxu0 %vm27_vm3, %v25626_v58 }
 0x3b8   :  { %22231 = vmatprep.mubr.msk.bf16.mxu0 %vm27_vm3, %v25632_v21 }
 0x3ba   :  { %v26157_v31 = vpop.f32.mrb[136].mxu1 }
 0x3bb   :  { %v26159_v25 = vpop.f32.mrb[137].mxu1 }
 0x3bc   :  { %28823 = vst [vmem:[#allocation65_spill] sm:$0xff] %v26159_v25  ;;  %v26161_v19 = vpop.f32.mrb[138].mxu1  ;;  %v8871_v25 = vld [vmem:[#allocation2 + $0x1e0] sm:$0xff] }
 0x3bd   :  { %28824 = vst [vmem:[#allocation66_spill] sm:$0xff] %v26161_v19  ;;  %v26163_v22 = vpop.f32.mrb[139].mxu1  ;;  %v26449_v19 = vld [vmem:[#allocation2 + $0x178] sm:$0xff] }
 0x3be   :  { %28825 = vst [vmem:[#allocation67_spill] sm:$0xff] %v26163_v22  ;;  %v8863_v22 = vld [vmem:[#allocation2 + $0x190] sm:$0xff] }
 0x3bf   :  { %22232 = vmatmul.mubr.msk.bf16.gmra.mrb[120].mxu0 %vm27_vm3, %v25638_v45 }
 0x3c0   :  { %22235 = vmatprep.mubr.msk.bf16.mxu0 %vm27_vm3, %v25644_v46 }
 0x3c2   :  { %v26169_v9 = vpop.f32.mrb[140].mxu1 }
 0x3c3   :  { %28826 = vst [vmem:[#allocation68_spill] sm:$0xff] %v26169_v9  ;;  %v26171_v24 = vpop.f32.mrb[141].mxu1  ;;  %v26445_v9 = vld [vmem:[#allocation2 + $0x170] sm:$0xff] }
 0x3c4   :  { %28827 = vst [vmem:[#allocation69_spill] sm:$0xff] %v26171_v24  ;;  %v26173_v30 = vpop.f32.mrb[142].mxu1  ;;  %v26433_v24 = vld [vmem:[#allocation2 + $0x158] sm:$0xff] }
 0x3c5   :  { %28828 = vst [vmem:[#allocation70_spill] sm:$0xff] %v26173_v30  ;;  %v26175_v14 = vpop.f32.mrb[143].mxu1  ;;  %v26429_v30 = vld [vmem:[#allocation2 + $0x150] sm:$0xff] }
 0x3c6   :  { %28829 = vst [vmem:[#allocation71_spill] sm:$0xff] %v26175_v14  ;;  %v26425_v14 = vld [vmem:[#allocation2 + $0x148] sm:$0xff] }
 0x3c7   :  { %22236 = vmatmul.mubr.msk.bf16.gmra.mrb[124].mxu0 %vm27_vm3, %v25893_v37 }
 0x3c8   :  { %22239 = vmatprep.mubr.msk.bf16.mxu0 %vm27_vm3, %v25817_v61 }
 0x3ca   :  { %v26186_v60 = vpop.f32.mrb[144].mxu1 }
 0x3cb   :  { %28830 = vst [vmem:[#allocation72_spill] sm:$0xff] %v26186_v60  ;;  %v26189_v1 = vpop.f32.mrb[145].mxu1  ;;  %v23842_v60 = vld [vmem:[%s28756_s3 + $0xf8] sm:$0xff]  }
 0x3cc   :  { %28831 = vst [vmem:[#allocation73_spill] sm:$0xff] %v26189_v1  ;;  %v26191_v41 = vpop.f32.mrb[146].mxu1  ;;  %v26417_v1 = vld [vmem:[#allocation2 + $0x128] sm:$0xff] }
 0x3cd   :  { %28832 = vst [vmem:[#allocation74_spill] sm:$0xff] %v26191_v41  ;;  %v26193_v58 = vpop.f32.mrb[147].mxu1  ;;  %v8855_v41 = vld [vmem:[#allocation2 + $0x140] sm:$0xff] }
 0x3ce   :  { %28833 = vst [vmem:[#allocation75_spill] sm:$0xff] %v26193_v58  ;;  %v26413_v58 = vld [vmem:[#allocation2 + $0x120] sm:$0xff] }
 0x3cf   :  { %22240 = vmatmul.mubr.msk.bf16.gmra.mrb[128].mxu0 %vm27_vm3, %v25823_v13 }
 0x3d0   :  { %22243 = vmatprep.mubr.msk.bf16.mxu0 %vm27_vm3, %v25837_v27 }
 0x3d2   :  { %v26199_v21 = vpop.f32.mrb[148].mxu1 }
 0x3d3   :  { %28834 = vst [vmem:[#allocation76_spill] sm:$0xff] %v26199_v21  ;;  %v26201_v45 = vpop.f32.mrb[149].mxu1  ;;  %v26405_v21 = vld [vmem:[#allocation2 + $0x110] sm:$0xff] }
 0x3d4   :  { %28835 = vst [vmem:[#allocation77_spill] sm:$0xff] %v26201_v45  ;;  %v26203_v46 = vpop.f32.mrb[150].mxu1  ;;  %v26401_v45 = vld [vmem:[#allocation2 + $0x108] sm:$0xff] }
 0x3d5   :  { %28836 = vst [vmem:[#allocation78_spill] sm:$0xff] %v26203_v46  ;;  %v26205_v35 = vpop.f32.mrb[151].mxu1  ;;  %v26393_v46 = vld [vmem:[#allocation2 + $0xf8] sm:$0xff] }
 0x3d6   :  { %28837 = vst [vmem:[#allocation79_spill] sm:$0xff] %v26205_v35 }
 0x3d7   :  { %22244 = vmatmul.mubr.msk.bf16.gmra.mrb[132].mxu0 %vm27_vm3, %v25843_v49 }
 0x3d8   :  { %22247 = vmatprep.mubr.msk.bf16.mxu0 %vm27_vm3, %v25857_v48 }
 0x3da   :  { %v26211_v37 = vpop.f32.mrb[152].mxu1 }
 0x3db   :  { %28838 = vst [vmem:[#allocation80_spill] sm:$0xff] %v26211_v37  ;;  %v26213_v26 = vpop.f32.mrb[153].mxu1  ;;  %v26388_v37 = vld [vmem:[#allocation2 + $0xd8] sm:$0xff] }
 0x3dc   :  { %28839 = vst [vmem:[#allocation81_spill] sm:$0xff] %v26213_v26  ;;  %v26215_v18 = vpop.f32.mrb[154].mxu1 }
 0x3dd   :  { %28840 = vst [vmem:[#allocation82_spill] sm:$0xff] %v26215_v18  ;;  %v26217_v50 = vpop.f32.mrb[155].mxu1 }
 0x3de   :  { %28841 = vst [vmem:[#allocation83_spill] sm:$0xff] %v26217_v50 }
 0x3df   :  { %22248 = vmatmul.mubr.msk.bf16.gmra.mrb[136].mxu0 %vm27_vm3, %v25863_v23 }
 0x3e0   :  { %22251 = vmatprep.mubr.msk.bf16.mxu0 %vm27_vm3, %v25678_v20 }
 0x3e2   :  { %v26223_v52 = vpop.f32.mrb[156].mxu1 }
 0x3e3   :  { %28842 = vst [vmem:[#allocation84_spill] sm:$0xff] %v26223_v52  ;;  %v26225_v54 = vpop.f32.mrb[157].mxu1  ;;  %v26384_v52 = vld [vmem:[#allocation2 + $0xd0] sm:$0xff] }
 0x3e4   :  { %28843 = vst [vmem:[#allocation85_spill] sm:$0xff] %v26225_v54  ;;  %v26227_v0 = vpop.f32.mrb[158].mxu1 }
 0x3e5   :  { %28844 = vst [vmem:[#allocation86_spill] sm:$0xff] %v26227_v0  ;;  %v26229_v35 = vpop.f32.mrb[159].mxu1 }
 0x3e6   :  { %28845 = vst [vmem:[#allocation87_spill] sm:$0xff] %v26229_v35 }
 0x3e7   :  { %22252 = vmatmul.mubr.msk.bf16.gmra.mrb[140].mxu0 %vm27_vm3, %v25973_v62 }
 0x3e8   :  { %22255 = vmatprep.mubr.msk.bf16.mxu0 %vm27_vm3, %v25897_v17 }
 0x3ea   :  { %v26235_v50 = vpop.f32.mrb[160].mxu1 }
 0x3eb   :  { %28846 = vst [vmem:[#allocation88_spill] sm:$0xff] %v26235_v50  ;;  %v26237_v18 = vpop.f32.mrb[161].mxu1 }
 0x3ec   :  { %28847 = vst [vmem:[#allocation89_spill] sm:$0xff] %v26237_v18  ;;  %v26239_v26 = vpop.f32.mrb[162].mxu1 }
 0x3ed   :  { %28848 = vst [vmem:[#allocation90_spill] sm:$0xff] %v26239_v26  ;;  %v26241_v20 = vpop.f32.mrb[163].mxu1 }
 0x3ee   :  { %28849 = vst [vmem:[#allocation91_spill] sm:$0xff] %v26241_v20 }
 0x3ef   :  { %22256 = vmatmul.mubr.msk.bf16.gmra.mrb[144].mxu0 %vm27_vm3, %v25903_v39 }
 0x3f0   :  { %22259 = vmatprep.mubr.msk.bf16.mxu0 %vm27_vm3, %v25917_v15 }
 0x3f2   :  { %v26247_v35 = vpop.f32.mrb[164].mxu1 }
 0x3f3   :  { %28850 = vst [vmem:[#allocation92_spill] sm:$0xff] %v26247_v35  ;;  %v26249_v62 = vpop.f32.mrb[165].mxu1 }
 0x3f4   :  { %28851 = vst [vmem:[#allocation93_spill] sm:$0xff] %v26249_v62  ;;  %v26251_v0 = vpop.f32.mrb[166].mxu1 }
 0x3f5   :  { %28852 = vst [vmem:[#allocation94_spill] sm:$0xff] %v26251_v0  ;;  %v26253_v54 = vpop.f32.mrb[167].mxu1 }
 0x3f6   :  { %28853 = vst [vmem:[#allocation95_spill] sm:$0xff] %v26253_v54 }
 0x3f7   :  { %22260 = vmatmul.mubr.msk.bf16.gmra.mrb[148].mxu0 %vm27_vm3, %v25923_v11 }
 0x3f8   :  { %22263 = vmatprep.mubr.msk.bf16.mxu0 %vm27_vm3, %v25937_v7 }
 0x3fa   :  { %v26259_v20 = vpop.f32.mrb[168].mxu1 }
 0x3fb   :  { %28854 = vst [vmem:[#allocation96_spill] sm:$0xff] %v26259_v20  ;;  %v26261_v26 = vpop.f32.mrb[169].mxu1  ;;  %v26376_v20 = vld [vmem:[#allocation2 + $0xc0] sm:$0xff] }
 0x3fc   :  { %28855 = vst [vmem:[#allocation97_spill] sm:$0xff] %v26261_v26  ;;  %v26263_v18 = vpop.f32.mrb[170].mxu1 }
 0x3fd   :  { %28856 = vst [vmem:[#allocation98_spill] sm:$0xff] %v26263_v18  ;;  %v26265_v50 = vpop.f32.mrb[171].mxu1 }
 0x3fe   :  { %28857 = vst [vmem:[#allocation99_spill] sm:$0xff] %v26265_v50 }
 0x3ff   :  { %22264 = vmatmul.mubr.msk.bf16.gmra.mrb[152].mxu0 %vm27_vm3, %v25943_v42 }
 0x400   :  { %22267 = vmatprep.mubr.msk.bf16.mxu0 %vm27_vm3, %v25723_v34 }
 0x402   :  { %v26271_v54 = vpop.f32.mrb[172].mxu1 }
 0x403   :  { %28858 = vst [vmem:[#allocation100_spill] sm:$0xff] %v26271_v54  ;;  %v26273_v0 = vpop.f32.mrb[173].mxu1  ;;  %v26364_v54 = vld [vmem:[#allocation2 + $0xb0] sm:$0xff] }
 0x404   :  { %28859 = vst [vmem:[#allocation101_spill] sm:$0xff] %v26273_v0  ;;  %v26275_v62 = vpop.f32.mrb[174].mxu1 }
 0x405   :  { %28860 = vst [vmem:[#allocation102_spill] sm:$0xff] %v26275_v62  ;;  %v26277_v35 = vpop.f32.mrb[175].mxu1 }
 0x406   :  { %28861 = vst [vmem:[#allocation103_spill] sm:$0xff] %v26277_v35 }
 0x407   :  { %22268 = vmatmul.mubr.msk.bf16.gmra.mrb[156].mxu0 %vm27_vm3, %v26029_v29 }
 0x408   :  { %22271 = vmatprep.mubr.msk.bf16.mxu0 %vm27_vm3, %v25977_v51 }
 0x40a   :  { %v26283_v50 = vpop.f32.mrb[176].mxu1 }
 0x40b   :  { %28862 = vst [vmem:[#allocation104_spill] sm:$0xff] %v26283_v50  ;;  %v26285_v18 = vpop.f32.mrb[177].mxu1 }
 0x40c   :  { %28863 = vst [vmem:[#allocation105_spill] sm:$0xff] %v26285_v18  ;;  %v26287_v26 = vpop.f32.mrb[178].mxu1 }
 0x40d   :  { %28864 = vst [vmem:[#allocation106_spill] sm:$0xff] %v26287_v26  ;;  %v26289_v34 = vpop.f32.mrb[179].mxu1 }
 0x40e   :  { %28865 = vst [vmem:[#allocation107_spill] sm:$0xff] %v26289_v34 }
 0x40f   :  { %22272 = vmatmul.mubr.msk.bf16.gmra.mrb[160].mxu0 %vm27_vm3, %v25983_v2 }
 0x410   :  { %22275 = vmatprep.mubr.msk.bf16.mxu0 %vm27_vm3, %v25997_v55 }
 0x412   :  { %v26295_v35 = vpop.f32.mrb[180].mxu1 }
 0x413   :  { %28866 = vst [vmem:[#allocation108_spill] sm:$0xff] %v26295_v35  ;;  %v26297_v29 = vpop.f32.mrb[181].mxu1 }
 0x414   :  { %28867 = vst [vmem:[#allocation109_spill] sm:$0xff] %v26297_v29  ;;  %v26299_v62 = vpop.f32.mrb[182].mxu1 }
 0x415   :  { %28868 = vst [vmem:[#allocation110_spill] sm:$0xff] %v26299_v62  ;;  %v26301_v0 = vpop.f32.mrb[183].mxu1 }
 0x416   :  { %28869 = vst [vmem:[#allocation111_spill] sm:$0xff] %v26301_v0 }
 0x417   :  { %22276 = vmatmul.mubr.msk.bf16.gmra.mrb[164].mxu0 %vm27_vm3, %v26003_v38 }
 0x418   :  { %22279 = vmatprep.mubr.msk.bf16.mxu0 %vm27_vm3, %v26009_v28 }
 0x41a   :  { %v26307_v34 = vpop.f32.mrb[184].mxu1 }
 0x41b   :  { %28870 = vst [vmem:[#allocation112_spill] sm:$0xff] %v26307_v34  ;;  %v26309_v26 = vpop.f32.mrb[185].mxu1  ;;  %v26360_v34 = vld [vmem:[#allocation2 + $0xa8] sm:$0xff] }
 0x41c   :  { %28871 = vst [vmem:[#allocation113_spill] sm:$0xff] %v26309_v26  ;;  %v26311_v18 = vpop.f32.mrb[186].mxu1  ;;  %v23840_v26 = vld [vmem:[%s28756_s3 + $0xe8] sm:$0xff]  }
 0x41d   :  { %28872 = vst [vmem:[#allocation114_spill] sm:$0xff] %v26311_v18  ;;  %v26313_v50 = vpop.f32.mrb[187].mxu1  ;;  %v26329_v18 = vld [vmem:[#allocation2 + $0x290] sm:$0xff] }
 0x41e   :  { %28873 = vst [vmem:[#allocation115_spill] sm:$0xff] %v26313_v50  ;;  %v26333_v50 = vld [vmem:[#allocation2 + $0x298] sm:$0xff] }
 0x41f   :  { %22280 = vmatmul.mubr.msk.bf16.gmra.mrb[168].mxu0 %vm27_vm3, %v26015_v59 }
 0x420   :  { %22283 = vmatprep.mubr.msk.bf16.mxu0 %vm27_vm3, %v25789_v10  ;;  %v26337_v10 = vld [vmem:[#allocation2 + $0x2a0] sm:$0xff] }
 0x422   :  { %v26319_v0 = vpop.f32.mrb[188].mxu1 }
 0x423   :  { %28874 = vst [vmem:[#allocation116_spill] sm:$0xff] %v26319_v0  ;;  %v26321_v62 = vpop.f32.mrb[189].mxu1  ;;  %v8839_v0 = vld [vmem:[#allocation2 + $0xa0] sm:$0xff] }
 0x424   :  { %28875 = vst [vmem:[#allocation117_spill] sm:$0xff] %v26321_v62  ;;  %v26323_v29 = vpop.f32.mrb[190].mxu1  ;;  %v7683_v62 = vld [vmem:[#allocation2 + $0x2c8] sm:$0xff] }
 0x425   :  { %28876 = vst [vmem:[#allocation118_spill] sm:$0xff] %v26323_v29  ;;  %v26325_v35 = vpop.f32.mrb[191].mxu1  ;;  %v26341_v29 = vld [vmem:[#allocation2 + $0x2a8] sm:$0xff] }
 0x426   :  { %28877 = vst [vmem:[#allocation119_spill] sm:$0xff] %v26325_v35  ;;  %v26349_v35 = vld [vmem:[#allocation2 + $0x2b8] sm:$0xff] }
 0x427   :  { %22284 = vmatmul.mubr.msk.bf16.gmra.mrb[172].mxu0 %vm27_vm3, %v26065_v16  ;;  %v26345_v16 = vld [vmem:[#allocation2 + $0x2b0] sm:$0xff] }
 0x428   :  { %22287 = vmatprep.mubr.msk.bf16.mxu0 %vm27_vm3, %v26329_v18 }
 0x42f   :  { %22288 = vmatmul.mubr.msk.bf16.gmra.mrb[176].mxu0 %vm27_vm3, %v26333_v50 }
 0x430   :  { %22291 = vmatprep.mubr.msk.bf16.mxu0 %vm27_vm3, %v26337_v10 }
 0x437   :  { %22292 = vmatmul.mubr.msk.bf16.gmra.mrb[180].mxu0 %vm27_vm3, %v26341_v29 }
 0x438   :  { %22295 = vmatprep.mubr.msk.bf16.mxu0 %vm27_vm3, %v26345_v16 }
 0x43f   :  { %22296 = vmatmul.mubr.msk.bf16.gmra.mrb[184].mxu0 %vm27_vm3, %v26349_v35 }
 0x440   :  { %22299 = vmatprep.mubr.msk.bf16.mxu0 %vm27_vm3, %v26055_v33 }
 0x447   :  { %22300 = vmatmul.mubr.msk.bf16.gmra.mrb[188].mxu0 %vm27_vm3, %v7683_v62  ;;  %v26372_v62 = vld [vmem:[#allocation2 + $0xb8] sm:$0xff] }
 0x448   :  { %22311 = vmatprep.mubr.msk.bf16.mxu0 %vm27_vm3, %v8839_v0  ;;  %v23841_v0 = vld [vmem:[%s28756_s3 + $0xf0] sm:$0xff]  }
 0x44f   :  { %22312 = vmatmul.mubr.msk.bf16.vlgmr.msra.gmra.mrb[64].mxu0 %vm27_vm3, %v26360_v34 }
 0x450   :  { %22440 = vmatpush3.bf16.msra.mxu0 %v26184_v36  ;;  %22315 = vmatprep.mubr.msk.bf16.mxu0 %vm27_vm3, %v26364_v54  ;;  %v26380_v36 = vld [vmem:[#allocation2 + $0xc8] sm:$0xff] }
 0x451   :  { %22441 = vmatprep.subr.bf16.mxu0 %v23840_v26 }
 0x454   :  { %22442 = vmatpush3.bf16.msra.mxu0 %v23840_v26  ;;  %v8847_v26 = vld [vmem:[#allocation2 + $0xf0] sm:$0xff] }
 0x455   :  { %22443 = vmatprep.subr.bf16.mxu0 %v23841_v0 }
 0x457   :  { %22316 = vmatmul.mubr.msk.bf16.gmra.mrb[68].mxu0 %vm27_vm3, %v26372_v62 }
 0x458   :  { %22319 = vmatprep.mubr.msk.bf16.mxu0 %vm27_vm3, %v26376_v20  ;;  %22444 = vmatpush3.bf16.msra.mxu0 %v23841_v0  ;;  %v26397_v0 = vld [vmem:[#allocation2 + $0x100] sm:$0xff] }
 0x459   :  { %22445 = vmatprep.subr.bf16.mxu0 %v23842_v60 }
 0x45c   :  { %22446 = vmatpush3.bf16.msra.mxu0 %v23842_v60  ;;  %v26441_v60 = vld [vmem:[#allocation2 + $0x168] sm:$0xff] }
 0x45f   :  { %22320 = vmatmul.mubr.msk.bf16.gmra.mrb[72].mxu0 %vm27_vm3, %v26380_v36 }
 0x460   :  { %22323 = vmatprep.mubr.msk.bf16.mxu0 %vm27_vm3, %v26384_v52 }
 0x467   :  { %22324 = vmatmul.mubr.msk.bf16.gmra.mrb[76].mxu0 %vm27_vm3, %v26388_v37 }
 0x468   :  { %22327 = vmatprep.mubr.msk.bf16.mxu0 %vm27_vm3, %v8847_v26  ;;  %v26409_v26 = vld [vmem:[#allocation2 + $0x118] sm:$0xff] }
 0x46f   :  { %22328 = vmatmul.mubr.msk.bf16.gmra.mrb[80].mxu0 %vm27_vm3, %v26393_v46 }
 0x470   :  { %22331 = vmatprep.mubr.msk.bf16.mxu0 %vm27_vm3, %v26397_v0 }
 0x477   :  { %22332 = vmatmul.mubr.msk.bf16.gmra.mrb[84].mxu0 %vm27_vm3, %v26401_v45 }
 0x478   :  { %22335 = vmatprep.mubr.msk.bf16.mxu0 %vm27_vm3, %v26405_v21 }
 0x47f   :  { %22336 = vmatmul.mubr.msk.bf16.gmra.mrb[88].mxu0 %vm27_vm3, %v26409_v26 }
 0x480   :  { %22339 = vmatprep.mubr.msk.bf16.mxu0 %vm27_vm3, %v26413_v58 }
 0x487   :  { %22340 = vmatmul.mubr.msk.bf16.gmra.mrb[92].mxu0 %vm27_vm3, %v26417_v1 }
 0x488   :  { %22343 = vmatprep.mubr.msk.bf16.mxu0 %vm27_vm3, %v8855_v41  ;;  %v26437_v41 = vld [vmem:[#allocation2 + $0x160] sm:$0xff] }
 0x48f   :  { %22344 = vmatmul.mubr.msk.bf16.gmra.mrb[96].mxu0 %vm27_vm3, %v26425_v14 }
 0x490   :  { %22347 = vmatprep.mubr.msk.bf16.mxu0 %vm27_vm3, %v26429_v30 }
 0x497   :  { %22348 = vmatmul.mubr.msk.bf16.gmra.mrb[100].mxu0 %vm27_vm3, %v26433_v24 }
 0x498   :  { %22351 = vmatprep.mubr.msk.bf16.mxu0 %vm27_vm3, %v26437_v41 }
 0x49f   :  { %22352 = vmatmul.mubr.msk.bf16.gmra.mrb[104].mxu0 %vm27_vm3, %v26441_v60 }
 0x4a0   :  { %22355 = vmatprep.mubr.msk.bf16.mxu0 %vm27_vm3, %v26445_v9 }
 0x4a7   :  { %22356 = vmatmul.mubr.msk.bf16.gmra.mrb[108].mxu0 %vm27_vm3, %v26449_v19 }
 0x4a8   :  { %22359 = vmatprep.mubr.msk.bf16.mxu0 %vm27_vm3, %v8863_v22  ;;  %v10083_v22 = vld [vmem:[#allocation2 + $0x1a8] sm:$0xff] }
 0x4af   :  { %22360 = vmatmul.mubr.msk.bf16.gmra.mrb[112].mxu0 %vm27_vm3, %v25795_v32  ;;  %v10081_v32 = vld [vmem:[#allocation2 + $0x198] sm:$0xff] }
 0x4b0   :  { %22363 = vmatprep.mubr.msk.bf16.mxu0 %vm27_vm3, %v25817_v61  ;;  %v23843_v61 = vld [vmem:[%s28756_s3 + $0x100] sm:$0xff]  }
 0x4b1   :  { %22575 = vmatprep.subr.bf16.mxu0 %v23843_v61 }
 0x4b7   :  { %22364 = vmatmul.mubr.msk.bf16.gmra.mrb[116].mxu0 %vm27_vm3, %v25823_v13  ;;  %v23846_v13 = vld [vmem:[%s28756_s3 + $0x118] sm:$0xff]  }
 0x4b8   :  { %22367 = vmatprep.mubr.msk.bf16.mxu0 %vm27_vm3, %v25837_v27  ;;  %v26585_v27 = vld [vmem:[#allocation2 + $0x130] sm:$0xff] }
 0x4bf   :  { %22368 = vmatmul.mubr.msk.bf16.gmra.mrb[120].mxu0 %vm27_vm3, %v25843_v49  ;;  %v26567_v49 = vld [vmem:[#allocation2 + $0xe0] sm:$0xff] }
 0x4c0   :  { %22371 = vmatprep.mubr.msk.bf16.mxu0 %vm27_vm3, %v25857_v48  ;;  %v23845_v48 = vld [vmem:[%s28756_s3 + $0x110] sm:$0xff]  }
 0x4c7   :  { %22372 = vmatmul.mubr.msk.bf16.gmra.mrb[124].mxu0 %vm27_vm3, %v25863_v23  ;;  %v8879_v23 = vld [vmem:[#allocation2 + $0x230] sm:$0xff] }
 0x4c8   :  { %22375 = vmatprep.mubr.msk.bf16.mxu0 %vm27_vm3, %v8871_v25  ;;  %v26611_v25 = vld [vmem:[#allocation2 + $0x1a0] sm:$0xff] }
 0x4cf   :  { %22376 = vmatmul.mubr.msk.bf16.gmra.mrb[128].mxu0 %vm27_vm3, %v25881_v6  ;;  %v28878_v6 = vld [vmem:[#allocation57_spill] sm:$0xff] }
 0x4d0   :  { %22379 = vmatprep.mubr.msk.bf16.mxu0 %vm27_vm3, %v25897_v17  ;;  %v26543_v17 = vld [vmem:[#allocation2 + $0x308] sm:$0xff] }
 0x4d7   :  { %22380 = vmatmul.mubr.msk.bf16.gmra.mrb[132].mxu0 %vm27_vm3, %v25903_v39  ;;  %v26537_v39 = vld [vmem:[#allocation2 + $0x300] sm:$0xff] }
 0x4d8   :  { %22383 = vmatprep.mubr.msk.bf16.mxu0 %vm27_vm3, %v25917_v15  ;;  %v26535_v15 = vld [vmem:[#allocation2 + $0x2f8] sm:$0xff] }
 0x4df   :  { %22384 = vmatmul.mubr.msk.bf16.gmra.mrb[136].mxu0 %vm27_vm3, %v25923_v11  ;;  %v26529_v11 = vld [vmem:[#allocation2 + $0x2f0] sm:$0xff] }
 0x4e0   :  { %22387 = vmatprep.mubr.msk.bf16.mxu0 %vm27_vm3, %v25937_v7  ;;  %v26502_v7 = vld [vmem:[#allocation2 + $0x288] sm:$0xff] }
 0x4e7   :  { %22388 = vmatmul.mubr.msk.bf16.gmra.mrb[140].mxu0 %vm27_vm3, %v25943_v42  ;;  %v8887_v42 = vld [vmem:[#allocation2 + $0x280] sm:$0xff] }
 0x4e8   :  { %22391 = vmatprep.mubr.msk.bf16.mxu0 %vm27_vm3, %v8879_v23  ;;  %v10093_v23 = vld [vmem:[#allocation2 + $0x208] sm:$0xff] }
 0x4ef   :  { %22392 = vmatmul.mubr.msk.bf16.gmra.mrb[144].mxu0 %vm27_vm3, %v28878_v6  ;;  %v10094_v6 = vld [vmem:[#allocation2 + $0x210] sm:$0xff] }
 0x4f0   :  { %22395 = vmatprep.mubr.msk.bf16.mxu0 %vm27_vm3, %v25977_v51  ;;  %v26521_v51 = vld [vmem:[#allocation2 + $0x2e0] sm:$0xff] }
 0x4f7   :  { %22396 = vmatmul.mubr.msk.bf16.gmra.mrb[148].mxu0 %vm27_vm3, %v25983_v2  ;;  %v26519_v2 = vld [vmem:[#allocation2 + $0x2d8] sm:$0xff] }
 0x4f8   :  { %22399 = vmatprep.mubr.msk.bf16.mxu0 %vm27_vm3, %v25997_v55  ;;  %v8895_v55 = vld [vmem:[#allocation2 + $0x2d0] sm:$0xff] }
 0x4ff   :  { %22400 = vmatmul.mubr.msk.bf16.gmra.mrb[152].mxu0 %vm27_vm3, %v26003_v38  ;;  %v26527_v38 = vld [vmem:[#allocation2 + $0x2e8] sm:$0xff] }
 0x500   :  { %22403 = vmatprep.mubr.msk.bf16.mxu0 %vm27_vm3, %v26009_v28  ;;  %v26606_v28 = vld [vmem:[#allocation2 + $0x180] sm:$0xff] }
 0x507   :  { %22404 = vmatmul.mubr.msk.bf16.gmra.mrb[156].mxu0 %vm27_vm3, %v26015_v59  ;;  %v23844_v59 = vld [vmem:[%s28756_s3 + $0x108] sm:$0xff]  }
 0x508   :  { %22407 = vmatprep.mubr.msk.bf16.mxu0 %vm27_vm3, %v8887_v42  ;;  %v10095_v42 = vld [vmem:[#allocation2 + $0x218] sm:$0xff] }
 0x50f   :  { %22408 = vmatmul.mubr.msk.bf16.gmra.mrb[160].mxu0 %vm27_vm3, %v26502_v7 }
 0x510   :  { %22411 = vmatprep.mubr.msk.bf16.mxu0 %vm27_vm3, %v26329_v18 }
 0x517   :  { %22412 = vmatmul.mubr.msk.bf16.gmra.mrb[164].mxu0 %vm27_vm3, %v26333_v50 }
 0x518   :  { %22415 = vmatprep.mubr.msk.bf16.mxu0 %vm27_vm3, %v26337_v10 }
 0x51f   :  { %22416 = vmatmul.mubr.msk.bf16.gmra.mrb[168].mxu0 %vm27_vm3, %v26341_v29 }
 0x520   :  { %22419 = vmatprep.mubr.msk.bf16.mxu0 %vm27_vm3, %v26345_v16 }
 0x527   :  { %22420 = vmatmul.mubr.msk.bf16.gmra.mrb[172].mxu0 %vm27_vm3, %v26349_v35 }
 0x528   :  { %22423 = vmatprep.mubr.msk.bf16.mxu0 %vm27_vm3, %v8895_v55  ;;  %v10096_v55 = vld [vmem:[#allocation2 + $0x220] sm:$0xff] }
 0x52f   :  { %22424 = vmatmul.mubr.msk.bf16.gmra.mrb[176].mxu0 %vm27_vm3, %v26519_v2 }
 0x530   :  { %22427 = vmatprep.mubr.msk.bf16.mxu0 %vm27_vm3, %v26521_v51 }
 0x537   :  { %22428 = vmatmul.mubr.msk.bf16.gmra.mrb[180].mxu0 %vm27_vm3, %v26527_v38 }
 0x538   :  { %22431 = vmatprep.mubr.msk.bf16.mxu0 %vm27_vm3, %v26529_v11 }
 0x53f   :  { %22432 = vmatmul.mubr.msk.bf16.gmra.mrb[184].mxu0 %vm27_vm3, %v26535_v15 }
 0x540   :  { %22435 = vmatprep.mubr.msk.bf16.mxu0 %vm27_vm3, %v26537_v39 }
 0x547   :  { %22436 = vmatmul.mubr.msk.bf16.gmra.mrb[188].mxu0 %vm27_vm3, %v26543_v17 }
 0x548   :  { %22447 = vmatprep.mubr.msk.bf16.mxu0 %vm27_vm3, %v26360_v34  ;;  %v10089_v34 = vld [vmem:[#allocation2 + $0x1e8] sm:$0xff] }
 0x54f   :  { %22448 = vmatmul.mubr.msk.bf16.vlgmr.msra.gmra.mrb[64].mxu0 %vm27_vm3, %v26364_v54 }
 0x550   :  { %22576 = vmatpush3.bf16.msra.mxu0 %v23843_v61  ;;  %22451 = vmatprep.mubr.msk.bf16.mxu0 %vm27_vm3, %v26372_v62  ;;  %v10092_v61 = vld [vmem:[#allocation2 + $0x200] sm:$0xff] }
 0x551   :  { %22577 = vmatprep.subr.bf16.mxu0 %v23844_v59 }
 0x554   :  { %22578 = vmatpush3.bf16.msra.mxu0 %v23844_v59  ;;  %v10097_v59 = vld [vmem:[#allocation2 + $0x238] sm:$0xff] }
 0x555   :  { %22579 = vmatprep.subr.bf16.mxu0 %v23845_v48 }
 0x557   :  { %22452 = vmatmul.mubr.msk.bf16.gmra.mrb[68].mxu0 %vm27_vm3, %v26376_v20 }
 0x558   :  { %22455 = vmatprep.mubr.msk.bf16.mxu0 %vm27_vm3, %v26380_v36  ;;  %22580 = vmatpush3.bf16.msra.mxu0 %v23845_v48  ;;  %v10098_v48 = vld [vmem:[#allocation2 + $0x240] sm:$0xff] }
 0x559   :  { %22581 = vmatprep.subr.bf16.mxu0 %v23846_v13 }
 0x55c   :  { %22582 = vmatpush3.bf16.msra.mxu0 %v23846_v13  ;;  %v10099_v13 = vld [vmem:[#allocation2 + $0x248] sm:$0xff] }
 0x55f   :  { %22456 = vmatmul.mubr.msk.bf16.gmra.mrb[72].mxu0 %vm27_vm3, %v26384_v52 }
 0x560   :  { %22459 = vmatprep.mubr.msk.bf16.mxu0 %vm27_vm3, %v26388_v37 }
 0x567   :  { %22460 = vmatmul.mubr.msk.bf16.gmra.mrb[76].mxu0 %vm27_vm3, %v26567_v49 }
 0x568   :  { %22463 = vmatprep.mubr.msk.bf16.mxu0 %vm27_vm3, %v26393_v46  ;;  %v10088_v46 = vld [vmem:[#allocation2 + $0x1d0] sm:$0xff] }
 0x56f   :  { %22464 = vmatmul.mubr.msk.bf16.gmra.mrb[80].mxu0 %vm27_vm3, %v26397_v0 }
 0x570   :  { %22467 = vmatprep.mubr.msk.bf16.mxu0 %vm27_vm3, %v26401_v45 }
 0x577   :  { %22468 = vmatmul.mubr.msk.bf16.gmra.mrb[84].mxu0 %vm27_vm3, %v26405_v21 }
 0x578   :  { %22471 = vmatprep.mubr.msk.bf16.mxu0 %vm27_vm3, %v26409_v26 }
 0x57f   :  { %22472 = vmatmul.mubr.msk.bf16.gmra.mrb[88].mxu0 %vm27_vm3, %v26413_v58 }
 0x580   :  { %22475 = vmatprep.mubr.msk.bf16.mxu0 %vm27_vm3, %v26417_v1 }
 0x587   :  { %22476 = vmatmul.mubr.msk.bf16.gmra.mrb[92].mxu0 %vm27_vm3, %v26585_v27 }
 0x588   :  { %22479 = vmatprep.mubr.msk.bf16.mxu0 %vm27_vm3, %v26425_v14  ;;  %v10087_v14 = vld [vmem:[#allocation2 + $0x1c8] sm:$0xff] }
 0x58f   :  { %22480 = vmatmul.mubr.msk.bf16.gmra.mrb[96].mxu0 %vm27_vm3, %v26429_v30 }
 0x590   :  { %22483 = vmatprep.mubr.msk.bf16.mxu0 %vm27_vm3, %v26433_v24  ;;  %v10086_v24 = vld [vmem:[#allocation2 + $0x1c0] sm:$0xff] }
 0x597   :  { %22484 = vmatmul.mubr.msk.bf16.gmra.mrb[100].mxu0 %vm27_vm3, %v26437_v41  ;;  %v10090_v41 = vld [vmem:[#allocation2 + $0x1f0] sm:$0xff] }
 0x598   :  { %22487 = vmatprep.mubr.msk.bf16.mxu0 %vm27_vm3, %v26441_v60  ;;  %v10091_v60 = vld [vmem:[#allocation2 + $0x1f8] sm:$0xff] }
 0x59f   :  { %22488 = vmatmul.mubr.msk.bf16.gmra.mrb[104].mxu0 %vm27_vm3, %v26445_v9  ;;  %v10084_v9 = vld [vmem:[#allocation2 + $0x1b0] sm:$0xff] }
 0x5a0   :  { %22491 = vmatprep.mubr.msk.bf16.mxu0 %vm27_vm3, %v26449_v19  ;;  %v10085_v19 = vld [vmem:[#allocation2 + $0x1b8] sm:$0xff] }
 0x5a7   :  { %22492 = vmatmul.mubr.msk.bf16.gmra.mrb[108].mxu0 %vm27_vm3, %v26606_v28 }
 0x5a8   :  { %22495 = vmatprep.mubr.msk.bf16.mxu0 %vm27_vm3, %v10081_v32  ;;  %v10100_v32 = vld [vmem:[#allocation2 + $0x250] sm:$0xff] }
 0x5af   :  { %22496 = vmatmul.mubr.msk.bf16.gmra.mrb[112].mxu0 %vm27_vm3, %v26611_v25 }
 0x5b0   :  { %22499 = vmatprep.mubr.msk.bf16.mxu0 %vm27_vm3, %v10083_v22  ;;  %v10101_v22 = vld [vmem:[#allocation2 + $0x258] sm:$0xff] }
 0x5b7   :  { %22500 = vmatmul.mubr.msk.bf16.gmra.mrb[116].mxu0 %vm27_vm3, %v10084_v9  ;;  %v10102_v9 = vld [vmem:[#allocation2 + $0x260] sm:$0xff] }
 0x5b8   :  { %22503 = vmatprep.mubr.msk.bf16.mxu0 %vm27_vm3, %v10085_v19  ;;  %v10103_v19 = vld [vmem:[#allocation2 + $0x268] sm:$0xff] }
 0x5bf   :  { %22504 = vmatmul.mubr.msk.bf16.gmra.mrb[120].mxu0 %vm27_vm3, %v10086_v24  ;;  %v10104_v24 = vld [vmem:[#allocation2 + $0x270] sm:$0xff] }
 0x5c0   :  { %22507 = vmatprep.mubr.msk.bf16.mxu0 %vm27_vm3, %v10087_v14  ;;  %v11307_v14 = vld [vmem:[#allocation2 + $0x1d8] sm:$0xff] }
 0x5c7   :  { %22508 = vmatmul.mubr.msk.bf16.gmra.mrb[124].mxu0 %vm27_vm3, %v10088_v46  ;;  %v24377_v46 = vld [vmem:[#allocation2 + $0x1f0] sm:$0xff] }
 0x5c8   :  { %22511 = vmatprep.mubr.msk.bf16.mxu0 %vm27_vm3, %v10089_v34  ;;  %v24378_v34 = vld [vmem:[#allocation2 + $0x1f8] sm:$0xff] }
 0x5cf   :  { %22512 = vmatmul.mubr.msk.bf16.gmra.mrb[128].mxu0 %vm27_vm3, %v10090_v41  ;;  %v24379_v41 = vld [vmem:[#allocation2 + $0x200] sm:$0xff] }
 0x5d0   :  { %22515 = vmatprep.mubr.msk.bf16.mxu0 %vm27_vm3, %v10091_v60  ;;  %v24380_v60 = vld [vmem:[#allocation2 + $0x208] sm:$0xff] }
 0x5d7   :  { %22516 = vmatmul.mubr.msk.bf16.gmra.mrb[132].mxu0 %vm27_vm3, %v10092_v61  ;;  %v24381_v61 = vld [vmem:[#allocation2 + $0x210] sm:$0xff] }
 0x5d8   :  { %22519 = vmatprep.mubr.msk.bf16.mxu0 %vm27_vm3, %v10093_v23  ;;  %v24382_v23 = vld [vmem:[#allocation2 + $0x218] sm:$0xff] }
 0x5df   :  { %22520 = vmatmul.mubr.msk.bf16.gmra.mrb[136].mxu0 %vm27_vm3, %v10094_v6  ;;  %v24383_v6 = vld [vmem:[#allocation2 + $0x220] sm:$0xff] }
 0x5e0   :  { %22523 = vmatprep.mubr.msk.bf16.mxu0 %vm27_vm3, %v10095_v42  ;;  %v11315_v42 = vld [vmem:[#allocation2 + $0x228] sm:$0xff] }
 0x5e7   :  { %22524 = vmatmul.mubr.msk.bf16.gmra.mrb[140].mxu0 %vm27_vm3, %v10096_v55  ;;  %v24384_v55 = vld [vmem:[#allocation2 + $0x240] sm:$0xff] }
 0x5e8   :  { %22527 = vmatprep.mubr.msk.bf16.mxu0 %vm27_vm3, %v10097_v59  ;;  %v24385_v59 = vld [vmem:[#allocation2 + $0x248] sm:$0xff] }
 0x5ef   :  { %22528 = vmatmul.mubr.msk.bf16.gmra.mrb[144].mxu0 %vm27_vm3, %v10098_v48  ;;  %v24386_v48 = vld [vmem:[#allocation2 + $0x250] sm:$0xff] }
 0x5f0   :  { %22531 = vmatprep.mubr.msk.bf16.mxu0 %vm27_vm3, %v10099_v13  ;;  %v24387_v13 = vld [vmem:[#allocation2 + $0x258] sm:$0xff] }
 0x5f7   :  { %22532 = vmatmul.mubr.msk.bf16.gmra.mrb[148].mxu0 %vm27_vm3, %v10100_v32  ;;  %v24388_v32 = vld [vmem:[#allocation2 + $0x260] sm:$0xff] }
 0x5f8   :  { %22535 = vmatprep.mubr.msk.bf16.mxu0 %vm27_vm3, %v10101_v22  ;;  %v24389_v22 = vld [vmem:[#allocation2 + $0x268] sm:$0xff] }
 0x5ff   :  { %22536 = vmatmul.mubr.msk.bf16.gmra.mrb[152].mxu0 %vm27_vm3, %v10102_v9  ;;  %v24390_v9 = vld [vmem:[#allocation2 + $0x270] sm:$0xff] }
 0x600   :  { %22539 = vmatprep.mubr.msk.bf16.mxu0 %vm27_vm3, %v10103_v19  ;;  %v11323_v19 = vld [vmem:[#allocation2 + $0x278] sm:$0xff] }
 0x607   :  { %22540 = vmatmul.mubr.msk.bf16.gmra.mrb[156].mxu0 %vm27_vm3, %v10104_v24  ;;  %v24391_v24 = vld [vmem:[#allocation2 + $0x290] sm:$0xff] }
 0x608   :  { %22543 = vmatprep.mubr.msk.bf16.mxu0 %vm27_vm3, %v26502_v7  ;;  %v23847_v7 = vld [vmem:[%s28758_s5 + $0x40] sm:$0xff]  }
 0x609   :  { %20623 = vmatprep.subr.bf16.mxu1 %v23847_v7  ;;  %v24392_v7 = vld [vmem:[#allocation2 + $0x298] sm:$0xff] }
 0x60f   :  { %22544 = vmatmul.mubr.msk.bf16.gmra.mrb[160].mxu0 %vm27_vm3, %v26329_v18  ;;  %v23848_v18 = vld [vmem:[%s28758_s5] sm:$0xff]  }
 0x610   :  { %22547 = vmatprep.mubr.msk.bf16.mxu0 %vm27_vm3, %v26333_v50  ;;  %20624 = vmatpush3.bf16.msra.mxu1 %v23848_v18  ;;  %v10120_v50 = vld [vmem:[#allocation2 + $0x310] sm:$0xff]  ;;  %v24393_v18 = vld [vmem:[#allocation2 + $0x2a0] sm:$0xff] }
 0x617   :  { %22548 = vmatmul.mubr.msk.bf16.gmra.mrb[164].mxu0 %vm27_vm3, %v26337_v10  ;;  %v23852_v10 = vld [vmem:[%s28758_s5 + $0x10] sm:$0xff]  }
 0x618   :  { %22551 = vmatprep.mubr.msk.bf16.mxu0 %vm27_vm3, %v26341_v29  ;;  %v23851_v29 = vld [vmem:[%s28758_s5 + $0x50] sm:$0xff]  }
 0x61f   :  { %22552 = vmatmul.mubr.msk.bf16.gmra.mrb[168].mxu0 %vm27_vm3, %v26345_v16  ;;  %v23854_v16 = vld [vmem:[%s28758_s5 + $0x18] sm:$0xff]  }
 0x620   :  { %22555 = vmatprep.mubr.msk.bf16.mxu0 %vm27_vm3, %v26349_v35  ;;  %v23849_v35 = vld [vmem:[%s28758_s5 + $0x48] sm:$0xff]  }
 0x621   :  { %20625 = vmatprep.subr.bf16.mxu1 %v23849_v35  ;;  %v24394_v35 = vld [vmem:[#allocation2 + $0x2a8] sm:$0xff] }
 0x627   :  { %22556 = vmatmul.mubr.msk.bf16.gmra.mrb[172].mxu0 %vm27_vm3, %v26055_v33  ;;  %v23850_v33 = vld [vmem:[%s28758_s5 + $0x8] sm:$0xff]  }
 0x628   :  { %22559 = vmatprep.mubr.msk.bf16.mxu0 %vm27_vm3, %v26519_v2  ;;  %20626 = vmatpush3.bf16.msra.mxu1 %v23850_v33  ;;  %v23861_v2 = vld [vmem:[%s28758_s5 + $0x78] sm:$0xff]   ;;  %v24395_v33 = vld [vmem:[#allocation2 + $0x2b0] sm:$0xff] }
 0x629   :  { %20627 = vmatprep.subr.bf16.mxu1 %v23851_v29  ;;  %v24396_v29 = vld [vmem:[#allocation2 + $0x2b8] sm:$0xff] }
 0x62c   :  { %20628 = vmatpush3.bf16.msra.mxu1 %v23852_v10  ;;  %v26794_v10 = vld [vmem:[%s28759_s4] ss:$0 sm:$0xff] }
 0x62f   :  { %22560 = vmatmul.mubr.msk.bf16.gmra.mrb[176].mxu0 %vm27_vm3, %v26521_v51  ;;  %v23862_v51 = vld [vmem:[%s28758_s5 + $0x38] sm:$0xff]  }
 0x630   :  { %22563 = vmatprep.mubr.msk.bf16.mxu0 %vm27_vm3, %v26527_v38  ;;  %v24370_v38 = vld [vmem:[#allocation2 + $0x178] sm:$0xff] }
 0x637   :  { %22564 = vmatmul.mubr.msk.bf16.gmra.mrb[180].mxu0 %vm27_vm3, %v26529_v11  ;;  %v11299_v11 = vld [vmem:[#allocation2 + $0x188] sm:$0xff] }
 0x638   :  { %22567 = vmatprep.mubr.msk.bf16.mxu0 %vm27_vm3, %v26535_v15  ;;  %v23863_v15 = vld [vmem:[%s28758_s5 + $0xc0] sm:$0xff]  }
 0x63f   :  { %22568 = vmatmul.mubr.msk.bf16.gmra.mrb[184].mxu0 %vm27_vm3, %v26537_v39  ;;  %v24371_v39 = vld [vmem:[#allocation2 + $0x1a8] sm:$0xff] }
 0x640   :  { %22571 = vmatprep.mubr.msk.bf16.mxu0 %vm27_vm3, %v26543_v17  ;;  %v24372_v17 = vld [vmem:[#allocation2 + $0x1b0] sm:$0xff] }
 0x647   :  { %22572 = vmatmul.mubr.msk.bf16.gmra.mrb[188].mxu0 %vm27_vm3, %v10120_v50  ;;  %v11330_v50 = vld [vmem:[#allocation2 + $0x2c0] sm:$0xff] }
 0x648   :  { %22583 = vmatprep.mubr.msk.bf16.mxu0 %vm27_vm3, %v26364_v54  ;;  %v23853_v54 = vld [vmem:[%s28758_s5 + $0x58] sm:$0xff]  }
 0x649   :  { %20629 = vmatprep.subr.bf16.mxu1 %v23853_v54 }
 0x64a   :  { %20630 = vmatpush3.bf16.msra.mxu1 %v23854_v16  ;;  %v28879_v16 = vld [vmem:[#allocation5_spill] sm:$0xff] }
 0x64f   :  { %22584 = vmatmul.mubr.msk.bf16.vlgmr.msra.gmra.mrb[64].mxu0 %vm27_vm3, %v26372_v62  ;;  %v23856_v62 = vld [vmem:[%s28758_s5 + $0x20] sm:$0xff]  }
 0x650   :  { %22587 = vmatprep.mubr.msk.bf16.mxu0 %vm27_vm3, %v26376_v20  ;;  %v24365_v20 = vld [vmem:[#allocation2 + $0xe8] sm:$0xff] }
 0x657   :  { %22588 = vmatmul.mubr.msk.bf16.gmra.mrb[68].mxu0 %vm27_vm3, %v26380_v36  ;;  %v23858_v36 = vld [vmem:[%s28758_s5 + $0x28] sm:$0xff]  }
 0x658   :  { %22591 = vmatprep.mubr.msk.bf16.mxu0 %vm27_vm3, %v26384_v52  ;;  %v23855_v52 = vld [vmem:[%s28758_s5 + $0x60] sm:$0xff]  }
 0x659   :  { %20631 = vmatprep.subr.bf16.mxu1 %v23855_v52 }
 0x65a   :  { %20632 = vmatpush3.bf16.msra.mxu1 %v23856_v62  ;;  %v28880_v62 = vld [vmem:[#allocation6_spill] sm:$0xff] }
 0x65f   :  { %22592 = vmatmul.mubr.msk.bf16.gmra.mrb[72].mxu0 %vm27_vm3, %v26388_v37  ;;  %v23857_v37 = vld [vmem:[%s28758_s5 + $0x68] sm:$0xff]  }
 0x660   :  { %22595 = vmatprep.mubr.msk.bf16.mxu0 %vm27_vm3, %v26567_v49  ;;  %20633 = vmatprep.subr.bf16.mxu1 %v23857_v37  ;;  %v24373_v49 = vld [vmem:[#allocation2 + $0x1b8] sm:$0xff] }
 0x661   :  { %20634 = vmatpush3.bf16.msra.mxu1 %v23858_v36 }
 0x667   :  { %22596 = vmatmul.mubr.msk.bf16.gmra.mrb[76].mxu0 %vm27_vm3, %v24365_v20 }
 0x668   :  { %22599 = vmatprep.mubr.msk.bf16.mxu0 %vm27_vm3, %v26397_v0  ;;  %v24367_v0 = vld [vmem:[#allocation2 + $0x160] sm:$0xff] }
 0x66f   :  { %22600 = vmatmul.mubr.msk.bf16.gmra.mrb[80].mxu0 %vm27_vm3, %v26401_v45  ;;  %v23860_v45 = vld [vmem:[%s28758_s5 + $0x30] sm:$0xff]  }
 0x670   :  { %22603 = vmatprep.mubr.msk.bf16.mxu0 %vm27_vm3, %v26405_v21  ;;  %v11291_v21 = vld [vmem:[#allocation2 + $0x138] sm:$0xff] }
 0x677   :  { %22604 = vmatmul.mubr.msk.bf16.gmra.mrb[84].mxu0 %vm27_vm3, %v26409_v26  ;;  %v24368_v26 = vld [vmem:[#allocation2 + $0x168] sm:$0xff] }
 0x678   :  { %22607 = vmatprep.mubr.msk.bf16.mxu0 %vm27_vm3, %v26413_v58  ;;  %v23859_v58 = vld [vmem:[%s28758_s5 + $0x70] sm:$0xff]  }
 0x679   :  { %20635 = vmatprep.subr.bf16.mxu1 %v23859_v58  ;;  %v28881_v58 = vld [vmem:[#allocation7_spill] sm:$0xff] }
 0x67a   :  { %20636 = vmatpush3.bf16.msra.mxu1 %v23860_v45 }
 0x67b   :  { %20637 = vmatprep.subr.bf16.mxu1 %v23861_v2 }
 0x67e   :  { %20638 = vmatpush3.bf16.msra.mxu1 %v23862_v51  ;;  %v24397_v51 = vld [vmem:[#allocation2 + $0x2c8] sm:$0xff] }
 0x67f   :  { %22608 = vmatmul.mubr.msk.bf16.gmra.mrb[88].mxu0 %vm27_vm3, %v26417_v1  ;;  %v24366_v1 = vld [vmem:[#allocation2 + $0x158] sm:$0xff]  ;;  %20645 = vmatprep.subr.bf16.mxu1 %v23863_v15  ;;  %v24398_v15 = vld [vmem:[#allocation2 + $0x2e0] sm:$0xff] }
 0x680   :  { %22611 = vmatprep.mubr.msk.bf16.mxu0 %vm27_vm3, %v26585_v27  ;;  %v24374_v27 = vld [vmem:[#allocation2 + $0x1c0] sm:$0xff] }
 0x687   :  { %22612 = vmatmul.mubr.msk.bf16.gmra.mrb[92].mxu0 %vm27_vm3, %v11291_v21 }
 0x688   :  { %22615 = vmatprep.mubr.msk.bf16.mxu0 %vm27_vm3, %v26429_v30  ;;  %v24369_v30 = vld [vmem:[#allocation2 + $0x170] sm:$0xff] }
 0x68f   :  { %22616 = vmatmul.mubr.msk.bf16.gmra.mrb[96].mxu0 %vm27_vm3, %v24366_v1 }
 0x690   :  { %22619 = vmatprep.mubr.msk.bf16.mxu0 %vm27_vm3, %v24367_v0 }
 0x697   :  { %22620 = vmatmul.mubr.msk.bf16.gmra.mrb[100].mxu0 %vm27_vm3, %v24368_v26  ;;  %v28882_v26 = vld [vmem:[#allocation8_spill] sm:$0xff] }
 0x698   :  { %22623 = vmatprep.mubr.msk.bf16.mxu0 %vm27_vm3, %v24369_v30 }
 0x69f   :  { %22624 = vmatmul.mubr.msk.bf16.gmra.mrb[104].mxu0 %vm27_vm3, %v24370_v38 }
 0x6a0   :  { %22627 = vmatprep.mubr.msk.bf16.mxu0 %vm27_vm3, %v26606_v28  ;;  %v24375_v28 = vld [vmem:[#allocation2 + $0x1c8] sm:$0xff] }
 0x6a7   :  { %22628 = vmatmul.mubr.msk.bf16.gmra.mrb[108].mxu0 %vm27_vm3, %v11299_v11 }
 0x6a8   :  { %22631 = vmatprep.mubr.msk.bf16.mxu0 %vm27_vm3, %v26611_v25  ;;  %v24376_v25 = vld [vmem:[#allocation2 + $0x1d0] sm:$0xff] }
 0x6af   :  { %22632 = vmatmul.mubr.msk.bf16.gmra.mrb[112].mxu0 %vm27_vm3, %v24371_v39 }
 0x6b0   :  { %22635 = vmatprep.mubr.msk.bf16.mxu0 %vm27_vm3, %v24372_v17 }
 0x6b7   :  { %22636 = vmatmul.mubr.msk.bf16.gmra.mrb[116].mxu0 %vm27_vm3, %v24373_v49 }
 0x6b8   :  { %22639 = vmatprep.mubr.msk.bf16.mxu0 %vm27_vm3, %v24374_v27 }
 0x6bf   :  { %22640 = vmatmul.mubr.msk.bf16.gmra.mrb[120].mxu0 %vm27_vm3, %v24375_v28  ;;  %v28883_v28 = vld [vmem:[#allocation9_spill] sm:$0xff] }
 0x6c0   :  { %22643 = vmatprep.mubr.msk.bf16.mxu0 %vm27_vm3, %v24376_v25 }
 0x6c7   :  { %22644 = vmatmul.mubr.msk.bf16.gmra.mrb[124].mxu0 %vm27_vm3, %v11307_v14 }
 0x6c8   :  { %22647 = vmatprep.mubr.msk.bf16.mxu0 %vm27_vm3, %v24377_v46 }
 0x6cf   :  { %22648 = vmatmul.mubr.msk.bf16.gmra.mrb[128].mxu0 %vm27_vm3, %v24378_v34  ;;  %v23864_v34 = vld [vmem:[%s28758_s5 + $0x80] sm:$0xff]  }
 0x6d0   :  { %22651 = vmatprep.mubr.msk.bf16.mxu0 %vm27_vm3, %v24379_v41 }
 0x6d7   :  { %22652 = vmatmul.mubr.msk.bf16.gmra.mrb[132].mxu0 %vm27_vm3, %v24380_v60  ;;  %v28884_v60 = vld [vmem:[#allocation10_spill] sm:$0xff] }
 0x6d8   :  { %22655 = vmatprep.mubr.msk.bf16.mxu0 %vm27_vm3, %v24381_v61 }
 0x6df   :  { %22656 = vmatmul.mubr.msk.bf16.gmra.mrb[136].mxu0 %vm27_vm3, %v24382_v23 }
 0x6e0   :  { %22659 = vmatprep.mubr.msk.bf16.mxu0 %vm27_vm3, %v24383_v6  ;;  %v23865_v6 = vld [vmem:[%s28758_s5 + $0xc8] sm:$0xff]  }
 0x6e7   :  { %22660 = vmatmul.mubr.msk.bf16.gmra.mrb[140].mxu0 %vm27_vm3, %v11315_v42 }
 0x6e8   :  { %22663 = vmatprep.mubr.msk.bf16.mxu0 %vm27_vm3, %v24384_v55  ;;  %v28885_v55 = vld [vmem:[#allocation11_spill] sm:$0xff] }
 0x6ef   :  { %22664 = vmatmul.mubr.msk.bf16.gmra.mrb[144].mxu0 %vm27_vm3, %v24385_v59 }
 0x6f0   :  { %22667 = vmatprep.mubr.msk.bf16.mxu0 %vm27_vm3, %v24386_v48 }
 0x6f7   :  { %22668 = vmatmul.mubr.msk.bf16.gmra.mrb[148].mxu0 %vm27_vm3, %v24387_v13 }
 0x6f8   :  { %22671 = vmatprep.mubr.msk.bf16.mxu0 %vm27_vm3, %v24388_v32  ;;  %v28886_v32 = vld [vmem:[#allocation12_spill] sm:$0xff] }
 0x6ff   :  { %22672 = vmatmul.mubr.msk.bf16.gmra.mrb[152].mxu0 %vm27_vm3, %v24389_v22 }
 0x700   :  { %22675 = vmatprep.mubr.msk.bf16.mxu0 %vm27_vm3, %v24390_v9 }
 0x707   :  { %22676 = vmatmul.mubr.msk.bf16.gmra.mrb[156].mxu0 %vm27_vm3, %v11323_v19  ;;  %v24399_v19 = vld [vmem:[#allocation2 + $0x2e8] sm:$0xff] }
 0x708   :  { %22679 = vmatprep.mubr.msk.bf16.mxu0 %vm27_vm3, %v24391_v24  ;;  %v23866_v24 = vld [vmem:[%s28758_s5 + $0x88] sm:$0xff]  }
 0x70f   :  { %22680 = vmatmul.mubr.msk.bf16.gmra.mrb[160].mxu0 %vm27_vm3, %v24392_v7 }
 0x710   :  { %22683 = vmatprep.mubr.msk.bf16.mxu0 %vm27_vm3, %v24393_v18 }
 0x717   :  { %22684 = vmatmul.mubr.msk.bf16.gmra.mrb[164].mxu0 %vm27_vm3, %v24394_v35  ;;  %v23867_v35 = vld [vmem:[%s28758_s5 + $0xd0] sm:$0xff]  }
 0x718   :  { %22687 = vmatprep.mubr.msk.bf16.mxu0 %vm27_vm3, %v24395_v33  ;;  %v24400_v33 = vld [vmem:[#allocation2 + $0x2f0] sm:$0xff] }
 0x71f   :  { %22688 = vmatmul.mubr.msk.bf16.gmra.mrb[168].mxu0 %vm27_vm3, %v24396_v29 }
 0x720   :  { %22691 = vmatprep.mubr.msk.bf16.mxu0 %vm27_vm3, %v11330_v50 }
 0x722   :  { %v22585_v54 = vpop.f32.mrb[64].mxu0 }
 0x723   :  { %v22719_v20 = vadd.f32 %v22585_v54, %v28879_v16  ;;  %v11599_v52 = vpop.f32.mrb[65].mxu0 }
 0x724   :  { %v22720_v37 = vadd.f32 %v11599_v52, %v28880_v62  ;;  %v22586_v36 = vpop.f32.mrb[66].mxu0 }
 0x725   :  { %v12511_v21 = vadd.f32 %v22719_v20, %v26794_v10  ;;  %v22721_v45 = vadd.f32 %v22586_v36, %v28881_v58  ;;  %v11602_v1 = vpop.f32.mrb[67].mxu0  ;;  %v28887_v20 = vld [vmem:[#allocation13_spill] sm:$0xff]  ;;  %v23868_v36 = vld [vmem:[%s28758_s5 + $0x90] sm:$0xff]   ;;  %v28888_v58 = vld [vmem:[#allocation14_spill] sm:$0xff] }
 0x726   :  { %v12503_v0 = vadd.f32 %v22720_v37, %v26794_v10  ;;  %v22722_v30 = vadd.f32 %v11602_v1, %v28882_v26 }
 0x727   :  { %v12512_v2 = vadd.f32 %v22721_v45, %v26794_v10  ;;  %22692 = vmatmul.mubr.msk.bf16.gmra.mrb[172].mxu0 %vm27_vm3, %v24397_v51  ;;  %v12513_v38 = vmax.f32 %v12511_v21, 0.0 }
 0x728   :  { %v12504_v11 = vadd.f32 %v22722_v30, %v26794_v10  ;;  %22695 = vmatprep.mubr.msk.bf16.mxu0 %vm27_vm3, %v24398_v15  ;;  %v12505_v39 = vmax.f32 %v12503_v0, 0.0  ;;  %v23869_v0 = vld [vmem:[%s28758_s5 + $0xd8] sm:$0xff]   ;;  %v28889_v30 = vld [vmem:[#allocation15_spill] sm:$0xff] }
 0x729   :  { %v12514_v17 = vmax.f32 %v12512_v2, 0.0 }
 0x72a   :  { %v12506_v49 = vmax.f32 %v12504_v11, 0.0  ;;  %v22589_v27 = vpop.f32.mrb[68].mxu0  ;;  %v28890_v11 = vld [vmem:[#allocation16_spill] sm:$0xff] }
 0x72b   :  { %v22723_v25 = vadd.f32 %v22589_v27, %v28883_v28  ;;  %v11615_v14 = vpop.f32.mrb[69].mxu0  ;;  %v12515_v46 = vpack.c.bf16 %v12514_v17, %v12513_v38  ;;  %v24401_v17 = vld [vmem:[#allocation2 + $0x2f8] sm:$0xff] }
 0x72c   :  { %v12507_v41 = vpack.c.bf16 %v12506_v49, %v12505_v39  ;;  %v22724_v61 = vadd.f32 %v11615_v14, %v28884_v60  ;;  %v22590_v23 = vpop.f32.mrb[70].mxu0  ;;  %v23870_v49 = vld [vmem:[%s28758_s5 + $0x98] sm:$0xff]   ;;  %v24402_v14 = vld [vmem:[#allocation2 + $0x300] sm:$0xff] }
 0x72d   :  { %v12527_v42 = vadd.f32 %v22723_v25, %v26794_v10  ;;  %v22725_v59 = vadd.f32 %v22590_v23, %v28885_v55  ;;  %v11618_v48 = vpop.f32.mrb[71].mxu0  ;;  %17212 = vmatprep.mubr.bf16.mxu1 %v12515_v46  ;;  %v23871_v25 = vld [vmem:[%s28758_s5 + $0xe0] sm:$0xff]  }
 0x72e   :  { %v12519_v13 = vadd.f32 %v22724_v61, %v26794_v10  ;;  %v22726_v22 = vadd.f32 %v11618_v48, %v28886_v32  ;;  %17213 = vmatmul.mubr.bf16.vlgmr.msra.gmra.mrb[192].mxu1 %v12507_v41  ;;  %v28891_v61 = vld [vmem:[#allocation17_spill] sm:$0xff]  ;;  %v28892_v48 = vld [vmem:[#allocation18_spill] sm:$0xff] }
 0x72f   :  { %v12528_v9 = vadd.f32 %v22725_v59, %v26794_v10  ;;  %20646 = vmatpush3.bf16.msra.mxu1 %v23864_v34  ;;  %22696 = vmatmul.mubr.msk.bf16.gmra.mrb[176].mxu0 %vm27_vm3, %v24399_v19  ;;  %v12529_v7 = vmax.f32 %v12527_v42, 0.0  ;;  %v23872_v42 = vld [vmem:[%s28758_s5 + $0xa0] sm:$0xff]   ;;  %v28893_v19 = vld [vmem:[#allocation19_spill] sm:$0xff] }
 0x730   :  { %v12520_v18 = vadd.f32 %v22726_v22, %v26794_v10  ;;  %20647 = vmatprep.subr.bf16.mxu1 %v23865_v6  ;;  %22699 = vmatprep.mubr.msk.bf16.mxu0 %vm27_vm3, %v24400_v33  ;;  %v12521_v50 = vmax.f32 %v12519_v13, 0.0  ;;  %v23873_v22 = vld [vmem:[%s28758_s5 + $0xe8] sm:$0xff]  }
 0x731   :  { %v12530_v29 = vmax.f32 %v12528_v9, 0.0 }
 0x732   :  { %v12522_v54 = vmax.f32 %v12520_v18, 0.0  ;;  %v22593_v16 = vpop.f32.mrb[72].mxu0 }
 0x733   :  { %v22727_v52 = vadd.f32 %v22593_v16, %v28887_v20  ;;  %20648 = vmatpush3.bf16.msra.mxu1 %v23866_v24  ;;  %v11631_v62 = vpop.f32.mrb[73].mxu0  ;;  %v12531_v37 = vpack.c.bf16 %v12530_v29, %v12529_v7  ;;  %v24403_v29 = vld [vmem:[#allocation2 + $0x308] sm:$0xff] }
 0x734   :  { %v26832_v21 = vpack.c.bf16 %v12522_v54, %v12521_v50  ;;  %v22728_v45 = vadd.f32 %v11631_v62, %v28888_v58  ;;  %v22594_v1 = vpop.f32.mrb[74].mxu0  ;;  %20649 = vmatprep.subr.bf16.mxu1 %v23867_v35  ;;  %v28894_v35 = vld [vmem:[#allocation20_spill] sm:$0xff]  ;;  %v23874_v54 = vld [vmem:[%s28758_s5 + $0xa8] sm:$0xff]   ;;  %v24404_v62 = vld [vmem:[#allocation2 + $0x310] sm:$0xff] }
 0x735   :  { %v12543_v26 = vadd.f32 %v22727_v52, %v26794_v10  ;;  %v22729_v2 = vadd.f32 %v22594_v1, %v28889_v30  ;;  %v11634_v51 = vpop.f32.mrb[75].mxu0  ;;  %17253 = vmatprep.mubr.bf16.mxu1 %v12531_v37  ;;  %v23875_v52 = vld [vmem:[%s28758_s5 + $0xf0] sm:$0xff]  }
 0x736   :  { %v12535_v38 = vadd.f32 %v22728_v45, %v26794_v10  ;;  %v22730_v15 = vadd.f32 %v11634_v51, %v28890_v11  ;;  %v23876_v58 = vld [vmem:[%s28758_s5 + $0xb0] sm:$0xff]   ;;  %v28896_v11 = vld [vmem:[#allocation22_spill] sm:$0xff] }
 0x737   :  { %v12544_v39 = vadd.f32 %v22729_v2, %v26794_v10  ;;  %20650 = vmatpush3.bf16.msra.mxu1 %v23868_v36  ;;  %22700 = vmatmul.mubr.msk.bf16.gmra.mrb[180].mxu0 %vm27_vm3, %v24401_v17  ;;  %v12545_v27 = vmax.f32 %v12543_v26, 0.0  ;;  %v11339_v2 = vld [vmem:[#allocation2 + $0x318] sm:$0xff] }
 0x738   :  { %v12536_v28 = vadd.f32 %v22730_v15, %v26794_v10  ;;  %20651 = vmatprep.subr.bf16.mxu1 %v23869_v0  ;;  %22703 = vmatprep.mubr.msk.bf16.mxu0 %vm27_vm3, %v24402_v14  ;;  %v12537_v46 = vmax.f32 %v12535_v38, 0.0  ;;  %v28895_v0 = vld [vmem:[#allocation21_spill] sm:$0xff]  ;;  %v23877_v17 = vld [vmem:[%s28758_s5 + $0xf8] sm:$0xff]  }
 0x739   :  { %v12546_v34 = vmax.f32 %v12544_v39, 0.0 }
 0x73a   :  { %v12538_v41 = vmax.f32 %v12536_v28, 0.0  ;;  %v22597_v60 = vpop.f32.mrb[76].mxu0 }
 0x73b   :  { %v22731_v23 = vadd.f32 %v22597_v60, %v28891_v61  ;;  %20652 = vmatpush3.bf16.msra.mxu1 %v23870_v49  ;;  %v11647_v6 = vpop.f32.mrb[77].mxu0  ;;  %v26856_v55 = vpack.c.bf16 %v12546_v34, %v12545_v27  ;;  %v28897_v27 = vld [vmem:[#allocation23_spill] sm:$0xff]  ;;  %v23878_v60 = vld [vmem:[%s28758_s5 + $0xb8] sm:$0xff]  }
 0x73c   :  { %v26858_v59 = vpack.c.bf16 %v12538_v41, %v12537_v46  ;;  %v22732_v13 = vadd.f32 %v11647_v6, %v28892_v48  ;;  %v22598_v32 = vpop.f32.mrb[78].mxu0  ;;  %20653 = vmatprep.subr.bf16.mxu1 %v23871_v25  ;;  %v28898_v46 = vld [vmem:[#allocation24_spill] sm:$0xff]  ;;  %v23879_v6 = vld [vmem:[%s28758_s5 + $0x140] sm:$0xff]  }
 0x73d   :  { %v12559_v9 = vadd.f32 %v22731_v23, %v26794_v10  ;;  %v22733_v24 = vadd.f32 %v22598_v32, %v28893_v19  ;;  %v11650_v7 = vpop.f32.mrb[79].mxu0 }
 0x73e   :  { %v12551_v18 = vadd.f32 %v22732_v13, %v26794_v10  ;;  %v22734_v33 = vadd.f32 %v11650_v7, %v28894_v35  ;;  %v28900_v35 = vld [vmem:[#allocation26_spill] sm:$0xff] }
 0x73f   :  { %v12560_v50 = vadd.f32 %v22733_v24, %v26794_v10  ;;  %20654 = vmatpush3.bf16.msra.mxu1 %v23872_v42  ;;  %22704 = vmatmul.mubr.msk.bf16.gmra.mrb[184].mxu0 %vm27_vm3, %v24403_v29  ;;  %v12561_v16 = vmax.f32 %v12559_v9, 0.0  ;;  %v23880_v24 = vld [vmem:[%s28758_s5 + $0x100] sm:$0xff]   ;;  %v23881_v29 = vld [vmem:[%s28758_s5 + $0x148] sm:$0xff]  }
 0x740   :  { %v12552_v20 = vadd.f32 %v22734_v33, %v26794_v10  ;;  %20655 = vmatprep.subr.bf16.mxu1 %v23873_v22  ;;  %22707 = vmatprep.mubr.msk.bf16.mxu0 %vm27_vm3, %v24404_v62  ;;  %v12553_v37 = vmax.f32 %v12551_v18, 0.0  ;;  %v28899_v22 = vld [vmem:[#allocation25_spill] sm:$0xff] }
 0x741   :  { %v12562_v36 = vmax.f32 %v12560_v50, 0.0 }
 0x742   :  { %v12554_v45 = vmax.f32 %v12552_v20, 0.0  ;;  %v22601_v1 = vpop.f32.mrb[80].mxu0 }
 0x743   :  { %v22735_v26 = vadd.f32 %v22601_v1, %v28895_v0  ;;  %20656 = vmatpush3.bf16.msra.mxu1 %v23874_v54  ;;  %v11663_v30 = vpop.f32.mrb[81].mxu0  ;;  %v26882_v51 = vpack.c.bf16 %v12562_v36, %v12561_v16  ;;  %v28901_v16 = vld [vmem:[#allocation27_spill] sm:$0xff] }
 0x744   :  { %v26884_v38 = vpack.c.bf16 %v12554_v45, %v12553_v37  ;;  %v22736_v15 = vadd.f32 %v11663_v30, %v28896_v11  ;;  %v22602_v39 = vpop.f32.mrb[82].mxu0  ;;  %20657 = vmatprep.subr.bf16.mxu1 %v23875_v52  ;;  %v28902_v37 = vld [vmem:[#allocation28_spill] sm:$0xff]  ;;  %v23882_v45 = vld [vmem:[%s28758_s5 + $0x108] sm:$0xff]  }
 0x745   :  { %v12575_v49 = vadd.f32 %v22735_v26, %v26794_v10  ;;  %v22737_v28 = vadd.f32 %v22602_v39, %v28897_v27  ;;  %v11666_v25 = vpop.f32.mrb[83].mxu0  ;;  %v23883_v26 = vld [vmem:[%s28758_s5 + $0x150] sm:$0xff]  }
 0x746   :  { %v12567_v14 = vadd.f32 %v22736_v15, %v26794_v10  ;;  %v22738_v34 = vadd.f32 %v11666_v25, %v28898_v46  ;;  %v28903_v15 = vld [vmem:[#allocation29_spill] sm:$0xff]  ;;  %v23885_v46 = vld [vmem:[%s28758_s5 + $0x158] sm:$0xff]  }
 0x747   :  { %v12576_v41 = vadd.f32 %v22737_v28, %v26794_v10  ;;  %20658 = vmatpush3.bf16.msra.mxu1 %v23876_v58  ;;  %22708 = vmatmul.mubr.msk.bf16.gmra.mrb[188].mxu0 %vm27_vm3, %v11339_v2  ;;  %v12577_v61 = vmax.f32 %v12575_v49, 0.0  ;;  %v28904_v28 = vld [vmem:[#allocation30_spill] sm:$0xff] }
 0x748   :  { %v12568_v23 = vadd.f32 %v22738_v34, %v26794_v10  ;;  %20659 = vmatprep.subr.bf16.mxu1 %v23877_v17  ;;  %v12569_v42 = vmax.f32 %v12567_v14, 0.0  ;;  %v23884_v17 = vld [vmem:[%s28758_s5 + $0x110] sm:$0xff]  }
 0x749   :  { %v12578_v48 = vmax.f32 %v12576_v41, 0.0  ;;  %v28905_v41 = vld [vmem:[#allocation31_spill] sm:$0xff] }
 0x74a   :  { %v12570_v13 = vmax.f32 %v12568_v23, 0.0  ;;  %v22605_v32 = vpop.f32.mrb[84].mxu0 }
 0x74b   :  { %v22739_v9 = vadd.f32 %v22605_v32, %v28899_v22  ;;  %20660 = vmatpush3.bf16.msra.mxu1 %v23878_v60  ;;  %v11679_v19 = vpop.f32.mrb[85].mxu0  ;;  %v26907_v7 = vpack.c.bf16 %v12578_v48, %v12577_v61 }
 0x74c   :  { %v26909_v18 = vpack.c.bf16 %v12570_v13, %v12569_v42  ;;  %v22740_v33 = vadd.f32 %v11679_v19, %v28900_v35  ;;  %v22606_v50 = vpop.f32.mrb[86].mxu0  ;;  %20667 = vmatprep.subr.bf16.mxu1 %v23879_v6  ;;  %v28906_v6 = vld [vmem:[#allocation32_spill] sm:$0xff] }
 0x74d   :  { %v12591_v54 = vadd.f32 %v22739_v9, %v26794_v10  ;;  %v22741_v20 = vadd.f32 %v22606_v50, %v28901_v16  ;;  %v11682_v52 = vpop.f32.mrb[87].mxu0  ;;  %v23886_v13 = vld [vmem:[%s28758_s5 + $0x118] sm:$0xff]   ;;  %v23887_v9 = vld [vmem:[%s28758_s5 + $0x160] sm:$0xff]  }
 0x74e   :  { %v12583_v62 = vadd.f32 %v22740_v33, %v26794_v10  ;;  %v22742_v36 = vadd.f32 %v11682_v52, %v28902_v37  ;;  %17254 = vmatmul.mubr.bf16.vlgmr.msra.gmra.mrb[196].mxu1 %v26832_v21  ;;  %v28907_v50 = vld [vmem:[#allocation33_spill] sm:$0xff] }
 0x74f   :  { %v12592_v58 = vadd.f32 %v22741_v20, %v26794_v10  ;;  %20668 = vmatpush3.bf16.msra.mxu1 %v23880_v24  ;;  %17294 = vmatprep.mubr.bf16.mxu1 %v26856_v55  ;;  %v12593_v1 = vmax.f32 %v12591_v54, 0.0  ;;  %v23888_v16 = vld [vmem:[%s28758_s5 + $0x120] sm:$0xff]  }
 0x750   :  { %v12584_v0 = vadd.f32 %v22742_v36, %v26794_v10  ;;  %20669 = vmatprep.subr.bf16.mxu1 %v23881_v29  ;;  %v12585_v30 = vmax.f32 %v12583_v62, 0.0  ;;  %v28908_v62 = vld [vmem:[#allocation34_spill] sm:$0xff] }
 0x751   :  { %v12594_v2 = vmax.f32 %v12592_v58, 0.0  ;;  %v23889_v58 = vld [vmem:[%s28758_s5 + $0x168] sm:$0xff]  }
 0x752   :  { %v12586_v21 = vmax.f32 %v12584_v0, 0.0  ;;  %v22609_v11 = vpop.f32.mrb[88].mxu0 }
 0x753   :  { %v22743_v39 = vadd.f32 %v22609_v11, %v28903_v15  ;;  %20670 = vmatpush3.bf16.msra.mxu1 %v23882_v45  ;;  %v11695_v55 = vpop.f32.mrb[89].mxu0  ;;  %v26933_v49 = vpack.c.bf16 %v12594_v2, %v12593_v1  ;;  %v28909_v1 = vld [vmem:[#allocation35_spill] sm:$0xff]  ;;  %v28910_v2 = vld [vmem:[#allocation36_spill] sm:$0xff]  ;;  %v23890_v15 = vld [vmem:[%s28758_s5 + $0x128] sm:$0xff]  }
 0x754   :  { %v26935_v27 = vpack.c.bf16 %v12586_v21, %v12585_v30  ;;  %v22744_v25 = vadd.f32 %v11695_v55, %v28904_v28  ;;  %v22610_v14 = vpop.f32.mrb[90].mxu0  ;;  %20671 = vmatprep.subr.bf16.mxu1 %v23883_v26 }
 0x755   :  { %v12607_v34 = vadd.f32 %v22743_v39, %v26794_v10  ;;  %v22745_v60 = vadd.f32 %v22610_v14, %v28905_v41  ;;  %v11698_v61 = vpop.f32.mrb[91].mxu0 }
 0x756   :  { %v12599_v23 = vadd.f32 %v22744_v25, %v26794_v10  ;;  %v22746_v42 = vadd.f32 %v11698_v61, %v28906_v6  ;;  %v23892_v61 = vld [vmem:[%s28758_s5 + $0x130] sm:$0xff]  }
 0x757   :  { %v12608_v48 = vadd.f32 %v22745_v60, %v26794_v10  ;;  %20672 = vmatpush3.bf16.msra.mxu1 %v23884_v17  ;;  %v12609_v32 = vmax.f32 %v12607_v34, 0.0  ;;  %v23891_v17 = vld [vmem:[%s28758_s5 + $0x170] sm:$0xff]   ;;  %v28911_v34 = vld [vmem:[#allocation37_spill] sm:$0xff] }
 0x758   :  { %v12600_v22 = vadd.f32 %v22746_v42, %v26794_v10  ;;  %20673 = vmatprep.subr.bf16.mxu1 %v23885_v46  ;;  %v12601_v19 = vmax.f32 %v12599_v23, 0.0  ;;  %v28912_v42 = vld [vmem:[#allocation38_spill] sm:$0xff] }
 0x759   :  { %v12610_v24 = vmax.f32 %v12608_v48, 0.0 }
 0x75a   :  { %v12602_v35 = vmax.f32 %v12600_v22, 0.0  ;;  %v22613_v33 = vpop.f32.mrb[92].mxu0 }
 0x75b   :  { %v22747_v29 = vadd.f32 %v22613_v33, %v28907_v50  ;;  %20674 = vmatpush3.bf16.msra.mxu1 %v23886_v13  ;;  %v11711_v54 = vpop.f32.mrb[93].mxu0  ;;  %v26957_v20 = vpack.c.bf16 %v12610_v24, %v12609_v32  ;;  %v23893_v32 = vld [vmem:[%s28758_s5 + $0x178] sm:$0xff]  }
 0x75c   :  { %v26959_v52 = vpack.c.bf16 %v12602_v35, %v12601_v19  ;;  %v22748_v37 = vadd.f32 %v11711_v54, %v28908_v62  ;;  %v22614_v36 = vpop.f32.mrb[94].mxu0  ;;  %20675 = vmatprep.subr.bf16.mxu1 %v23887_v9  ;;  %v28913_v9 = vld [vmem:[#allocation39_spill] sm:$0xff]  ;;  %v28914_v33 = vld [vmem:[#allocation40_spill] sm:$0xff] }
 0x75d   :  { %v12623_v45 = vadd.f32 %v22747_v29, %v26794_v10  ;;  %v22749_v0 = vadd.f32 %v22614_v36, %v28909_v1  ;;  %v11714_v26 = vpop.f32.mrb[95].mxu0  ;;  %v23894_v54 = vld [vmem:[%s28758_s5 + $0x138] sm:$0xff]  }
 0x75e   :  { %v12615_v30 = vadd.f32 %v22748_v37, %v26794_v10  ;;  %v22750_v21 = vadd.f32 %v11714_v26, %v28910_v2  ;;  %v23895_v37 = vld [vmem:[%s28758_s5 + $0x1c0] sm:$0xff]  }
 0x75f   :  { %v12624_v11 = vadd.f32 %v22749_v0, %v26794_v10  ;;  %20676 = vmatpush3.bf16.msra.mxu1 %v23888_v16  ;;  %v12625_v39 = vmax.f32 %v12623_v45, 0.0  ;;  %v28915_v0 = vld [vmem:[#allocation41_spill] sm:$0xff] }
 0x760   :  { %v12616_v55 = vadd.f32 %v22750_v21, %v26794_v10  ;;  %20677 = vmatprep.subr.bf16.mxu1 %v23889_v58  ;;  %v12617_v28 = vmax.f32 %v12615_v30, 0.0  ;;  %v23896_v2 = vld [vmem:[%s28758_s5 + $0x180] sm:$0xff]  }
 0x761   :  { %v12626_v25 = vmax.f32 %v12624_v11, 0.0 }
 0x762   :  { %v12618_v14 = vmax.f32 %v12616_v55, 0.0  ;;  %v22617_v46 = vpop.f32.mrb[96].mxu0 }
 0x763   :  { %v22751_v41 = vadd.f32 %v22617_v46, %v28911_v34  ;;  %20678 = vmatpush3.bf16.msra.mxu1 %v23890_v15  ;;  %v11727_v60 = vpop.f32.mrb[97].mxu0  ;;  %v26981_v23 = vpack.c.bf16 %v12626_v25, %v12625_v39  ;;  %v28916_v15 = vld [vmem:[#allocation42_spill] sm:$0xff]  ;;  %v28917_v25 = vld [vmem:[#allocation43_spill] sm:$0xff] }
 0x764   :  { %v26983_v6 = vpack.c.bf16 %v12618_v14, %v12617_v28  ;;  %v22752_v48 = vadd.f32 %v11727_v60, %v28912_v42  ;;  %v22618_v13 = vpop.f32.mrb[98].mxu0  ;;  %20679 = vmatprep.subr.bf16.mxu1 %v23891_v17  ;;  %v23897_v17 = vld [vmem:[%s28758_s5 + $0x1c8] sm:$0xff]  }
 0x765   :  { %v12639_v22 = vadd.f32 %v22751_v41, %v26794_v10  ;;  %v22753_v19 = vadd.f32 %v22618_v13, %v28913_v9  ;;  %v11730_v24 = vpop.f32.mrb[99].mxu0  ;;  %v28918_v41 = vld [vmem:[#allocation44_spill] sm:$0xff]  ;;  %v23898_v42 = vld [vmem:[%s28758_s5 + $0x188] sm:$0xff]  }
 0x766   :  { %v12631_v35 = vadd.f32 %v22752_v48, %v26794_v10  ;;  %v22754_v50 = vadd.f32 %v11730_v24, %v28914_v33  ;;  %v28919_v24 = vld [vmem:[#allocation45_spill] sm:$0xff]  ;;  %v23900_v33 = vld [vmem:[%s28758_s5 + $0x190] sm:$0xff]  }
 0x767   :  { %v12640_v29 = vadd.f32 %v22753_v19, %v26794_v10  ;;  %20680 = vmatpush3.bf16.msra.mxu1 %v23892_v61  ;;  %v12641_v16 = vmax.f32 %v12639_v22, 0.0 }
 0x768   :  { %v12632_v62 = vadd.f32 %v22754_v50, %v26794_v10  ;;  %20681 = vmatprep.subr.bf16.mxu1 %v23893_v32  ;;  %v12633_v36 = vmax.f32 %v12631_v35, 0.0  ;;  %v23899_v32 = vld [vmem:[%s28758_s5 + $0x1d0] sm:$0xff]  }
 0x769   :  { %v12642_v58 = vmax.f32 %v12640_v29, 0.0 }
 0x76a   :  { %v12634_v45 = vmax.f32 %v12632_v62, 0.0  ;;  %v22621_v1 = vpop.f32.mrb[100].mxu0 }
 0x76b   :  { %v22755_v26 = vadd.f32 %v22621_v1, %v28915_v0  ;;  %20682 = vmatpush3.bf16.msra.mxu1 %v23894_v54  ;;  %v11743_v30 = vpop.f32.mrb[101].mxu0  ;;  %v27005_v21 = vpack.c.bf16 %v12642_v58, %v12641_v16  ;;  %v28920_v54 = vld [vmem:[#allocation46_spill] sm:$0xff]  ;;  %v28921_v58 = vld [vmem:[#allocation47_spill] sm:$0xff] }
 0x76c   :  { %v27007_v11 = vpack.c.bf16 %v12634_v45, %v12633_v36  ;;  %v22756_v39 = vadd.f32 %v11743_v30, %v28916_v15  ;;  %v22622_v55 = vpop.f32.mrb[102].mxu0  ;;  %20689 = vmatprep.subr.bf16.mxu1 %v23895_v37  ;;  %v23901_v37 = vld [vmem:[%s28758_s5 + $0x1d8] sm:$0xff]  }
 0x76d   :  { %v12655_v28 = vadd.f32 %v22755_v26, %v26794_v10  ;;  %v22757_v14 = vadd.f32 %v22622_v55, %v28917_v25  ;;  %v11746_v46 = vpop.f32.mrb[103].mxu0  ;;  %v28922_v26 = vld [vmem:[#allocation48_spill] sm:$0xff] }
 0x76e   :  { %v12647_v34 = vadd.f32 %v22756_v39, %v26794_v10  ;;  %v22758_v60 = vadd.f32 %v11746_v46, %v28918_v41  ;;  %17295 = vmatmul.mubr.bf16.vlgmr.msra.gmra.mrb[200].mxu1 %v26858_v59  ;;  %v23902_v15 = vld [vmem:[%s28758_s5 + $0x198] sm:$0xff]  }
 0x76f   :  { %v12656_v61 = vadd.f32 %v22757_v14, %v26794_v10  ;;  %20690 = vmatpush3.bf16.msra.mxu1 %v23896_v2  ;;  %17335 = vmatprep.mubr.bf16.mxu1 %v26882_v51  ;;  %v12657_v48 = vmax.f32 %v12655_v28, 0.0 }
 0x770   :  { %v12648_v13 = vadd.f32 %v22758_v60, %v26794_v10  ;;  %20691 = vmatprep.subr.bf16.mxu1 %v23897_v17  ;;  %v12649_v22 = vmax.f32 %v12647_v34, 0.0  ;;  %v23903_v17 = vld [vmem:[%s28758_s5 + $0x1e0] sm:$0xff]  }
 0x771   :  { %v12658_v9 = vmax.f32 %v12656_v61, 0.0  ;;  %v28923_v34 = vld [vmem:[#allocation49_spill] sm:$0xff] }
 0x772   :  { %v12650_v59 = vmax.f32 %v12648_v13, 0.0  ;;  %v22625_v19 = vpop.f32.mrb[104].mxu0  ;;  %v23904_v61 = vld [vmem:[%s28758_s5 + $0x1a0] sm:$0xff]   ;;  %v28924_v13 = vld [vmem:[#allocation50_spill] sm:$0xff] }
 0x773   :  { %v22759_v35 = vadd.f32 %v22625_v19, %v28919_v24  ;;  %20692 = vmatpush3.bf16.msra.mxu1 %v23898_v42  ;;  %v11759_v51 = vpop.f32.mrb[105].mxu0  ;;  %v27031_v50 = vpack.c.bf16 %v12658_v9, %v12657_v48  ;;  %v23905_v9 = vld [vmem:[%s28758_s5 + $0x1e8] sm:$0xff]   ;;  %v28925_v19 = vld [vmem:[#allocation51_spill] sm:$0xff] }
 0x774   :  { %v27033_v29 = vpack.c.bf16 %v12650_v59, %v12649_v22  ;;  %v22760_v16 = vadd.f32 %v11759_v51, %v28920_v54  ;;  %v22626_v62 = vpop.f32.mrb[106].mxu0  ;;  %20693 = vmatprep.subr.bf16.mxu1 %v23899_v32 }
 0x775   :  { %v12671_v36 = vadd.f32 %v22759_v35, %v26794_v10  ;;  %v22761_v45 = vadd.f32 %v22626_v62, %v28921_v58  ;;  %v11762_v1 = vpop.f32.mrb[107].mxu0  ;;  %v23906_v62 = vld [vmem:[%s28758_s5 + $0x1a8] sm:$0xff]  }
 0x776   :  { %v12663_v0 = vadd.f32 %v22760_v16, %v26794_v10  ;;  %v22762_v30 = vadd.f32 %v11762_v1, %v28922_v26 }
 0x777   :  { %v12672_v2 = vadd.f32 %v22761_v45, %v26794_v10  ;;  %20694 = vmatpush3.bf16.msra.mxu1 %v23900_v33  ;;  %v12673_v39 = vmax.f32 %v12671_v36, 0.0  ;;  %v28926_v33 = vld [vmem:[#allocation52_spill] sm:$0xff]  ;;  %v27074_v36 = vld [vmem:[%s28759_s4] ss:$0 sm:$0xff]  ;;  %v23907_v45 = vld [vmem:[%s28758_s5 + $0x1f0] sm:$0xff]  }
 0x778   :  { %v12664_v55 = vadd.f32 %v22762_v30, %v26794_v10  ;;  %20695 = vmatprep.subr.bf16.mxu1 %v23901_v37  ;;  %v12665_v28 = vmax.f32 %v12663_v0, 0.0  ;;  %v28927_v30 = vld [vmem:[#allocation53_spill] sm:$0xff] }
 0x779   :  { %v12674_v25 = vmax.f32 %v12672_v2, 0.0 }
 0x77a   :  { %v12666_v14 = vmax.f32 %v12664_v55, 0.0  ;;  %v22629_v46 = vpop.f32.mrb[108].mxu0 }
 0x77b   :  { %v22763_v41 = vadd.f32 %v22629_v46, %v28923_v34  ;;  %20696 = vmatpush3.bf16.msra.mxu1 %v23902_v15  ;;  %v11775_v60 = vpop.f32.mrb[109].mxu0  ;;  %v27055_v42 = vpack.c.bf16 %v12674_v25, %v12673_v39  ;;  %v23908_v39 = vld [vmem:[%s28758_s5 + $0x1b0] sm:$0xff]   ;;  %v23909_v46 = vld [vmem:[%s28758_s5 + $0x1f8] sm:$0xff]  }
 0x77c   :  { %v27057_v48 = vpack.c.bf16 %v12666_v14, %v12665_v28  ;;  %v22764_v32 = vadd.f32 %v11775_v60, %v28924_v13  ;;  %v22630_v22 = vpop.f32.mrb[110].mxu0  ;;  %20697 = vmatprep.subr.bf16.mxu1 %v23903_v17  ;;  %v28928_v28 = vld [vmem:[#allocation54_spill] sm:$0xff] }
 0x77d   :  { %v12687_v59 = vadd.f32 %v22763_v41, %v26794_v10  ;;  %v22765_v24 = vadd.f32 %v22630_v22, %v28925_v19  ;;  %v11778_v35 = vpop.f32.mrb[111].mxu0  ;;  %v28929_v41 = vld [vmem:[#allocation55_spill] sm:$0xff] }
 0x77e   :  { %v12679_v51 = vadd.f32 %v22764_v32, %v26794_v10  ;;  %v22766_v54 = vadd.f32 %v11778_v35, %v28926_v33  ;;  %v28930_v32 = vld [vmem:[#allocation56_spill] sm:$0xff]  ;;  %v23911_v35 = vld [vmem:[%s28758_s5 + $0x240] sm:$0xff]  }
 0x77f   :  { %v12688_v16 = vadd.f32 %v22765_v24, %v26794_v10  ;;  %20698 = vmatpush3.bf16.msra.mxu1 %v23904_v61  ;;  %v12689_v37 = vmax.f32 %v12687_v59, 0.0  ;;  %v23910_v59 = vld [vmem:[%s28758_s5 + $0x1b8] sm:$0xff]  }
 0x780   :  { %v12680_v58 = vadd.f32 %v27074_v36, %v22766_v54  ;;  %20699 = vmatprep.subr.bf16.mxu1 %v23905_v9  ;;  %v12681_v1 = vmax.f32 %v12679_v51, 0.0 }
 0x781   :  { %v12690_v10 = vmax.f32 %v12688_v16, 0.0 }
 0x782   :  { %v12682_v0 = vmax.f32 %v12680_v58, 0.0  ;;  %v22633_v26 = vpop.f32.mrb[112].mxu0 }
 0x783   :  { %v22767_v2 = vadd.f32 %v22633_v26, %v28927_v30  ;;  %20700 = vmatpush3.bf16.msra.mxu1 %v23906_v62  ;;  %v11791_v15 = vpop.f32.mrb[113].mxu0  ;;  %v27084_v55 = vpack.c.bf16 %v12690_v10, %v12689_v37  ;;  %v28931_v62 = vld [vmem:[#allocation58_spill] sm:$0xff] }
 0x784   :  { %v27086_v17 = vpack.c.bf16 %v12682_v0, %v12681_v1  ;;  %v22768_v25 = vadd.f32 %v11791_v15, %v28928_v28  ;;  %v22634_v14 = vpop.f32.mrb[114].mxu0  ;;  %20701 = vmatprep.subr.bf16.mxu1 %v23907_v45  ;;  %v23912_v45 = vld [vmem:[%s28758_s5 + $0x200] sm:$0xff]   ;;  %v28932_v0 = vld [vmem:[#allocation59_spill] sm:$0xff] }
 0x785   :  { %v12703_v34 = vadd.f32 %v27074_v36, %v22767_v2  ;;  %v22769_v60 = vadd.f32 %v22634_v14, %v28929_v41  ;;  %v11794_v61 = vpop.f32.mrb[115].mxu0  ;;  %v23913_v2 = vld [vmem:[%s28758_s5 + $0x248] sm:$0xff]  }
 0x786   :  { %v12695_v13 = vadd.f32 %v27074_v36, %v22768_v25  ;;  %v22770_v22 = vadd.f32 %v11794_v61, %v28930_v32  ;;  %v23915_v32 = vld [vmem:[%s28758_s5 + $0x250] sm:$0xff]  }
 0x787   :  { %v12704_v9 = vadd.f32 %v27074_v36, %v22769_v60  ;;  %20702 = vmatpush3.bf16.msra.mxu1 %v23908_v39  ;;  %v12705_v19 = vmax.f32 %v12703_v34, 0.0  ;;  %v28933_v39 = vld [vmem:[#allocation60_spill] sm:$0xff]  ;;  %v23914_v60 = vld [vmem:[%s28758_s5 + $0x208] sm:$0xff]  }
 0x788   :  { %v12696_v24 = vadd.f32 %v27074_v36, %v22770_v22  ;;  %20703 = vmatprep.subr.bf16.mxu1 %v23909_v46  ;;  %v12697_v51 = vmax.f32 %v12695_v13, 0.0  ;;  %v28934_v46 = vld [vmem:[#allocation61_spill] sm:$0xff] }
 0x789   :  { %v12706_v33 = vmax.f32 %v12704_v9, 0.0 }
 0x78a   :  { %v12698_v54 = vmax.f32 %v12696_v24, 0.0  ;;  %v22637_v16 = vpop.f32.mrb[116].mxu0  ;;  %v23916_v24 = vld [vmem:[%s28758_s5 + $0x210] sm:$0xff]  }
 0x78b   :  { %v22771_v37 = vadd.f32 %v22637_v16, %v28931_v62  ;;  %20704 = vmatpush3.bf16.msra.mxu1 %v23910_v59  ;;  %v11807_v58 = vpop.f32.mrb[117].mxu0  ;;  %v27108_v1 = vpack.c.bf16 %v12706_v33, %v12705_v19  ;;  %v28935_v33 = vld [vmem:[#allocation62_spill] sm:$0xff]  ;;  %v23917_v62 = vld [vmem:[%s28758_s5 + $0x258] sm:$0xff]  }
 0x78c   :  { %v27110_v10 = vpack.c.bf16 %v12698_v54, %v12697_v51  ;;  %v22772_v26 = vadd.f32 %v11807_v58, %v28932_v0  ;;  %v22638_v30 = vpop.f32.mrb[118].mxu0  ;;  %20711 = vmatprep.subr.bf16.mxu1 %v23911_v35 }
 0x78d   :  { %v12719_v15 = vadd.f32 %v27074_v36, %v22771_v37  ;;  %v22773_v28 = vadd.f32 %v22638_v30, %v28933_v39  ;;  %v11810_v25 = vpop.f32.mrb[119].mxu0  ;;  %v28936_v37 = vld [vmem:[#allocation63_spill] sm:$0xff] }
 0x78e   :  { %v12711_v14 = vadd.f32 %v27074_v36, %v22772_v26  ;;  %v22774_v34 = vadd.f32 %v11810_v25, %v28934_v46  ;;  %17336 = vmatmul.mubr.bf16.vlgmr.msra.gmra.mrb[204].mxu1 %v26884_v38  ;;  %v28937_v26 = vld [vmem:[#allocation64_spill] sm:$0xff]  ;;  %v23919_v25 = vld [vmem:[%s28758_s5 + $0x260] sm:$0xff]  }
 0x78f   :  { %v12720_v41 = vadd.f32 %v27074_v36, %v22773_v28  ;;  %20712 = vmatpush3.bf16.msra.mxu1 %v23912_v45  ;;  %17376 = vmatprep.mubr.bf16.mxu1 %v26907_v7  ;;  %v12721_v61 = vmax.f32 %v12719_v15, 0.0  ;;  %v23918_v15 = vld [vmem:[%s28758_s5 + $0x218] sm:$0xff]  }
 0x790   :  { %v12712_v13 = vadd.f32 %v27074_v36, %v22774_v34  ;;  %20713 = vmatprep.subr.bf16.mxu1 %v23913_v2  ;;  %v12713_v22 = vmax.f32 %v12711_v14, 0.0 }
 0x791   :  { %v12722_v9 = vmax.f32 %v12720_v41, 0.0 }
 0x792   :  { %v12714_v38 = vmax.f32 %v12712_v13, 0.0  ;;  %v22641_v59 = vpop.f32.mrb[120].mxu0  ;;  %v23920_v13 = vld [vmem:[%s28758_s5 + $0x220] sm:$0xff]  }
 0x793   :  { %v22775_v19 = vadd.f32 %v22641_v59, %v25989_v40  ;;  %20714 = vmatpush3.bf16.msra.mxu1 %v23914_v60  ;;  %v11823_v7 = vpop.f32.mrb[121].mxu0  ;;  %v27134_v35 = vpack.c.bf16 %v12722_v9, %v12721_v61  ;;  %v23921_v59 = vld [vmem:[%s28758_s5 + $0x268] sm:$0xff]  }
 0x794   :  { %v27136_v51 = vpack.c.bf16 %v12714_v38, %v12713_v22  ;;  %v22776_v54 = vadd.f32 %v11823_v7, %v28935_v33  ;;  %v22642_v16 = vpop.f32.mrb[122].mxu0  ;;  %20715 = vmatprep.subr.bf16.mxu1 %v23915_v32 }
 0x795   :  { %v12735_v40 = vadd.f32 %v27074_v36, %v22775_v19  ;;  %v22777_v58 = vadd.f32 %v22642_v16, %v28936_v37  ;;  %v11826_v45 = vpop.f32.mrb[123].mxu0 }
 0x796   :  { %v12727_v0 = vadd.f32 %v27074_v36, %v22776_v54  ;;  %v22778_v30 = vadd.f32 %v11826_v45, %v28937_v26  ;;  %v23924_v26 = vld [vmem:[%s28758_s5 + $0x230] sm:$0xff]  }
 0x797   :  { %v12736_v2 = vadd.f32 %v27074_v36, %v22777_v58  ;;  %20716 = vmatpush3.bf16.msra.mxu1 %v23916_v24  ;;  %v12737_v39 = vmax.f32 %v12735_v40, 0.0 }
 0x798   :  { %v12728_v28 = vadd.f32 %v27074_v36, %v22778_v30  ;;  %20717 = vmatprep.subr.bf16.mxu1 %v23917_v62  ;;  %v12729_v14 = vmax.f32 %v12727_v0, 0.0 }
 0x799   :  { %v12738_v46 = vmax.f32 %v12736_v2, 0.0 }
 0x79a   :  { %v12730_v34 = vmax.f32 %v12728_v28, 0.0  ;;  %v22645_v41 = vpop.f32.mrb[124].mxu0  ;;  %v23925_v28 = vld [vmem:[%s28758_s5 + $0x278] sm:$0xff]  }
 0x79b   :  { %v22779_v60 = vadd.f32 %v22645_v41, %v26121_v56  ;;  %20718 = vmatpush3.bf16.msra.mxu1 %v23918_v15  ;;  %v11839_v61 = vpop.f32.mrb[125].mxu0  ;;  %v27158_v32 = vpack.c.bf16 %v12738_v46, %v12737_v39 }
 0x79c   :  { %v27160_v22 = vpack.c.bf16 %v12730_v34, %v12729_v14  ;;  %v22780_v9 = vadd.f32 %v11839_v61, %v26123_v57  ;;  %v22646_v38 = vpop.f32.mrb[126].mxu0  ;;  %20719 = vmatprep.subr.bf16.mxu1 %v23919_v25  ;;  %v23922_v57 = vld [vmem:[%s28758_s5 + $0x228] sm:$0xff]  }
 0x79d   :  { %v12751_v56 = vadd.f32 %v27074_v36, %v22779_v60  ;;  %v22781_v19 = vadd.f32 %v22646_v38, %v26125_v47  ;;  %v11842_v7 = vpop.f32.mrb[127].mxu0  ;;  %v23923_v47 = vld [vmem:[%s28758_s5 + $0x270] sm:$0xff]  }
 0x79e   :  { %v12743_v24 = vadd.f32 %v27074_v36, %v22780_v9  ;;  %v22782_v33 = vadd.f32 %v11842_v7, %v26127_v63 }
 0x79f   :  { %v12752_v54 = vadd.f32 %v27074_v36, %v22781_v19  ;;  %20720 = vmatpush3.bf16.msra.mxu1 %v23920_v13  ;;  %v12753_v16 = vmax.f32 %v12751_v56, 0.0  ;;  %v23928_v19 = vld [vmem:[%s28758_s5 + $0x280] sm:$0xff]  }
 0x7a0   :  { %v12744_v62 = vadd.f32 %v27074_v36, %v22782_v33  ;;  %20721 = vmatprep.subr.bf16.mxu1 %v23921_v59  ;;  %v12745_v40 = vmax.f32 %v12743_v24, 0.0 }
 0x7a1   :  { %v12754_v37 = vmax.f32 %v12752_v54, 0.0 }
 0x7a2   :  { %v12746_v58 = vmax.f32 %v12744_v62, 0.0  ;;  %v22649_v45 = vpop.f32.mrb[128].mxu0 }
 0x7a3   :  { %v22783_v63 = vadd.f32 %v22649_v45, %v26133_v4  ;;  %20722 = vmatpush3.bf16.msra.mxu1 %v23922_v57  ;;  %v11855_v0 = vpop.f32.mrb[129].mxu0  ;;  %v27182_v30 = vpack.c.bf16 %v12754_v37, %v12753_v16  ;;  %v23929_v57 = vld [vmem:[%s28758_s5 + $0x2c8] sm:$0xff]  }
 0x7a4   :  { %v27184_v2 = vpack.c.bf16 %v12746_v58, %v12745_v40  ;;  %v22784_v15 = vadd.f32 %v11855_v0, %v26135_v53  ;;  %v22650_v39 = vpop.f32.mrb[130].mxu0  ;;  %20723 = vmatprep.subr.bf16.mxu1 %v23923_v47  ;;  %v23926_v53 = vld [vmem:[%s28758_s5 + $0x238] sm:$0xff]  }
 0x7a5   :  { %v12767_v4 = vadd.f32 %v27074_v36, %v22783_v63  ;;  %v22785_v25 = vadd.f32 %v22650_v39, %v26137_v44  ;;  %v11858_v14 = vpop.f32.mrb[131].mxu0  ;;  %v23927_v44 = vld [vmem:[%s28758_s5 + $0x2c0] sm:$0xff]  }
 0x7a6   :  { %v12759_v46 = vadd.f32 %v27074_v36, %v22784_v15  ;;  %v22786_v34 = vadd.f32 %v11858_v14, %v26139_v43  ;;  %v23932_v15 = vld [vmem:[%s28758_s5 + $0x290] sm:$0xff]  }
 0x7a7   :  { %v12768_v41 = vadd.f32 %v27074_v36, %v22785_v25  ;;  %20724 = vmatpush3.bf16.msra.mxu1 %v23924_v26  ;;  %v12769_v60 = vmax.f32 %v12767_v4, 0.0  ;;  %v28938_v4 = vld [vmem:[#allocation65_spill] sm:$0xff] }
 0x7a8   :  { %v12760_v61 = vadd.f32 %v27074_v36, %v22786_v34  ;;  %20725 = vmatprep.subr.bf16.mxu1 %v23925_v28  ;;  %v12761_v13 = vmax.f32 %v12759_v46, 0.0  ;;  %v23933_v46 = vld [vmem:[%s28758_s5 + $0x2d8] sm:$0xff]   ;;  %v28939_v34 = vld [vmem:[#allocation66_spill] sm:$0xff] }
 0x7a9   :  { %v12770_v9 = vmax.f32 %v12768_v41, 0.0 }
 0x7aa   :  { %v12762_v38 = vmax.f32 %v12760_v61, 0.0  ;;  %v22653_v59 = vpop.f32.mrb[132].mxu0  ;;  %v28940_v61 = vld [vmem:[#allocation67_spill] sm:$0xff] }
 0x7ab   :  { %v22787_v43 = vadd.f32 %v22653_v59, %v26145_v5  ;;  %20726 = vmatpush3.bf16.msra.mxu1 %v23926_v53  ;;  %v11871_v56 = vpop.f32.mrb[133].mxu0  ;;  %v27206_v7 = vpack.c.bf16 %v12770_v9, %v12769_v60  ;;  %v23934_v9 = vld [vmem:[%s28758_s5 + $0x298] sm:$0xff]  }
 0x7ac   :  { %v27208_v24 = vpack.c.bf16 %v12762_v38, %v12761_v13  ;;  %v22788_v33 = vadd.f32 %v11871_v56, %v26147_v8  ;;  %v22654_v54 = vpop.f32.mrb[134].mxu0  ;;  %20733 = vmatprep.subr.bf16.mxu1 %v23927_v44  ;;  %v23930_v8 = vld [vmem:[%s28758_s5 + $0x288] sm:$0xff]  }
 0x7ad   :  { %v12783_v5 = vadd.f32 %v27074_v36, %v22787_v43  ;;  %v22789_v16 = vadd.f32 %v22654_v54, %v26149_v12  ;;  %v11874_v62 = vpop.f32.mrb[135].mxu0  ;;  %v23931_v12 = vld [vmem:[%s28758_s5 + $0x2d0] sm:$0xff]   ;;  %v23935_v43 = vld [vmem:[%s28758_s5 + $0x2e0] sm:$0xff]  }
 0x7ae   :  { %v12775_v47 = vadd.f32 %v27074_v36, %v22788_v33  ;;  %v22790_v40 = vadd.f32 %v11874_v62, %v26151_v3  ;;  %17377 = vmatmul.mubr.bf16.vlgmr.msra.gmra.mrb[208].mxu1 %v26909_v18  ;;  %v23936_v62 = vld [vmem:[%s28758_s5 + $0x2a0] sm:$0xff]  }
 0x7af   :  { %v12784_v37 = vadd.f32 %v27074_v36, %v22789_v16  ;;  %20734 = vmatpush3.bf16.msra.mxu1 %v23928_v19  ;;  %17417 = vmatprep.mubr.bf16.mxu1 %v26933_v49  ;;  %v12785_v58 = vmax.f32 %v12783_v5, 0.0 }
 0x7b0   :  { %v12776_v45 = vadd.f32 %v27074_v36, %v22790_v40  ;;  %20735 = vmatprep.subr.bf16.mxu1 %v23929_v57  ;;  %v12777_v3 = vmax.f32 %v12775_v47, 0.0  ;;  %v28941_v57 = vld [vmem:[#allocation68_spill] sm:$0xff] }
 0x7b1   :  { %v12786_v63 = vmax.f32 %v12784_v37, 0.0  ;;  %v28942_v37 = vld [vmem:[#allocation69_spill] sm:$0xff] }
 0x7b2   :  { %v12778_v18 = vmax.f32 %v12776_v45, 0.0  ;;  %v22657_v0 = vpop.f32.mrb[136].mxu0  ;;  %v23937_v45 = vld [vmem:[%s28758_s5 + $0x2e8] sm:$0xff]  }
 0x7b3   :  { %v22791_v26 = vadd.f32 %v22657_v0, %v26157_v31  ;;  %20736 = vmatpush3.bf16.msra.mxu1 %v23930_v8  ;;  %v11887_v49 = vpop.f32.mrb[137].mxu0  ;;  %v27232_v39 = vpack.c.bf16 %v12786_v63, %v12785_v58 }
 0x7b4   :  { %v27234_v28 = vpack.c.bf16 %v12778_v18, %v12777_v3  ;;  %v22792_v25 = vadd.f32 %v11887_v49, %v28938_v4  ;;  %v22658_v14 = vpop.f32.mrb[138].mxu0  ;;  %20737 = vmatprep.subr.bf16.mxu1 %v23931_v12  ;;  %v28943_v3 = vld [vmem:[#allocation70_spill] sm:$0xff] }
 0x7b5   :  { %v12799_v31 = vadd.f32 %v27074_v36, %v22791_v26  ;;  %v22793_v41 = vadd.f32 %v22658_v14, %v28939_v34  ;;  %v11890_v53 = vpop.f32.mrb[139].mxu0  ;;  %v28944_v26 = vld [vmem:[#allocation71_spill] sm:$0xff]  ;;  %v23938_v4 = vld [vmem:[%s28758_s5 + $0x2a8] sm:$0xff]  }
 0x7b6   :  { %v12791_v60 = vadd.f32 %v27074_v36, %v22792_v25  ;;  %v22794_v44 = vadd.f32 %v11890_v53, %v28940_v61  ;;  %v23939_v14 = vld [vmem:[%s28758_s5 + $0x2f0] sm:$0xff]  }
 0x7b7   :  { %v12800_v13 = vadd.f32 %v27074_v36, %v22793_v41  ;;  %20738 = vmatpush3.bf16.msra.mxu1 %v23932_v15  ;;  %v12801_v38 = vmax.f32 %v12799_v31, 0.0 }
 0x7b8   :  { %v12792_v59 = vadd.f32 %v27074_v36, %v22794_v44  ;;  %20739 = vmatprep.subr.bf16.mxu1 %v23933_v46  ;;  %v12793_v56 = vmax.f32 %v12791_v60, 0.0  ;;  %v28945_v60 = vld [vmem:[#allocation72_spill] sm:$0xff] }
 0x7b9   :  { %v12802_v19 = vmax.f32 %v12800_v13, 0.0  ;;  %v23940_v13 = vld [vmem:[%s28758_s5 + $0x2b0] sm:$0xff]  }
 0x7ba   :  { %v12794_v33 = vmax.f32 %v12792_v59, 0.0  ;;  %v22661_v54 = vpop.f32.mrb[140].mxu0  ;;  %v28946_v59 = vld [vmem:[#allocation73_spill] sm:$0xff] }
 0x7bb   :  { %v22795_v5 = vadd.f32 %v22661_v54, %v28941_v57  ;;  %20740 = vmatpush3.bf16.msra.mxu1 %v23934_v9  ;;  %v11903_v16 = vpop.f32.mrb[141].mxu0  ;;  %v27256_v47 = vpack.c.bf16 %v12802_v19, %v12801_v38  ;;  %v23941_v19 = vld [vmem:[%s28758_s5 + $0x2f8] sm:$0xff]   ;;  %v28947_v54 = vld [vmem:[#allocation74_spill] sm:$0xff] }
 0x7bc   :  { %v27258_v40 = vpack.c.bf16 %v12794_v33, %v12793_v56  ;;  %v22796_v8 = vadd.f32 %v11903_v16, %v28942_v37  ;;  %v22662_v58 = vpop.f32.mrb[142].mxu0  ;;  %20741 = vmatprep.subr.bf16.mxu1 %v23935_v43 }
 0x7bd   :  { %v12815_v12 = vadd.f32 %v27074_v36, %v22795_v5  ;;  %v22797_v63 = vadd.f32 %v22662_v58, %v28943_v3  ;;  %v11906_v18 = vpop.f32.mrb[143].mxu0  ;;  %v23942_v58 = vld [vmem:[%s28758_s5 + $0x2b8] sm:$0xff]  }
 0x7be   :  { %v12807_v0 = vadd.f32 %v27074_v36, %v22796_v8  ;;  %v22798_v49 = vadd.f32 %v11906_v18, %v28944_v26 }
 0x7bf   :  { %v12816_v15 = vadd.f32 %v27074_v36, %v22797_v63  ;;  %20742 = vmatpush3.bf16.msra.mxu1 %v23936_v62  ;;  %v12817_v46 = vmax.f32 %v12815_v12, 0.0  ;;  %v28948_v62 = vld [vmem:[#allocation75_spill] sm:$0xff]  ;;  %v23943_v12 = vld [vmem:[%s28758_s5 + $0x340] sm:$0xff]  }
 0x7c0   :  { %v12808_v25 = vadd.f32 %v27074_v36, %v22798_v49  ;;  %20743 = vmatprep.subr.bf16.mxu1 %v23937_v45  ;;  %v12809_v34 = vmax.f32 %v12807_v0, 0.0  ;;  %v28949_v49 = vld [vmem:[#allocation76_spill] sm:$0xff] }
 0x7c1   :  { %v12818_v31 = vmax.f32 %v12816_v15, 0.0 }
 0x7c2   :  { %v12810_v41 = vmax.f32 %v12808_v25, 0.0  ;;  %v22665_v53 = vpop.f32.mrb[144].mxu0  ;;  %v23944_v25 = vld [vmem:[%s28758_s5 + $0x300] sm:$0xff]  }
 0x7c3   :  { %v22799_v61 = vadd.f32 %v22665_v53, %v28945_v60  ;;  %20744 = vmatpush3.bf16.msra.mxu1 %v23938_v4  ;;  %v11919_v44 = vpop.f32.mrb[145].mxu0  ;;  %v27280_v9 = vpack.c.bf16 %v12818_v31, %v12817_v46  ;;  %v28950_v31 = vld [vmem:[#allocation77_spill] sm:$0xff]  ;;  %v23945_v53 = vld [vmem:[%s28758_s5 + $0x348] sm:$0xff]  }
 0x7c4   :  { %v27282_v38 = vpack.c.bf16 %v12810_v41, %v12809_v34  ;;  %v22800_v43 = vadd.f32 %v11919_v44, %v28946_v59  ;;  %v22666_v56 = vpop.f32.mrb[146].mxu0  ;;  %20745 = vmatprep.subr.bf16.mxu1 %v23939_v14 }
 0x7c5   :  { %v12831_v33 = vadd.f32 %v27074_v36, %v22799_v61  ;;  %v22801_v57 = vadd.f32 %v22666_v56, %v28947_v54  ;;  %v11922_v5 = vpop.f32.mrb[147].mxu0  ;;  %v28951_v61 = vld [vmem:[#allocation78_spill] sm:$0xff] }
 0x7c6   :  { %v12823_v16 = vadd.f32 %v27074_v36, %v22800_v43  ;;  %v22802_v37 = vadd.f32 %v11922_v5, %v28948_v62  ;;  %v28952_v43 = vld [vmem:[#allocation79_spill] sm:$0xff] }
 0x7c7   :  { %v12832_v8 = vadd.f32 %v27074_v36, %v22801_v57  ;;  %20746 = vmatpush3.bf16.msra.mxu1 %v23940_v13  ;;  %v12833_v3 = vmax.f32 %v12831_v33, 0.0  ;;  %v23946_v33 = vld [vmem:[%s28758_s5 + $0x308] sm:$0xff]   ;;  %v23947_v57 = vld [vmem:[%s28758_s5 + $0x350] sm:$0xff]  }
 0x7c8   :  { %v12824_v45 = vadd.f32 %v27074_v36, %v22802_v37  ;;  %20747 = vmatprep.subr.bf16.mxu1 %v23941_v19  ;;  %v12825_v18 = vmax.f32 %v12823_v16, 0.0 }
 0x7c9   :  { %v12834_v63 = vmax.f32 %v12832_v8, 0.0  ;;  %v28953_v8 = vld [vmem:[#allocation80_spill] sm:$0xff] }
 0x7ca   :  { %v12826_v0 = vmax.f32 %v12824_v45, 0.0  ;;  %v22669_v26 = vpop.f32.mrb[148].mxu0  ;;  %v23948_v45 = vld [vmem:[%s28758_s5 + $0x310] sm:$0xff]  }
 0x7cb   :  { %v22803_v15 = vadd.f32 %v22669_v26, %v28949_v49  ;;  %20748 = vmatpush3.bf16.msra.mxu1 %v23942_v58  ;;  %v11935_v4 = vpop.f32.mrb[149].mxu0  ;;  %v27304_v14 = vpack.c.bf16 %v12834_v63, %v12833_v3  ;;  %v28954_v63 = vld [vmem:[#allocation81_spill] sm:$0xff]  ;;  %v23949_v26 = vld [vmem:[%s28758_s5 + $0x358] sm:$0xff]  }
 0x7cc   :  { %v27306_v46 = vpack.c.bf16 %v12826_v0, %v12825_v18  ;;  %v22804_v34 = vadd.f32 %v11935_v4, %v28950_v31  ;;  %v22670_v41 = vpop.f32.mrb[150].mxu0  ;;  %20755 = vmatprep.subr.bf16.mxu1 %v23943_v12 }
 0x7cd   :  { %v12847_v60 = vadd.f32 %v27074_v36, %v22803_v15  ;;  %v22805_v44 = vadd.f32 %v22670_v41, %v28951_v61  ;;  %v11938_v13 = vpop.f32.mrb[151].mxu0  ;;  %v28955_v15 = vld [vmem:[#allocation82_spill] sm:$0xff] }
 0x7ce   :  { %v12839_v59 = vadd.f32 %v27074_v36, %v22804_v34  ;;  %v22806_v56 = vadd.f32 %v11938_v13, %v28952_v43  ;;  %17418 = vmatmul.mubr.bf16.vlgmr.msra.gmra.mrb[212].mxu1 %v26935_v27  ;;  %v28956_v34 = vld [vmem:[#allocation83_spill] sm:$0xff] }
 0x7cf   :  { %v12848_v19 = vadd.f32 %v27074_v36, %v22805_v44  ;;  %20756 = vmatpush3.bf16.msra.mxu1 %v23944_v25  ;;  %17458 = vmatprep.mubr.bf16.mxu1 %v26957_v20  ;;  %v12849_v5 = vmax.f32 %v12847_v60, 0.0  ;;  %v23950_v60 = vld [vmem:[%s28758_s5 + $0x318] sm:$0xff]   ;;  %v23951_v44 = vld [vmem:[%s28758_s5 + $0x360] sm:$0xff]  }
 0x7d0   :  { %v12840_v54 = vadd.f32 %v27074_v36, %v22806_v56  ;;  %20757 = vmatprep.subr.bf16.mxu1 %v23945_v53  ;;  %v12841_v62 = vmax.f32 %v12839_v59, 0.0 }
 0x7d1   :  { %v12850_v16 = vmax.f32 %v12848_v19, 0.0 }
 0x7d2   :  { %v12842_v27 = vmax.f32 %v12840_v54, 0.0  ;;  %v22673_v37 = vpop.f32.mrb[152].mxu0 }
 0x7d3   :  { %v22807_v58 = vadd.f32 %v22673_v37, %v28953_v8  ;;  %20758 = vmatpush3.bf16.msra.mxu1 %v23946_v33  ;;  %v11951_v20 = vpop.f32.mrb[153].mxu0  ;;  %v27330_v12 = vpack.c.bf16 %v12850_v16, %v12849_v5  ;;  %v28957_v33 = vld [vmem:[#allocation84_spill] sm:$0xff]  ;;  %v23952_v5 = vld [vmem:[%s28758_s5 + $0x320] sm:$0xff]  }
 0x7d4   :  { %v27332_v3 = vpack.c.bf16 %v12842_v27, %v12841_v62  ;;  %v22808_v18 = vadd.f32 %v11951_v20, %v28954_v63  ;;  %v22674_v0 = vpop.f32.mrb[154].mxu0  ;;  %20759 = vmatprep.subr.bf16.mxu1 %v23947_v57  ;;  %v28958_v27 = vld [vmem:[#allocation85_spill] sm:$0xff] }
 0x7d5   :  { %v12863_v49 = vadd.f32 %v27074_v36, %v22807_v58  ;;  %v22809_v4 = vadd.f32 %v22674_v0, %v28955_v15  ;;  %v11954_v25 = vpop.f32.mrb[155].mxu0  ;;  %v23953_v58 = vld [vmem:[%s28758_s5 + $0x368] sm:$0xff]  }
 0x7d6   :  { %v12855_v31 = vadd.f32 %v27074_v36, %v22808_v18  ;;  %v22810_v41 = vadd.f32 %v11954_v25, %v28956_v34 }
 0x7d7   :  { %v12864_v53 = vadd.f32 %v27074_v36, %v22809_v4  ;;  %20760 = vmatpush3.bf16.msra.mxu1 %v23948_v45  ;;  %v12865_v13 = vmax.f32 %v12863_v49, 0.0  ;;  %v28959_v45 = vld [vmem:[#allocation86_spill] sm:$0xff] }
 0x7d8   :  { %v12856_v61 = vadd.f32 %v27074_v36, %v22810_v41  ;;  %20761 = vmatprep.subr.bf16.mxu1 %v23949_v26  ;;  %v12857_v43 = vmax.f32 %v12855_v31, 0.0  ;;  %v28960_v26 = vld [vmem:[#allocation87_spill] sm:$0xff]  ;;  %v23954_v4 = vld [vmem:[%s28758_s5 + $0x328] sm:$0xff]  }
 0x7d9   :  { %v12866_v59 = vmax.f32 %v12864_v53, 0.0  ;;  %v23955_v31 = vld [vmem:[%s28758_s5 + $0x370] sm:$0xff]  }
 0x7da   :  { %v12858_v56 = vmax.f32 %v12856_v61, 0.0  ;;  %v22677_v19 = vpop.f32.mrb[156].mxu0 }
 0x7db   :  { %v22811_v54 = vadd.f32 %v22677_v19, %v28957_v33  ;;  %20762 = vmatpush3.bf16.msra.mxu1 %v23950_v60  ;;  %v11967_v57 = vpop.f32.mrb[157].mxu0  ;;  %v27354_v16 = vpack.c.bf16 %v12866_v59, %v12865_v13  ;;  %v28962_v33 = vld [vmem:[#allocation89_spill] sm:$0xff] }
 0x7dc   :  { %v27356_v62 = vpack.c.bf16 %v12858_v56, %v12857_v43  ;;  %v22812_v37 = vadd.f32 %v11967_v57, %v28958_v27  ;;  %v22678_v8 = vpop.f32.mrb[158].mxu0  ;;  %20763 = vmatprep.subr.bf16.mxu1 %v23951_v44  ;;  %v28961_v44 = vld [vmem:[#allocation88_spill] sm:$0xff]  ;;  %v23956_v43 = vld [vmem:[%s28758_s5 + $0x330] sm:$0xff]  }
 0x7dd   :  { %v12879_v20 = vadd.f32 %v27074_v36, %v22811_v54  ;;  %v22813_v63 = vadd.f32 %v22678_v8, %v28959_v45  ;;  %v11970_v18 = vpop.f32.mrb[159].mxu0  ;;  %v28964_v45 = vld [vmem:[#allocation91_spill] sm:$0xff] }
 0x7de   :  { %v12871_v0 = vadd.f32 %v27074_v36, %v22812_v37  ;;  %v22814_v49 = vadd.f32 %v11970_v18, %v28960_v26  ;;  %v28963_v37 = vld [vmem:[#allocation90_spill] sm:$0xff] }
 0x7df   :  { %v12880_v15 = vadd.f32 %v27074_v36, %v22813_v63  ;;  %20764 = vmatpush3.bf16.msra.mxu1 %v23952_v5  ;;  %v12881_v34 = vmax.f32 %v12879_v20, 0.0  ;;  %v23957_v5 = vld [vmem:[%s28758_s5 + $0x378] sm:$0xff]  }
 0x7e0   :  { %v12872_v25 = vadd.f32 %v27074_v36, %v22814_v49  ;;  %20765 = vmatprep.subr.bf16.mxu1 %v23953_v58  ;;  %v12873_v53 = vmax.f32 %v12871_v0, 0.0  ;;  %v23958_v0 = vld [vmem:[%s28758_s5 + $0x338] sm:$0xff]   ;;  %v23959_v49 = vld [vmem:[%s28758_s5 + $0x3c0] sm:$0xff]  }
 0x7e1   :  { %v12882_v41 = vmax.f32 %v12880_v15, 0.0 }
 0x7e2   :  { %v12874_v60 = vmax.f32 %v12872_v25, 0.0  ;;  %v22681_v61 = vpop.f32.mrb[160].mxu0 }
 0x7e3   :  { %v22815_v13 = vadd.f32 %v22681_v61, %v28961_v44  ;;  %20766 = vmatpush3.bf16.msra.mxu1 %v23954_v4  ;;  %v11983_v59 = vpop.f32.mrb[161].mxu0  ;;  %v27378_v56 = vpack.c.bf16 %v12882_v41, %v12881_v34  ;;  %v28965_v41 = vld [vmem:[#allocation92_spill] sm:$0xff]  ;;  %v23960_v61 = vld [vmem:[%s28758_s5 + $0x380] sm:$0xff]  }
 0x7e4   :  { %v27380_v19 = vpack.c.bf16 %v12874_v60, %v12873_v53  ;;  %v22816_v54 = vadd.f32 %v11983_v59, %v28962_v33  ;;  %v22682_v57 = vpop.f32.mrb[162].mxu0  ;;  %20767 = vmatprep.subr.bf16.mxu1 %v23955_v31  ;;  %v28966_v59 = vld [vmem:[#allocation93_spill] sm:$0xff] }
 0x7e5   :  { %v12895_v27 = vadd.f32 %v27074_v36, %v22815_v13  ;;  %v22817_v8 = vadd.f32 %v22682_v57, %v28963_v37  ;;  %v11986_v58 = vpop.f32.mrb[163].mxu0 }
 0x7e6   :  { %v12887_v20 = vadd.f32 %v27074_v36, %v22816_v54  ;;  %v22818_v63 = vadd.f32 %v11986_v58, %v28964_v45  ;;  %v23961_v54 = vld [vmem:[%s28758_s5 + $0x3c8] sm:$0xff]   ;;  %v28968_v58 = vld [vmem:[#allocation95_spill] sm:$0xff] }
 0x7e7   :  { %v12896_v18 = vadd.f32 %v27074_v36, %v22817_v8  ;;  %20768 = vmatpush3.bf16.msra.mxu1 %v23956_v43  ;;  %v12897_v15 = vmax.f32 %v12895_v27, 0.0 }
 0x7e8   :  { %v12888_v26 = vadd.f32 %v27074_v36, %v22818_v63  ;;  %20769 = vmatprep.subr.bf16.mxu1 %v23957_v5  ;;  %v12889_v25 = vmax.f32 %v12887_v20, 0.0  ;;  %v28967_v5 = vld [vmem:[#allocation94_spill] sm:$0xff] }
 0x7e9   :  { %v12898_v4 = vmax.f32 %v12896_v18, 0.0  ;;  %v23962_v63 = vld [vmem:[%s28758_s5 + $0x388] sm:$0xff]  }
 0x7ea   :  { %v12890_v31 = vmax.f32 %v12888_v26, 0.0  ;;  %v22685_v34 = vpop.f32.mrb[164].mxu0 }
 0x7eb   :  { %v22819_v53 = vadd.f32 %v22685_v34, %v28965_v41  ;;  %20770 = vmatpush3.bf16.msra.mxu1 %v23958_v0  ;;  %v11999_v60 = vpop.f32.mrb[165].mxu0  ;;  %v27402_v44 = vpack.c.bf16 %v12898_v4, %v12897_v15  ;;  %v23963_v0 = vld [vmem:[%s28758_s5 + $0x3d0] sm:$0xff]  }
 0x7ec   :  { %v27404_v13 = vpack.c.bf16 %v12890_v31, %v12889_v25  ;;  %v22820_v43 = vadd.f32 %v11999_v60, %v28966_v59  ;;  %v22686_v33 = vpop.f32.mrb[166].mxu0  ;;  %20777 = vmatprep.subr.bf16.mxu1 %v23959_v49  ;;  %v28969_v25 = vld [vmem:[#allocation96_spill] sm:$0xff]  ;;  %v23964_v34 = vld [vmem:[%s28758_s5 + $0x390] sm:$0xff]  }
 0x7ed   :  { %v12911_v57 = vadd.f32 %v27074_v36, %v22819_v53  ;;  %v22821_v27 = vadd.f32 %v22686_v33, %v28967_v5  ;;  %v12002_v37 = vpop.f32.mrb[167].mxu0  ;;  %v28970_v53 = vld [vmem:[#allocation97_spill] sm:$0xff]  ;;  %v23965_v59 = vld [vmem:[%s28758_s5 + $0x3d8] sm:$0xff]  }
 0x7ee   :  { %v12903_v8 = vadd.f32 %v27074_v36, %v22820_v43  ;;  %v22822_v20 = vadd.f32 %v12002_v37, %v28968_v58  ;;  %17459 = vmatmul.mubr.bf16.vlgmr.msra.gmra.mrb[216].mxu1 %v26959_v52  ;;  %v27439_v43 = vld [vmem:[%s28759_s4] ss:$0 sm:$0xff]  ;;  %v28972_v37 = vld [vmem:[#allocation99_spill] sm:$0xff] }
 0x7ef   :  { %v12912_v45 = vadd.f32 %v27074_v36, %v22821_v27  ;;  %20778 = vmatpush3.bf16.msra.mxu1 %v23960_v61  ;;  %17499 = vmatprep.mubr.bf16.mxu1 %v26981_v23  ;;  %v12913_v26 = vmax.f32 %v12911_v57, 0.0 }
 0x7f0   :  { %v12904_v18 = vadd.f32 %v27074_v36, %v22822_v20  ;;  %20779 = vmatprep.subr.bf16.mxu1 %v23961_v54  ;;  %v12905_v15 = vmax.f32 %v12903_v8, 0.0  ;;  %v28971_v54 = vld [vmem:[#allocation98_spill] sm:$0xff]  ;;  %v23966_v20 = vld [vmem:[%s28758_s5 + $0x398] sm:$0xff]  }
 0x7f1   :  { %v12914_v49 = vmax.f32 %v12912_v45, 0.0 }
 0x7f2   :  { %v12906_v52 = vmax.f32 %v12904_v18, 0.0  ;;  %v22689_v4 = vpop.f32.mrb[168].mxu0 }
 0x7f3   :  { %v22823_v31 = vadd.f32 %v22689_v4, %v28969_v25  ;;  %20780 = vmatpush3.bf16.msra.mxu1 %v23962_v63  ;;  %v12015_v23 = vpop.f32.mrb[169].mxu0  ;;  %v27428_v41 = vpack.c.bf16 %v12914_v49, %v12913_v26  ;;  %v23967_v63 = vld [vmem:[%s28758_s5 + $0x3e0] sm:$0xff]  }
 0x7f4   :  { %v27430_v36 = vpack.c.bf16 %v12906_v52, %v12905_v15  ;;  %v22824_v60 = vadd.f32 %v12015_v23, %v28970_v53  ;;  %v22690_v61 = vpop.f32.mrb[170].mxu0  ;;  %20781 = vmatprep.subr.bf16.mxu1 %v23963_v0  ;;  %v28973_v52 = vld [vmem:[#allocation100_spill] sm:$0xff]  ;;  %v28974_v53 = vld [vmem:[#allocation101_spill] sm:$0xff] }
 0x7f5   :  { %v12927_v33 = vadd.f32 %v27439_v43, %v22823_v31  ;;  %v22825_v57 = vadd.f32 %v22690_v61, %v28971_v54  ;;  %v12018_v5 = vpop.f32.mrb[171].mxu0  ;;  %v23968_v31 = vld [vmem:[%s28758_s5 + $0x3a0] sm:$0xff]   ;;  %v28975_v54 = vld [vmem:[#allocation102_spill] sm:$0xff] }
 0x7f6   :  { %v12919_v27 = vadd.f32 %v27439_v43, %v22824_v60  ;;  %v22826_v8 = vadd.f32 %v12018_v5, %v28972_v37  ;;  %v28976_v37 = vld [vmem:[#allocation103_spill] sm:$0xff] }
 0x7f7   :  { %v12928_v58 = vadd.f32 %v27439_v43, %v22825_v57  ;;  %20782 = vmatpush3.bf16.msra.mxu1 %v23964_v34  ;;  %v12929_v18 = vmax.f32 %v12927_v33, 0.0 }
 0x7f8   :  { %v12920_v45 = vadd.f32 %v27439_v43, %v22826_v8  ;;  %20783 = vmatprep.subr.bf16.mxu1 %v23965_v59  ;;  %v12921_v26 = vmax.f32 %v12919_v27, 0.0  ;;  %v23969_v59 = vld [vmem:[%s28758_s5 + $0x3e8] sm:$0xff]  }
 0x7f9   :  { %v12930_v0 = vmax.f32 %v12928_v58, 0.0 }
 0x7fa   :  { %v12922_v49 = vmax.f32 %v12920_v45, 0.0  ;;  %v22693_v15 = vpop.f32.mrb[172].mxu0 }
 0x7fb   :  { %v22827_v4 = vadd.f32 %v22693_v15, %v28973_v52  ;;  %20784 = vmatpush3.bf16.msra.mxu1 %v23966_v20  ;;  %v12031_v25 = vpop.f32.mrb[173].mxu0  ;;  %v27457_v23 = vpack.c.bf16 %v12930_v0, %v12929_v18  ;;  %v23970_v20 = vld [vmem:[%s28758_s5 + $0x3a8] sm:$0xff]  }
 0x7fc   :  { %v27459_v34 = vpack.c.bf16 %v12922_v49, %v12921_v26  ;;  %v22828_v60 = vadd.f32 %v12031_v25, %v28974_v53  ;;  %v22694_v61 = vpop.f32.mrb[174].mxu0  ;;  %20785 = vmatprep.subr.bf16.mxu1 %v23967_v63  ;;  %v23971_v63 = vld [vmem:[%s28758_s5 + $0x3f0] sm:$0xff]   ;;  %v28977_v25 = vld [vmem:[#allocation104_spill] sm:$0xff] }
 0x7fd   :  { %v12943_v33 = vadd.f32 %v27439_v43, %v22827_v4  ;;  %v22829_v57 = vadd.f32 %v22694_v61, %v28975_v54  ;;  %v12034_v5 = vpop.f32.mrb[175].mxu0 }
 0x7fe   :  { %v12935_v27 = vadd.f32 %v27439_v43, %v22828_v60  ;;  %v22830_v8 = vadd.f32 %v12034_v5, %v28976_v37 }
 0x7ff   :  { %v12944_v58 = vadd.f32 %v27439_v43, %v22829_v57  ;;  %20786 = vmatpush3.bf16.msra.mxu1 %v23968_v31  ;;  %v12945_v18 = vmax.f32 %v12943_v33, 0.0  ;;  %v28978_v57 = vld [vmem:[#allocation105_spill] sm:$0xff] }
 0x800   :  { %v12936_v45 = vadd.f32 %v27439_v43, %v22830_v8  ;;  %20787 = vmatprep.subr.bf16.mxu1 %v23969_v59  ;;  %v12937_v49 = vmax.f32 %v12935_v27, 0.0  ;;  %v23972_v59 = vld [vmem:[%s28758_s5 + $0x3b0] sm:$0xff]   ;;  %v23973_v8 = vld [vmem:[%s28758_s5 + $0x3f8] sm:$0xff]  }
 0x801   :  { %v12946_v0 = vmax.f32 %v12944_v58, 0.0  ;;  %v20639_v26 = vpop.f32.mrb[192].mxu1 }
 0x802   :  { %v12938_v15 = vmax.f32 %v12936_v45, 0.0  ;;  %v22697_v52 = vpop.f32.mrb[176].mxu0  ;;  %v20640_v4 = vpop.f32.mrb[193].mxu1 }
 0x803   :  { %v22831_v31 = vadd.f32 %v22697_v52, %v28977_v25  ;;  %v27478_v53 = vadd.f32 %v20640_v4, %v20639_v26  ;;  %20788 = vmatpush3.bf16.msra.mxu1 %v23970_v20  ;;  %v12047_v60 = vpop.f32.mrb[177].mxu0  ;;  %v20642_v61 = vpop.f32.mrb[194].mxu1  ;;  %v27483_v54 = vpack.c.bf16 %v12946_v0, %v12945_v18  ;;  %v28979_v20 = vld [vmem:[#allocation106_spill] sm:$0xff]  ;;  %v28980_v0 = vld [vmem:[#allocation107_spill] sm:$0xff]  ;;  %v23975_v25 = vld [vmem:[%s28758_s5 + $0x440] sm:$0xff]  }
 0x804   :  { %v27485_v33 = vpack.c.bf16 %v12938_v15, %v12937_v49  ;;  %v22832_v5 = vadd.f32 %v12047_v60, %v28978_v57  ;;  %v22698_v27 = vpop.f32.mrb[178].mxu0  ;;  %v20643_v37 = vpop.f32.mrb[195].mxu1  ;;  %20789 = vmatprep.subr.bf16.mxu1 %v23971_v63  ;;  %v23974_v63 = vld [vmem:[%s28758_s5 + $0x3b8] sm:$0xff]  }
 0x805   :  { %v12959_v58 = vadd.f32 %v27439_v43, %v22831_v31  ;;  %v22833_v45 = vadd.f32 %v22698_v27, %v28979_v20  ;;  %v27493_v26 = vadd.f32 %v20643_v37, %v20642_v61  ;;  %v12050_v52 = vpop.f32.mrb[179].mxu0  ;;  %v28981_v27 = vld [vmem:[#allocation108_spill] sm:$0xff]  ;;  %v23976_v20 = vld [vmem:[%s28758_s5 + $0x400] sm:$0xff]  }
 0x806   :  { %v12951_v18 = vadd.f32 %v27439_v43, %v22832_v5  ;;  %v22834_v49 = vadd.f32 %v12050_v52, %v28980_v0  ;;  %v28982_v52 = vld [vmem:[#allocation109_spill] sm:$0xff] }
 0x807   :  { %v12960_v15 = vadd.f32 %v27439_v43, %v22833_v45  ;;  %20790 = vmatpush3.bf16.msra.mxu1 %v23972_v59  ;;  %v12961_v31 = vmax.f32 %v12959_v58, 0.0  ;;  %v23977_v58 = vld [vmem:[%s28758_s5 + $0x448] sm:$0xff]  }
 0x808   :  { %v12952_v4 = vadd.f32 %v27439_v43, %v22834_v49  ;;  %20791 = vmatprep.subr.bf16.mxu1 %v23973_v8  ;;  %v12953_v61 = vmax.f32 %v12951_v18, 0.0 }
 0x809   :  { %v12962_v60 = vmax.f32 %v12960_v15, 0.0  ;;  %v28983_v15 = vld [vmem:[#allocation110_spill] sm:$0xff] }
 0x80a   :  { %v12954_v57 = vmax.f32 %v12952_v4, 0.0  ;;  %v22701_v5 = vpop.f32.mrb[180].mxu0 }
 0x80b   :  { %v22835_v37 = vadd.f32 %v22701_v5, %v28981_v27  ;;  %20792 = vmatpush3.bf16.msra.mxu1 %v23974_v63  ;;  %v12063_v59 = vpop.f32.mrb[181].mxu0  ;;  %v27509_v45 = vpack.c.bf16 %v12962_v60, %v12961_v31  ;;  %v28984_v27 = vld [vmem:[#allocation111_spill] sm:$0xff] }
 0x80c   :  { %v27511_v8 = vpack.c.bf16 %v12954_v57, %v12953_v61  ;;  %v22836_v0 = vadd.f32 %v12063_v59, %v28982_v52  ;;  %v22702_v49 = vpop.f32.mrb[182].mxu0  ;;  %20799 = vmatprep.subr.bf16.mxu1 %v23975_v25  ;;  %v23978_v25 = vld [vmem:[%s28758_s5 + $0x408] sm:$0xff]   ;;  %v23979_v57 = vld [vmem:[%s28758_s5 + $0x450] sm:$0xff]  }
 0x80d   :  { %v12975_v18 = vadd.f32 %v27439_v43, %v22835_v37  ;;  %v22837_v63 = vadd.f32 %v22702_v49, %v28983_v15  ;;  %v12066_v4 = vpop.f32.mrb[183].mxu0  ;;  %v28985_v49 = vld [vmem:[#allocation112_spill] sm:$0xff]  ;;  %v23980_v15 = vld [vmem:[%s28758_s5 + $0x410] sm:$0xff]  }
 0x80e   :  { %v12967_v5 = vadd.f32 %v27439_v43, %v22836_v0  ;;  %v22838_v31 = vadd.f32 %v12066_v4, %v28984_v27  ;;  %17500 = vmatmul.mubr.bf16.vlgmr.msra.gmra.mrb[220].mxu1 %v26983_v6  ;;  %v28988_v4 = vld [vmem:[#allocation113_spill] sm:$0xff] }
 0x80f   :  { %v12976_v60 = vadd.f32 %v27439_v43, %v22837_v63  ;;  %20800 = vmatpush3.bf16.msra.mxu1 %v23976_v20  ;;  %17540 = vmatprep.mubr.bf16.mxu1 %v27005_v21  ;;  %v12977_v37 = vmax.f32 %v12975_v18, 0.0  ;;  %v23981_v18 = vld [vmem:[%s28758_s5 + $0x458] sm:$0xff]  }
 0x810   :  { %v12968_v61 = vadd.f32 %v27439_v43, %v22838_v31  ;;  %20801 = vmatprep.subr.bf16.mxu1 %v23977_v58  ;;  %v12969_v52 = vmax.f32 %v12967_v5, 0.0 }
 0x811   :  { %v12978_v59 = vmax.f32 %v12976_v60, 0.0  ;;  %v28989_v60 = vld [vmem:[#allocation114_spill] sm:$0xff] }
 0x812   :  { %v12970_v6 = vmax.f32 %v12968_v61, 0.0  ;;  %v22705_v0 = vpop.f32.mrb[184].mxu0 }
 0x813   :  { %v22839_v20 = vadd.f32 %v22705_v0, %v28985_v49  ;;  %20802 = vmatpush3.bf16.msra.mxu1 %v23978_v25  ;;  %v12079_v21 = vpop.f32.mrb[185].mxu0  ;;  %v27535_v63 = vpack.c.bf16 %v12978_v59, %v12977_v37  ;;  %v28990_v49 = vld [vmem:[#allocation115_spill] sm:$0xff] }
 0x814   :  { %v27537_v58 = vpack.c.bf16 %v12970_v6, %v12969_v52  ;;  %v22840_v27 = vadd.f32 %v12079_v21, %v28988_v4  ;;  %v22706_v31 = vpop.f32.mrb[186].mxu0  ;;  %20803 = vmatprep.subr.bf16.mxu1 %v23979_v57  ;;  %v23982_v57 = vld [vmem:[%s28758_s5 + $0x418] sm:$0xff]   ;;  %v23983_v6 = vld [vmem:[%s28758_s5 + $0x460] sm:$0xff]  }
 0x815   :  { %28986 = vst [vmem:[#allocation57_spill] sm:$0xff] %v27535_v63  ;;  %v12991_v5 = vadd.f32 %v27439_v43, %v22839_v20  ;;  %v22841_v25 = vadd.f32 %v22706_v31, %v28989_v60  ;;  %v12082_v61 = vpop.f32.mrb[187].mxu0  ;;  %v28991_v60 = vld [vmem:[#allocation116_spill] sm:$0xff] }
 0x816   :  { %28987 = vst [vmem:[#allocation5_spill] sm:$0xff] %v27537_v58  ;;  %v12983_v0 = vadd.f32 %v27439_v43, %v22840_v27  ;;  %v22842_v37 = vadd.f32 %v12082_v61, %v28990_v49 }
 0x817   :  { %v12992_v59 = vadd.f32 %v27439_v43, %v22841_v25  ;;  %20804 = vmatpush3.bf16.msra.mxu1 %v23980_v15  ;;  %v12993_v20 = vmax.f32 %v12991_v5, 0.0  ;;  %v23984_v25 = vld [vmem:[%s28758_s5 + $0x420] sm:$0xff]   ;;  %v23985_v5 = vld [vmem:[%s28758_s5 + $0x468] sm:$0xff]  }
 0x818   :  { %v12984_v52 = vadd.f32 %v27439_v43, %v22842_v37  ;;  %20805 = vmatprep.subr.bf16.mxu1 %v23981_v18  ;;  %v12985_v4 = vmax.f32 %v12983_v0, 0.0  ;;  %v28993_v37 = vld [vmem:[#allocation117_spill] sm:$0xff] }
 0x819   :  { %v12994_v21 = vmax.f32 %v12992_v59, 0.0  ;;  %v28994_v59 = vld [vmem:[#allocation118_spill] sm:$0xff] }
 0x81a   :  { %v12986_v27 = vmax.f32 %v12984_v52, 0.0  ;;  %v22709_v31 = vpop.f32.mrb[188].mxu0 }
 0x81b   :  { %v22843_v61 = vadd.f32 %v22709_v31, %v28991_v60  ;;  %20806 = vmatpush3.bf16.msra.mxu1 %v23982_v57  ;;  %v12095_v15 = vpop.f32.mrb[189].mxu0  ;;  %v27559_v49 = vpack.c.bf16 %v12994_v21, %v12993_v20  ;;  %v28995_v60 = vld [vmem:[#allocation119_spill] sm:$0xff] }
 0x81c   :  { %v27561_v18 = vpack.c.bf16 %v12986_v27, %v12985_v4  ;;  %v22844_v58 = vadd.f32 %v12095_v15, %v28993_v37  ;;  %v22710_v63 = vpop.f32.mrb[190].mxu0  ;;  %20807 = vmatprep.subr.bf16.mxu1 %v23983_v6  ;;  %v23986_v6 = vld [vmem:[%s28758_s5 + $0x428] sm:$0xff]   ;;  %v19418_v4 = vld [vmem:[%s28760_s6] ss:$0 sm:$0xff] }
 0x81d   :  { %v13007_v0 = vadd.f32 %v27439_v43, %v22843_v61  ;;  %v22845_v57 = vadd.f32 %v22710_v63, %v28994_v59  ;;  %v12098_v52 = vpop.f32.mrb[191].mxu0  ;;  %v23987_v63 = vld [vmem:[%s28758_s5 + $0x470] sm:$0xff]  }
 0x81e   :  { %28992 = vst [vmem:[#allocation6_spill] sm:$0xff] %v27561_v18  ;;  %v12999_v31 = vadd.f32 %v27439_v43, %v22844_v58  ;;  %v22846_v20 = vadd.f32 %v12098_v52, %v28995_v60 }
 0x81f   :  { %v13008_v21 = vadd.f32 %v27439_v43, %v22845_v57  ;;  %20808 = vmatpush3.bf16.msra.mxu1 %v23984_v25  ;;  %v13009_v58 = vmax.f32 %v13007_v0, 0.0  ;;  %v17215_v57 = vadd.f32 %v27478_v53, %v19418_v4  ;;  %v23989_v0 = vld [vmem:[%s28758_s5 + $0x478] sm:$0xff]  }
 0x820   :  { %v13000_v27 = vadd.f32 %v27439_v43, %v22846_v20  ;;  %20809 = vmatprep.subr.bf16.mxu1 %v23985_v5  ;;  %v13001_v37 = vmax.f32 %v12999_v31, 0.0  ;;  %v23988_v43 = vld [vmem:[%s28758_s5 + $0x430] sm:$0xff]   ;;  %v17218_v31 = vadd.f32 %v27493_v26, %v19418_v4  ;;  %v23993_v26 = vld [vmem:[%s28758_s5 + $0x4c8] sm:$0xff]  }
 0x821   :  { %v13010_v61 = vmax.f32 %v13008_v21, 0.0  ;;  %v20661_v15 = vpop.f32.mrb[196].mxu1  ;;  %v23995_v4 = vld [vmem:[%s28758_s5 + $0x4d0] sm:$0xff]  }
 0x822   :  { %v13002_v25 = vmax.f32 %v13000_v27, 0.0  ;;  %v20662_v59 = vpop.f32.mrb[197].mxu1 }
 0x823   :  { %v20663_v52 = vadd.f32 %v20662_v59, %v20661_v15  ;;  %v20664_v60 = vpop.f32.mrb[198].mxu1  ;;  %20810 = vmatpush3.bf16.msra.mxu1 %v23986_v6  ;;  %v27586_v5 = vpack.c.bf16 %v13010_v61, %v13009_v58  ;;  %v23990_v6 = vld [vmem:[%s28758_s5 + $0x438] sm:$0xff]   ;;  %v23991_v58 = vld [vmem:[%s28758_s5 + $0x4c0] sm:$0xff]   ;;  %v23996_v61 = vld [vmem:[%s28758_s5 + $0x490] sm:$0xff]  }
 0x824   :  { %v27588_v20 = vpack.c.bf16 %v13002_v25, %v13001_v37  ;;  %v20665_v18 = vpop.f32.mrb[199].mxu1  ;;  %20811 = vmatprep.subr.bf16.mxu1 %v23987_v63  ;;  %v23992_v63 = vld [vmem:[%s28758_s5 + $0x480] sm:$0xff]   ;;  %v24001_v25 = vld [vmem:[%s28758_s5 + $0x4e8] sm:$0xff]  }
 0x825   :  { %v17256_v53 = vadd.f32 %v20663_v52, %v17215_v57  ;;  %v20666_v21 = vadd.f32 %v20665_v18, %v20664_v60  ;;  %v23994_v18 = vld [vmem:[%s28758_s5 + $0x488] sm:$0xff]   ;;  %v23999_v15 = vld [vmem:[%s28758_s5 + $0x4e0] sm:$0xff]   ;;  %v24003_v57 = vld [vmem:[%s28758_s5 + $0x4f0] sm:$0xff]  }
 0x826   :  { %v24000_v37 = vld [vmem:[%s28758_s5 + $0x4a0] sm:$0xff]   ;;  %v24002_v59 = vld [vmem:[%s28758_s5 + $0x4a8] sm:$0xff]  }
 0x827   :  { %v17259_v27 = vadd.f32 %v20666_v21, %v17218_v31  ;;  %20812 = vmatpush3.bf16.msra.mxu1 %v23988_v43  ;;  %v24004_v31 = vld [vmem:[%s28758_s5 + $0x4b0] sm:$0xff]  }
 0x828   :  { %20813 = vmatprep.subr.bf16.mxu1 %v23989_v0 }
 0x82b   :  { %20814 = vmatpush3.bf16.msra.mxu1 %v23990_v6  ;;  %v24005_v6 = vld [vmem:[%s28758_s5 + $0x4f8] sm:$0xff]  }
 0x82c   :  { %20821 = vmatprep.subr.bf16.mxu1 %v23991_v58 }
 0x82e   :  { %17541 = vmatmul.mubr.bf16.vlgmr.msra.gmra.mrb[224].mxu1 %v27007_v11  ;;  %v23997_v11 = vld [vmem:[%s28758_s5 + $0x4d8] sm:$0xff]  }
 0x82f   :  { %20822 = vmatpush3.bf16.msra.mxu1 %v23992_v63  ;;  %17581 = vmatprep.mubr.bf16.mxu1 %v27031_v50  ;;  %v23998_v50 = vld [vmem:[%s28758_s5 + $0x498] sm:$0xff]  }
 0x830   :  { %20823 = vmatprep.subr.bf16.mxu1 %v23993_v26 }
 0x833   :  { %20824 = vmatpush3.bf16.msra.mxu1 %v23994_v18  ;;  %v24006_v18 = vld [vmem:[%s28758_s5 + $0x4b8] sm:$0xff]  }
 0x834   :  { %20825 = vmatprep.subr.bf16.mxu1 %v23995_v4  ;;  %v24007_v4 = vld [vmem:[%s28758_s5 + $0x540] sm:$0xff]  }
 0x837   :  { %20826 = vmatpush3.bf16.msra.mxu1 %v23996_v61  ;;  %v24008_v61 = vld [vmem:[%s28758_s5 + $0x500] sm:$0xff]  }
 0x838   :  { %20827 = vmatprep.subr.bf16.mxu1 %v23997_v11  ;;  %v24011_v11 = vld [vmem:[%s28758_s5 + $0x550] sm:$0xff]  }
 0x83b   :  { %20828 = vmatpush3.bf16.msra.mxu1 %v23998_v50  ;;  %v24012_v50 = vld [vmem:[%s28758_s5 + $0x510] sm:$0xff]  }
 0x83c   :  { %20829 = vmatprep.subr.bf16.mxu1 %v23999_v15  ;;  %v24015_v15 = vld [vmem:[%s28758_s5 + $0x560] sm:$0xff]  }
 0x83f   :  { %20830 = vmatpush3.bf16.msra.mxu1 %v24000_v37  ;;  %v24016_v37 = vld [vmem:[%s28758_s5 + $0x520] sm:$0xff]  }
 0x840   :  { %20831 = vmatprep.subr.bf16.mxu1 %v24001_v25  ;;  %v24017_v25 = vld [vmem:[%s28758_s5 + $0x568] sm:$0xff]  }
 0x841   :  { %v20683_v52 = vpop.f32.mrb[200].mxu1 }
 0x842   :  { %v20684_v60 = vpop.f32.mrb[201].mxu1 }
 0x843   :  { %v20685_v43 = vadd.f32 %v20684_v60, %v20683_v52  ;;  %v20686_v0 = vpop.f32.mrb[202].mxu1  ;;  %20832 = vmatpush3.bf16.msra.mxu1 %v24002_v59  ;;  %v24018_v59 = vld [vmem:[%s28758_s5 + $0x528] sm:$0xff]  }
 0x844   :  { %v20687_v21 = vpop.f32.mrb[203].mxu1  ;;  %20833 = vmatprep.subr.bf16.mxu1 %v24003_v57  ;;  %v24019_v57 = vld [vmem:[%s28758_s5 + $0x570] sm:$0xff]  }
 0x845   :  { %v17297_v58 = vadd.f32 %v20685_v43, %v17256_v53  ;;  %v20688_v63 = vadd.f32 %v20687_v21, %v20686_v0  ;;  %v24009_v53 = vld [vmem:[%s28758_s5 + $0x548] sm:$0xff]  }
 0x847   :  { %v17300_v26 = vadd.f32 %v20688_v63, %v17259_v27  ;;  %20834 = vmatpush3.bf16.msra.mxu1 %v24004_v31  ;;  %v24010_v27 = vld [vmem:[%s28758_s5 + $0x508] sm:$0xff]   ;;  %v24020_v31 = vld [vmem:[%s28758_s5 + $0x530] sm:$0xff]  }
 0x848   :  { %20835 = vmatprep.subr.bf16.mxu1 %v24005_v6  ;;  %v24021_v6 = vld [vmem:[%s28758_s5 + $0x578] sm:$0xff]  }
 0x84b   :  { %20836 = vmatpush3.bf16.msra.mxu1 %v24006_v18 }
 0x84c   :  { %20843 = vmatprep.subr.bf16.mxu1 %v24007_v4 }
 0x84e   :  { %17582 = vmatmul.mubr.bf16.vlgmr.msra.gmra.mrb[228].mxu1 %v27033_v29  ;;  %v24013_v29 = vld [vmem:[%s28758_s5 + $0x558] sm:$0xff]  }
 0x84f   :  { %20844 = vmatpush3.bf16.msra.mxu1 %v24008_v61  ;;  %17622 = vmatprep.mubr.bf16.mxu1 %v27055_v42  ;;  %v24014_v42 = vld [vmem:[%s28758_s5 + $0x518] sm:$0xff]  }
 0x850   :  { %20845 = vmatprep.subr.bf16.mxu1 %v24009_v53  ;;  %v24022_v61 = vld [vmem:[%s28758_s5 + $0x538] sm:$0xff]   ;;  %v24023_v53 = vld [vmem:[%s28758_s5 + $0x5c0] sm:$0xff]  }
 0x853   :  { %20846 = vmatpush3.bf16.msra.mxu1 %v24010_v27  ;;  %v24024_v27 = vld [vmem:[%s28758_s5 + $0x580] sm:$0xff]  }
 0x854   :  { %20847 = vmatprep.subr.bf16.mxu1 %v24011_v11  ;;  %v24027_v11 = vld [vmem:[%s28758_s5 + $0x5d0] sm:$0xff]  }
 0x857   :  { %20848 = vmatpush3.bf16.msra.mxu1 %v24012_v50  ;;  %v24028_v50 = vld [vmem:[%s28758_s5 + $0x590] sm:$0xff]  }
 0x858   :  { %20849 = vmatprep.subr.bf16.mxu1 %v24013_v29  ;;  %v24031_v29 = vld [vmem:[%s28758_s5 + $0x5e0] sm:$0xff]  }
 0x85b   :  { %20850 = vmatpush3.bf16.msra.mxu1 %v24014_v42  ;;  %v24032_v42 = vld [vmem:[%s28758_s5 + $0x5a0] sm:$0xff]  }
 0x85c   :  { %20851 = vmatprep.subr.bf16.mxu1 %v24015_v15  ;;  %v24033_v15 = vld [vmem:[%s28758_s5 + $0x5e8] sm:$0xff]  }
 0x85f   :  { %20852 = vmatpush3.bf16.msra.mxu1 %v24016_v37  ;;  %v24034_v37 = vld [vmem:[%s28758_s5 + $0x5a8] sm:$0xff]  }
 0x860   :  { %20853 = vmatprep.subr.bf16.mxu1 %v24017_v25  ;;  %v24035_v25 = vld [vmem:[%s28758_s5 + $0x5f0] sm:$0xff]  }
 0x861   :  { %v20705_v52 = vpop.f32.mrb[204].mxu1 }
 0x862   :  { %v20706_v60 = vpop.f32.mrb[205].mxu1 }
 0x863   :  { %v20707_v43 = vadd.f32 %v20706_v60, %v20705_v52  ;;  %v20708_v0 = vpop.f32.mrb[206].mxu1  ;;  %20854 = vmatpush3.bf16.msra.mxu1 %v24018_v59 }
 0x864   :  { %v20709_v21 = vpop.f32.mrb[207].mxu1  ;;  %20855 = vmatprep.subr.bf16.mxu1 %v24019_v57 }
 0x865   :  { %v17338_v63 = vadd.f32 %v20707_v43, %v17297_v58  ;;  %v20710_v18 = vadd.f32 %v20709_v21, %v20708_v0  ;;  %v24025_v58 = vld [vmem:[%s28758_s5 + $0x5c8] sm:$0xff]   ;;  %v24036_v43 = vld [vmem:[%s28758_s5 + $0x5b0] sm:$0xff]  }
 0x867   :  { %v17341_v4 = vadd.f32 %v20710_v18, %v17300_v26  ;;  %20856 = vmatpush3.bf16.msra.mxu1 %v24020_v31  ;;  %v24026_v26 = vld [vmem:[%s28758_s5 + $0x588] sm:$0xff]   ;;  %v24037_v31 = vld [vmem:[%s28758_s5 + $0x5f8] sm:$0xff]  }
 0x868   :  { %20857 = vmatprep.subr.bf16.mxu1 %v24021_v6 }
 0x86b   :  { %20858 = vmatpush3.bf16.msra.mxu1 %v24022_v61  ;;  %v24038_v61 = vld [vmem:[%s28758_s5 + $0x5b8] sm:$0xff]  }
 0x86c   :  { %20865 = vmatprep.subr.bf16.mxu1 %v24023_v53  ;;  %v24039_v53 = vld [vmem:[%s28758_s5 + $0x640] sm:$0xff]  }
 0x86e   :  { %17623 = vmatmul.mubr.bf16.vlgmr.msra.gmra.mrb[232].mxu1 %v27057_v48  ;;  %v24029_v48 = vld [vmem:[%s28758_s5 + $0x5d8] sm:$0xff]  }
 0x86f   :  { %20866 = vmatpush3.bf16.msra.mxu1 %v24024_v27  ;;  %17663 = vmatprep.mubr.bf16.mxu1 %v27084_v55  ;;  %v24030_v55 = vld [vmem:[%s28758_s5 + $0x598] sm:$0xff]   ;;  %v24040_v27 = vld [vmem:[%s28758_s5 + $0x600] sm:$0xff]  }
 0x870   :  { %20867 = vmatprep.subr.bf16.mxu1 %v24025_v58  ;;  %v24043_v58 = vld [vmem:[%s28758_s5 + $0x650] sm:$0xff]  }
 0x873   :  { %20868 = vmatpush3.bf16.msra.mxu1 %v24026_v26  ;;  %v24044_v26 = vld [vmem:[%s28758_s5 + $0x610] sm:$0xff]  }
 0x874   :  { %20869 = vmatprep.subr.bf16.mxu1 %v24027_v11  ;;  %v24047_v11 = vld [vmem:[%s28758_s5 + $0x660] sm:$0xff]  }
 0x877   :  { %20870 = vmatpush3.bf16.msra.mxu1 %v24028_v50  ;;  %v24048_v50 = vld [vmem:[%s28758_s5 + $0x620] sm:$0xff]  }
 0x878   :  { %20871 = vmatprep.subr.bf16.mxu1 %v24029_v48  ;;  %v24049_v48 = vld [vmem:[%s28758_s5 + $0x668] sm:$0xff]  }
 0x87b   :  { %20872 = vmatpush3.bf16.msra.mxu1 %v24030_v55  ;;  %v24050_v55 = vld [vmem:[%s28758_s5 + $0x628] sm:$0xff]  }
 0x87c   :  { %20873 = vmatprep.subr.bf16.mxu1 %v24031_v29  ;;  %v24051_v29 = vld [vmem:[%s28758_s5 + $0x670] sm:$0xff]  }
 0x87f   :  { %20874 = vmatpush3.bf16.msra.mxu1 %v24032_v42 }
 0x880   :  { %20875 = vmatprep.subr.bf16.mxu1 %v24033_v15 }
 0x881   :  { %v20727_v59 = vpop.f32.mrb[208].mxu1 }
 0x882   :  { %v20728_v57 = vpop.f32.mrb[209].mxu1 }
 0x883   :  { %v20729_v52 = vadd.f32 %v20728_v57, %v20727_v59  ;;  %v20730_v60 = vpop.f32.mrb[210].mxu1  ;;  %20876 = vmatpush3.bf16.msra.mxu1 %v24034_v37  ;;  %v24052_v59 = vld [vmem:[%s28758_s5 + $0x630] sm:$0xff]  }
 0x884   :  { %v20731_v0 = vpop.f32.mrb[211].mxu1  ;;  %20877 = vmatprep.subr.bf16.mxu1 %v24035_v25 }
 0x885   :  { %v17379_v21 = vadd.f32 %v20729_v52, %v17338_v63  ;;  %v20732_v6 = vadd.f32 %v20731_v0, %v20730_v60  ;;  %v24041_v63 = vld [vmem:[%s28758_s5 + $0x648] sm:$0xff]   ;;  %v24053_v52 = vld [vmem:[%s28758_s5 + $0x678] sm:$0xff]  }
 0x887   :  { %v17382_v18 = vadd.f32 %v20732_v6, %v17341_v4  ;;  %20878 = vmatpush3.bf16.msra.mxu1 %v24036_v43  ;;  %v24042_v4 = vld [vmem:[%s28758_s5 + $0x608] sm:$0xff]   ;;  %v24055_v6 = vld [vmem:[%s28758_s5 + $0x6c0] sm:$0xff]  }
 0x888   :  { %20879 = vmatprep.subr.bf16.mxu1 %v24037_v31  ;;  %v24054_v31 = vld [vmem:[%s28758_s5 + $0x638] sm:$0xff]  }
 0x88b   :  { %20880 = vmatpush3.bf16.msra.mxu1 %v24038_v61  ;;  %v24056_v61 = vld [vmem:[%s28758_s5 + $0x680] sm:$0xff]  }
 0x88c   :  { %20887 = vmatprep.subr.bf16.mxu1 %v24039_v53  ;;  %v24059_v53 = vld [vmem:[%s28758_s5 + $0x6d0] sm:$0xff]  }
 0x88e   :  { %17664 = vmatmul.mubr.bf16.vlgmr.msra.gmra.mrb[236].mxu1 %v27086_v17  ;;  %v24045_v17 = vld [vmem:[%s28758_s5 + $0x658] sm:$0xff]  }
 0x88f   :  { %20888 = vmatpush3.bf16.msra.mxu1 %v24040_v27  ;;  %17704 = vmatprep.mubr.bf16.mxu1 %v27108_v1  ;;  %v24046_v1 = vld [vmem:[%s28758_s5 + $0x618] sm:$0xff]   ;;  %v24060_v27 = vld [vmem:[%s28758_s5 + $0x690] sm:$0xff]  }
 0x890   :  { %20889 = vmatprep.subr.bf16.mxu1 %v24041_v63  ;;  %v24063_v63 = vld [vmem:[%s28758_s5 + $0x6e0] sm:$0xff]  }
 0x893   :  { %20890 = vmatpush3.bf16.msra.mxu1 %v24042_v4  ;;  %v24064_v4 = vld [vmem:[%s28758_s5 + $0x6a0] sm:$0xff]  }
 0x894   :  { %20891 = vmatprep.subr.bf16.mxu1 %v24043_v58  ;;  %v24065_v58 = vld [vmem:[%s28758_s5 + $0x6e8] sm:$0xff]  }
 0x897   :  { %20892 = vmatpush3.bf16.msra.mxu1 %v24044_v26  ;;  %v24066_v26 = vld [vmem:[%s28758_s5 + $0x6a8] sm:$0xff]  }
 0x898   :  { %20893 = vmatprep.subr.bf16.mxu1 %v24045_v17  ;;  %v24067_v17 = vld [vmem:[%s28758_s5 + $0x6f0] sm:$0xff]  }
 0x89b   :  { %20894 = vmatpush3.bf16.msra.mxu1 %v24046_v1 }
 0x89c   :  { %20895 = vmatprep.subr.bf16.mxu1 %v24047_v11 }
 0x89f   :  { %20896 = vmatpush3.bf16.msra.mxu1 %v24048_v50 }
 0x8a0   :  { %20897 = vmatprep.subr.bf16.mxu1 %v24049_v48 }
 0x8a1   :  { %v20749_v42 = vpop.f32.mrb[212].mxu1 }
 0x8a2   :  { %v20750_v15 = vpop.f32.mrb[213].mxu1 }
 0x8a3   :  { %v20751_v37 = vadd.f32 %v20750_v15, %v20749_v42  ;;  %v20752_v25 = vpop.f32.mrb[214].mxu1  ;;  %20898 = vmatpush3.bf16.msra.mxu1 %v24050_v55  ;;  %v24068_v55 = vld [vmem:[%s28758_s5 + $0x6b0] sm:$0xff]   ;;  %v24069_v42 = vld [vmem:[%s28758_s5 + $0x6f8] sm:$0xff]  }
 0x8a4   :  { %v20753_v57 = vpop.f32.mrb[215].mxu1  ;;  %20899 = vmatprep.subr.bf16.mxu1 %v24051_v29 }
 0x8a5   :  { %v17420_v60 = vadd.f32 %v20751_v37, %v17379_v21  ;;  %v20754_v43 = vadd.f32 %v20753_v57, %v20752_v25  ;;  %v24057_v21 = vld [vmem:[%s28758_s5 + $0x6c8] sm:$0xff]   ;;  %v24071_v57 = vld [vmem:[%s28758_s5 + $0x740] sm:$0xff]  }
 0x8a7   :  { %v17423_v0 = vadd.f32 %v20754_v43, %v17382_v18  ;;  %20900 = vmatpush3.bf16.msra.mxu1 %v24052_v59  ;;  %v24058_v18 = vld [vmem:[%s28758_s5 + $0x688] sm:$0xff]   ;;  %v24070_v59 = vld [vmem:[%s28758_s5 + $0x6b8] sm:$0xff]  }
 0x8a8   :  { %20901 = vmatprep.subr.bf16.mxu1 %v24053_v52  ;;  %v24072_v52 = vld [vmem:[%s28758_s5 + $0x700] sm:$0xff]   ;;  %v24074_v43 = vld [vmem:[%s28758_s5 + $0x708] sm:$0xff]  }
 0x8ab   :  { %20902 = vmatpush3.bf16.msra.mxu1 %v24054_v31  ;;  %v24076_v31 = vld [vmem:[%s28758_s5 + $0x710] sm:$0xff]  }
 0x8ac   :  { %20909 = vmatprep.subr.bf16.mxu1 %v24055_v6  ;;  %v24079_v6 = vld [vmem:[%s28758_s5 + $0x760] sm:$0xff]  }
 0x8ae   :  { %17705 = vmatmul.mubr.bf16.vlgmr.msra.gmra.mrb[240].mxu1 %v27110_v10  ;;  %v24061_v10 = vld [vmem:[%s28758_s5 + $0x6d8] sm:$0xff]  }
 0x8af   :  { %20910 = vmatpush3.bf16.msra.mxu1 %v24056_v61  ;;  %17745 = vmatprep.mubr.bf16.mxu1 %v27134_v35  ;;  %v24062_v35 = vld [vmem:[%s28758_s5 + $0x698] sm:$0xff]   ;;  %v24080_v61 = vld [vmem:[%s28758_s5 + $0x720] sm:$0xff]  }
 0x8b0   :  { %20911 = vmatprep.subr.bf16.mxu1 %v24057_v21  ;;  %v24081_v21 = vld [vmem:[%s28758_s5 + $0x768] sm:$0xff]  }
 0x8b3   :  { %20912 = vmatpush3.bf16.msra.mxu1 %v24058_v18  ;;  %v24082_v18 = vld [vmem:[%s28758_s5 + $0x728] sm:$0xff]  }
 0x8b4   :  { %20913 = vmatprep.subr.bf16.mxu1 %v24059_v53  ;;  %v24083_v53 = vld [vmem:[%s28758_s5 + $0x770] sm:$0xff]  }
 0x8b7   :  { %20914 = vmatpush3.bf16.msra.mxu1 %v24060_v27 }
 0x8b8   :  { %20915 = vmatprep.subr.bf16.mxu1 %v24061_v10 }
 0x8bb   :  { %20916 = vmatpush3.bf16.msra.mxu1 %v24062_v35 }
 0x8bc   :  { %20917 = vmatprep.subr.bf16.mxu1 %v24063_v63 }
 0x8bf   :  { %20918 = vmatpush3.bf16.msra.mxu1 %v24064_v4  ;;  %v24084_v4 = vld [vmem:[%s28758_s5 + $0x730] sm:$0xff]  }
 0x8c0   :  { %20919 = vmatprep.subr.bf16.mxu1 %v24065_v58 }
 0x8c1   :  { %v20771_v1 = vpop.f32.mrb[216].mxu1 }
 0x8c2   :  { %v20772_v11 = vpop.f32.mrb[217].mxu1 }
 0x8c3   :  { %v20773_v50 = vadd.f32 %v20772_v11, %v20771_v1  ;;  %v20774_v48 = vpop.f32.mrb[218].mxu1  ;;  %20920 = vmatpush3.bf16.msra.mxu1 %v24066_v26  ;;  %v24085_v26 = vld [vmem:[%s28758_s5 + $0x778] sm:$0xff]  }
 0x8c4   :  { %v20775_v29 = vpop.f32.mrb[219].mxu1  ;;  %20921 = vmatprep.subr.bf16.mxu1 %v24067_v17 }
 0x8c5   :  { %v17461_v15 = vadd.f32 %v20773_v50, %v17420_v60  ;;  %v20776_v37 = vadd.f32 %v20775_v29, %v20774_v48  ;;  %v24073_v60 = vld [vmem:[%s28758_s5 + $0x748] sm:$0xff]   ;;  %v24086_v50 = vld [vmem:[%s28758_s5 + $0x738] sm:$0xff]   ;;  %v24087_v48 = vld [vmem:[%s28758_s5 + $0x7c0] sm:$0xff]  }
 0x8c6   :  { %v24089_v29 = vld [vmem:[%s28758_s5 + $0x7c8] sm:$0xff]  }
 0x8c7   :  { %v17464_v25 = vadd.f32 %v20776_v37, %v17423_v0  ;;  %20922 = vmatpush3.bf16.msra.mxu1 %v24068_v55  ;;  %v24075_v0 = vld [vmem:[%s28758_s5 + $0x750] sm:$0xff]   ;;  %v24088_v55 = vld [vmem:[%s28758_s5 + $0x780] sm:$0xff]  }
 0x8c8   :  { %20923 = vmatprep.subr.bf16.mxu1 %v24069_v42  ;;  %v24090_v42 = vld [vmem:[%s28758_s5 + $0x788] sm:$0xff]   ;;  %v24092_v37 = vld [vmem:[%s28758_s5 + $0x790] sm:$0xff]  }
 0x8cb   :  { %20924 = vmatpush3.bf16.msra.mxu1 %v24070_v59  ;;  %v24096_v59 = vld [vmem:[%s28758_s5 + $0x7a0] sm:$0xff]  }
 0x8cc   :  { %20931 = vmatprep.subr.bf16.mxu1 %v24071_v57  ;;  %v24097_v57 = vld [vmem:[%s28758_s5 + $0x7e8] sm:$0xff]  }
 0x8ce   :  { %17746 = vmatmul.mubr.bf16.vlgmr.msra.gmra.mrb[244].mxu1 %v27136_v51  ;;  %v24077_v51 = vld [vmem:[%s28758_s5 + $0x758] sm:$0xff]  }
 0x8cf   :  { %20932 = vmatpush3.bf16.msra.mxu1 %v24072_v52  ;;  %17786 = vmatprep.mubr.bf16.mxu1 %v27158_v32  ;;  %v24078_v32 = vld [vmem:[%s28758_s5 + $0x718] sm:$0xff]   ;;  %v24098_v52 = vld [vmem:[%s28758_s5 + $0x7a8] sm:$0xff]  }
 0x8d0   :  { %20933 = vmatprep.subr.bf16.mxu1 %v24073_v60  ;;  %v24099_v60 = vld [vmem:[%s28758_s5 + $0x7f0] sm:$0xff]  }
 0x8d3   :  { %20934 = vmatpush3.bf16.msra.mxu1 %v24074_v43 }
 0x8d4   :  { %20935 = vmatprep.subr.bf16.mxu1 %v24075_v0 }
 0x8d7   :  { %20936 = vmatpush3.bf16.msra.mxu1 %v24076_v31 }
 0x8d8   :  { %20937 = vmatprep.subr.bf16.mxu1 %v24077_v51 }
 0x8db   :  { %20938 = vmatpush3.bf16.msra.mxu1 %v24078_v32  ;;  %v24100_v32 = vld [vmem:[%s28758_s5 + $0x7b0] sm:$0xff]  }
 0x8dc   :  { %20939 = vmatprep.subr.bf16.mxu1 %v24079_v6 }
 0x8df   :  { %20940 = vmatpush3.bf16.msra.mxu1 %v24080_v61  ;;  %v24101_v61 = vld [vmem:[%s28758_s5 + $0x7f8] sm:$0xff]  }
 0x8e0   :  { %20941 = vmatprep.subr.bf16.mxu1 %v24081_v21 }
 0x8e1   :  { %v20793_v27 = vpop.f32.mrb[220].mxu1 }
 0x8e2   :  { %v20794_v10 = vpop.f32.mrb[221].mxu1 }
 0x8e3   :  { %v20795_v35 = vadd.f32 %v20794_v10, %v20793_v27  ;;  %v20796_v63 = vpop.f32.mrb[222].mxu1  ;;  %20942 = vmatpush3.bf16.msra.mxu1 %v24082_v18  ;;  %v24102_v27 = vld [vmem:[%s28758_s5 + $0x7b8] sm:$0xff]   ;;  %v24103_v10 = vld [vmem:[%s28758_s5 + $0x840] sm:$0xff]  }
 0x8e4   :  { %v20797_v58 = vpop.f32.mrb[223].mxu1  ;;  %20943 = vmatprep.subr.bf16.mxu1 %v24083_v53 }
 0x8e5   :  { %v17502_v17 = vadd.f32 %v20795_v35, %v17461_v15  ;;  %v20798_v1 = vadd.f32 %v20797_v58, %v20796_v63  ;;  %v24091_v15 = vld [vmem:[%s28758_s5 + $0x7d0] sm:$0xff]   ;;  %v24104_v35 = vld [vmem:[%s28758_s5 + $0x800] sm:$0xff]   ;;  %v24105_v63 = vld [vmem:[%s28758_s5 + $0x848] sm:$0xff]  }
 0x8e6   :  { %v24107_v58 = vld [vmem:[%s28758_s5 + $0x850] sm:$0xff]  }
 0x8e7   :  { %v17505_v11 = vadd.f32 %v20798_v1, %v17464_v25  ;;  %20944 = vmatpush3.bf16.msra.mxu1 %v24084_v4  ;;  %v24095_v25 = vld [vmem:[%s28758_s5 + $0x7e0] sm:$0xff]   ;;  %v24106_v4 = vld [vmem:[%s28758_s5 + $0x808] sm:$0xff]  }
 0x8e8   :  { %20945 = vmatprep.subr.bf16.mxu1 %v24085_v26  ;;  %v24108_v26 = vld [vmem:[%s28758_s5 + $0x810] sm:$0xff]   ;;  %v24112_v1 = vld [vmem:[%s28758_s5 + $0x820] sm:$0xff]  }
 0x8eb   :  { %20946 = vmatpush3.bf16.msra.mxu1 %v24086_v50  ;;  %v24114_v50 = vld [vmem:[%s28758_s5 + $0x828] sm:$0xff]  }
 0x8ec   :  { %20953 = vmatprep.subr.bf16.mxu1 %v24087_v48  ;;  %v24115_v48 = vld [vmem:[%s28758_s5 + $0x870] sm:$0xff]  }
 0x8ee   :  { %17787 = vmatmul.mubr.bf16.vlgmr.msra.gmra.mrb[248].mxu1 %v27160_v22  ;;  %v24093_v22 = vld [vmem:[%s28758_s5 + $0x7d8] sm:$0xff]  }
 0x8ef   :  { %20954 = vmatpush3.bf16.msra.mxu1 %v24088_v55  ;;  %17827 = vmatprep.mubr.bf16.mxu1 %v27182_v30  ;;  %v24094_v30 = vld [vmem:[%s28758_s5 + $0x798] sm:$0xff]  }
 0x8f0   :  { %20955 = vmatprep.subr.bf16.mxu1 %v24089_v29 }
 0x8f3   :  { %20956 = vmatpush3.bf16.msra.mxu1 %v24090_v42 }
 0x8f4   :  { %20957 = vmatprep.subr.bf16.mxu1 %v24091_v15 }
 0x8f7   :  { %20958 = vmatpush3.bf16.msra.mxu1 %v24092_v37  ;;  %v24116_v37 = vld [vmem:[%s28758_s5 + $0x830] sm:$0xff]  }
 0x8f8   :  { %20959 = vmatprep.subr.bf16.mxu1 %v24093_v22 }
 0x8fb   :  { %20960 = vmatpush3.bf16.msra.mxu1 %v24094_v30  ;;  %v24117_v30 = vld [vmem:[%s28758_s5 + $0x878] sm:$0xff]  }
 0x8fc   :  { %20961 = vmatprep.subr.bf16.mxu1 %v24095_v25 }
 0x8ff   :  { %20962 = vmatpush3.bf16.msra.mxu1 %v24096_v59 }
 0x900   :  { %20963 = vmatprep.subr.bf16.mxu1 %v24097_v57 }
 0x901   :  { %v20815_v43 = vpop.f32.mrb[224].mxu1 }
 0x902   :  { %v20816_v0 = vpop.f32.mrb[225].mxu1 }
 0x903   :  { %v20817_v31 = vadd.f32 %v20816_v0, %v20815_v43  ;;  %v20818_v51 = vpop.f32.mrb[226].mxu1  ;;  %20964 = vmatpush3.bf16.msra.mxu1 %v24098_v52  ;;  %v24118_v52 = vld [vmem:[%s28758_s5 + $0x838] sm:$0xff]   ;;  %v24120_v43 = vld [vmem:[%s28758_s5 + $0x880] sm:$0xff]   ;;  %v24121_v0 = vld [vmem:[%s28758_s5 + $0x8c8] sm:$0xff]  }
 0x904   :  { %v20819_v6 = vpop.f32.mrb[227].mxu1  ;;  %20965 = vmatprep.subr.bf16.mxu1 %v24099_v60  ;;  %v24119_v60 = vld [vmem:[%s28758_s5 + $0x8c0] sm:$0xff]  }
 0x905   :  { %v17543_v21 = vadd.f32 %v20817_v31, %v17502_v17  ;;  %v20820_v18 = vadd.f32 %v20819_v6, %v20818_v51  ;;  %v24111_v17 = vld [vmem:[%s28758_s5 + $0x860] sm:$0xff]   ;;  %v24122_v31 = vld [vmem:[%s28758_s5 + $0x888] sm:$0xff]   ;;  %v24123_v51 = vld [vmem:[%s28758_s5 + $0x8d0] sm:$0xff]  }
 0x906   :  { %v24127_v6 = vld [vmem:[%s28758_s5 + $0x8e0] sm:$0xff]  }
 0x907   :  { %v17546_v53 = vadd.f32 %v20820_v18, %v17505_v11  ;;  %20966 = vmatpush3.bf16.msra.mxu1 %v24100_v32  ;;  %v24113_v11 = vld [vmem:[%s28758_s5 + $0x868] sm:$0xff]   ;;  %v24124_v32 = vld [vmem:[%s28758_s5 + $0x890] sm:$0xff]  }
 0x908   :  { %20967 = vmatprep.subr.bf16.mxu1 %v24101_v61  ;;  %v24128_v61 = vld [vmem:[%s28758_s5 + $0x8a0] sm:$0xff]   ;;  %v24130_v18 = vld [vmem:[%s28758_s5 + $0x8a8] sm:$0xff]  }
 0x90b   :  { %20968 = vmatpush3.bf16.msra.mxu1 %v24102_v27 }
 0x90c   :  { %20975 = vmatprep.subr.bf16.mxu1 %v24103_v10 }
 0x90e   :  { %17828 = vmatmul.mubr.bf16.vlgmr.msra.gmra.mrb[252].mxu1 %v27184_v2  ;;  %v24109_v2 = vld [vmem:[%s28758_s5 + $0x858] sm:$0xff]  }
 0x90f   :  { %20976 = vmatpush3.bf16.msra.mxu1 %v24104_v35  ;;  %17868 = vmatprep.mubr.bf16.mxu1 %v27206_v7  ;;  %v24110_v7 = vld [vmem:[%s28758_s5 + $0x818] sm:$0xff]  }
 0x910   :  { %20977 = vmatprep.subr.bf16.mxu1 %v24105_v63 }
 0x913   :  { %20978 = vmatpush3.bf16.msra.mxu1 %v24106_v4  ;;  %v24132_v4 = vld [vmem:[%s28758_s5 + $0x8b0] sm:$0xff]  }
 0x914   :  { %20979 = vmatprep.subr.bf16.mxu1 %v24107_v58 }
 0x917   :  { %20980 = vmatpush3.bf16.msra.mxu1 %v24108_v26  ;;  %v24133_v26 = vld [vmem:[%s28758_s5 + $0x8f8] sm:$0xff]  }
 0x918   :  { %20981 = vmatprep.subr.bf16.mxu1 %v24109_v2 }
 0x91b   :  { %20982 = vmatpush3.bf16.msra.mxu1 %v24110_v7 }
 0x91c   :  { %20983 = vmatprep.subr.bf16.mxu1 %v24111_v17 }
 0x91f   :  { %20984 = vmatpush3.bf16.msra.mxu1 %v24112_v1  ;;  %v24134_v1 = vld [vmem:[%s28758_s5 + $0x8b8] sm:$0xff]  }
 0x920   :  { %20985 = vmatprep.subr.bf16.mxu1 %v24113_v11  ;;  %v24135_v11 = vld [vmem:[%s28758_s5 + $0x940] sm:$0xff]  }
 0x921   :  { %v20837_v55 = vpop.f32.mrb[228].mxu1 }
 0x922   :  { %v20838_v29 = vpop.f32.mrb[229].mxu1 }
 0x923   :  { %v20839_v42 = vadd.f32 %v20838_v29, %v20837_v55  ;;  %v20840_v15 = vpop.f32.mrb[230].mxu1  ;;  %20986 = vmatpush3.bf16.msra.mxu1 %v24114_v50  ;;  %v24136_v50 = vld [vmem:[%s28758_s5 + $0x900] sm:$0xff]   ;;  %v24138_v55 = vld [vmem:[%s28758_s5 + $0x908] sm:$0xff]   ;;  %v24139_v29 = vld [vmem:[%s28758_s5 + $0x950] sm:$0xff]  }
 0x924   :  { %v20841_v22 = vpop.f32.mrb[231].mxu1  ;;  %20987 = vmatprep.subr.bf16.mxu1 %v24115_v48  ;;  %v24137_v48 = vld [vmem:[%s28758_s5 + $0x948] sm:$0xff]  }
 0x925   :  { %v17584_v25 = vadd.f32 %v20839_v42, %v17543_v21  ;;  %v20842_v59 = vadd.f32 %v20841_v22, %v20840_v15  ;;  %v24129_v21 = vld [vmem:[%s28758_s5 + $0x8e8] sm:$0xff]   ;;  %v24140_v42 = vld [vmem:[%s28758_s5 + $0x910] sm:$0xff]   ;;  %v24143_v15 = vld [vmem:[%s28758_s5 + $0x960] sm:$0xff]  }
 0x926   :  { %v24145_v22 = vld [vmem:[%s28758_s5 + $0x968] sm:$0xff]  }
 0x927   :  { %v17587_v57 = vadd.f32 %v20842_v59, %v17546_v53  ;;  %20988 = vmatpush3.bf16.msra.mxu1 %v24116_v37  ;;  %v24131_v53 = vld [vmem:[%s28758_s5 + $0x8f0] sm:$0xff]   ;;  %v24144_v37 = vld [vmem:[%s28758_s5 + $0x920] sm:$0xff]  }
 0x928   :  { %20989 = vmatprep.subr.bf16.mxu1 %v24117_v30  ;;  %v24146_v30 = vld [vmem:[%s28758_s5 + $0x928] sm:$0xff]  }
 0x92b   :  { %20990 = vmatpush3.bf16.msra.mxu1 %v24118_v52 }
 0x92c   :  { %20997 = vmatprep.subr.bf16.mxu1 %v24119_v60 }
 0x92e   :  { %17869 = vmatmul.mubr.bf16.vlgmr.msra.gmra.mrb[0].mxu1 %v27208_v24  ;;  %v24125_v24 = vld [vmem:[%s28758_s5 + $0x8d8] sm:$0xff]  }
 0x92f   :  { %20998 = vmatpush3.bf16.msra.mxu1 %v24120_v43  ;;  %17909 = vmatprep.mubr.bf16.mxu1 %v27232_v39  ;;  %v24126_v39 = vld [vmem:[%s28758_s5 + $0x898] sm:$0xff]   ;;  %v24148_v43 = vld [vmem:[%s28758_s5 + $0x930] sm:$0xff]  }
 0x930   :  { %20999 = vmatprep.subr.bf16.mxu1 %v24121_v0 }
 0x933   :  { %21000 = vmatpush3.bf16.msra.mxu1 %v24122_v31  ;;  %v24149_v31 = vld [vmem:[%s28758_s5 + $0x978] sm:$0xff]  }
 0x934   :  { %21001 = vmatprep.subr.bf16.mxu1 %v24123_v51 }
 0x937   :  { %21002 = vmatpush3.bf16.msra.mxu1 %v24124_v32 }
 0x938   :  { %21003 = vmatprep.subr.bf16.mxu1 %v24125_v24 }
 0x93b   :  { %21004 = vmatpush3.bf16.msra.mxu1 %v24126_v39  ;;  %v24150_v39 = vld [vmem:[%s28758_s5 + $0x938] sm:$0xff]  }
 0x93c   :  { %21005 = vmatprep.subr.bf16.mxu1 %v24127_v6  ;;  %v24151_v6 = vld [vmem:[%s28758_s5 + $0x9c0] sm:$0xff]  }
 0x93f   :  { %21006 = vmatpush3.bf16.msra.mxu1 %v24128_v61  ;;  %v24152_v61 = vld [vmem:[%s28758_s5 + $0x980] sm:$0xff]  }
 0x940   :  { %21007 = vmatprep.subr.bf16.mxu1 %v24129_v21  ;;  %v24153_v21 = vld [vmem:[%s28758_s5 + $0x9c8] sm:$0xff]  }
 0x941   :  { %v20859_v27 = vpop.f32.mrb[232].mxu1 }
 0x942   :  { %v20860_v10 = vpop.f32.mrb[233].mxu1 }
 0x943   :  { %v20861_v35 = vadd.f32 %v20860_v10, %v20859_v27  ;;  %v20862_v63 = vpop.f32.mrb[234].mxu1  ;;  %21008 = vmatpush3.bf16.msra.mxu1 %v24130_v18  ;;  %v24154_v18 = vld [vmem:[%s28758_s5 + $0x988] sm:$0xff]   ;;  %v24156_v27 = vld [vmem:[%s28758_s5 + $0x990] sm:$0xff]   ;;  %v24159_v10 = vld [vmem:[%s28758_s5 + $0x9e0] sm:$0xff]  }
 0x944   :  { %v20863_v58 = vpop.f32.mrb[235].mxu1  ;;  %21009 = vmatprep.subr.bf16.mxu1 %v24131_v53  ;;  %v24155_v53 = vld [vmem:[%s28758_s5 + $0x9d0] sm:$0xff]  }
 0x945   :  { %v17625_v2 = vadd.f32 %v20861_v35, %v17584_v25  ;;  %v20864_v7 = vadd.f32 %v20863_v58, %v20862_v63  ;;  %v24147_v25 = vld [vmem:[%s28758_s5 + $0x970] sm:$0xff]   ;;  %v24160_v35 = vld [vmem:[%s28758_s5 + $0x9a0] sm:$0xff]   ;;  %v24161_v63 = vld [vmem:[%s28758_s5 + $0x9e8] sm:$0xff]  }
 0x946   :  { %v24163_v58 = vld [vmem:[%s28758_s5 + $0x9f0] sm:$0xff]  }
 0x947   :  { %v17628_v17 = vadd.f32 %v20864_v7, %v17587_v57  ;;  %21010 = vmatpush3.bf16.msra.mxu1 %v24132_v4  ;;  %v24162_v4 = vld [vmem:[%s28758_s5 + $0x9a8] sm:$0xff]  }
 0x948   :  { %21011 = vmatprep.subr.bf16.mxu1 %v24133_v26 }
 0x94b   :  { %21012 = vmatpush3.bf16.msra.mxu1 %v24134_v1  ;;  %v24164_v1 = vld [vmem:[%s28758_s5 + $0x9b0] sm:$0xff]  }
 0x94c   :  { %21019 = vmatprep.subr.bf16.mxu1 %v24135_v11 }
 0x94e   :  { %17910 = vmatmul.mubr.bf16.vlgmr.msra.gmra.mrb[4].mxu1 %v27234_v28  ;;  %v24141_v28 = vld [vmem:[%s28758_s5 + $0x958] sm:$0xff]  }
 0x94f   :  { %21020 = vmatpush3.bf16.msra.mxu1 %v24136_v50  ;;  %17950 = vmatprep.mubr.bf16.mxu1 %v27256_v47  ;;  %v24142_v47 = vld [vmem:[%s28758_s5 + $0x918] sm:$0xff]  }
 0x950   :  { %21021 = vmatprep.subr.bf16.mxu1 %v24137_v48  ;;  %v24165_v50 = vld [vmem:[%s28758_s5 + $0x9f8] sm:$0xff]  }
 0x953   :  { %21022 = vmatpush3.bf16.msra.mxu1 %v24138_v55 }
 0x954   :  { %21023 = vmatprep.subr.bf16.mxu1 %v24139_v29 }
 0x957   :  { %21024 = vmatpush3.bf16.msra.mxu1 %v24140_v42  ;;  %v24166_v42 = vld [vmem:[%s28758_s5 + $0x9b8] sm:$0xff]  }
 0x958   :  { %21025 = vmatprep.subr.bf16.mxu1 %v24141_v28  ;;  %v24167_v28 = vld [vmem:[%s28758_s5 + $0xa40] sm:$0xff]  }
 0x95b   :  { %21026 = vmatpush3.bf16.msra.mxu1 %v24142_v47  ;;  %v24168_v47 = vld [vmem:[%s28758_s5 + $0xa00] sm:$0xff]  }
 0x95c   :  { %21027 = vmatprep.subr.bf16.mxu1 %v24143_v15  ;;  %v24169_v15 = vld [vmem:[%s28758_s5 + $0xa48] sm:$0xff]  }
 0x95f   :  { %21028 = vmatpush3.bf16.msra.mxu1 %v24144_v37  ;;  %v24170_v37 = vld [vmem:[%s28758_s5 + $0xa08] sm:$0xff]  }
 0x960   :  { %21029 = vmatprep.subr.bf16.mxu1 %v24145_v22  ;;  %v24171_v22 = vld [vmem:[%s28758_s5 + $0xa50] sm:$0xff]  }
 0x961   :  { %v20881_v59 = vpop.f32.mrb[236].mxu1 }
 0x962   :  { %v20882_v57 = vpop.f32.mrb[237].mxu1 }
 0x963   :  { %v20883_v52 = vadd.f32 %v20882_v57, %v20881_v59  ;;  %v20884_v60 = vpop.f32.mrb[238].mxu1  ;;  %21030 = vmatpush3.bf16.msra.mxu1 %v24146_v30  ;;  %v24172_v30 = vld [vmem:[%s28758_s5 + $0xa10] sm:$0xff]   ;;  %v24176_v59 = vld [vmem:[%s28758_s5 + $0xa20] sm:$0xff]   ;;  %v24177_v57 = vld [vmem:[%s28758_s5 + $0xa68] sm:$0xff]  }
 0x964   :  { %v20885_v0 = vpop.f32.mrb[239].mxu1  ;;  %21031 = vmatprep.subr.bf16.mxu1 %v24147_v25  ;;  %v24175_v25 = vld [vmem:[%s28758_s5 + $0xa60] sm:$0xff]  }
 0x965   :  { %v17666_v51 = vadd.f32 %v20883_v52, %v17625_v2  ;;  %v20886_v32 = vadd.f32 %v20885_v0, %v20884_v60  ;;  %v24178_v52 = vld [vmem:[%s28758_s5 + $0xa28] sm:$0xff]   ;;  %v24179_v60 = vld [vmem:[%s28758_s5 + $0xa70] sm:$0xff]  }
 0x967   :  { %v17669_v24 = vadd.f32 %v20886_v32, %v17628_v17  ;;  %21032 = vmatpush3.bf16.msra.mxu1 %v24148_v43  ;;  %v24180_v32 = vld [vmem:[%s28758_s5 + $0xa30] sm:$0xff]  }
 0x968   :  { %21033 = vmatprep.subr.bf16.mxu1 %v24149_v31 }
 0x96b   :  { %21034 = vmatpush3.bf16.msra.mxu1 %v24150_v39  ;;  %v24181_v39 = vld [vmem:[%s28758_s5 + $0xa78] sm:$0xff]  }
 0x96c   :  { %21041 = vmatprep.subr.bf16.mxu1 %v24151_v6 }
 0x96e   :  { %17951 = vmatmul.mubr.bf16.vlgmr.msra.gmra.mrb[8].mxu1 %v27258_v40  ;;  %v24157_v40 = vld [vmem:[%s28758_s5 + $0x9d8] sm:$0xff]  }
 0x96f   :  { %21042 = vmatpush3.bf16.msra.mxu1 %v24152_v61  ;;  %17991 = vmatprep.mubr.bf16.mxu1 %v27280_v9  ;;  %v24158_v9 = vld [vmem:[%s28758_s5 + $0x998] sm:$0xff]  }
 0x970   :  { %21043 = vmatprep.subr.bf16.mxu1 %v24153_v21 }
 0x973   :  { %21044 = vmatpush3.bf16.msra.mxu1 %v24154_v18  ;;  %v24182_v18 = vld [vmem:[%s28758_s5 + $0xa38] sm:$0xff]  }
 0x974   :  { %21045 = vmatprep.subr.bf16.mxu1 %v24155_v53  ;;  %v24183_v53 = vld [vmem:[%s28758_s5 + $0xac0] sm:$0xff]  }
 0x977   :  { %21046 = vmatpush3.bf16.msra.mxu1 %v24156_v27  ;;  %v24184_v27 = vld [vmem:[%s28758_s5 + $0xa80] sm:$0xff]  }
 0x978   :  { %21047 = vmatprep.subr.bf16.mxu1 %v24157_v40  ;;  %v24185_v40 = vld [vmem:[%s28758_s5 + $0xac8] sm:$0xff]  }
 0x97b   :  { %21048 = vmatpush3.bf16.msra.mxu1 %v24158_v9  ;;  %v24186_v9 = vld [vmem:[%s28758_s5 + $0xa88] sm:$0xff]  }
 0x97c   :  { %21049 = vmatprep.subr.bf16.mxu1 %v24159_v10  ;;  %v24187_v10 = vld [vmem:[%s28758_s5 + $0xad0] sm:$0xff]  }
 0x97f   :  { %21050 = vmatpush3.bf16.msra.mxu1 %v24160_v35  ;;  %v24188_v35 = vld [vmem:[%s28758_s5 + $0xa90] sm:$0xff]  }
 0x980   :  { %21051 = vmatprep.subr.bf16.mxu1 %v24161_v63  ;;  %v24191_v63 = vld [vmem:[%s28758_s5 + $0xae0] sm:$0xff]  }
 0x981   :  { %v20903_v26 = vpop.f32.mrb[240].mxu1 }
 0x982   :  { %v20904_v2 = vpop.f32.mrb[241].mxu1 }
 0x983   :  { %v20905_v7 = vadd.f32 %v20904_v2, %v20903_v26  ;;  %v20906_v17 = vpop.f32.mrb[242].mxu1  ;;  %21052 = vmatpush3.bf16.msra.mxu1 %v24162_v4  ;;  %v24192_v4 = vld [vmem:[%s28758_s5 + $0xaa0] sm:$0xff]   ;;  %v24194_v26 = vld [vmem:[%s28758_s5 + $0xaa8] sm:$0xff]   ;;  %v24195_v2 = vld [vmem:[%s28758_s5 + $0xaf0] sm:$0xff]  }
 0x984   :  { %v20907_v11 = vpop.f32.mrb[243].mxu1  ;;  %21053 = vmatprep.subr.bf16.mxu1 %v24163_v58  ;;  %v24193_v58 = vld [vmem:[%s28758_s5 + $0xae8] sm:$0xff]  }
 0x985   :  { %v17707_v48 = vadd.f32 %v20905_v7, %v17666_v51  ;;  %v20908_v55 = vadd.f32 %v20907_v11, %v20906_v17 }
 0x987   :  { %v17710_v29 = vadd.f32 %v20908_v55, %v17669_v24  ;;  %21054 = vmatpush3.bf16.msra.mxu1 %v24164_v1  ;;  %v24197_v55 = vld [vmem:[%s28758_s5 + $0xaf8] sm:$0xff]  }
 0x988   :  { %21055 = vmatprep.subr.bf16.mxu1 %v24165_v50  ;;  %v24196_v50 = vld [vmem:[%s28758_s5 + $0xab0] sm:$0xff]  }
 0x98b   :  { %21056 = vmatpush3.bf16.msra.mxu1 %v24166_v42 }
 0x98c   :  { %21063 = vmatprep.subr.bf16.mxu1 %v24167_v28 }
 0x98e   :  { %17992 = vmatmul.mubr.bf16.vlgmr.msra.gmra.mrb[12].mxu1 %v27282_v38  ;;  %v24173_v38 = vld [vmem:[%s28758_s5 + $0xa58] sm:$0xff]  }
 0x98f   :  { %21064 = vmatpush3.bf16.msra.mxu1 %v24168_v47  ;;  %18032 = vmatprep.mubr.bf16.mxu1 %v27304_v14  ;;  %v24174_v14 = vld [vmem:[%s28758_s5 + $0xa18] sm:$0xff]  }
 0x990   :  { %21065 = vmatprep.subr.bf16.mxu1 %v24169_v15  ;;  %v24198_v47 = vld [vmem:[%s28758_s5 + $0xab8] sm:$0xff]   ;;  %v24199_v15 = vld [vmem:[%s28758_s5 + $0xb40] sm:$0xff]  }
 0x993   :  { %21066 = vmatpush3.bf16.msra.mxu1 %v24170_v37  ;;  %v24200_v37 = vld [vmem:[%s28758_s5 + $0xb00] sm:$0xff]  }
 0x994   :  { %21067 = vmatprep.subr.bf16.mxu1 %v24171_v22  ;;  %v24201_v22 = vld [vmem:[%s28758_s5 + $0xb48] sm:$0xff]  }
 0x997   :  { %21068 = vmatpush3.bf16.msra.mxu1 %v24172_v30  ;;  %v24202_v30 = vld [vmem:[%s28758_s5 + $0xb08] sm:$0xff]  }
 0x998   :  { %21069 = vmatprep.subr.bf16.mxu1 %v24173_v38  ;;  %v24203_v38 = vld [vmem:[%s28758_s5 + $0xb50] sm:$0xff]  }
 0x99b   :  { %21070 = vmatpush3.bf16.msra.mxu1 %v24174_v14  ;;  %v24204_v14 = vld [vmem:[%s28758_s5 + $0xb10] sm:$0xff]  }
 0x99c   :  { %21071 = vmatprep.subr.bf16.mxu1 %v24175_v25  ;;  %v24207_v25 = vld [vmem:[%s28758_s5 + $0xb60] sm:$0xff]  }
 0x99f   :  { %21072 = vmatpush3.bf16.msra.mxu1 %v24176_v59  ;;  %v24208_v59 = vld [vmem:[%s28758_s5 + $0xb20] sm:$0xff]  }
 0x9a0   :  { %21073 = vmatprep.subr.bf16.mxu1 %v24177_v57  ;;  %v24209_v57 = vld [vmem:[%s28758_s5 + $0xb68] sm:$0xff]  }
 0x9a1   :  { %v20925_v43 = vpop.f32.mrb[244].mxu1 }
 0x9a2   :  { %v20926_v0 = vpop.f32.mrb[245].mxu1 }
 0x9a3   :  { %v20927_v31 = vadd.f32 %v20926_v0, %v20925_v43  ;;  %v20928_v51 = vpop.f32.mrb[246].mxu1  ;;  %21074 = vmatpush3.bf16.msra.mxu1 %v24178_v52  ;;  %v24210_v52 = vld [vmem:[%s28758_s5 + $0xb28] sm:$0xff]  }
 0x9a4   :  { %v20929_v24 = vpop.f32.mrb[247].mxu1  ;;  %21075 = vmatprep.subr.bf16.mxu1 %v24179_v60  ;;  %v24211_v60 = vld [vmem:[%s28758_s5 + $0xb70] sm:$0xff]  }
 0x9a5   :  { %v17748_v6 = vadd.f32 %v20927_v31, %v17707_v48  ;;  %v20930_v61 = vadd.f32 %v20929_v24, %v20928_v51 }
 0x9a7   :  { %v17751_v21 = vadd.f32 %v20930_v61, %v17710_v29  ;;  %21076 = vmatpush3.bf16.msra.mxu1 %v24180_v32  ;;  %v24212_v32 = vld [vmem:[%s28758_s5 + $0xb30] sm:$0xff]  }
 0x9a8   :  { %21077 = vmatprep.subr.bf16.mxu1 %v24181_v39  ;;  %v24213_v39 = vld [vmem:[%s28758_s5 + $0xb78] sm:$0xff]  }
 0x9ab   :  { %21078 = vmatpush3.bf16.msra.mxu1 %v24182_v18  ;;  %v24214_v18 = vld [vmem:[%s28758_s5 + $0xb38] sm:$0xff]  }
 0x9ac   :  { %21085 = vmatprep.subr.bf16.mxu1 %v24183_v53  ;;  %v24215_v53 = vld [vmem:[%s28758_s5 + $0xbc0] sm:$0xff]  }
 0x9ae   :  { %18033 = vmatmul.mubr.bf16.vlgmr.msra.gmra.mrb[16].mxu1 %v27306_v46  ;;  %v24189_v46 = vld [vmem:[%s28758_s5 + $0xad8] sm:$0xff]  }
 0x9af   :  { %21086 = vmatpush3.bf16.msra.mxu1 %v24184_v27  ;;  %18073 = vmatprep.mubr.bf16.mxu1 %v27330_v12  ;;  %v24190_v12 = vld [vmem:[%s28758_s5 + $0xa98] sm:$0xff]   ;;  %v24216_v27 = vld [vmem:[%s28758_s5 + $0xb80] sm:$0xff]  }
 0x9b0   :  { %21087 = vmatprep.subr.bf16.mxu1 %v24185_v40  ;;  %v24217_v40 = vld [vmem:[%s28758_s5 + $0xbc8] sm:$0xff]  }
 0x9b3   :  { %21088 = vmatpush3.bf16.msra.mxu1 %v24186_v9  ;;  %v24218_v9 = vld [vmem:[%s28758_s5 + $0xb88] sm:$0xff]  }
 0x9b4   :  { %21089 = vmatprep.subr.bf16.mxu1 %v24187_v10  ;;  %v24219_v10 = vld [vmem:[%s28758_s5 + $0xbd0] sm:$0xff]  }
 0x9b7   :  { %21090 = vmatpush3.bf16.msra.mxu1 %v24188_v35  ;;  %v24220_v35 = vld [vmem:[%s28758_s5 + $0xb90] sm:$0xff]  }
 0x9b8   :  { %21091 = vmatprep.subr.bf16.mxu1 %v24189_v46  ;;  %v24223_v46 = vld [vmem:[%s28758_s5 + $0xbe0] sm:$0xff]  }
 0x9bb   :  { %21092 = vmatpush3.bf16.msra.mxu1 %v24190_v12  ;;  %v24224_v12 = vld [vmem:[%s28758_s5 + $0xba0] sm:$0xff]  }
 0x9bc   :  { %21093 = vmatprep.subr.bf16.mxu1 %v24191_v63  ;;  %v24225_v63 = vld [vmem:[%s28758_s5 + $0xbe8] sm:$0xff]  }
 0x9bf   :  { %21094 = vmatpush3.bf16.msra.mxu1 %v24192_v4  ;;  %v24226_v4 = vld [vmem:[%s28758_s5 + $0xba8] sm:$0xff]  }
 0x9c0   :  { %21095 = vmatprep.subr.bf16.mxu1 %v24193_v58  ;;  %v24227_v58 = vld [vmem:[%s28758_s5 + $0xbf0] sm:$0xff]  }
 0x9c1   :  { %v20947_v7 = vpop.f32.mrb[248].mxu1 }
 0x9c2   :  { %v20948_v17 = vpop.f32.mrb[249].mxu1 }
 0x9c3   :  { %v20949_v1 = vadd.f32 %v20948_v17, %v20947_v7  ;;  %v20950_v11 = vpop.f32.mrb[250].mxu1  ;;  %21096 = vmatpush3.bf16.msra.mxu1 %v24194_v26 }
 0x9c4   :  { %v20951_v48 = vpop.f32.mrb[251].mxu1  ;;  %21097 = vmatprep.subr.bf16.mxu1 %v24195_v2 }
 0x9c5   :  { %v17789_v29 = vadd.f32 %v20949_v1, %v17748_v6  ;;  %v20952_v42 = vadd.f32 %v20951_v48, %v20950_v11  ;;  %v24228_v1 = vld [vmem:[%s28758_s5 + $0xbb0] sm:$0xff]  }
 0x9c7   :  { %v17792_v28 = vadd.f32 %v20952_v42, %v17751_v21  ;;  %21098 = vmatpush3.bf16.msra.mxu1 %v24196_v50  ;;  %v24229_v50 = vld [vmem:[%s28758_s5 + $0xbf8] sm:$0xff]  }
 0x9c8   :  { %21099 = vmatprep.subr.bf16.mxu1 %v24197_v55  ;;  %v24230_v42 = vld [vmem:[%s28758_s5 + $0xbb8] sm:$0xff]  }
 0x9cb   :  { %21100 = vmatpush3.bf16.msra.mxu1 %v24198_v47  ;;  %v24232_v47 = vld [vmem:[%s28758_s5 + $0xc00] sm:$0xff]  }
 0x9cc   :  { %21107 = vmatprep.subr.bf16.mxu1 %v24199_v15  ;;  %v24233_v15 = vld [vmem:[%s28758_s5 + $0xc48] sm:$0xff]  }
 0x9ce   :  { %18074 = vmatmul.mubr.bf16.vlgmr.msra.gmra.mrb[20].mxu1 %v27332_v3  ;;  %v24205_v3 = vld [vmem:[%s28758_s5 + $0xb58] sm:$0xff]  }
 0x9cf   :  { %21108 = vmatpush3.bf16.msra.mxu1 %v24200_v37  ;;  %18114 = vmatprep.mubr.bf16.mxu1 %v27354_v16  ;;  %v24206_v16 = vld [vmem:[%s28758_s5 + $0xb18] sm:$0xff]   ;;  %v24234_v37 = vld [vmem:[%s28758_s5 + $0xc08] sm:$0xff]  }
 0x9d0   :  { %21109 = vmatprep.subr.bf16.mxu1 %v24201_v22  ;;  %v24235_v22 = vld [vmem:[%s28758_s5 + $0xc50] sm:$0xff]  }
 0x9d3   :  { %21110 = vmatpush3.bf16.msra.mxu1 %v24202_v30  ;;  %v24236_v30 = vld [vmem:[%s28758_s5 + $0xc10] sm:$0xff]  }
 0x9d4   :  { %21111 = vmatprep.subr.bf16.mxu1 %v24203_v38  ;;  %v24239_v38 = vld [vmem:[%s28758_s5 + $0xc60] sm:$0xff]  }
 0x9d7   :  { %21112 = vmatpush3.bf16.msra.mxu1 %v24204_v14  ;;  %v24240_v14 = vld [vmem:[%s28758_s5 + $0xc20] sm:$0xff]  }
 0x9d8   :  { %21113 = vmatprep.subr.bf16.mxu1 %v24205_v3  ;;  %v24241_v3 = vld [vmem:[%s28758_s5 + $0xc68] sm:$0xff]  }
 0x9db   :  { %21114 = vmatpush3.bf16.msra.mxu1 %v24206_v16  ;;  %v24242_v16 = vld [vmem:[%s28758_s5 + $0xc28] sm:$0xff]  }
 0x9dc   :  { %21115 = vmatprep.subr.bf16.mxu1 %v24207_v25  ;;  %v24243_v25 = vld [vmem:[%s28758_s5 + $0xc70] sm:$0xff]  }
 0x9df   :  { %21116 = vmatpush3.bf16.msra.mxu1 %v24208_v59 }
 0x9e0   :  { %21117 = vmatprep.subr.bf16.mxu1 %v24209_v57 }
 0x9e1   :  { %v20969_v43 = vpop.f32.mrb[252].mxu1 }
 0x9e2   :  { %v20970_v0 = vpop.f32.mrb[253].mxu1 }
 0x9e3   :  { %v20971_v31 = vadd.f32 %v20970_v0, %v20969_v43  ;;  %v20972_v51 = vpop.f32.mrb[254].mxu1  ;;  %21118 = vmatpush3.bf16.msra.mxu1 %v24210_v52  ;;  %v24244_v43 = vld [vmem:[%s28758_s5 + $0xc30] sm:$0xff]  }
 0x9e4   :  { %v20973_v24 = vpop.f32.mrb[255].mxu1  ;;  %21119 = vmatprep.subr.bf16.mxu1 %v24211_v60 }
 0x9e5   :  { %v17830_v6 = vadd.f32 %v20971_v31, %v17789_v29  ;;  %v20974_v61 = vadd.f32 %v20973_v24, %v20972_v51  ;;  %v24245_v31 = vld [vmem:[%s28758_s5 + $0xc78] sm:$0xff]  }
 0x9e7   :  { %v17833_v21 = vadd.f32 %v20974_v61, %v17792_v28  ;;  %21120 = vmatpush3.bf16.msra.mxu1 %v24212_v32  ;;  %v24231_v28 = vld [vmem:[%s28758_s5 + $0xc40] sm:$0xff]  }
 0x9e8   :  { %21121 = vmatprep.subr.bf16.mxu1 %v24213_v39  ;;  %v24246_v39 = vld [vmem:[%s28758_s5 + $0xc38] sm:$0xff]   ;;  %v24248_v61 = vld [vmem:[%s28758_s5 + $0xc80] sm:$0xff]  }
 0x9eb   :  { %21122 = vmatpush3.bf16.msra.mxu1 %v24214_v18  ;;  %v24250_v18 = vld [vmem:[%s28758_s5 + $0xc88] sm:$0xff]  }
 0x9ec   :  { %21129 = vmatprep.subr.bf16.mxu1 %v24215_v53  ;;  %v24251_v53 = vld [vmem:[%s28758_s5 + $0xcd0] sm:$0xff]  }
 0x9ee   :  { %18115 = vmatmul.mubr.bf16.vlgmr.msra.gmra.mrb[24].mxu1 %v27356_v62  ;;  %v24221_v62 = vld [vmem:[%s28758_s5 + $0xbd8] sm:$0xff]  }
 0x9ef   :  { %21130 = vmatpush3.bf16.msra.mxu1 %v24216_v27  ;;  %18155 = vmatprep.mubr.bf16.mxu1 %v27378_v56  ;;  %v24222_v56 = vld [vmem:[%s28758_s5 + $0xb98] sm:$0xff]   ;;  %v24252_v27 = vld [vmem:[%s28758_s5 + $0xc90] sm:$0xff]  }
 0x9f0   :  { %21131 = vmatprep.subr.bf16.mxu1 %v24217_v40  ;;  %v24255_v40 = vld [vmem:[%s28758_s5 + $0xce0] sm:$0xff]  }
 0x9f3   :  { %21132 = vmatpush3.bf16.msra.mxu1 %v24218_v9  ;;  %v24256_v9 = vld [vmem:[%s28758_s5 + $0xca0] sm:$0xff]  }
 0x9f4   :  { %21133 = vmatprep.subr.bf16.mxu1 %v24219_v10  ;;  %v24257_v10 = vld [vmem:[%s28758_s5 + $0xce8] sm:$0xff]  }
 0x9f7   :  { %21134 = vmatpush3.bf16.msra.mxu1 %v24220_v35  ;;  %v24258_v35 = vld [vmem:[%s28758_s5 + $0xca8] sm:$0xff]  }
 0x9f8   :  { %21135 = vmatprep.subr.bf16.mxu1 %v24221_v62  ;;  %v24259_v62 = vld [vmem:[%s28758_s5 + $0xcf0] sm:$0xff]  }
 0x9fb   :  { %21136 = vmatpush3.bf16.msra.mxu1 %v24222_v56 }
 0x9fc   :  { %21137 = vmatprep.subr.bf16.mxu1 %v24223_v46 }
 0x9ff   :  { %21138 = vmatpush3.bf16.msra.mxu1 %v24224_v12 }
 0xa00   :  { %21139 = vmatprep.subr.bf16.mxu1 %v24225_v63 }
 0xa01   :  { %v20991_v26 = vpop.f32.mrb[0].mxu1 }
 0xa02   :  { %v20992_v2 = vpop.f32.mrb[1].mxu1 }
 0xa03   :  { %v20993_v7 = vadd.f32 %v20992_v2, %v20991_v26  ;;  %v20994_v17 = vpop.f32.mrb[2].mxu1  ;;  %21140 = vmatpush3.bf16.msra.mxu1 %v24226_v4  ;;  %v24260_v4 = vld [vmem:[%s28758_s5 + $0xcb0] sm:$0xff]   ;;  %v24261_v26 = vld [vmem:[%s28758_s5 + $0xcf8] sm:$0xff]  }
 0xa04   :  { %v20995_v11 = vpop.f32.mrb[3].mxu1  ;;  %21141 = vmatprep.subr.bf16.mxu1 %v24227_v58 }
 0xa05   :  { %v17871_v48 = vadd.f32 %v20993_v7, %v17830_v6  ;;  %v20996_v55 = vadd.f32 %v20995_v11, %v20994_v17  ;;  %v24247_v6 = vld [vmem:[%s28758_s5 + $0xcc0] sm:$0xff]  }
 0xa06   :  { %v24263_v11 = vld [vmem:[%s28758_s5 + $0xd40] sm:$0xff]  }
 0xa07   :  { %v17874_v29 = vadd.f32 %v20996_v55, %v17833_v21  ;;  %21142 = vmatpush3.bf16.msra.mxu1 %v24228_v1  ;;  %v24249_v21 = vld [vmem:[%s28758_s5 + $0xcc8] sm:$0xff]   ;;  %v24262_v1 = vld [vmem:[%s28758_s5 + $0xcb8] sm:$0xff]  }
 0xa08   :  { %21143 = vmatprep.subr.bf16.mxu1 %v24229_v50  ;;  %v24264_v50 = vld [vmem:[%s28758_s5 + $0xd00] sm:$0xff]   ;;  %v24266_v55 = vld [vmem:[%s28758_s5 + $0xd08] sm:$0xff]  }
 0xa0b   :  { %21144 = vmatpush3.bf16.msra.mxu1 %v24230_v42  ;;  %v24268_v42 = vld [vmem:[%s28758_s5 + $0xd10] sm:$0xff]  }
 0xa0c   :  { %21151 = vmatprep.subr.bf16.mxu1 %v24231_v28  ;;  %v24271_v28 = vld [vmem:[%s28758_s5 + $0xd60] sm:$0xff]  }
 0xa0e   :  { %18156 = vmatmul.mubr.bf16.vlgmr.msra.gmra.mrb[28].mxu1 %v27380_v19  ;;  %v24237_v19 = vld [vmem:[%s28758_s5 + $0xc58] sm:$0xff]  }
 0xa0f   :  { %21152 = vmatpush3.bf16.msra.mxu1 %v24232_v47  ;;  %18196 = vmatprep.mubr.bf16.mxu1 %v27402_v44  ;;  %v24238_v44 = vld [vmem:[%s28758_s5 + $0xc18] sm:$0xff]   ;;  %v24272_v47 = vld [vmem:[%s28758_s5 + $0xd20] sm:$0xff]  }
 0xa10   :  { %21153 = vmatprep.subr.bf16.mxu1 %v24233_v15  ;;  %v24273_v15 = vld [vmem:[%s28758_s5 + $0xd68] sm:$0xff]  }
 0xa13   :  { %21154 = vmatpush3.bf16.msra.mxu1 %v24234_v37  ;;  %v24274_v37 = vld [vmem:[%s28758_s5 + $0xd28] sm:$0xff]  }
 0xa14   :  { %21155 = vmatprep.subr.bf16.mxu1 %v24235_v22  ;;  %v24275_v22 = vld [vmem:[%s28758_s5 + $0xd70] sm:$0xff]  }
 0xa17   :  { %21156 = vmatpush3.bf16.msra.mxu1 %v24236_v30 }
 0xa18   :  { %21157 = vmatprep.subr.bf16.mxu1 %v24237_v19 }
 0xa1b   :  { %21158 = vmatpush3.bf16.msra.mxu1 %v24238_v44 }
 0xa1c   :  { %21159 = vmatprep.subr.bf16.mxu1 %v24239_v38 }
 0xa1f   :  { %21160 = vmatpush3.bf16.msra.mxu1 %v24240_v14  ;;  %v24276_v14 = vld [vmem:[%s28758_s5 + $0xd30] sm:$0xff]  }
 0xa20   :  { %21161 = vmatprep.subr.bf16.mxu1 %v24241_v3 }
 0xa21   :  { %v21013_v59 = vpop.f32.mrb[4].mxu1 }
 0xa22   :  { %v21014_v57 = vpop.f32.mrb[5].mxu1 }
 0xa23   :  { %v21015_v52 = vadd.f32 %v21014_v57, %v21013_v59  ;;  %v21016_v60 = vpop.f32.mrb[6].mxu1  ;;  %21162 = vmatpush3.bf16.msra.mxu1 %v24242_v16  ;;  %v24277_v16 = vld [vmem:[%s28758_s5 + $0xd78] sm:$0xff]  }
 0xa24   :  { %v21017_v0 = vpop.f32.mrb[7].mxu1  ;;  %21163 = vmatprep.subr.bf16.mxu1 %v24243_v25 }
 0xa25   :  { %v17912_v51 = vadd.f32 %v21015_v52, %v17871_v48  ;;  %v21018_v32 = vadd.f32 %v21017_v0, %v21016_v60  ;;  %v24265_v48 = vld [vmem:[%s28758_s5 + $0xd48] sm:$0xff]   ;;  %v24278_v52 = vld [vmem:[%s28758_s5 + $0xd38] sm:$0xff]   ;;  %v24279_v60 = vld [vmem:[%s28758_s5 + $0xdc0] sm:$0xff]  }
 0xa26   :  { %v24281_v0 = vld [vmem:[%s28758_s5 + $0xdc8] sm:$0xff]  }
 0xa27   :  { %v17915_v24 = vadd.f32 %v21018_v32, %v17874_v29  ;;  %21164 = vmatpush3.bf16.msra.mxu1 %v24244_v43  ;;  %v24267_v29 = vld [vmem:[%s28758_s5 + $0xd50] sm:$0xff]   ;;  %v24280_v43 = vld [vmem:[%s28758_s5 + $0xd80] sm:$0xff]  }
 0xa28   :  { %21165 = vmatprep.subr.bf16.mxu1 %v24245_v31  ;;  %v24282_v31 = vld [vmem:[%s28758_s5 + $0xd88] sm:$0xff]   ;;  %v24284_v32 = vld [vmem:[%s28758_s5 + $0xd90] sm:$0xff]  }
 0xa2b   :  { %21166 = vmatpush3.bf16.msra.mxu1 %v24246_v39  ;;  %v24288_v39 = vld [vmem:[%s28758_s5 + $0xda0] sm:$0xff]  }
 0xa2c   :  { %21173 = vmatprep.subr.bf16.mxu1 %v24247_v6  ;;  %v24289_v6 = vld [vmem:[%s28758_s5 + $0xde8] sm:$0xff]  }
 0xa2e   :  { %18197 = vmatmul.mubr.bf16.vlgmr.msra.gmra.mrb[32].mxu1 %v27404_v13  ;;  %v24253_v13 = vld [vmem:[%s28758_s5 + $0xcd8] sm:$0xff]  }
 0xa2f   :  { %21174 = vmatpush3.bf16.msra.mxu1 %v24248_v61  ;;  %18237 = vmatprep.mubr.bf16.mxu1 %v27428_v41  ;;  %v24254_v41 = vld [vmem:[%s28758_s5 + $0xc98] sm:$0xff]   ;;  %v24290_v61 = vld [vmem:[%s28758_s5 + $0xda8] sm:$0xff]  }
 0xa30   :  { %21175 = vmatprep.subr.bf16.mxu1 %v24249_v21  ;;  %v24291_v21 = vld [vmem:[%s28758_s5 + $0xdf0] sm:$0xff]  }
 0xa33   :  { %21176 = vmatpush3.bf16.msra.mxu1 %v24250_v18 }
 0xa34   :  { %21177 = vmatprep.subr.bf16.mxu1 %v24251_v53 }
 0xa37   :  { %21178 = vmatpush3.bf16.msra.mxu1 %v24252_v27 }
 0xa38   :  { %21179 = vmatprep.subr.bf16.mxu1 %v24253_v13 }
 0xa3b   :  { %21180 = vmatpush3.bf16.msra.mxu1 %v24254_v41  ;;  %v24292_v41 = vld [vmem:[%s28758_s5 + $0xdb0] sm:$0xff]  }
 0xa3c   :  { %21181 = vmatprep.subr.bf16.mxu1 %v24255_v40 }
 0xa3f   :  { %21182 = vmatpush3.bf16.msra.mxu1 %v24256_v9  ;;  %v24293_v9 = vld [vmem:[%s28758_s5 + $0xdf8] sm:$0xff]  }
 0xa40   :  { %21183 = vmatprep.subr.bf16.mxu1 %v24257_v10 }
 0xa41   :  { %v21035_v56 = vpop.f32.mrb[8].mxu1 }
 0xa42   :  { %v21036_v46 = vpop.f32.mrb[9].mxu1 }
 0xa43   :  { %v21037_v12 = vadd.f32 %v21036_v46, %v21035_v56  ;;  %v21038_v63 = vpop.f32.mrb[10].mxu1  ;;  %21184 = vmatpush3.bf16.msra.mxu1 %v24258_v35  ;;  %v24294_v56 = vld [vmem:[%s28758_s5 + $0xdb8] sm:$0xff]   ;;  %v24295_v46 = vld [vmem:[%s28758_s5 + $0xe40] sm:$0xff]  }
 0xa44   :  { %v21039_v58 = vpop.f32.mrb[11].mxu1  ;;  %21185 = vmatprep.subr.bf16.mxu1 %v24259_v62 }
 0xa45   :  { %v17953_v2 = vadd.f32 %v21037_v12, %v17912_v51  ;;  %v21040_v7 = vadd.f32 %v21039_v58, %v21038_v63  ;;  %v24283_v51 = vld [vmem:[%s28758_s5 + $0xdd0] sm:$0xff]   ;;  %v24296_v12 = vld [vmem:[%s28758_s5 + $0xe00] sm:$0xff]   ;;  %v24297_v63 = vld [vmem:[%s28758_s5 + $0xe48] sm:$0xff]  }
 0xa46   :  { %v24299_v58 = vld [vmem:[%s28758_s5 + $0xe50] sm:$0xff]  }
 0xa47   :  { %v17956_v17 = vadd.f32 %v21040_v7, %v17915_v24  ;;  %21186 = vmatpush3.bf16.msra.mxu1 %v24260_v4  ;;  %v24287_v24 = vld [vmem:[%s28758_s5 + $0xde0] sm:$0xff]   ;;  %v24298_v4 = vld [vmem:[%s28758_s5 + $0xe08] sm:$0xff]  }
 0xa48   :  { %21187 = vmatprep.subr.bf16.mxu1 %v24261_v26  ;;  %v24300_v26 = vld [vmem:[%s28758_s5 + $0xe10] sm:$0xff]   ;;  %v24304_v7 = vld [vmem:[%s28758_s5 + $0xe20] sm:$0xff]  }
 0xa4b   :  { %21188 = vmatpush3.bf16.msra.mxu1 %v24262_v1  ;;  %v24306_v1 = vld [vmem:[%s28758_s5 + $0xe28] sm:$0xff]  }
 0xa4c   :  { %21195 = vmatprep.subr.bf16.mxu1 %v24263_v11  ;;  %v24307_v11 = vld [vmem:[%s28758_s5 + $0xe70] sm:$0xff]  }
 0xa4e   :  { %18238 = vmatmul.mubr.bf16.vlgmr.msra.gmra.mrb[36].mxu1 %v27430_v36  ;;  %v24269_v36 = vld [vmem:[%s28758_s5 + $0xd58] sm:$0xff]  }
 0xa4f   :  { %21196 = vmatpush3.bf16.msra.mxu1 %v24264_v50  ;;  %18278 = vmatprep.mubr.bf16.mxu1 %v27457_v23  ;;  %v24270_v23 = vld [vmem:[%s28758_s5 + $0xd18] sm:$0xff]  }
 0xa50   :  { %21197 = vmatprep.subr.bf16.mxu1 %v24265_v48 }
 0xa53   :  { %21198 = vmatpush3.bf16.msra.mxu1 %v24266_v55 }
 0xa54   :  { %21199 = vmatprep.subr.bf16.mxu1 %v24267_v29 }
 0xa57   :  { %21200 = vmatpush3.bf16.msra.mxu1 %v24268_v42  ;;  %v24308_v42 = vld [vmem:[%s28758_s5 + $0xe30] sm:$0xff]  }
 0xa58   :  { %21201 = vmatprep.subr.bf16.mxu1 %v24269_v36 }
 0xa5b   :  { %21202 = vmatpush3.bf16.msra.mxu1 %v24270_v23  ;;  %v24309_v23 = vld [vmem:[%s28758_s5 + $0xe78] sm:$0xff]  }
 0xa5c   :  { %21203 = vmatprep.subr.bf16.mxu1 %v24271_v28 }
 0xa5f   :  { %21204 = vmatpush3.bf16.msra.mxu1 %v24272_v47 }
 0xa60   :  { %21205 = vmatprep.subr.bf16.mxu1 %v24273_v15 }
 0xa61   :  { %v21057_v30 = vpop.f32.mrb[12].mxu1 }
 0xa62   :  { %v21058_v19 = vpop.f32.mrb[13].mxu1 }
 0xa63   :  { %v21059_v44 = vadd.f32 %v21058_v19, %v21057_v30  ;;  %v21060_v38 = vpop.f32.mrb[14].mxu1  ;;  %21206 = vmatpush3.bf16.msra.mxu1 %v24274_v37  ;;  %v24310_v37 = vld [vmem:[%s28758_s5 + $0xe38] sm:$0xff]   ;;  %v24312_v30 = vld [vmem:[%s28758_s5 + $0xe80] sm:$0xff]   ;;  %v24313_v19 = vld [vmem:[%s28758_s5 + $0xec8] sm:$0xff]  }
 0xa64   :  { %v21061_v3 = vpop.f32.mrb[15].mxu1  ;;  %21207 = vmatprep.subr.bf16.mxu1 %v24275_v22  ;;  %v24311_v22 = vld [vmem:[%s28758_s5 + $0xec0] sm:$0xff]  }
 0xa65   :  { %v17994_v25 = vadd.f32 %v21059_v44, %v17953_v2  ;;  %v21062_v59 = vadd.f32 %v21061_v3, %v21060_v38  ;;  %v24303_v2 = vld [vmem:[%s28758_s5 + $0xe60] sm:$0xff]   ;;  %v24314_v38 = vld [vmem:[%s28758_s5 + $0xe88] sm:$0xff]   ;;  %v24316_v3 = vld [vmem:[%s28758_s5 + $0xe90] sm:$0xff]  }
 0xa66   :  { %v28996_v44 = vld [vmem:[#allocation57_spill] sm:$0xff] }
 0xa67   :  { %v17997_v57 = vadd.f32 %v21062_v59, %v17956_v17  ;;  %21208 = vmatpush3.bf16.msra.mxu1 %v24276_v14  ;;  %v24305_v17 = vld [vmem:[%s28758_s5 + $0xe68] sm:$0xff]   ;;  %v24315_v14 = vld [vmem:[%s28758_s5 + $0xed0] sm:$0xff]   ;;  %v24320_v59 = vld [vmem:[%s28758_s5 + $0xea0] sm:$0xff]  }
 0xa68   :  { %21209 = vmatprep.subr.bf16.mxu1 %v24277_v16  ;;  %v24318_v16 = vld [vmem:[%s28758_s5 + $0xe98] sm:$0xff]  }
 0xa6b   :  { %21210 = vmatpush3.bf16.msra.mxu1 %v24278_v52  ;;  %v24322_v52 = vld [vmem:[%s28758_s5 + $0xea8] sm:$0xff]  }
 0xa6c   :  { %21217 = vmatprep.subr.bf16.mxu1 %v24279_v60  ;;  %v24323_v60 = vld [vmem:[%s28758_s5 + $0xef0] sm:$0xff]  }
 0xa6e   :  { %18279 = vmatmul.mubr.bf16.vlgmr.msra.gmra.mrb[40].mxu1 %v27459_v34  ;;  %v24285_v34 = vld [vmem:[%s28758_s5 + $0xdd8] sm:$0xff]  }
 0xa6f   :  { %21218 = vmatpush3.bf16.msra.mxu1 %v24280_v43  ;;  %18319 = vmatprep.mubr.bf16.mxu1 %v27483_v54  ;;  %v24286_v54 = vld [vmem:[%s28758_s5 + $0xd98] sm:$0xff]  }
 0xa70   :  { %21219 = vmatprep.subr.bf16.mxu1 %v24281_v0 }
 0xa73   :  { %21220 = vmatpush3.bf16.msra.mxu1 %v24282_v31 }
 0xa74   :  { %21221 = vmatprep.subr.bf16.mxu1 %v24283_v51 }
 0xa77   :  { %21222 = vmatpush3.bf16.msra.mxu1 %v24284_v32  ;;  %v24324_v32 = vld [vmem:[%s28758_s5 + $0xeb0] sm:$0xff]  }
 0xa78   :  { %21223 = vmatprep.subr.bf16.mxu1 %v24285_v34 }
 0xa7b   :  { %21224 = vmatpush3.bf16.msra.mxu1 %v24286_v54  ;;  %v24325_v54 = vld [vmem:[%s28758_s5 + $0xef8] sm:$0xff]  }
 0xa7c   :  { %21225 = vmatprep.subr.bf16.mxu1 %v24287_v24 }
 0xa7f   :  { %21226 = vmatpush3.bf16.msra.mxu1 %v24288_v39 }
 0xa80   :  { %21227 = vmatprep.subr.bf16.mxu1 %v24289_v6 }
 0xa81   :  { %v21079_v18 = vpop.f32.mrb[16].mxu1 }
 0xa82   :  { %v21080_v53 = vpop.f32.mrb[17].mxu1 }
 0xa83   :  { %v21081_v27 = vadd.f32 %v21080_v53, %v21079_v18  ;;  %v21082_v13 = vpop.f32.mrb[18].mxu1  ;;  %21228 = vmatpush3.bf16.msra.mxu1 %v24290_v61  ;;  %v24326_v61 = vld [vmem:[%s28758_s5 + $0xeb8] sm:$0xff]   ;;  %v24328_v18 = vld [vmem:[%s28758_s5 + $0xf00] sm:$0xff]   ;;  %v24329_v53 = vld [vmem:[%s28758_s5 + $0xf48] sm:$0xff]  }
 0xa84   :  { %v21083_v40 = vpop.f32.mrb[19].mxu1  ;;  %21229 = vmatprep.subr.bf16.mxu1 %v24291_v21  ;;  %v24327_v21 = vld [vmem:[%s28758_s5 + $0xf40] sm:$0xff]  }
 0xa85   :  { %v18035_v10 = vadd.f32 %v21081_v27, %v17994_v25  ;;  %v21084_v35 = vadd.f32 %v21083_v40, %v21082_v13  ;;  %v24319_v25 = vld [vmem:[%s28758_s5 + $0xee0] sm:$0xff]   ;;  %v24330_v13 = vld [vmem:[%s28758_s5 + $0xf08] sm:$0xff]   ;;  %v24332_v40 = vld [vmem:[%s28758_s5 + $0xf10] sm:$0xff]  }
 0xa86   :  { %v28997_v27 = vld [vmem:[#allocation5_spill] sm:$0xff] }
 0xa87   :  { %v18038_v62 = vadd.f32 %v21084_v35, %v17997_v57  ;;  %21230 = vmatpush3.bf16.msra.mxu1 %v24292_v41  ;;  %v24321_v57 = vld [vmem:[%s28758_s5 + $0xee8] sm:$0xff]   ;;  %v24331_v41 = vld [vmem:[%s28758_s5 + $0xf50] sm:$0xff]   ;;  %v24336_v35 = vld [vmem:[%s28758_s5 + $0xf20] sm:$0xff]  }
 0xa88   :  { %21231 = vmatprep.subr.bf16.mxu1 %v24293_v9  ;;  %v24333_v9 = vld [vmem:[%s28758_s5 + $0xf58] sm:$0xff]  }
 0xa8b   :  { %21232 = vmatpush3.bf16.msra.mxu1 %v24294_v56  ;;  %v24338_v56 = vld [vmem:[%s28758_s5 + $0xf28] sm:$0xff]  }
 0xa8c   :  { %21239 = vmatprep.subr.bf16.mxu1 %v24295_v46  ;;  %v24339_v46 = vld [vmem:[%s28758_s5 + $0xf70] sm:$0xff]  }
 0xa8e   :  { %18320 = vmatmul.mubr.bf16.vlgmr.msra.gmra.mrb[44].mxu1 %v27485_v33  ;;  %v24301_v33 = vld [vmem:[%s28758_s5 + $0xe58] sm:$0xff]  }
 0xa8f   :  { %21240 = vmatpush3.bf16.msra.mxu1 %v24296_v12  ;;  %18360 = vmatprep.mubr.bf16.mxu1 %v27509_v45  ;;  %v24302_v45 = vld [vmem:[%s28758_s5 + $0xe18] sm:$0xff]  }
 0xa90   :  { %21241 = vmatprep.subr.bf16.mxu1 %v24297_v63 }
 0xa93   :  { %21242 = vmatpush3.bf16.msra.mxu1 %v24298_v4 }
 0xa94   :  { %21243 = vmatprep.subr.bf16.mxu1 %v24299_v58 }
 0xa97   :  { %21244 = vmatpush3.bf16.msra.mxu1 %v24300_v26  ;;  %v24340_v26 = vld [vmem:[%s28758_s5 + $0xf30] sm:$0xff]  }
 0xa98   :  { %21245 = vmatprep.subr.bf16.mxu1 %v24301_v33 }
 0xa9b   :  { %21246 = vmatpush3.bf16.msra.mxu1 %v24302_v45  ;;  %v24341_v45 = vld [vmem:[%s28758_s5 + $0xf78] sm:$0xff]  }
 0xa9c   :  { %21247 = vmatprep.subr.bf16.mxu1 %v24303_v2 }
 0xa9f   :  { %21248 = vmatpush3.bf16.msra.mxu1 %v24304_v7 }
 0xaa0   :  { %21249 = vmatprep.subr.bf16.mxu1 %v24305_v17 }
 0xaa1   :  { %v21101_v50 = vpop.f32.mrb[20].mxu1 }
 0xaa2   :  { %v21102_v48 = vpop.f32.mrb[21].mxu1 }
 0xaa3   :  { %v21103_v55 = vadd.f32 %v21102_v48, %v21101_v50  ;;  %v21104_v29 = vpop.f32.mrb[22].mxu1  ;;  %21250 = vmatpush3.bf16.msra.mxu1 %v24306_v1  ;;  %v24342_v1 = vld [vmem:[%s28758_s5 + $0xf38] sm:$0xff]   ;;  %v24344_v50 = vld [vmem:[%s28758_s5 + $0xf80] sm:$0xff]   ;;  %v24345_v48 = vld [vmem:[%s28758_s5 + $0xfc8] sm:$0xff]  }
 0xaa4   :  { %v21105_v36 = vpop.f32.mrb[23].mxu1  ;;  %21251 = vmatprep.subr.bf16.mxu1 %v24307_v11  ;;  %v24343_v11 = vld [vmem:[%s28758_s5 + $0xfc0] sm:$0xff]  }
 0xaa5   :  { %v18076_v28 = vadd.f32 %v21103_v55, %v18035_v10  ;;  %v21106_v47 = vadd.f32 %v21105_v36, %v21104_v29  ;;  %v24335_v10 = vld [vmem:[%s28758_s5 + $0xf60] sm:$0xff]   ;;  %v28998_v55 = vld [vmem:[#allocation6_spill] sm:$0xff]  ;;  %v24348_v36 = vld [vmem:[%s28758_s5 + $0xf90] sm:$0xff]  }
 0xaa6   :  { %v24346_v29 = vld [vmem:[%s28758_s5 + $0xf88] sm:$0xff]  }
 0xaa7   :  { %v18079_v15 = vadd.f32 %v21106_v47, %v18038_v62  ;;  %21252 = vmatpush3.bf16.msra.mxu1 %v24308_v42  ;;  %v24337_v62 = vld [vmem:[%s28758_s5 + $0xf68] sm:$0xff]   ;;  %v24347_v42 = vld [vmem:[%s28758_s5 + $0xfd0] sm:$0xff]   ;;  %v24352_v47 = vld [vmem:[%s28758_s5 + $0xfa0] sm:$0xff]  }
 0xaa8   :  { %21253 = vmatprep.subr.bf16.mxu1 %v24309_v23  ;;  %v24349_v23 = vld [vmem:[%s28758_s5 + $0xfd8] sm:$0xff]  }
 0xaab   :  { %21254 = vmatpush3.bf16.msra.mxu1 %v24310_v37  ;;  %v24354_v37 = vld [vmem:[%s28758_s5 + $0xfa8] sm:$0xff]  }
 0xaac   :  { %21261 = vmatprep.subr.bf16.mxu1 %v24311_v22  ;;  %v24355_v22 = vld [vmem:[%s28758_s5 + $0xff0] sm:$0xff]  }
 0xaae   :  { %18361 = vmatmul.mubr.bf16.vlgmr.msra.gmra.mrb[48].mxu1 %v27511_v8  ;;  %v24317_v8 = vld [vmem:[%s28758_s5 + $0xed8] sm:$0xff]  }
 0xaaf   :  { %21262 = vmatpush3.bf16.msra.mxu1 %v24312_v30  ;;  %18401 = vmatprep.mubr.bf16.mxu1 %v28996_v44 }
 0xab0   :  { %21263 = vmatprep.subr.bf16.mxu1 %v24313_v19 }
 0xab3   :  { %21264 = vmatpush3.bf16.msra.mxu1 %v24314_v38 }
 0xab4   :  { %21265 = vmatprep.subr.bf16.mxu1 %v24315_v14  ;;  %v24356_v14 = vld [vmem:[%s28758_s5 + $0xfb0] sm:$0xff]  }
 0xab7   :  { %21266 = vmatpush3.bf16.msra.mxu1 %v24316_v3 }
 0xab8   :  { %21267 = vmatprep.subr.bf16.mxu1 %v24317_v8  ;;  %v24357_v8 = vld [vmem:[%s28758_s5 + $0xff8] sm:$0xff]  }
 0xabb   :  { %21268 = vmatpush3.bf16.msra.mxu1 %v24318_v16 }
 0xabc   :  { %21269 = vmatprep.subr.bf16.mxu1 %v24319_v25 }
 0xabf   :  { %21270 = vmatpush3.bf16.msra.mxu1 %v24320_v59 }
 0xac0   :  { %21271 = vmatprep.subr.bf16.mxu1 %v24321_v57  ;;  %v24358_v57 = vld [vmem:[%s28758_s5 + $0xfb8] sm:$0xff]  }
 0xac1   :  { %v21123_v43 = vpop.f32.mrb[24].mxu1 }
 0xac2   :  { %v21124_v0 = vpop.f32.mrb[25].mxu1 }
 0xac3   :  { %v21125_v31 = vadd.f32 %v21124_v0, %v21123_v43  ;;  %v21126_v51 = vpop.f32.mrb[26].mxu1  ;;  %21272 = vmatpush3.bf16.msra.mxu1 %v24322_v52 }
 0xac4   :  { %v21127_v34 = vpop.f32.mrb[27].mxu1  ;;  %21273 = vmatprep.subr.bf16.mxu1 %v24323_v60 }
 0xac5   :  { %v18117_v24 = vadd.f32 %v21125_v31, %v18076_v28  ;;  %v21128_v39 = vadd.f32 %v21127_v34, %v21126_v51  ;;  %v24351_v28 = vld [vmem:[%s28758_s5 + $0xfe0] sm:$0xff]  }
 0xac7   :  { %v18120_v6 = vadd.f32 %v21128_v39, %v18079_v15  ;;  %21274 = vmatpush3.bf16.msra.mxu1 %v24324_v32  ;;  %v24353_v15 = vld [vmem:[%s28758_s5 + $0xfe8] sm:$0xff]  }
 0xac8   :  { %21275 = vmatprep.subr.bf16.mxu1 %v24325_v54 }
 0xacb   :  { %21276 = vmatpush3.bf16.msra.mxu1 %v24326_v61 }
 0xacc   :  { %21283 = vmatprep.subr.bf16.mxu1 %v24327_v21 }
 0xace   :  { %18402 = vmatmul.mubr.bf16.vlgmr.msra.gmra.mrb[52].mxu1 %v28997_v27 }
 0xacf   :  { %21284 = vmatpush3.bf16.msra.mxu1 %v24328_v18  ;;  %18442 = vmatprep.mubr.bf16.mxu1 %v27559_v49  ;;  %v24334_v49 = vld [vmem:[%s28758_s5 + $0xf18] sm:$0xff]  }
 0xad0   :  { %21285 = vmatprep.subr.bf16.mxu1 %v24329_v53 }
 0xad3   :  { %21286 = vmatpush3.bf16.msra.mxu1 %v24330_v13 }
 0xad4   :  { %21287 = vmatprep.subr.bf16.mxu1 %v24331_v41 }
 0xad7   :  { %21288 = vmatpush3.bf16.msra.mxu1 %v24332_v40 }
 0xad8   :  { %21289 = vmatprep.subr.bf16.mxu1 %v24333_v9 }
 0xadb   :  { %21290 = vmatpush3.bf16.msra.mxu1 %v24334_v49 }
 0xadc   :  { %21291 = vmatprep.subr.bf16.mxu1 %v24335_v10 }
 0xadf   :  { %21292 = vmatpush3.bf16.msra.mxu1 %v24336_v35 }
 0xae0   :  { %21293 = vmatprep.subr.bf16.mxu1 %v24337_v62 }
 0xae1   :  { %v21145_v12 = vpop.f32.mrb[28].mxu1 }
 0xae2   :  { %v21146_v63 = vpop.f32.mrb[29].mxu1 }
 0xae3   :  { %v21147_v4 = vadd.f32 %v21146_v63, %v21145_v12  ;;  %v21148_v58 = vpop.f32.mrb[30].mxu1  ;;  %21294 = vmatpush3.bf16.msra.mxu1 %v24338_v56 }
 0xae4   :  { %v21149_v33 = vpop.f32.mrb[31].mxu1  ;;  %21295 = vmatprep.subr.bf16.mxu1 %v24339_v46 }
 0xae5   :  { %v18158_v2 = vadd.f32 %v21147_v4, %v18117_v24  ;;  %v21150_v7 = vadd.f32 %v21149_v33, %v21148_v58 }
 0xae7   :  { %v18161_v17 = vadd.f32 %v21150_v7, %v18120_v6  ;;  %21296 = vmatpush3.bf16.msra.mxu1 %v24340_v26 }
 0xae8   :  { %21297 = vmatprep.subr.bf16.mxu1 %v24341_v45 }
 0xaeb   :  { %21298 = vmatpush3.bf16.msra.mxu1 %v24342_v1 }
 0xaec   :  { %21305 = vmatprep.subr.bf16.mxu1 %v24343_v11 }
 0xaee   :  { %18443 = vmatmul.mubr.bf16.vlgmr.msra.gmra.mrb[56].mxu1 %v28998_v55 }
 0xaef   :  { %21306 = vmatpush3.bf16.msra.mxu1 %v24344_v50  ;;  %18483 = vmatprep.mubr.bf16.mxu1 %v27586_v5  ;;  %v24350_v5 = vld [vmem:[%s28758_s5 + $0xf98] sm:$0xff]  }
 0xaf0   :  { %21307 = vmatprep.subr.bf16.mxu1 %v24345_v48 }
 0xaf3   :  { %21308 = vmatpush3.bf16.msra.mxu1 %v24346_v29 }
 0xaf4   :  { %21309 = vmatprep.subr.bf16.mxu1 %v24347_v42 }
 0xaf7   :  { %21310 = vmatpush3.bf16.msra.mxu1 %v24348_v36 }
 0xaf8   :  { %21311 = vmatprep.subr.bf16.mxu1 %v24349_v23 }
 0xafb   :  { %21312 = vmatpush3.bf16.msra.mxu1 %v24350_v5 }
 0xafc   :  { %21313 = vmatprep.subr.bf16.mxu1 %v24351_v28 }
 0xaff   :  { %21314 = vmatpush3.bf16.msra.mxu1 %v24352_v47 }
 0xb00   :  { %21315 = vmatprep.subr.bf16.mxu1 %v24353_v15 }
 0xb01   :  { %v21167_v30 = vpop.f32.mrb[32].mxu1 }
 0xb02   :  { %v21168_v19 = vpop.f32.mrb[33].mxu1 }
 0xb03   :  { %v21169_v44 = vadd.f32 %v21168_v19, %v21167_v30  ;;  %v21170_v38 = vpop.f32.mrb[34].mxu1  ;;  %21316 = vmatpush3.bf16.msra.mxu1 %v24354_v37 }
 0xb04   :  { %v21171_v3 = vpop.f32.mrb[35].mxu1  ;;  %21317 = vmatprep.subr.bf16.mxu1 %v24355_v22 }
 0xb05   :  { %v18199_v16 = vadd.f32 %v21169_v44, %v18158_v2  ;;  %v21172_v25 = vadd.f32 %v21171_v3, %v21170_v38 }
 0xb07   :  { %v18202_v59 = vadd.f32 %v21172_v25, %v18161_v17  ;;  %21318 = vmatpush3.bf16.msra.mxu1 %v24356_v14 }
 0xb08   :  { %21319 = vmatprep.subr.bf16.mxu1 %v24357_v8 }
 0xb0b   :  { %21320 = vmatpush3.bf16.msra.mxu1 %v24358_v57 }
 0xb0e   :  { %18484 = vmatmul.mubr.bf16.vlgmr.msra.gmra.mrb[60].mxu1 %v27588_v20 }
 0xb21   :  { %v21189_v52 = vpop.f32.mrb[36].mxu1 }
 0xb22   :  { %v21190_v60 = vpop.f32.mrb[37].mxu1 }
 0xb23   :  { %v21191_v43 = vadd.f32 %v21190_v60, %v21189_v52  ;;  %v21192_v0 = vpop.f32.mrb[38].mxu1 }
 0xb24   :  { %v21193_v31 = vpop.f32.mrb[39].mxu1 }
 0xb25   :  { %v18240_v51 = vadd.f32 %v21191_v43, %v18199_v16  ;;  %v21194_v32 = vadd.f32 %v21193_v31, %v21192_v0 }
 0xb27   :  { %v18243_v34 = vadd.f32 %v21194_v32, %v18202_v59 }
 0xb41   :  { %v21211_v54 = vpop.f32.mrb[40].mxu1 }
 0xb42   :  { %v21212_v24 = vpop.f32.mrb[41].mxu1 }
 0xb43   :  { %v21213_v39 = vadd.f32 %v21212_v24, %v21211_v54  ;;  %v21214_v6 = vpop.f32.mrb[42].mxu1 }
 0xb44   :  { %v21215_v61 = vpop.f32.mrb[43].mxu1 }
 0xb45   :  { %v18281_v21 = vadd.f32 %v21213_v39, %v18240_v51  ;;  %v21216_v18 = vadd.f32 %v21215_v61, %v21214_v6 }
 0xb47   :  { %v18284_v53 = vadd.f32 %v21216_v18, %v18243_v34 }
 0xb61   :  { %v21233_v27 = vpop.f32.mrb[44].mxu1 }
 0xb62   :  { %v21234_v13 = vpop.f32.mrb[45].mxu1 }
 0xb63   :  { %v21235_v41 = vadd.f32 %v21234_v13, %v21233_v27  ;;  %v21236_v20 = vpop.f32.mrb[46].mxu1 }
 0xb64   :  { %v21237_v40 = vpop.f32.mrb[47].mxu1 }
 0xb65   :  { %v18322_v9 = vadd.f32 %v21235_v41, %v18281_v21  ;;  %v21238_v49 = vadd.f32 %v21237_v40, %v21236_v20 }
 0xb67   :  { %v18325_v10 = vadd.f32 %v21238_v49, %v18284_v53 }
 0xb81   :  { %v21255_v35 = vpop.f32.mrb[48].mxu1 }
 0xb82   :  { %v21256_v62 = vpop.f32.mrb[49].mxu1 }
 0xb83   :  { %v21257_v56 = vadd.f32 %v21256_v62, %v21255_v35  ;;  %v21258_v46 = vpop.f32.mrb[50].mxu1 }
 0xb84   :  { %v21259_v12 = vpop.f32.mrb[51].mxu1 }
 0xb85   :  { %v18363_v63 = vadd.f32 %v21257_v56, %v18322_v9  ;;  %v21260_v4 = vadd.f32 %v21259_v12, %v21258_v46 }
 0xb87   :  { %v18366_v58 = vadd.f32 %v21260_v4, %v18325_v10 }
 0xba1   :  { %v21277_v26 = vpop.f32.mrb[52].mxu1 }
 0xba2   :  { %v21278_v33 = vpop.f32.mrb[53].mxu1 }
 0xba3   :  { %v21279_v45 = vadd.f32 %v21278_v33, %v21277_v26  ;;  %v21280_v2 = vpop.f32.mrb[54].mxu1 }
 0xba4   :  { %v21281_v7 = vpop.f32.mrb[55].mxu1 }
 0xba5   :  { %v18404_v17 = vadd.f32 %v21279_v45, %v18363_v63  ;;  %v21282_v1 = vadd.f32 %v21281_v7, %v21280_v2 }
 0xba7   :  { %v18407_v11 = vadd.f32 %v21282_v1, %v18366_v58 }
 0xbc1   :  { %v21299_v50 = vpop.f32.mrb[56].mxu1 }
 0xbc2   :  { %v21300_v48 = vpop.f32.mrb[57].mxu1 }
 0xbc3   :  { %v21301_v55 = vadd.f32 %v21300_v48, %v21299_v50  ;;  %v21302_v29 = vpop.f32.mrb[58].mxu1 }
 0xbc4   :  { %v21303_v42 = vpop.f32.mrb[59].mxu1 }
 0xbc5   :  { %v18445_v36 = vadd.f32 %v21301_v55, %v18404_v17  ;;  %v21304_v23 = vadd.f32 %v21303_v42, %v21302_v29 }
 0xbc7   :  { %v18448_v5 = vadd.f32 %v21304_v23, %v18407_v11 }
 0xbe1   :  { %v21321_v28 = vpop.f32.mrb[60].mxu1 }
 0xbe2   :  { %v21322_v47 = vpop.f32.mrb[61].mxu1 }
 0xbe3   :  { %v21323_v15 = vadd.f32 %v21322_v47, %v21321_v28  ;;  %v21324_v37 = vpop.f32.mrb[62].mxu1 }
 0xbe4   :  { %v21325_v22 = vpop.f32.mrb[63].mxu1 }
 0xbe5   :  { %v18486_v30 = vadd.f32 %v21323_v15, %v18445_v36  ;;  %v21326_v19 = vadd.f32 %v21325_v22, %v21324_v37 }
 0xbe7   :  { %18492 = vst [vmem:[%s28761_s7] sm:$0xff] %v18486_v30  ;;  %v18489_v44 = vadd.f32 %v21326_v19, %v18448_v5 }
 0xbe9   :  { %18493 = vst [vmem:[%s28761_s7 + $0x8] sm:$0xff] %v18489_v44 }

</bundles_post_ra>
